<compile_context>
chip_gen: v7x
topology: tpu7x:2x2x1
jax: 0.10.0
libtpu: 0.0.40
codegen_flags: <defaults>
</compile_context>

<pallas_src>
import functools
import math

import jax
import jax.numpy as jnp
from jax.experimental import pallas as pl
from jax.experimental.pallas import tpu as pltpu

NEG_SLOPE = 0.01  # nn.LeakyReLU() default negative_slope
LAYER_SIZES = [4, 1024, 512, 256, 128, 64, 32, 1]
_LANE = 128


def _leaky_relu(x):
    # one vmul + vmax instead of compare + select
    return jnp.maximum(x, NEG_SLOPE * x)


def _mlp_kernel(x_ref, *refs):
    """Fused MLP forward for one batch tile, computed transposed.

    x_ref : (4, block_b)              activations are (features, batch_tile)
    refs  : w1, b1, ..., w7, b7, out  wi: (out, in)   bi: (out, 1) f32
    out   : (1, block_b)              lane-dense output row
    """
    out_ref = refs[-1]
    param_refs = refs[:-1]
    n_layers = len(param_refs) // 2

    h = x_ref[...]                                    # dtype == layer-0 weight dtype
    for li in range(n_layers):
        w = param_refs[2 * li][...]                   # (out, in)
        b = param_refs[2 * li + 1][...]               # (out, 1) broadcasts over lanes
        acc = jnp.dot(w, h, preferred_element_type=jnp.float32) + b
        if li != n_layers - 1:
            # Fuse the (possible) bf16 downcast into the activation: hidden
            # activations are stored at the next layer's weight dtype, which
            # halves VMEM / spill traffic for the big early-layer tiles.
            nxt_dtype = param_refs[2 * (li + 1)].dtype
            h = _leaky_relu(acc).astype(nxt_dtype)
        else:
            h = acc                                   # final 32->1 stays f32
    out_ref[...] = h.astype(out_ref.dtype)            # (1, block_b) lane-dense store


def _round_up(x, m):
    return -(-x // m) * m


def _pick_block_b(batch, block_b_max):
    """Multiple of 128, capped at block_b_max, preferring >= 2 grid steps."""
    half = _round_up(max(1, -(-batch // 2)), _LANE)   # ceil(B/2) rounded to 128
    return max(_LANE, min(block_b_max, half))


def _resident_spec(shape):
    """Full-array block, constant index_map (never re-fetched across grid)."""
    idx = lambda i: (0,) * len(shape)
    try:
        # Single-buffer the resident params: the second pipeline buffer is
        # dead VMEM for a constant index_map.
        return pl.BlockSpec(shape, idx, pipeline_mode=pl.Buffered(1))
    except (TypeError, AttributeError):
        return pl.BlockSpec(shape, idx)


@functools.partial(jax.jit, static_argnames=("block_b_max", "weight_dtype"))
def regression_unit_price(x, params, block_b_max=1024, weight_dtype=jnp.bfloat16):
    """x: (B, 4) f32; params: list of (w, b), w (out, in), b (out,) — PyTorch layout."""
    assert block_b_max % _LANE == 0 and _LANE <= block_b_max <= 2048
    B = x.shape[0]
    block_b = _pick_block_b(B, block_b_max)
    nb = pl.cdiv(B, block_b)
    B_pad = nb * block_b

    n_layers = len(params)
    # First and last layers stay f32 for fidelity; bulk middle layers run at
    # weight_dtype (default bf16: half the HBM->VMEM traffic, native MXU rate).
    layer_dtypes = [jnp.float32] + [weight_dtype] * (n_layers - 2) + [jnp.float32]

    # Batch on the lane axis: (4, B_pad); zero-pad only when the batch is ragged.
    x_t = x.T.astype(layer_dtypes[0])
    if B_pad != B:
        x_t = jnp.pad(x_t, ((0, 0), (0, B_pad - B)))

    kernel_args = []
    for (w, b), dt in zip(params, layer_dtypes):
        kernel_args.append(w.astype(dt))
        # (out, 1) so biases broadcast along the lane (batch) axis; keep f32.
        kernel_args.append(b.reshape(-1, 1).astype(jnp.float32))

    # x / out tile only the batch (lane) axis; params are resident full blocks.
    in_specs = [pl.BlockSpec((LAYER_SIZES[0], block_b), lambda i: (0, i))]
    for p in kernel_args:
        in_specs.append(_resident_spec(p.shape))
    out_spec = pl.BlockSpec((1, block_b), lambda i: (0, i))

    flops = 2 * B * sum(LAYER_SIZES[i] * LAYER_SIZES[i + 1]
                        for i in range(len(LAYER_SIZES) - 1))
    bytes_accessed = (x_t.size * x_t.dtype.itemsize
                      + sum(p.size * p.dtype.itemsize for p in kernel_args)
                      + B_pad * 4)

    out = pl.pallas_call(
        _mlp_kernel,
        out_shape=jax.ShapeDtypeStruct((1, B_pad), jnp.float32),
        grid_spec=pltpu.PrefetchScalarGridSpec(
            num_scalar_prefetch=0,
            grid=(nb,),
            in_specs=in_specs,
            out_specs=out_spec,
        ),
        compiler_params=pltpu.CompilerParams(
            dimension_semantics=("parallel",),
            # Explicit scoped-VMEM limit: block_b=1024 intermediates (+ resident
            # params) exceed v5e's 16 MiB / v7x's 32 MiB defaults but fit 48 MiB.
            vmem_limit_bytes=48 * 1024 * 1024,
        ),
        cost_estimate=pl.CostEstimate(
            flops=flops, transcendentals=0, bytes_accessed=bytes_accessed),
    )(x_t, *kernel_args)

    return out[0, :B][:, None]                        # back to (B, 1)


def init_params(key):
    """PyTorch default nn.Linear init: U(-1/sqrt(fan_in), 1/sqrt(fan_in))."""
    params = []
    for li in range(len(LAYER_SIZES) - 1):
        fan_in, fan_out = LAYER_SIZES[li], LAYER_SIZES[li + 1]
        key, kw, kb = jax.random.split(key, 3)
        bound = 1.0 / math.sqrt(fan_in)
        w = jax.random.uniform(kw, (fan_out, fan_in), jnp.float32, -bound, bound)
        b = jax.random.uniform(kb, (fan_out,), jnp.float32, -bound, bound)
        params.append((w, b))
    return params


def reference_forward(x, params, weight_dtype=jnp.bfloat16):
    """Plain-JAX reference of the same MLP with the same per-layer dtype recipe."""
    n_layers = len(params)
    layer_dtypes = [jnp.float32] + [weight_dtype] * (n_layers - 2) + [jnp.float32]
    h = x.astype(layer_dtypes[0])
    for li, ((w, b), dt) in enumerate(zip(params, layer_dtypes)):
        acc = jnp.dot(h, w.astype(dt).T,
                      preferred_element_type=jnp.float32) + b.astype(jnp.float32)
        if li != n_layers - 1:
            h = _leaky_relu(acc).astype(layer_dtypes[li + 1])
        else:
            h = acc
    return h  # (B, 1)


if __name__ == "__main__":
    key = jax.random.PRNGKey(0)
    kx1, kx2, kp = jax.random.split(key, 3)
    params = init_params(kp)

    # Case 1: tiny batch, full f32 recipe (exact PyTorch semantics) -> tight check.
    B1 = 8
    x1 = jax.random.normal(kx1, (B1, 4), jnp.float32)
    y1 = jax.block_until_ready(
        regression_unit_price(x1, params, weight_dtype=jnp.float32))
    r1 = reference_forward(x1, params, weight_dtype=jnp.float32)
    assert y1.shape == (B1, 1)
    assert jnp.allclose(y1, r1, atol=1e-3, rtol=1e-3), "f32 path mismatch"

    # Case 2: ragged batch, default bf16 middle layers, multi-step grid
    # (200 rows -> block_b=128, 2 grid steps + zero-padded tail).
    B2 = 200
    x2 = jax.random.normal(kx2, (B2, 4), jnp.float32)
    y2 = jax.block_until_ready(regression_unit_price(x2, params))
    r2 = reference_forward(x2, params, weight_dtype=jnp.bfloat16)
    assert y2.shape == (B2, 1)
    assert jnp.allclose(y2, r2, atol=5e-2, rtol=5e-2), "bf16 path mismatch"

    print("KERNEL_OK")
</pallas_src>

<mosaic_0001>
module attributes {stable_mosaic.version = 11 : i64} {
  func.func @_mlp_kernel(%arg0: i32, %arg1: memref<4x128xf32, #tpu.memory_space<vmem>>, %arg2: memref<1024x4xf32, #tpu.memory_space<vmem>>, %arg3: memref<1024x1xf32, #tpu.memory_space<vmem>>, %arg4: memref<512x1024xf32, #tpu.memory_space<vmem>>, %arg5: memref<512x1xf32, #tpu.memory_space<vmem>>, %arg6: memref<256x512xf32, #tpu.memory_space<vmem>>, %arg7: memref<256x1xf32, #tpu.memory_space<vmem>>, %arg8: memref<128x256xf32, #tpu.memory_space<vmem>>, %arg9: memref<128x1xf32, #tpu.memory_space<vmem>>, %arg10: memref<64x128xf32, #tpu.memory_space<vmem>>, %arg11: memref<64x1xf32, #tpu.memory_space<vmem>>, %arg12: memref<32x64xf32, #tpu.memory_space<vmem>>, %arg13: memref<32x1xf32, #tpu.memory_space<vmem>>, %arg14: memref<1x32xf32, #tpu.memory_space<vmem>>, %arg15: memref<1x1xf32, #tpu.memory_space<vmem>>, %arg16: memref<1x128xf32, #tpu.memory_space<vmem>>) attributes {dimension_semantics = [#tpu.dimension_semantics<parallel>], iteration_bounds = array<i64: 1>, scalar_prefetch = 0 : i64, scratch_operands = 0 : i64, tpu.core_type = #tpu.core_type<tc>, window_params = [{transform_indices = @transform_0, window_bounds = array<i64: 4, 128>}, {pipeline_mode = #tpu.pipeline_mode<synchronous>, transform_indices = @transform_1, window_bounds = array<i64: 1024, 4>}, {pipeline_mode = #tpu.pipeline_mode<synchronous>, transform_indices = @transform_2, window_bounds = array<i64: 1024, 1>}, {pipeline_mode = #tpu.pipeline_mode<synchronous>, transform_indices = @transform_3, window_bounds = array<i64: 512, 1024>}, {pipeline_mode = #tpu.pipeline_mode<synchronous>, transform_indices = @transform_4, window_bounds = array<i64: 512, 1>}, {pipeline_mode = #tpu.pipeline_mode<synchronous>, transform_indices = @transform_5, window_bounds = array<i64: 256, 512>}, {pipeline_mode = #tpu.pipeline_mode<synchronous>, transform_indices = @transform_6, window_bounds = array<i64: 256, 1>}, {pipeline_mode = #tpu.pipeline_mode<synchronous>, transform_indices = @transform_7, window_bounds = array<i64: 128, 256>}, {pipeline_mode = #tpu.pipeline_mode<synchronous>, transform_indices = @transform_8, window_bounds = array<i64: 128, 1>}, {pipeline_mode = #tpu.pipeline_mode<synchronous>, transform_indices = @transform_9, window_bounds = array<i64: 64, 128>}, {pipeline_mode = #tpu.pipeline_mode<synchronous>, transform_indices = @transform_10, window_bounds = array<i64: 64, 1>}, {pipeline_mode = #tpu.pipeline_mode<synchronous>, transform_indices = @transform_11, window_bounds = array<i64: 32, 64>}, {pipeline_mode = #tpu.pipeline_mode<synchronous>, transform_indices = @transform_12, window_bounds = array<i64: 32, 1>}, {pipeline_mode = #tpu.pipeline_mode<synchronous>, transform_indices = @transform_13, window_bounds = array<i64: 1, 32>}, {pipeline_mode = #tpu.pipeline_mode<synchronous>, transform_indices = @transform_14, window_bounds = array<i64: 1, 1>}, {transform_indices = @transform_15, window_bounds = array<i64: 1, 128>}]} {
    %c0 = arith.constant 0 : index
    %c0_0 = arith.constant 0 : index
    %0 = vector.load %arg1[%c0, %c0_0] : memref<4x128xf32, #tpu.memory_space<vmem>>, vector<4x128xf32>
    %c0_1 = arith.constant 0 : index
    %c0_2 = arith.constant 0 : index
    %1 = vector.load %arg2[%c0_1, %c0_2] : memref<1024x4xf32, #tpu.memory_space<vmem>>, vector<1024x4xf32>
    %c0_3 = arith.constant 0 : index
    %c0_4 = arith.constant 0 : index
    %2 = vector.load %arg3[%c0_3, %c0_4] : memref<1024x1xf32, #tpu.memory_space<vmem>>, vector<1024x1xf32>
    %cst = arith.constant dense<0.000000e+00> : vector<1024x128xf32>
    %3 = tpu.matmul %1, %0, %cst {dimension_numbers = #tpu.dot_dimension_numbers<[1], [0], [0], [1], [0, 0, 1, 1], [], []>} : vector<1024x4xf32>, vector<4x128xf32>, vector<1024x128xf32> -> vector<1024x128xf32>
    %4 = vector.broadcast %2 : vector<1024x1xf32> to vector<1024x128xf32>
    %5 = arith.addf %3, %4 : vector<1024x128xf32>
    %cst_5 = arith.constant 0.00999999977 : f32
    %6 = vector.broadcast %cst_5 : f32 to vector<1024x128xf32>
    %7 = arith.mulf %6, %5 : vector<1024x128xf32>
    %8 = arith.maximumf %5, %7 : vector<1024x128xf32>
    %c0_6 = arith.constant 0 : index
    %c0_7 = arith.constant 0 : index
    %9 = vector.load %arg4[%c0_6, %c0_7] : memref<512x1024xf32, #tpu.memory_space<vmem>>, vector<512x1024xf32>
    %c0_8 = arith.constant 0 : index
    %c0_9 = arith.constant 0 : index
    %10 = vector.load %arg5[%c0_8, %c0_9] : memref<512x1xf32, #tpu.memory_space<vmem>>, vector<512x1xf32>
    %cst_10 = arith.constant dense<0.000000e+00> : vector<512x128xf32>
    %11 = tpu.matmul %9, %8, %cst_10 {dimension_numbers = #tpu.dot_dimension_numbers<[1], [0], [0], [1], [0, 0, 1, 1], [], []>} : vector<512x1024xf32>, vector<1024x128xf32>, vector<512x128xf32> -> vector<512x128xf32>
    %12 = vector.broadcast %10 : vector<512x1xf32> to vector<512x128xf32>
    %13 = arith.addf %11, %12 : vector<512x128xf32>
    %cst_11 = arith.constant 0.00999999977 : f32
    %14 = vector.broadcast %cst_11 : f32 to vector<512x128xf32>
    %15 = arith.mulf %14, %13 : vector<512x128xf32>
    %16 = arith.maximumf %13, %15 : vector<512x128xf32>
    %c0_12 = arith.constant 0 : index
    %c0_13 = arith.constant 0 : index
    %17 = vector.load %arg6[%c0_12, %c0_13] : memref<256x512xf32, #tpu.memory_space<vmem>>, vector<256x512xf32>
    %c0_14 = arith.constant 0 : index
    %c0_15 = arith.constant 0 : index
    %18 = vector.load %arg7[%c0_14, %c0_15] : memref<256x1xf32, #tpu.memory_space<vmem>>, vector<256x1xf32>
    %cst_16 = arith.constant dense<0.000000e+00> : vector<256x128xf32>
    %19 = tpu.matmul %17, %16, %cst_16 {dimension_numbers = #tpu.dot_dimension_numbers<[1], [0], [0], [1], [0, 0, 1, 1], [], []>} : vector<256x512xf32>, vector<512x128xf32>, vector<256x128xf32> -> vector<256x128xf32>
    %20 = vector.broadcast %18 : vector<256x1xf32> to vector<256x128xf32>
    %21 = arith.addf %19, %20 : vector<256x128xf32>
    %cst_17 = arith.constant 0.00999999977 : f32
    %22 = vector.broadcast %cst_17 : f32 to vector<256x128xf32>
    %23 = arith.mulf %22, %21 : vector<256x128xf32>
    %24 = arith.maximumf %21, %23 : vector<256x128xf32>
    %c0_18 = arith.constant 0 : index
    %c0_19 = arith.constant 0 : index
    %25 = vector.load %arg8[%c0_18, %c0_19] : memref<128x256xf32, #tpu.memory_space<vmem>>, vector<128x256xf32>
    %c0_20 = arith.constant 0 : index
    %c0_21 = arith.constant 0 : index
    %26 = vector.load %arg9[%c0_20, %c0_21] : memref<128x1xf32, #tpu.memory_space<vmem>>, vector<128x1xf32>
    %cst_22 = arith.constant dense<0.000000e+00> : vector<128x128xf32>
    %27 = tpu.matmul %25, %24, %cst_22 {dimension_numbers = #tpu.dot_dimension_numbers<[1], [0], [0], [1], [0, 0, 1, 1], [], []>} : vector<128x256xf32>, vector<256x128xf32>, vector<128x128xf32> -> vector<128x128xf32>
    %28 = vector.broadcast %26 : vector<128x1xf32> to vector<128x128xf32>
    %29 = arith.addf %27, %28 : vector<128x128xf32>
    %cst_23 = arith.constant 0.00999999977 : f32
    %30 = vector.broadcast %cst_23 : f32 to vector<128x128xf32>
    %31 = arith.mulf %30, %29 : vector<128x128xf32>
    %32 = arith.maximumf %29, %31 : vector<128x128xf32>
    %c0_24 = arith.constant 0 : index
    %c0_25 = arith.constant 0 : index
    %33 = vector.load %arg10[%c0_24, %c0_25] : memref<64x128xf32, #tpu.memory_space<vmem>>, vector<64x128xf32>
    %c0_26 = arith.constant 0 : index
    %c0_27 = arith.constant 0 : index
    %34 = vector.load %arg11[%c0_26, %c0_27] : memref<64x1xf32, #tpu.memory_space<vmem>>, vector<64x1xf32>
    %cst_28 = arith.constant dense<0.000000e+00> : vector<64x128xf32>
    %35 = tpu.matmul %33, %32, %cst_28 {dimension_numbers = #tpu.dot_dimension_numbers<[1], [0], [0], [1], [0, 0, 1, 1], [], []>} : vector<64x128xf32>, vector<128x128xf32>, vector<64x128xf32> -> vector<64x128xf32>
    %36 = vector.broadcast %34 : vector<64x1xf32> to vector<64x128xf32>
    %37 = arith.addf %35, %36 : vector<64x128xf32>
    %cst_29 = arith.constant 0.00999999977 : f32
    %38 = vector.broadcast %cst_29 : f32 to vector<64x128xf32>
    %39 = arith.mulf %38, %37 : vector<64x128xf32>
    %40 = arith.maximumf %37, %39 : vector<64x128xf32>
    %c0_30 = arith.constant 0 : index
    %c0_31 = arith.constant 0 : index
    %41 = vector.load %arg12[%c0_30, %c0_31] : memref<32x64xf32, #tpu.memory_space<vmem>>, vector<32x64xf32>
    %c0_32 = arith.constant 0 : index
    %c0_33 = arith.constant 0 : index
    %42 = vector.load %arg13[%c0_32, %c0_33] : memref<32x1xf32, #tpu.memory_space<vmem>>, vector<32x1xf32>
    %cst_34 = arith.constant dense<0.000000e+00> : vector<32x128xf32>
    %43 = tpu.matmul %41, %40, %cst_34 {dimension_numbers = #tpu.dot_dimension_numbers<[1], [0], [0], [1], [0, 0, 1, 1], [], []>} : vector<32x64xf32>, vector<64x128xf32>, vector<32x128xf32> -> vector<32x128xf32>
    %44 = vector.broadcast %42 : vector<32x1xf32> to vector<32x128xf32>
    %45 = arith.addf %43, %44 : vector<32x128xf32>
    %cst_35 = arith.constant 0.00999999977 : f32
    %46 = vector.broadcast %cst_35 : f32 to vector<32x128xf32>
    %47 = arith.mulf %46, %45 : vector<32x128xf32>
    %48 = arith.maximumf %45, %47 : vector<32x128xf32>
    %c0_36 = arith.constant 0 : index
    %c0_37 = arith.constant 0 : index
    %49 = vector.load %arg14[%c0_36, %c0_37] : memref<1x32xf32, #tpu.memory_space<vmem>>, vector<1x32xf32>
    %c0_38 = arith.constant 0 : index
    %c0_39 = arith.constant 0 : index
    %50 = vector.load %arg15[%c0_38, %c0_39] : memref<1x1xf32, #tpu.memory_space<vmem>>, vector<1x1xf32>
    %cst_40 = arith.constant dense<0.000000e+00> : vector<1x128xf32>
    %51 = tpu.matmul %49, %48, %cst_40 {dimension_numbers = #tpu.dot_dimension_numbers<[1], [0], [0], [1], [0, 0, 1, 1], [], []>} : vector<1x32xf32>, vector<32x128xf32>, vector<1x128xf32> -> vector<1x128xf32>
    %52 = vector.broadcast %50 : vector<1x1xf32> to vector<1x128xf32>
    %53 = arith.addf %51, %52 : vector<1x128xf32>
    %c0_41 = arith.constant 0 : index
    %c0_42 = arith.constant 0 : index
    %54 = vector.load %arg16[%c0_41, %c0_42] : memref<1x128xf32, #tpu.memory_space<vmem>>, vector<1x128xf32>
    tpu.vector_store %arg16[%c0_41, %c0_42], %53 {strides = array<i32>} : memref<1x128xf32, #tpu.memory_space<vmem>>, vector<1x128xf32>,
    return
  }
  func.func @transform_0(%arg0: i32) -> (i32, i32) {
    %c0_i32 = arith.constant 0 : i32
    %c0_i32_0 = arith.constant 0 : i32
    return %c0_i32, %arg0 : i32, i32
  }
  func.func @transform_1(%arg0: i32) -> (i32, i32) {
    %c0_i32 = arith.constant 0 : i32
    %c0_i32_0 = arith.constant 0 : i32
    %c0_i32_1 = arith.constant 0 : i32
    return %c0_i32, %c0_i32_0 : i32, i32
  }
  func.func @transform_2(%arg0: i32) -> (i32, i32) {
    %c0_i32 = arith.constant 0 : i32
    %c0_i32_0 = arith.constant 0 : i32
    %c0_i32_1 = arith.constant 0 : i32
    return %c0_i32, %c0_i32_0 : i32, i32
  }
  func.func @transform_3(%arg0: i32) -> (i32, i32) {
    %c0_i32 = arith.constant 0 : i32
    %c0_i32_0 = arith.constant 0 : i32
    %c0_i32_1 = arith.constant 0 : i32
    return %c0_i32, %c0_i32_0 : i32, i32
  }
  func.func @transform_4(%arg0: i32) -> (i32, i32) {
    %c0_i32 = arith.constant 0 : i32
    %c0_i32_0 = arith.constant 0 : i32
    %c0_i32_1 = arith.constant 0 : i32
    return %c0_i32, %c0_i32_0 : i32, i32
  }
  func.func @transform_5(%arg0: i32) -> (i32, i32) {
    %c0_i32 = arith.constant 0 : i32
    %c0_i32_0 = arith.constant 0 : i32
    %c0_i32_1 = arith.constant 0 : i32
    return %c0_i32, %c0_i32_0 : i32, i32
  }
  func.func @transform_6(%arg0: i32) -> (i32, i32) {
    %c0_i32 = arith.constant 0 : i32
    %c0_i32_0 = arith.constant 0 : i32
    %c0_i32_1 = arith.constant 0 : i32
    return %c0_i32, %c0_i32_0 : i32, i32
  }
  func.func @transform_7(%arg0: i32) -> (i32, i32) {
    %c0_i32 = arith.constant 0 : i32
    %c0_i32_0 = arith.constant 0 : i32
    %c0_i32_1 = arith.constant 0 : i32
    return %c0_i32, %c0_i32_0 : i32, i32
  }
  func.func @transform_8(%arg0: i32) -> (i32, i32) {
    %c0_i32 = arith.constant 0 : i32
    %c0_i32_0 = arith.constant 0 : i32
    %c0_i32_1 = arith.constant 0 : i32
    return %c0_i32, %c0_i32_0 : i32, i32
  }
  func.func @transform_9(%arg0: i32) -> (i32, i32) {
    %c0_i32 = arith.constant 0 : i32
    %c0_i32_0 = arith.constant 0 : i32
    %c0_i32_1 = arith.constant 0 : i32
    return %c0_i32, %c0_i32_0 : i32, i32
  }
  func.func @transform_10(%arg0: i32) -> (i32, i32) {
    %c0_i32 = arith.constant 0 : i32
    %c0_i32_0 = arith.constant 0 : i32
    %c0_i32_1 = arith.constant 0 : i32
    return %c0_i32, %c0_i32_0 : i32, i32
  }
  func.func @transform_11(%arg0: i32) -> (i32, i32) {
    %c0_i32 = arith.constant 0 : i32
    %c0_i32_0 = arith.constant 0 : i32
    %c0_i32_1 = arith.constant 0 : i32
    return %c0_i32, %c0_i32_0 : i32, i32
  }
  func.func @transform_12(%arg0: i32) -> (i32, i32) {
    %c0_i32 = arith.constant 0 : i32
    %c0_i32_0 = arith.constant 0 : i32
    %c0_i32_1 = arith.constant 0 : i32
    return %c0_i32, %c0_i32_0 : i32, i32
  }
  func.func @transform_13(%arg0: i32) -> (i32, i32) {
    %c0_i32 = arith.constant 0 : i32
    %c0_i32_0 = arith.constant 0 : i32
    %c0_i32_1 = arith.constant 0 : i32
    return %c0_i32, %c0_i32_0 : i32, i32
  }
  func.func @transform_14(%arg0: i32) -> (i32, i32) {
    %c0_i32 = arith.constant 0 : i32
    %c0_i32_0 = arith.constant 0 : i32
    %c0_i32_1 = arith.constant 0 : i32
    return %c0_i32, %c0_i32_0 : i32, i32
  }
  func.func @transform_15(%arg0: i32) -> (i32, i32) {
    %c0_i32 = arith.constant 0 : i32
    %c0_i32_0 = arith.constant 0 : i32
    return %c0_i32, %arg0 : i32, i32
  }
}

</mosaic_0001>

<bundles_post_ra>
// kernel: regression_unit_price.1
= control target key start
LH: loop header
LB: loop body
LE: loop exit
PB: predicated region body
PF: predicated region fallthrough
CT: control target
= control target key end

     0   :  { %s10586_s0 = inlined_call_operand.vmem [shape: f32[4,128], index: 0, kind: input, shape index: {}]   ;;  %s10587_s1 = inlined_call_operand.vmem [shape: f32[1024,4], index: 1, kind: input, shape index: {}]   ;;  %s10588_s2 = inlined_call_operand.vmem [shape: f32[1024,1], index: 2, kind: input, shape index: {}]   ;;  %s10589_s3 = inlined_call_operand.hbm [shape: f32[512,1024], index: 3, kind: input, shape index: {}]   ;;  %s10590_s4 = inlined_call_operand.vmem [shape: f32[512,1], index: 4, kind: input, shape index: {}]   ;;  %s10591_s5 = inlined_call_operand.hbm [shape: f32[256,512], index: 5, kind: input, shape index: {}]   ;;  %s10592_s6 = inlined_call_operand.vmem [shape: f32[256,1], index: 6, kind: input, shape index: {}]   ;;  %s10593_s7 = inlined_call_operand.hbm [shape: f32[128,256], index: 7, kind: input, shape index: {}]   ;;  %s10594_s8 = inlined_call_operand.vmem [shape: f32[128,1], index: 8, kind: input, shape index: {}]   ;;  %s10595_s9 = inlined_call_operand.hbm [shape: f32[64,128], index: 9, kind: input, shape index: {}]   ;;  %s10596_s10 = inlined_call_operand.vmem [shape: f32[64,1], index: 10, kind: input, shape index: {}]   ;;  %s10597_s11 = inlined_call_operand.hbm [shape: f32[32,64], index: 11, kind: input, shape index: {}]   ;;  %s10598_s12 = inlined_call_operand.vmem [shape: f32[32,1], index: 12, kind: input, shape index: {}]   ;;  %s10599_s13 = inlined_call_operand.hbm [shape: f32[1,32], index: 13, kind: input, shape index: {}]   ;;  %s10600_s14 = inlined_call_operand.<no memory space> [shape: f32[1,1], index: 14, kind: input, shape index: {}]   ;;  %s10601_s15 = inlined_call_operand.vmem [shape: f32[1,128], index: 15, kind: output, shape index: {}]  }
   0x1   :  { %v20_v0 = vstv %s10600_s14 }
   0x2   :  { %21 = vst [vmem:[#allocation2] sm:$0x1] %v20_v0 }
   0x3   :  { %22 = vsyncpa [#allocation4], 0 }
   0x4   :  { %23 = vsyncpa [#allocation6], 0 }
   0x5   :  { %24 = vsyncpa [#allocation9], 0 }
   0x6   :  { %25 = vsyncpa [#allocation12], 0  ;;  %s8192_s20 = smov [#allocation5]   ;;  %s8052_s24 = scalar_lea.hbm %s10591_s5, 16384 }
   0x7   :  { %s51_s21 = sshll.u32 %s8192_s20, 4  ;;  %p8053_p0 = scmp.ne.s32.totalorder %s10591_s5, %s8052_s24  ;;  %s52_s21 = int_to_ptr.vmem [resolvable:$true] %s51_s21 }
   0x8   :  { %p8056_p1 = scmp.lt.u32.totalorder %s8052_s24, %s10591_s5 }
   0xa   :  { %p8058_p2 = pnand %p8056_p1, %p8053_p0 }
   0xc   :  { %8061 = shalt.err (!%p8058_p2)
}
   0xd   :  { %s8062_s14 = scalar_lea.vmem %s52_s21, 16384  ;;  %p8067_p4 = scmp.lt.s32.totalorder %s52_s21, %s52_s21 }
   0xe   :  { %p8063_p3 = scmp.ne.s32.totalorder %s52_s21, %s8062_s14  ;;  %p8068_p5 = scmp.lt.s32.totalorder %s8062_s14, %s8062_s14 }
  0x10   :  { %p8069_p6 = por %p8068_p5, %p8067_p4 }
  0x12   :  { %p8070_p7 = pnand %p8069_p6, %p8063_p3 }
  0x14   :  { %8073 = shalt.err (!%p8070_p7)
}
  0x15   :  { %s8193_s29 = smov 512   ;;  %s8194_s30 = smov 32  }
  0x16   :  { %57 = dma.hbm_to_vmem [thread:$0]  %s10591_s5, 16384, %s52_s21, [#allocation6], %s8193_s29, %s8193_s29, %s8194_s30  }
  0x17   :  { %s8195_s18 = smov [#allocation8]   ;;  %s8074_s23 = scalar_lea.hbm %s10595_s9, 1024 }
  0x18   :  { %s79_s19 = sshll.u32 %s8195_s18, 4  ;;  %p8075_p8 = scmp.ne.s32.totalorder %s10595_s9, %s8074_s23  ;;  %s80_s19 = int_to_ptr.vmem [resolvable:$true] %s79_s19 }
  0x19   :  { %p8078_p9 = scmp.lt.u32.totalorder %s8074_s23, %s10595_s9 }
  0x1b   :  { %p8080_p10 = pnand %p8078_p9, %p8075_p8 }
  0x1d   :  { %8083 = shalt.err (!%p8080_p10)
}
  0x1e   :  { %s8084_s28 = scalar_lea.vmem %s80_s19, 1024  ;;  %p8089_p12 = scmp.lt.s32.totalorder %s80_s19, %s80_s19 }
  0x1f   :  { %p8085_p11 = scmp.ne.s32.totalorder %s80_s19, %s8084_s28  ;;  %p8090_p13 = scmp.lt.s32.totalorder %s8084_s28, %s8084_s28 }
  0x21   :  { %p8091_p0 = por %p8090_p13, %p8089_p12 }
  0x23   :  { %p8092_p1 = pnand %p8091_p0, %p8085_p11 }
  0x25   :  { %8095 = shalt.err (!%p8092_p1)
}
  0x26   :  { %s8196_s5 = smov 128   ;;  %s8197_s21 = smov 8  }
  0x27   :  { %85 = dma.hbm_to_vmem [thread:$0]  %s10595_s9, 1024, %s80_s19, [#allocation9], %s8196_s5, %s8196_s5, %s8197_s21  }
  0x28   :  { %s8198_s30 = smov [#allocation3]   ;;  %s8096_s20 = scalar_lea.hbm %s10589_s3, 65536 }
  0x29   :  { %s37_s16 = sshll.u32 %s8198_s30, 4  ;;  %p8097_p2 = scmp.ne.s32.totalorder %s10589_s3, %s8096_s20  ;;  %s38_s16 = int_to_ptr.vmem [resolvable:$true] %s37_s16 }
  0x2a   :  { %p8100_p3 = scmp.lt.u32.totalorder %s8096_s20, %s10589_s3 }
  0x2c   :  { %p8102_p4 = pnand %p8100_p3, %p8097_p2 }
  0x2e   :  { %8105 = shalt.err (!%p8102_p4)
}
  0x2f   :  { %s8106_s26 = scalar_lea.vmem %s38_s16, 65536  ;;  %p8111_p6 = scmp.lt.s32.totalorder %s38_s16, %s38_s16 }
  0x30   :  { %p8107_p5 = scmp.ne.s32.totalorder %s38_s16, %s8106_s26  ;;  %p8112_p7 = scmp.lt.s32.totalorder %s8106_s26, %s8106_s26 }
  0x32   :  { %p8113_p8 = por %p8112_p7, %p8111_p6 }
  0x34   :  { %p8114_p9 = pnand %p8113_p8, %p8107_p5 }
  0x36   :  { %8117 = shalt.err (!%p8114_p9)
}
  0x37   :  { %s8199_s9 = smov 1024   ;;  %s8200_s19 = smov 64  }
  0x38   :  { %43 = dma.hbm_to_vmem [thread:$0]  %s10589_s3, 65536, %s38_s16, [#allocation4], %s8199_s9, %s8199_s9, %s8200_s19  }
  0x39   :  { %s8201_s14 = smov [#allocation7]   ;;  %s8118_s18 = scalar_lea.hbm %s10593_s7, 4096 }
  0x3a   :  { %s65_s29 = sshll.u32 %s8201_s14, 4  ;;  %p8119_p10 = scmp.ne.s32.totalorder %s10593_s7, %s8118_s18  ;;  %s66_s29 = int_to_ptr.vmem [resolvable:$true] %s65_s29 }
  0x3b   :  { %p8122_p11 = scmp.lt.u32.totalorder %s8118_s18, %s10593_s7 }
  0x3d   :  { %p8124_p12 = pnand %p8122_p11, %p8119_p10 }
  0x3f   :  { %8127 = shalt.err (!%p8124_p12)
}
  0x40   :  { %s8128_s25 = scalar_lea.vmem %s66_s29, 4096  ;;  %p8133_p0 = scmp.lt.s32.totalorder %s66_s29, %s66_s29 }
  0x41   :  { %p8129_p13 = scmp.ne.s32.totalorder %s66_s29, %s8128_s25  ;;  %p8134_p1 = scmp.lt.s32.totalorder %s8128_s25, %s8128_s25 }
  0x43   :  { %p8135_p2 = por %p8134_p1, %p8133_p0 }
  0x45   :  { %p8136_p3 = pnand %p8135_p2, %p8129_p13 }
  0x47   :  { %8139 = shalt.err (!%p8136_p3)
}
  0x48   :  { %s8202_s3 = smov 256   ;;  %s8203_s16 = smov 16  }
  0x49   :  { %71 = dma.hbm_to_vmem [thread:$0]  %s10593_s7, 4096, %s66_s29, [#allocation6], %s8202_s3, %s8202_s3, %s8203_s16  }
  0x4a   :  { %s8204_s19 = smov [#allocation10]   ;;  %s8205_s28 = smov [#allocation11]  }
  0x4b   :  { %s93_s27 = sshll.u32 %s8204_s19, 4  ;;  %s108_s14 = sshll.u32 %s8205_s28, 4  ;;  %s94_s27 = int_to_ptr.vmem [resolvable:$true] %s93_s27  ;;  %s109_s14 = int_to_ptr.vmem [resolvable:$true] %s108_s14 }
  0x4c   :  { %s8140_s18 = scalar_lea.hbm %s10597_s11, 512 }
  0x4d   :  { %p8141_p4 = scmp.ne.s32.totalorder %s10597_s11, %s8140_s18  ;;  %p8144_p5 = scmp.lt.u32.totalorder %s8140_s18, %s10597_s11 }
  0x4f   :  { %p8146_p6 = pnand %p8144_p5, %p8141_p4 }
  0x51   :  { %8149 = shalt.err (!%p8146_p6)
}
  0x52   :  { %s8150_s7 = scalar_lea.vmem %s94_s27, 512  ;;  %p8155_p8 = scmp.lt.s32.totalorder %s94_s27, %s94_s27 }
  0x53   :  { %p8151_p7 = scmp.ne.s32.totalorder %s94_s27, %s8150_s7  ;;  %p8156_p9 = scmp.lt.s32.totalorder %s8150_s7, %s8150_s7 }
  0x55   :  { %p8157_p10 = por %p8156_p9, %p8155_p8 }
  0x57   :  { %p8158_p11 = pnand %p8157_p10, %p8151_p7 }
  0x59   :  { %8161 = shalt.err (!%p8158_p11)
}
  0x5a   :  { %99 = dma.hbm_to_vmem [thread:$0]  %s10597_s11, 512, %s94_s27, [#allocation9], %s8196_s5, %s8196_s5, %s8197_s21  }
  0x5b   :  { %s8162_s26 = scalar_lea.hbm %s10599_s13, 16 }
  0x5c   :  { %p8163_p12 = scmp.ne.s32.totalorder %s10599_s13, %s8162_s26  ;;  %p8166_p13 = scmp.lt.u32.totalorder %s8162_s26, %s10599_s13 }
  0x5e   :  { %p8168_p0 = pnand %p8166_p13, %p8163_p12 }
  0x60   :  { %8171 = shalt.err (!%p8168_p0)
}
  0x61   :  { %s8172_s17 = scalar_lea.vmem %s109_s14, 16  ;;  %s8176_s18 = scalar_lea.vmem %s109_s14, 32 }
  0x62   :  { %p8173_p1 = scmp.ne.s32.totalorder %s109_s14, %s8172_s17  ;;  %p8177_p2 = scmp.lt.s32.totalorder %s109_s14, %s109_s14 }
  0x63   :  { %p8178_p3 = scmp.lt.s32.totalorder %s8176_s18, %s8172_s17 }
  0x65   :  { %p8179_p4 = por %p8178_p3, %p8177_p2 }
  0x67   :  { %p8180_p5 = pnand %p8179_p4, %p8173_p1 }
  0x69   :  { %8183 = shalt.err (!%p8180_p5)
}
  0x6a   :  { %111 = dma.hbm_to_vmem [thread:$0]  %s10599_s13, 16, %s109_s14, [#allocation12]  }
  0x6b   :  { %8184 = dma.done.wait [#allocation4], 65536  }
  0x6c   :  { %8185 = vsyncadd [#allocation4], 4294901760 }
  0x6d   :  { %8186 = dma.done.wait [#allocation6], 20480  }
  0x6e   :  { %8187 = vsyncadd [#allocation6], 4294946816 }
  0x6f   :  { %8188 = dma.done.wait [#allocation9], 1536  }
  0x70   :  { %8189 = vsyncadd [#allocation9], 4294965760 }
  0x71   :  { %8190 = dma.done.wait [#allocation12], 16  }
  0x72   :  { %8191 = vsyncadd [#allocation12], 4294967280  ;;  %v8206_v1 = vmov 0   ;;  %vm1414_vm0 = vcmask 1043456   ;;  %vm1029_vm1 = vcmask 31744   ;;  %v263_v2 = vld [vmem:[%s10588_s2 + $0x10] sm:$0xff] }
  0x73   :  { %8051 = vset.pattern.permute.xlu1 %v8206_v1  ;;  %8050 = vset.pattern.permute.xlu0 %v8206_v1  ;;  %v261_v3 = vld [vmem:[%s10588_s2] sm:$0xff]  ;;  %v134_v6 = vld [vmem:[%s10587_s1 + $0x8] sm:$0xff]  ;;  %v264_v7 = vld [vmem:[%s10588_s2 + $0x18] sm:$0xff]  ;;  %vm6287_vm2 = vcmask 523264   ;;  %vm8208_vm3 = vmmov 0   ;;  %vm6404_vm4 = vcmask 261120  }
  0x74   :  { %v132_v4 = vld [vmem:[%s10586_s0] sm:$0xf]  ;;  %401 = vperm.xlu1 %8051, %v263_v2   ;;  %391 = vperm.xlu0 %8050, %v261_v3   ;;  %v262_v8 = vld [vmem:[%s10588_s2 + $0x8] sm:$0xff]  ;;  %v135_v9 = vld [vmem:[%s10587_s1 + $0x10] sm:$0xff] }
  0x75   :  { %v133_v5 = vld [vmem:[%s10587_s1] sm:$0xff]  ;;  %6871 = vmatprep.subr.msk.mxu0 %vm1414_vm0, %v132_v4  ;;  %v136_v10 = vld [vmem:[%s10587_s1 + $0x18] sm:$0xff]  ;;  %v266_v11 = vld [vmem:[%s10588_s2 + $0x28] sm:$0xff] }
  0x76   :  { %6873 = vmatprep.mubr.msk.f32.mxu0 %vm1029_vm1, %v133_v5  ;;  %6872 = vmatpush3.msk.msra.mxu0 %vm1414_vm0, %v132_v4  ;;  %v265_v12 = vld [vmem:[%s10588_s2 + $0x20] sm:$0xff]  ;;  %v138_v14 = vld [vmem:[%s10587_s1 + $0x28] sm:$0xff]  ;;  %v268_v15 = vld [vmem:[%s10588_s2 + $0x38] sm:$0xff] }
  0x77   :  { %6874 = vmatmul.mubr.msk.f32.vlgmr.msra.gmra.mrb[0].mxu0 %vm1029_vm1, %v134_v6  ;;  %v137_v13 = vld [vmem:[%s10587_s1 + $0x20] sm:$0xff]  ;;  %v267_v16 = vld [vmem:[%s10588_s2 + $0x30] sm:$0xff]  ;;  %v140_v18 = vld [vmem:[%s10587_s1 + $0x38] sm:$0xff] }
  0x78   :  { %406 = vperm.xlu1 %8051, %v264_v7   ;;  %396 = vperm.xlu0 %8050, %v262_v8   ;;  %v139_v17 = vld [vmem:[%s10587_s1 + $0x30] sm:$0xff]  ;;  %v270_v19 = vld [vmem:[%s10588_s2 + $0x48] sm:$0xff]  ;;  %v269_v20 = vld [vmem:[%s10588_s2 + $0x40] sm:$0xff] }
  0x79   :  { %6876 = vmatprep.mubr.msk.f32.mxu0 %vm1029_vm1, %v135_v9  ;;  %v141_v21 = vld [vmem:[%s10587_s1 + $0x40] sm:$0xff]  ;;  %v142_v22 = vld [vmem:[%s10587_s1 + $0x48] sm:$0xff]  ;;  %v272_v23 = vld [vmem:[%s10588_s2 + $0x58] sm:$0xff] }
  0x7a   :  { %v271_v24 = vld [vmem:[%s10588_s2 + $0x50] sm:$0xff]  ;;  %v144_v26 = vld [vmem:[%s10587_s1 + $0x58] sm:$0xff]  ;;  %v274_v27 = vld [vmem:[%s10588_s2 + $0x68] sm:$0xff] }
  0x7b   :  { %6877 = vmatmul.mubr.msk.f32.gmra.mrb[2].mxu0 %vm1029_vm1, %v136_v10  ;;  %v143_v25 = vld [vmem:[%s10587_s1 + $0x50] sm:$0xff]  ;;  %v273_v28 = vld [vmem:[%s10588_s2 + $0x60] sm:$0xff]  ;;  %v146_v30 = vld [vmem:[%s10587_s1 + $0x68] sm:$0xff] }
  0x7c   :  { %416 = vperm.xlu1 %8051, %v266_v11   ;;  %411 = vperm.xlu0 %8050, %v265_v12   ;;  %v145_v29 = vld [vmem:[%s10587_s1 + $0x60] sm:$0xff]  ;;  %v276_v31 = vld [vmem:[%s10588_s2 + $0x78] sm:$0xff]  ;;  %v275_v32 = vld [vmem:[%s10588_s2 + $0x70] sm:$0xff] }
  0x7d   :  { %6879 = vmatprep.mubr.msk.f32.mxu0 %vm1029_vm1, %v137_v13  ;;  %v147_v33 = vld [vmem:[%s10587_s1 + $0x70] sm:$0xff]  ;;  %v148_v34 = vld [vmem:[%s10587_s1 + $0x78] sm:$0xff]  ;;  %v278_v35 = vld [vmem:[%s10588_s2 + $0x88] sm:$0xff] }
  0x7e   :  { %v277_v36 = vld [vmem:[%s10588_s2 + $0x80] sm:$0xff]  ;;  %v150_v38 = vld [vmem:[%s10587_s1 + $0x88] sm:$0xff]  ;;  %v280_v39 = vld [vmem:[%s10588_s2 + $0x98] sm:$0xff] }
  0x7f   :  { %6880 = vmatmul.mubr.msk.f32.gmra.mrb[4].mxu0 %vm1029_vm1, %v138_v14  ;;  %v149_v37 = vld [vmem:[%s10587_s1 + $0x80] sm:$0xff]  ;;  %v279_v40 = vld [vmem:[%s10588_s2 + $0x90] sm:$0xff]  ;;  %v152_v42 = vld [vmem:[%s10587_s1 + $0x98] sm:$0xff] }
  0x80   :  { %426 = vperm.xlu1 %8051, %v268_v15   ;;  %421 = vperm.xlu0 %8050, %v267_v16   ;;  %v151_v41 = vld [vmem:[%s10587_s1 + $0x90] sm:$0xff]  ;;  %v282_v43 = vld [vmem:[%s10588_s2 + $0xa8] sm:$0xff]  ;;  %v281_v44 = vld [vmem:[%s10588_s2 + $0xa0] sm:$0xff] }
  0x81   :  { %6882 = vmatprep.mubr.msk.f32.mxu0 %vm1029_vm1, %v139_v17  ;;  %v153_v45 = vld [vmem:[%s10587_s1 + $0xa0] sm:$0xff]  ;;  %v154_v46 = vld [vmem:[%s10587_s1 + $0xa8] sm:$0xff]  ;;  %v284_v47 = vld [vmem:[%s10588_s2 + $0xb8] sm:$0xff] }
  0x82   :  { %v283_v48 = vld [vmem:[%s10588_s2 + $0xb0] sm:$0xff]  ;;  %v156_v50 = vld [vmem:[%s10587_s1 + $0xb8] sm:$0xff]  ;;  %v286_v51 = vld [vmem:[%s10588_s2 + $0xc8] sm:$0xff] }
  0x83   :  { %6883 = vmatmul.mubr.msk.f32.gmra.mrb[6].mxu0 %vm1029_vm1, %v140_v18  ;;  %v155_v49 = vld [vmem:[%s10587_s1 + $0xb0] sm:$0xff]  ;;  %v285_v52 = vld [vmem:[%s10588_s2 + $0xc0] sm:$0xff]  ;;  %v158_v54 = vld [vmem:[%s10587_s1 + $0xc8] sm:$0xff] }
  0x84   :  { %436 = vperm.xlu1 %8051, %v270_v19   ;;  %431 = vperm.xlu0 %8050, %v269_v20   ;;  %v157_v53 = vld [vmem:[%s10587_s1 + $0xc0] sm:$0xff]  ;;  %v288_v55 = vld [vmem:[%s10588_s2 + $0xd8] sm:$0xff]  ;;  %v287_v56 = vld [vmem:[%s10588_s2 + $0xd0] sm:$0xff] }
  0x85   :  { %6885 = vmatprep.mubr.msk.f32.mxu0 %vm1029_vm1, %v141_v21  ;;  %v159_v57 = vld [vmem:[%s10587_s1 + $0xd0] sm:$0xff]  ;;  %v160_v58 = vld [vmem:[%s10587_s1 + $0xd8] sm:$0xff]  ;;  %v290_v59 = vld [vmem:[%s10588_s2 + $0xe8] sm:$0xff] }
  0x86   :  { %v289_v60 = vld [vmem:[%s10588_s2 + $0xe0] sm:$0xff]  ;;  %v162_v62 = vld [vmem:[%s10587_s1 + $0xe8] sm:$0xff]  ;;  %v292_v63 = vld [vmem:[%s10588_s2 + $0xf8] sm:$0xff] }
  0x87   :  { %6886 = vmatmul.mubr.msk.f32.gmra.mrb[8].mxu0 %vm1029_vm1, %v142_v22  ;;  %v161_v61 = vld [vmem:[%s10587_s1 + $0xe0] sm:$0xff]  ;;  %v291_v0 = vld [vmem:[%s10588_s2 + $0xf0] sm:$0xff]  ;;  %v164_v2 = vld [vmem:[%s10587_s1 + $0xf8] sm:$0xff] }
  0x88   :  { %446 = vperm.xlu1 %8051, %v272_v23   ;;  %441 = vperm.xlu0 %8050, %v271_v24   ;;  %v163_v1 = vld [vmem:[%s10587_s1 + $0xf0] sm:$0xff]  ;;  %v294_v3 = vld [vmem:[%s10588_s2 + $0x108] sm:$0xff]  ;;  %v293_v4 = vld [vmem:[%s10588_s2 + $0x100] sm:$0xff] }
  0x89   :  { %6888 = vmatprep.mubr.msk.f32.mxu0 %vm1029_vm1, %v143_v25  ;;  %v165_v5 = vld [vmem:[%s10587_s1 + $0x100] sm:$0xff]  ;;  %v166_v6 = vld [vmem:[%s10587_s1 + $0x108] sm:$0xff]  ;;  %v296_v7 = vld [vmem:[%s10588_s2 + $0x118] sm:$0xff] }
  0x8a   :  { %v295_v8 = vld [vmem:[%s10588_s2 + $0x110] sm:$0xff]  ;;  %v168_v10 = vld [vmem:[%s10587_s1 + $0x118] sm:$0xff]  ;;  %v298_v11 = vld [vmem:[%s10588_s2 + $0x128] sm:$0xff] }
  0x8b   :  { %6889 = vmatmul.mubr.msk.f32.gmra.mrb[10].mxu0 %vm1029_vm1, %v144_v26  ;;  %v167_v9 = vld [vmem:[%s10587_s1 + $0x110] sm:$0xff]  ;;  %v297_v12 = vld [vmem:[%s10588_s2 + $0x120] sm:$0xff]  ;;  %v170_v14 = vld [vmem:[%s10587_s1 + $0x128] sm:$0xff] }
  0x8c   :  { %456 = vperm.xlu1 %8051, %v274_v27   ;;  %451 = vperm.xlu0 %8050, %v273_v28   ;;  %v169_v13 = vld [vmem:[%s10587_s1 + $0x120] sm:$0xff]  ;;  %v300_v15 = vld [vmem:[%s10588_s2 + $0x138] sm:$0xff]  ;;  %v299_v16 = vld [vmem:[%s10588_s2 + $0x130] sm:$0xff] }
  0x8d   :  { %6891 = vmatprep.mubr.msk.f32.mxu0 %vm1029_vm1, %v145_v29  ;;  %v171_v17 = vld [vmem:[%s10587_s1 + $0x130] sm:$0xff]  ;;  %v172_v18 = vld [vmem:[%s10587_s1 + $0x138] sm:$0xff]  ;;  %v302_v19 = vld [vmem:[%s10588_s2 + $0x148] sm:$0xff] }
  0x8e   :  { %v301_v20 = vld [vmem:[%s10588_s2 + $0x140] sm:$0xff]  ;;  %v174_v22 = vld [vmem:[%s10587_s1 + $0x148] sm:$0xff]  ;;  %v304_v23 = vld [vmem:[%s10588_s2 + $0x158] sm:$0xff] }
  0x8f   :  { %6892 = vmatmul.mubr.msk.f32.gmra.mrb[12].mxu0 %vm1029_vm1, %v146_v30  ;;  %v173_v21 = vld [vmem:[%s10587_s1 + $0x140] sm:$0xff]  ;;  %v303_v24 = vld [vmem:[%s10588_s2 + $0x150] sm:$0xff]  ;;  %v176_v26 = vld [vmem:[%s10587_s1 + $0x158] sm:$0xff] }
  0x90   :  { %466 = vperm.xlu1 %8051, %v276_v31   ;;  %461 = vperm.xlu0 %8050, %v275_v32   ;;  %v175_v25 = vld [vmem:[%s10587_s1 + $0x150] sm:$0xff]  ;;  %v306_v27 = vld [vmem:[%s10588_s2 + $0x168] sm:$0xff]  ;;  %v305_v28 = vld [vmem:[%s10588_s2 + $0x160] sm:$0xff] }
  0x91   :  { %6894 = vmatprep.mubr.msk.f32.mxu0 %vm1029_vm1, %v147_v33  ;;  %v177_v29 = vld [vmem:[%s10587_s1 + $0x160] sm:$0xff]  ;;  %v178_v30 = vld [vmem:[%s10587_s1 + $0x168] sm:$0xff]  ;;  %v308_v31 = vld [vmem:[%s10588_s2 + $0x178] sm:$0xff] }
  0x92   :  { %v307_v32 = vld [vmem:[%s10588_s2 + $0x170] sm:$0xff] }
  0x93   :  { %6895 = vmatmul.mubr.msk.f32.gmra.mrb[14].mxu0 %vm1029_vm1, %v148_v34  ;;  %v179_v33 = vld [vmem:[%s10587_s1 + $0x170] sm:$0xff]  ;;  %v180_v34 = vld [vmem:[%s10587_s1 + $0x178] sm:$0xff] }
  0x94   :  { %476 = vperm.xlu1 %8051, %v278_v35   ;;  %471 = vperm.xlu0 %8050, %v277_v36   ;;  %v310_v35 = vld [vmem:[%s10588_s2 + $0x188] sm:$0xff]  ;;  %v309_v36 = vld [vmem:[%s10588_s2 + $0x180] sm:$0xff] }
  0x95   :  { %6897 = vmatprep.mubr.msk.f32.mxu0 %vm1029_vm1, %v149_v37  ;;  %v181_v37 = vld [vmem:[%s10587_s1 + $0x180] sm:$0xff] }
  0x97   :  { %6898 = vmatmul.mubr.msk.f32.gmra.mrb[16].mxu0 %vm1029_vm1, %v150_v38  ;;  %v10602_v38 = vmov 0.0|0.0  }
  0x98   :  { %486 = vperm.xlu1 %8051, %v280_v39   ;;  %481 = vperm.xlu0 %8050, %v279_v40   ;;  %v182_v39 = vld [vmem:[%s10587_s1 + $0x188] sm:$0xff]  ;;  %v312_v40 = vld [vmem:[%s10588_s2 + $0x198] sm:$0xff] }
  0x99   :  { %6900 = vmatprep.mubr.msk.f32.mxu0 %vm1029_vm1, %v151_v41  ;;  %7142 = vmatprep.subr.bf16.mxu1 %v10602_v38  ;;  %v311_v41 = vld [vmem:[%s10588_s2 + $0x190] sm:$0xff] }
  0x9a   :  { %7286 = vmatprep.subr.bf16.mxu0 %v10602_v38 }
  0x9b   :  { %6901 = vmatmul.mubr.msk.f32.gmra.mrb[18].mxu0 %vm1029_vm1, %v152_v42  ;;  %v183_v42 = vld [vmem:[%s10587_s1 + $0x190] sm:$0xff] }
  0x9c   :  { %496 = vperm.xlu1 %8051, %v282_v43   ;;  %491 = vperm.xlu0 %8050, %v281_v44   ;;  %v184_v43 = vld [vmem:[%s10587_s1 + $0x198] sm:$0xff]  ;;  %v314_v44 = vld [vmem:[%s10588_s2 + $0x1a8] sm:$0xff] }
  0x9d   :  { %6903 = vmatprep.mubr.msk.f32.mxu0 %vm1029_vm1, %v153_v45  ;;  %v313_v45 = vld [vmem:[%s10588_s2 + $0x1a0] sm:$0xff] }
  0x9f   :  { %6904 = vmatmul.mubr.msk.f32.gmra.mrb[20].mxu0 %vm1029_vm1, %v154_v46  ;;  %v185_v46 = vld [vmem:[%s10587_s1 + $0x1a0] sm:$0xff] }
  0xa0   :  { %506 = vperm.xlu1 %8051, %v284_v47   ;;  %501 = vperm.xlu0 %8050, %v283_v48   ;;  %v186_v47 = vld [vmem:[%s10587_s1 + $0x1a8] sm:$0xff]  ;;  %v316_v48 = vld [vmem:[%s10588_s2 + $0x1b8] sm:$0xff] }
  0xa1   :  { %6906 = vmatprep.mubr.msk.f32.mxu0 %vm1029_vm1, %v155_v49  ;;  %v315_v49 = vld [vmem:[%s10588_s2 + $0x1b0] sm:$0xff] }
  0xa3   :  { %6907 = vmatmul.mubr.msk.f32.gmra.mrb[22].mxu0 %vm1029_vm1, %v156_v50  ;;  %v187_v50 = vld [vmem:[%s10587_s1 + $0x1b0] sm:$0xff] }
  0xa4   :  { %516 = vperm.xlu1 %8051, %v286_v51   ;;  %511 = vperm.xlu0 %8050, %v285_v52   ;;  %v188_v51 = vld [vmem:[%s10587_s1 + $0x1b8] sm:$0xff]  ;;  %v318_v52 = vld [vmem:[%s10588_s2 + $0x1c8] sm:$0xff] }
  0xa5   :  { %6909 = vmatprep.mubr.msk.f32.mxu0 %vm1029_vm1, %v157_v53  ;;  %v317_v53 = vld [vmem:[%s10588_s2 + $0x1c0] sm:$0xff] }
  0xa7   :  { %6910 = vmatmul.mubr.msk.f32.gmra.mrb[24].mxu0 %vm1029_vm1, %v158_v54  ;;  %v189_v54 = vld [vmem:[%s10587_s1 + $0x1c0] sm:$0xff] }
  0xa8   :  { %526 = vperm.xlu1 %8051, %v288_v55   ;;  %521 = vperm.xlu0 %8050, %v287_v56   ;;  %v190_v55 = vld [vmem:[%s10587_s1 + $0x1c8] sm:$0xff]  ;;  %v320_v56 = vld [vmem:[%s10588_s2 + $0x1d8] sm:$0xff] }
  0xa9   :  { %6912 = vmatprep.mubr.msk.f32.mxu0 %vm1029_vm1, %v159_v57  ;;  %v319_v57 = vld [vmem:[%s10588_s2 + $0x1d0] sm:$0xff] }
  0xab   :  { %6913 = vmatmul.mubr.msk.f32.gmra.mrb[26].mxu0 %vm1029_vm1, %v160_v58  ;;  %v191_v58 = vld [vmem:[%s10587_s1 + $0x1d0] sm:$0xff] }
  0xac   :  { %536 = vperm.xlu1 %8051, %v290_v59   ;;  %531 = vperm.xlu0 %8050, %v289_v60   ;;  %v192_v59 = vld [vmem:[%s10587_s1 + $0x1d8] sm:$0xff]  ;;  %v322_v60 = vld [vmem:[%s10588_s2 + $0x1e8] sm:$0xff] }
  0xad   :  { %6915 = vmatprep.mubr.msk.f32.mxu0 %vm1029_vm1, %v161_v61  ;;  %v321_v61 = vld [vmem:[%s10588_s2 + $0x1e0] sm:$0xff] }
  0xaf   :  { %6916 = vmatmul.mubr.msk.f32.gmra.mrb[28].mxu0 %vm1029_vm1, %v162_v62  ;;  %v193_v62 = vld [vmem:[%s10587_s1 + $0x1e0] sm:$0xff] }
  0xb0   :  { %546 = vperm.xlu1 %8051, %v292_v63   ;;  %541 = vperm.xlu0 %8050, %v291_v0   ;;  %v194_v63 = vld [vmem:[%s10587_s1 + $0x1e8] sm:$0xff]  ;;  %v324_v0 = vld [vmem:[%s10588_s2 + $0x1f8] sm:$0xff] }
  0xb1   :  { %6918 = vmatprep.mubr.msk.f32.mxu0 %vm1029_vm1, %v163_v1  ;;  %v323_v1 = vld [vmem:[%s10588_s2 + $0x1f0] sm:$0xff] }
  0xb3   :  { %6919 = vmatmul.mubr.msk.f32.gmra.mrb[30].mxu0 %vm1029_vm1, %v164_v2  ;;  %v195_v2 = vld [vmem:[%s10587_s1 + $0x1f0] sm:$0xff] }
  0xb4   :  { %556 = vperm.xlu1 %8051, %v294_v3   ;;  %551 = vperm.xlu0 %8050, %v293_v4   ;;  %v196_v3 = vld [vmem:[%s10587_s1 + $0x1f8] sm:$0xff]  ;;  %v326_v4 = vld [vmem:[%s10588_s2 + $0x208] sm:$0xff] }
  0xb5   :  { %6921 = vmatprep.mubr.msk.f32.mxu0 %vm1029_vm1, %v165_v5  ;;  %v325_v5 = vld [vmem:[%s10588_s2 + $0x200] sm:$0xff] }
  0xb7   :  { %6922 = vmatmul.mubr.msk.f32.gmra.mrb[32].mxu0 %vm1029_vm1, %v166_v6  ;;  %v197_v6 = vld [vmem:[%s10587_s1 + $0x200] sm:$0xff] }
  0xb8   :  { %566 = vperm.xlu1 %8051, %v296_v7   ;;  %561 = vperm.xlu0 %8050, %v295_v8  }
  0xb9   :  { %6924 = vmatprep.mubr.msk.f32.mxu0 %vm1029_vm1, %v167_v9  ;;  %v198_v9 = vld [vmem:[%s10587_s1 + $0x208] sm:$0xff] }
  0xbb   :  { %6925 = vmatmul.mubr.msk.f32.gmra.mrb[34].mxu0 %vm1029_vm1, %v168_v10  ;;  %v328_v10 = vld [vmem:[%s10588_s2 + $0x218] sm:$0xff] }
  0xbc   :  { %576 = vperm.xlu1 %8051, %v298_v11   ;;  %571 = vperm.xlu0 %8050, %v297_v12   ;;  %v327_v11 = vld [vmem:[%s10588_s2 + $0x210] sm:$0xff] }
  0xbd   :  { %6927 = vmatprep.mubr.msk.f32.mxu0 %vm1029_vm1, %v169_v13  ;;  %v199_v12 = vld [vmem:[%s10587_s1 + $0x210] sm:$0xff] }
  0xbf   :  { %6928 = vmatmul.mubr.msk.f32.gmra.mrb[36].mxu0 %vm1029_vm1, %v170_v14 }
  0xc0   :  { %586 = vperm.xlu1 %8051, %v300_v15   ;;  %581 = vperm.xlu0 %8050, %v299_v16   ;;  %v200_v15 = vld [vmem:[%s10587_s1 + $0x218] sm:$0xff]  ;;  %v330_v16 = vld [vmem:[%s10588_s2 + $0x228] sm:$0xff] }
  0xc1   :  { %6930 = vmatprep.mubr.msk.f32.mxu0 %vm1029_vm1, %v171_v17  ;;  %v329_v17 = vld [vmem:[%s10588_s2 + $0x220] sm:$0xff] }
  0xc3   :  { %6931 = vmatmul.mubr.msk.f32.gmra.mrb[38].mxu0 %vm1029_vm1, %v172_v18  ;;  %v201_v18 = vld [vmem:[%s10587_s1 + $0x220] sm:$0xff] }
  0xc4   :  { %596 = vperm.xlu1 %8051, %v302_v19   ;;  %591 = vperm.xlu0 %8050, %v301_v20  }
  0xc5   :  { %6933 = vmatprep.mubr.msk.f32.mxu0 %vm1029_vm1, %v173_v21  ;;  %v202_v21 = vld [vmem:[%s10587_s1 + $0x228] sm:$0xff] }
  0xc7   :  { %6934 = vmatmul.mubr.msk.f32.gmra.mrb[40].mxu0 %vm1029_vm1, %v174_v22  ;;  %v332_v22 = vld [vmem:[%s10588_s2 + $0x238] sm:$0xff] }
  0xc8   :  { %606 = vperm.xlu1 %8051, %v304_v23   ;;  %601 = vperm.xlu0 %8050, %v303_v24   ;;  %v331_v23 = vld [vmem:[%s10588_s2 + $0x230] sm:$0xff] }
  0xc9   :  { %6936 = vmatprep.mubr.msk.f32.mxu0 %vm1029_vm1, %v175_v25  ;;  %v203_v24 = vld [vmem:[%s10587_s1 + $0x230] sm:$0xff] }
  0xcb   :  { %6937 = vmatmul.mubr.msk.f32.gmra.mrb[42].mxu0 %vm1029_vm1, %v176_v26 }
  0xcc   :  { %616 = vperm.xlu1 %8051, %v306_v27   ;;  %611 = vperm.xlu0 %8050, %v305_v28   ;;  %v204_v27 = vld [vmem:[%s10587_s1 + $0x238] sm:$0xff]  ;;  %v334_v28 = vld [vmem:[%s10588_s2 + $0x248] sm:$0xff] }
  0xcd   :  { %6939 = vmatprep.mubr.msk.f32.mxu0 %vm1029_vm1, %v177_v29  ;;  %v333_v29 = vld [vmem:[%s10588_s2 + $0x240] sm:$0xff] }
  0xcf   :  { %6940 = vmatmul.mubr.msk.f32.gmra.mrb[44].mxu0 %vm1029_vm1, %v178_v30  ;;  %v205_v30 = vld [vmem:[%s10587_s1 + $0x240] sm:$0xff] }
  0xd0   :  { %626 = vperm.xlu1 %8051, %v308_v31   ;;  %621 = vperm.xlu0 %8050, %v307_v32  }
  0xd1   :  { %6942 = vmatprep.mubr.msk.f32.mxu0 %vm1029_vm1, %v179_v33  ;;  %v206_v33 = vld [vmem:[%s10587_s1 + $0x248] sm:$0xff] }
  0xd3   :  { %6943 = vmatmul.mubr.msk.f32.gmra.mrb[46].mxu0 %vm1029_vm1, %v180_v34  ;;  %v358_v34 = vld [vmem:[%s10588_s2 + $0x308] sm:$0xff] }
  0xd4   :  { %636 = vperm.xlu1 %8051, %v310_v35   ;;  %631 = vperm.xlu0 %8050, %v309_v36   ;;  %v357_v35 = vld [vmem:[%s10588_s2 + $0x300] sm:$0xff]  ;;  %v207_v36 = vld [vmem:[%s10587_s1 + $0x250] sm:$0xff] }
  0xd5   :  { %6945 = vmatprep.mubr.msk.f32.mxu0 %vm1029_vm1, %v181_v37 }
  0xd7   :  { %6946 = vmatmul.mubr.msk.f32.gmra.mrb[48].mxu0 %vm1029_vm1, %v182_v39 }
  0xd8   :  { %646 = vperm.xlu1 %8051, %v312_v40   ;;  %641 = vperm.xlu0 %8050, %v311_v41   ;;  %v208_v40 = vld [vmem:[%s10587_s1 + $0x258] sm:$0xff] }
  0xd9   :  { %6948 = vmatprep.mubr.msk.f32.mxu0 %vm1029_vm1, %v183_v42  ;;  %v336_v41 = vld [vmem:[%s10588_s2 + $0x258] sm:$0xff]  ;;  %v335_v42 = vld [vmem:[%s10588_s2 + $0x250] sm:$0xff] }
  0xdb   :  { %6949 = vmatmul.mubr.msk.f32.gmra.mrb[50].mxu0 %vm1029_vm1, %v184_v43  ;;  %v209_v43 = vld [vmem:[%s10587_s1 + $0x260] sm:$0xff] }
  0xdc   :  { %656 = vperm.xlu1 %8051, %v314_v44   ;;  %651 = vperm.xlu0 %8050, %v313_v45  }
  0xdd   :  { %6951 = vmatprep.mubr.msk.f32.mxu0 %vm1029_vm1, %v185_v46  ;;  %v210_v46 = vld [vmem:[%s10587_s1 + $0x268] sm:$0xff] }
  0xdf   :  { %6952 = vmatmul.mubr.msk.f32.gmra.mrb[52].mxu0 %vm1029_vm1, %v186_v47  ;;  %v360_v47 = vld [vmem:[%s10588_s2 + $0x318] sm:$0xff] }
  0xe0   :  { %666 = vperm.xlu1 %8051, %v316_v48   ;;  %661 = vperm.xlu0 %8050, %v315_v49   ;;  %v359_v48 = vld [vmem:[%s10588_s2 + $0x310] sm:$0xff] }
  0xe1   :  { %6954 = vmatprep.mubr.msk.f32.mxu0 %vm1029_vm1, %v187_v50  ;;  %v211_v49 = vld [vmem:[%s10587_s1 + $0x270] sm:$0xff] }
  0xe3   :  { %6955 = vmatmul.mubr.msk.f32.gmra.mrb[54].mxu0 %vm1029_vm1, %v188_v51 }
  0xe4   :  { %676 = vperm.xlu1 %8051, %v318_v52   ;;  %671 = vperm.xlu0 %8050, %v317_v53   ;;  %v212_v52 = vld [vmem:[%s10587_s1 + $0x278] sm:$0xff]  ;;  %v338_v53 = vld [vmem:[%s10588_s2 + $0x268] sm:$0xff] }
  0xe5   :  { %6957 = vmatprep.mubr.msk.f32.mxu0 %vm1029_vm1, %v189_v54  ;;  %v337_v54 = vld [vmem:[%s10588_s2 + $0x260] sm:$0xff] }
  0xe7   :  { %6958 = vmatmul.mubr.msk.f32.gmra.mrb[56].mxu0 %vm1029_vm1, %v190_v55  ;;  %v2380_v55 = vld [vmem:[#allocation3 + $0x8] sm:$0xff] }
  0xe8   :  { %686 = vperm.xlu1 %8051, %v320_v56   ;;  %681 = vperm.xlu0 %8050, %v319_v57   ;;  %v213_v56 = vld [vmem:[%s10587_s1 + $0x280] sm:$0xff] }
  0xe9   :  { %6960 = vmatprep.mubr.msk.f32.mxu0 %vm1029_vm1, %v191_v58  ;;  %3339 = vmatprep.mubr.f32.mxu1 %v2380_v55  ;;  %v346_v55 = vld [vmem:[%s10588_s2 + $0x2a8] sm:$0xff] }
  0xeb   :  { %6961 = vmatmul.mubr.msk.f32.gmra.mrb[58].mxu0 %vm1029_vm1, %v192_v59  ;;  %v214_v59 = vld [vmem:[%s10587_s1 + $0x288] sm:$0xff] }
  0xec   :  { %696 = vperm.xlu1 %8051, %v322_v60   ;;  %691 = vperm.xlu0 %8050, %v321_v61   ;;  %v362_v60 = vld [vmem:[%s10588_s2 + $0x328] sm:$0xff]  ;;  %v361_v61 = vld [vmem:[%s10588_s2 + $0x320] sm:$0xff] }
  0xed   :  { %6963 = vmatprep.mubr.msk.f32.mxu0 %vm1029_vm1, %v193_v62  ;;  %v215_v62 = vld [vmem:[%s10587_s1 + $0x290] sm:$0xff] }
  0xef   :  { %6964 = vmatmul.mubr.msk.f32.gmra.mrb[60].mxu0 %vm1029_vm1, %v194_v63 }
  0xf0   :  { %706 = vperm.xlu1 %8051, %v324_v0   ;;  %701 = vperm.xlu0 %8050, %v323_v1   ;;  %v216_v1 = vld [vmem:[%s10587_s1 + $0x298] sm:$0xff] }
  0xf1   :  { %6966 = vmatprep.mubr.msk.f32.mxu0 %vm1029_vm1, %v195_v2  ;;  %v340_v2 = vld [vmem:[%s10588_s2 + $0x278] sm:$0xff] }
  0xf3   :  { %6967 = vmatmul.mubr.msk.f32.gmra.mrb[62].mxu0 %vm1029_vm1, %v196_v3  ;;  %v8833_v7 = vpop.permute.xlu1 %401  ;;  %v8835_v8 = vpop.permute.xlu0 %391  ;;  %v339_v3 = vld [vmem:[%s10588_s2 + $0x270] sm:$0xff] }
  0xf4   :  { %716 = vperm.xlu1 %8051, %v326_v4   ;;  %711 = vperm.xlu0 %8050, %v325_v5   ;;  %v217_v4 = vld [vmem:[%s10587_s1 + $0x2a0] sm:$0xff] }
  0xf5   :  { %6969 = vmatprep.mubr.msk.f32.mxu0 %vm1029_vm1, %v197_v6 }
  0xf7   :  { %6970 = vmatmul.mubr.msk.f32.gmra.mrb[64].mxu0 %vm1029_vm1, %v198_v9  ;;  %v8851_v13 = vpop.permute.xlu1 %406  ;;  %v8853_v14 = vpop.permute.xlu0 %396  ;;  %v218_v9 = vld [vmem:[%s10587_s1 + $0x2a8] sm:$0xff] }
  0xf8   :  { %726 = vperm.xlu1 %8051, %v328_v10   ;;  %721 = vperm.xlu0 %8050, %v327_v11   ;;  %v364_v10 = vld [vmem:[%s10588_s2 + $0x338] sm:$0xff]  ;;  %v363_v11 = vld [vmem:[%s10588_s2 + $0x330] sm:$0xff] }
  0xf9   :  { %6972 = vmatprep.mubr.msk.f32.mxu0 %vm1029_vm1, %v199_v12  ;;  %v219_v12 = vld [vmem:[%s10587_s1 + $0x2b0] sm:$0xff] }
  0xfb   :  { %6973 = vmatmul.mubr.msk.f32.gmra.mrb[66].mxu0 %vm1029_vm1, %v200_v15  ;;  %v8869_v19 = vpop.permute.xlu1 %416  ;;  %v8871_v20 = vpop.permute.xlu0 %411 }
  0xfc   :  { %736 = vperm.xlu1 %8051, %v330_v16   ;;  %731 = vperm.xlu0 %8050, %v329_v17   ;;  %v220_v17 = vld [vmem:[%s10587_s1 + $0x2b8] sm:$0xff] }
  0xfd   :  { %6975 = vmatprep.mubr.msk.f32.mxu0 %vm1029_vm1, %v201_v18  ;;  %v342_v18 = vld [vmem:[%s10588_s2 + $0x288] sm:$0xff] }
  0xff   :  { %6976 = vmatmul.mubr.msk.f32.gmra.mrb[68].mxu0 %vm1029_vm1, %v202_v21  ;;  %v8887_v25 = vpop.permute.xlu1 %426  ;;  %v8889_v26 = vpop.permute.xlu0 %421  ;;  %v341_v21 = vld [vmem:[%s10588_s2 + $0x280] sm:$0xff] }
 0x100   :  { %746 = vperm.xlu1 %8051, %v332_v22   ;;  %741 = vperm.xlu0 %8050, %v331_v23   ;;  %v221_v22 = vld [vmem:[%s10587_s1 + $0x2c0] sm:$0xff] }
 0x101   :  { %6978 = vmatprep.mubr.msk.f32.mxu0 %vm1029_vm1, %v203_v24 }
 0x103   :  { %6979 = vmatmul.mubr.msk.f32.gmra.mrb[70].mxu0 %vm1029_vm1, %v204_v27  ;;  %v8905_v31 = vpop.permute.xlu1 %436  ;;  %v8907_v32 = vpop.permute.xlu0 %431  ;;  %v222_v27 = vld [vmem:[%s10587_s1 + $0x2c8] sm:$0xff] }
 0x104   :  { %756 = vperm.xlu1 %8051, %v334_v28   ;;  %751 = vperm.xlu0 %8050, %v333_v29   ;;  %v366_v28 = vld [vmem:[%s10588_s2 + $0x348] sm:$0xff]  ;;  %v365_v29 = vld [vmem:[%s10588_s2 + $0x340] sm:$0xff] }
 0x105   :  { %6981 = vmatprep.mubr.msk.f32.mxu0 %vm1029_vm1, %v205_v30  ;;  %v223_v30 = vld [vmem:[%s10587_s1 + $0x2d0] sm:$0xff] }
 0x107   :  { %6982 = vmatmul.mubr.msk.f32.gmra.mrb[72].mxu0 %vm1029_vm1, %v206_v33  ;;  %v8923_v37 = vpop.permute.xlu1 %446  ;;  %v8925_v39 = vpop.permute.xlu0 %441 }
 0x108   :  { %876 = vperm.xlu1 %8051, %v358_v34   ;;  %871 = vperm.xlu0 %8050, %v357_v35   ;;  %v224_v35 = vld [vmem:[%s10587_s1 + $0x2d8] sm:$0xff] }
 0x109   :  { %6984 = vmatprep.mubr.msk.f32.mxu0 %vm1029_vm1, %v207_v36  ;;  %v344_v36 = vld [vmem:[%s10588_s2 + $0x298] sm:$0xff] }
 0x10b   :  { %6985 = vmatmul.mubr.msk.f32.gmra.mrb[74].mxu0 %vm1029_vm1, %v208_v40  ;;  %v8941_v44 = vpop.permute.xlu1 %456  ;;  %v8943_v45 = vpop.permute.xlu0 %451  ;;  %v343_v40 = vld [vmem:[%s10588_s2 + $0x290] sm:$0xff] }
 0x10c   :  { %766 = vperm.xlu1 %8051, %v336_v41   ;;  %761 = vperm.xlu0 %8050, %v335_v42   ;;  %v225_v41 = vld [vmem:[%s10587_s1 + $0x2e0] sm:$0xff] }
 0x10d   :  { %6987 = vmatprep.mubr.msk.f32.mxu0 %vm1029_vm1, %v209_v43 }
 0x10f   :  { %6988 = vmatmul.mubr.msk.f32.gmra.mrb[76].mxu0 %vm1029_vm1, %v210_v46  ;;  %v8959_v50 = vpop.permute.xlu1 %466  ;;  %v8961_v51 = vpop.permute.xlu0 %461  ;;  %v226_v46 = vld [vmem:[%s10587_s1 + $0x2e8] sm:$0xff] }
 0x110   :  { %886 = vperm.xlu1 %8051, %v360_v47   ;;  %881 = vperm.xlu0 %8050, %v359_v48   ;;  %v368_v47 = vld [vmem:[%s10588_s2 + $0x358] sm:$0xff]  ;;  %v367_v48 = vld [vmem:[%s10588_s2 + $0x350] sm:$0xff] }
 0x111   :  { %6990 = vmatprep.mubr.msk.f32.mxu0 %vm1029_vm1, %v211_v49  ;;  %v227_v49 = vld [vmem:[%s10587_s1 + $0x2f0] sm:$0xff] }
 0x113   :  { %6991 = vmatmul.mubr.msk.f32.gmra.mrb[78].mxu0 %vm1029_vm1, %v212_v52  ;;  %v8977_v57 = vpop.permute.xlu1 %476  ;;  %v8979_v58 = vpop.permute.xlu0 %471 }
 0x114   :  { %776 = vperm.xlu1 %8051, %v338_v53   ;;  %771 = vperm.xlu0 %8050, %v337_v54   ;;  %v228_v54 = vld [vmem:[%s10587_s1 + $0x2f8] sm:$0xff] }
 0x115   :  { %6993 = vmatprep.mubr.msk.f32.mxu0 %vm1029_vm1, %v213_v56  ;;  %v345_v56 = vld [vmem:[%s10588_s2 + $0x2a0] sm:$0xff] }
 0x117   :  { %6994 = vmatmul.mubr.msk.f32.gmra.mrb[80].mxu0 %vm1029_vm1, %v214_v59  ;;  %v8995_v63 = vpop.permute.xlu1 %486  ;;  %v8997_v0 = vpop.permute.xlu0 %481  ;;  %v229_v59 = vld [vmem:[%s10587_s1 + $0x300] sm:$0xff] }
 0x118   :  { %896 = vperm.xlu1 %8051, %v362_v60   ;;  %891 = vperm.xlu0 %8050, %v361_v61  }
 0x119   :  { %6996 = vmatprep.mubr.msk.f32.mxu0 %vm1029_vm1, %v215_v62  ;;  %v230_v62 = vld [vmem:[%s10587_s1 + $0x308] sm:$0xff] }
 0x11b   :  { %6997 = vmatmul.mubr.msk.f32.gmra.mrb[82].mxu0 %vm1029_vm1, %v216_v1  ;;  %v9013_v5 = vpop.permute.xlu1 %496  ;;  %v9015_v6 = vpop.permute.xlu0 %491  ;;  %v370_v1 = vld [vmem:[%s10588_s2 + $0x368] sm:$0xff] }
 0x11c   :  { %786 = vperm.xlu1 %8051, %v340_v2   ;;  %781 = vperm.xlu0 %8050, %v339_v3   ;;  %v369_v2 = vld [vmem:[%s10588_s2 + $0x360] sm:$0xff]  ;;  %v231_v3 = vld [vmem:[%s10587_s1 + $0x310] sm:$0xff] }
 0x11d   :  { %6999 = vmatprep.mubr.msk.f32.mxu0 %vm1029_vm1, %v217_v4 }
 0x11f   :  { %7000 = vmatmul.mubr.msk.f32.gmra.mrb[84].mxu0 %vm1029_vm1, %v218_v9  ;;  %v9031_v15 = vpop.permute.xlu1 %506  ;;  %v9033_v16 = vpop.permute.xlu0 %501 }
 0x120   :  { %906 = vperm.xlu1 %8051, %v364_v10   ;;  %901 = vperm.xlu0 %8050, %v363_v11   ;;  %v232_v10 = vld [vmem:[%s10587_s1 + $0x318] sm:$0xff] }
 0x121   :  { %7002 = vmatprep.mubr.msk.f32.mxu0 %vm1029_vm1, %v219_v12  ;;  %v348_v11 = vld [vmem:[%s10588_s2 + $0x2b8] sm:$0xff]  ;;  %v347_v12 = vld [vmem:[%s10588_s2 + $0x2b0] sm:$0xff] }
 0x123   :  { %7003 = vmatmul.mubr.msk.f32.gmra.mrb[86].mxu0 %vm1029_vm1, %v220_v17  ;;  %v9049_v23 = vpop.permute.xlu1 %516  ;;  %v9051_v24 = vpop.permute.xlu0 %511  ;;  %v233_v17 = vld [vmem:[%s10587_s1 + $0x320] sm:$0xff] }
 0x124   :  { %796 = vperm.xlu1 %8051, %v342_v18   ;;  %791 = vperm.xlu0 %8050, %v341_v21  }
 0x125   :  { %7005 = vmatprep.mubr.msk.f32.mxu0 %vm1029_vm1, %v221_v22  ;;  %v234_v22 = vld [vmem:[%s10587_s1 + $0x328] sm:$0xff] }
 0x127   :  { %7006 = vmatmul.mubr.msk.f32.gmra.mrb[88].mxu0 %vm1029_vm1, %v222_v27  ;;  %v9067_v33 = vpop.permute.xlu1 %526  ;;  %v9069_v34 = vpop.permute.xlu0 %521  ;;  %v372_v27 = vld [vmem:[%s10588_s2 + $0x378] sm:$0xff] }
 0x128   :  { %916 = vperm.xlu1 %8051, %v366_v28   ;;  %911 = vperm.xlu0 %8050, %v365_v29   ;;  %v371_v28 = vld [vmem:[%s10588_s2 + $0x370] sm:$0xff] }
 0x129   :  { %7008 = vmatprep.mubr.msk.f32.mxu0 %vm1029_vm1, %v223_v30  ;;  %v235_v29 = vld [vmem:[%s10587_s1 + $0x330] sm:$0xff] }
 0x12b   :  { %7009 = vmatmul.mubr.msk.f32.gmra.mrb[90].mxu0 %vm1029_vm1, %v224_v35  ;;  %v9085_v42 = vpop.permute.xlu1 %536  ;;  %v9087_v43 = vpop.permute.xlu0 %531 }
 0x12c   :  { %806 = vperm.xlu1 %8051, %v344_v36   ;;  %801 = vperm.xlu0 %8050, %v343_v40   ;;  %v236_v36 = vld [vmem:[%s10587_s1 + $0x338] sm:$0xff]  ;;  %v350_v40 = vld [vmem:[%s10588_s2 + $0x2c8] sm:$0xff] }
 0x12d   :  { %7011 = vmatprep.mubr.msk.f32.mxu0 %vm1029_vm1, %v225_v41  ;;  %v349_v41 = vld [vmem:[%s10588_s2 + $0x2c0] sm:$0xff] }
 0x12f   :  { %7012 = vmatmul.mubr.msk.f32.gmra.mrb[92].mxu0 %vm1029_vm1, %v226_v46  ;;  %v9103_v52 = vpop.permute.xlu1 %546  ;;  %v9105_v53 = vpop.permute.xlu0 %541  ;;  %v237_v46 = vld [vmem:[%s10587_s1 + $0x340] sm:$0xff] }
 0x130   :  { %926 = vperm.xlu1 %8051, %v368_v47   ;;  %921 = vperm.xlu0 %8050, %v367_v48  }
 0x131   :  { %7014 = vmatprep.mubr.msk.f32.mxu0 %vm1029_vm1, %v227_v49  ;;  %v238_v49 = vld [vmem:[%s10587_s1 + $0x348] sm:$0xff] }
 0x133   :  { %7015 = vmatmul.mubr.msk.f32.gmra.mrb[94].mxu0 %vm1029_vm1, %v228_v54  ;;  %v9121_v60 = vpop.permute.xlu1 %556  ;;  %v9123_v61 = vpop.permute.xlu0 %551  ;;  %v374_v54 = vld [vmem:[%s10588_s2 + $0x388] sm:$0xff] }
 0x134   :  { %816 = vperm.xlu1 %8051, %v346_v55   ;;  %811 = vperm.xlu0 %8050, %v345_v56   ;;  %v373_v55 = vld [vmem:[%s10588_s2 + $0x380] sm:$0xff]  ;;  %v239_v56 = vld [vmem:[%s10587_s1 + $0x350] sm:$0xff] }
 0x135   :  { %7017 = vmatprep.mubr.msk.f32.mxu0 %vm1029_vm1, %v229_v59 }
 0x137   :  { %7018 = vmatmul.mubr.msk.f32.gmra.mrb[96].mxu0 %vm1029_vm1, %v230_v62  ;;  %v9139_v4 = vpop.permute.xlu1 %566  ;;  %v9141_v9 = vpop.permute.xlu0 %561 }
 0x138   :  { %936 = vperm.xlu1 %8051, %v370_v1   ;;  %931 = vperm.xlu0 %8050, %v369_v2   ;;  %v240_v1 = vld [vmem:[%s10587_s1 + $0x358] sm:$0xff] }
 0x139   :  { %7020 = vmatprep.mubr.msk.f32.mxu0 %vm1029_vm1, %v231_v3  ;;  %v352_v2 = vld [vmem:[%s10588_s2 + $0x2d8] sm:$0xff]  ;;  %v351_v3 = vld [vmem:[%s10588_s2 + $0x2d0] sm:$0xff] }
 0x13b   :  { %7021 = vmatmul.mubr.msk.f32.gmra.mrb[98].mxu0 %vm1029_vm1, %v232_v10  ;;  %v9157_v18 = vpop.permute.xlu1 %576  ;;  %v9159_v21 = vpop.permute.xlu0 %571 }
 0x13c   :  { %826 = vperm.xlu1 %8051, %v348_v11   ;;  %821 = vperm.xlu0 %8050, %v347_v12   ;;  %v241_v11 = vld [vmem:[%s10587_s1 + $0x360] sm:$0xff] }
 0x13d   :  { %7023 = vmatprep.mubr.msk.f32.mxu0 %vm1029_vm1, %v233_v17 }
 0x13f   :  { %7024 = vmatmul.mubr.msk.f32.gmra.mrb[100].mxu0 %vm1029_vm1, %v234_v22  ;;  %v9175_v30 = vpop.permute.xlu1 %586  ;;  %v9177_v35 = vpop.permute.xlu0 %581 }
 0x140   :  { %946 = vperm.xlu1 %8051, %v372_v27   ;;  %941 = vperm.xlu0 %8050, %v371_v28   ;;  %v242_v28 = vld [vmem:[%s10587_s1 + $0x368] sm:$0xff] }
 0x141   :  { %7026 = vmatprep.mubr.msk.f32.mxu0 %vm1029_vm1, %v235_v29 }
 0x143   :  { %7027 = vmatmul.mubr.msk.f32.gmra.mrb[102].mxu0 %vm1029_vm1, %v236_v36  ;;  %v9193_v47 = vpop.permute.xlu1 %596  ;;  %v9195_v48 = vpop.permute.xlu0 %591  ;;  %v376_v36 = vld [vmem:[%s10588_s2 + $0x398] sm:$0xff] }
 0x144   :  { %836 = vperm.xlu1 %8051, %v350_v40   ;;  %831 = vperm.xlu0 %8050, %v349_v41  }
 0x145   :  { %7029 = vmatprep.mubr.msk.f32.mxu0 %vm1029_vm1, %v237_v46  ;;  %v243_v46 = vld [vmem:[%s10587_s1 + $0x370] sm:$0xff] }
 0x147   :  { %7030 = vmatmul.mubr.msk.f32.gmra.mrb[104].mxu0 %vm1029_vm1, %v238_v49  ;;  %v9211_v59 = vpop.permute.xlu1 %606  ;;  %v9213_v62 = vpop.permute.xlu0 %601 }
 0x148   :  { %956 = vperm.xlu1 %8051, %v374_v54   ;;  %951 = vperm.xlu0 %8050, %v373_v55  }
 0x149   :  { %7032 = vmatprep.mubr.msk.f32.mxu0 %vm1029_vm1, %v239_v56 }
 0x14a   :  { %v6875_v10 = vpop.f32.mrb[0].mxu0 }
 0x14b   :  { %v1484_v12 = vpop.f32.mrb[1].mxu0  ;;  %7033 = vmatmul.mubr.msk.f32.gmra.mrb[106].mxu0 %vm1029_vm1, %v240_v1  ;;  %v9229_v17 = vpop.permute.xlu1 %616  ;;  %v1490_v22 = vadd.f32 %v6875_v10, %v8853_v14  ;;  %v375_v14 = vld [vmem:[%s10588_s2 + $0x390] sm:$0xff] }
 0x14c   :  { %v9232_v27 = vpop.permute.xlu0 %611  ;;  %846 = vperm.xlu1 %8051, %v352_v2   ;;  %841 = vperm.xlu0 %8050, %v351_v3   ;;  %v1485_v29 = vadd.f32 %v1484_v12, %v8835_v8  ;;  %v244_v3 = vld [vmem:[%s10587_s1 + $0x378] sm:$0xff] }
 0x14d   :  { %7035 = vmatprep.mubr.msk.f32.mxu0 %vm1029_vm1, %v241_v11  ;;  %v2124_v40 = vmul.f32 0.01, %v1490_v22 }
 0x14e   :  { %v6878_v41 = vpop.f32.mrb[2].mxu0  ;;  %v2123_v49 = vmul.f32 0.01, %v1485_v29 }
 0x14f   :  { %v1500_v54 = vadd.f32 %v6878_v41, %v8851_v13  ;;  %v1494_v8 = vpop.f32.mrb[3].mxu0  ;;  %7036 = vmatmul.mubr.msk.f32.gmra.mrb[108].mxu0 %vm1029_vm1, %v242_v28  ;;  %v9250_v55 = vpop.permute.xlu1 %626  ;;  %v2252_v56 = vmax.f32 %v1490_v22, %v2124_v40  ;;  %v354_v13 = vld [vmem:[%s10588_s2 + $0x2e8] sm:$0xff] }
 0x150   :  { %v1495_v1 = vadd.f32 %v1494_v8, %v8833_v7  ;;  %v9253_v2 = vpop.permute.xlu0 %621  ;;  %966 = vperm.xlu1 %8051, %v376_v36   ;;  %961 = vperm.xlu0 %8050, %v375_v14   ;;  %v2251_v10 = vmax.f32 %v1485_v29, %v2123_v49  ;;  %v353_v7 = vld [vmem:[%s10588_s2 + $0x2e0] sm:$0xff]  ;;  %v246_v8 = vld [vmem:[%s10587_s1 + $0x388] sm:$0xff] }
 0x151   :  { %v2126_v11 = vmul.f32 0.01, %v1500_v54  ;;  %7038 = vmatprep.mubr.msk.f32.mxu0 %vm1029_vm1, %v243_v46  ;;  %v245_v36 = vld [vmem:[%s10587_s1 + $0x380] sm:$0xff] }
 0x152   :  { %v2125_v12 = vmul.f32 0.01, %v1495_v1  ;;  %v6881_v22 = vpop.f32.mrb[4].mxu0  ;;  %v7143_v28 = vpack.c.bf16 %v2252_v56, %v2251_v10 }
 0x153   :  { %v1510_v29 = vadd.f32 %v6881_v22, %v8869_v19  ;;  %v1504_v14 = vpop.f32.mrb[5].mxu0  ;;  %7039 = vmatmul.mubr.msk.f32.gmra.mrb[110].mxu0 %vm1029_vm1, %v244_v3  ;;  %v9270_v40 = vpop.permute.xlu1 %636  ;;  %v2254_v41 = vmax.f32 %v1500_v54, %v2126_v11  ;;  %v378_v19 = vld [vmem:[%s10588_s2 + $0x3a8] sm:$0xff]  ;;  %v377_v11 = vld [vmem:[%s10588_s2 + $0x3a0] sm:$0xff] }
 0x154   :  { %v1505_v46 = vadd.f32 %v1504_v14, %v8871_v20  ;;  %v9273_v49 = vpop.permute.xlu0 %631  ;;  %7144 = vmatpush1.bf16.msra.mxu1 %v7143_v28  ;;  %856 = vperm.xlu1 %8051, %v354_v13   ;;  %v2253_v56 = vmax.f32 %v1495_v1, %v2125_v12  ;;  %v247_v1 = vld [vmem:[%s10587_s1 + $0x390] sm:$0xff]  ;;  %v248_v14 = vld [vmem:[%s10587_s1 + $0x398] sm:$0xff] }
 0x155   :  { %v2128_v10 = vmul.f32 0.01, %v1510_v29  ;;  %851 = vperm.xlu0 %8050, %v353_v7   ;;  %7041 = vmatprep.mubr.msk.f32.mxu0 %vm1029_vm1, %v245_v36 }
 0x156   :  { %v2127_v54 = vmul.f32 0.01, %v1505_v46  ;;  %v6884_v3 = vpop.f32.mrb[6].mxu0  ;;  %7145 = vmatprep.subr.bf16.mxu1 %v10602_v38  ;;  %v7146_v20 = vpack.c.bf16 %v2254_v41, %v2253_v56 }
 0x157   :  { %v1520_v13 = vadd.f32 %v6884_v3, %v8887_v25  ;;  %v1514_v12 = vpop.f32.mrb[7].mxu0  ;;  %7042 = vmatmul.mubr.msk.f32.gmra.mrb[112].mxu0 %vm1029_vm1, %v246_v8  ;;  %v9291_v22 = vpop.permute.xlu1 %646  ;;  %v2256_v28 = vmax.f32 %v1510_v29, %v2128_v10  ;;  %v356_v25 = vld [vmem:[%s10588_s2 + $0x2f8] sm:$0xff]  ;;  %v355_v10 = vld [vmem:[%s10588_s2 + $0x2f0] sm:$0xff] }
 0x158   :  { %v1515_v7 = vadd.f32 %v1514_v12, %v8889_v26  ;;  %v9294_v36 = vpop.permute.xlu0 %641  ;;  %7147 = vmatpush1.bf16.msra.mxu1 %v7146_v20  ;;  %976 = vperm.xlu1 %8051, %v378_v19   ;;  %v2255_v41 = vmax.f32 %v1505_v46, %v2127_v54  ;;  %v249_v46 = vld [vmem:[%s10587_s1 + $0x3a0] sm:$0xff]  ;;  %v250_v12 = vld [vmem:[%s10587_s1 + $0x3a8] sm:$0xff] }
 0x159   :  { %v2130_v56 = vmul.f32 0.01, %v1520_v13  ;;  %971 = vperm.xlu0 %8050, %v377_v11   ;;  %7044 = vmatprep.mubr.msk.f32.mxu0 %vm1029_vm1, %v247_v1 }
 0x15a   :  { %v2129_v29 = vmul.f32 0.01, %v1515_v7  ;;  %v6887_v8 = vpop.f32.mrb[8].mxu0  ;;  %7148 = vmatprep.subr.bf16.mxu1 %v10602_v38  ;;  %v7149_v26 = vpack.c.bf16 %v2256_v28, %v2255_v41 }
 0x15b   :  { %v1530_v19 = vadd.f32 %v6887_v8, %v8905_v31  ;;  %v1524_v54 = vpop.f32.mrb[9].mxu0  ;;  %7045 = vmatmul.mubr.msk.f32.gmra.mrb[114].mxu0 %vm1029_vm1, %v248_v14  ;;  %v9312_v3 = vpop.permute.xlu1 %656  ;;  %v2258_v20 = vmax.f32 %v1520_v13, %v2130_v56  ;;  %v380_v31 = vld [vmem:[%s10588_s2 + $0x3b8] sm:$0xff]  ;;  %v379_v56 = vld [vmem:[%s10588_s2 + $0x3b0] sm:$0xff] }
 0x15c   :  { %v1525_v11 = vadd.f32 %v1524_v54, %v8907_v32  ;;  %v9315_v1 = vpop.permute.xlu0 %651  ;;  %7150 = vmatpush1.bf16.msra.mxu1 %v7149_v26  ;;  %866 = vperm.xlu1 %8051, %v356_v25   ;;  %v2257_v28 = vmax.f32 %v1515_v7, %v2129_v29  ;;  %v251_v7 = vld [vmem:[%s10587_s1 + $0x3b0] sm:$0xff]  ;;  %v252_v54 = vld [vmem:[%s10587_s1 + $0x3b8] sm:$0xff] }
 0x15d   :  { %v2132_v41 = vmul.f32 0.01, %v1530_v19  ;;  %861 = vperm.xlu0 %8050, %v355_v10   ;;  %7047 = vmatprep.mubr.msk.f32.mxu0 %vm1029_vm1, %v249_v46 }
 0x15e   :  { %v2131_v13 = vmul.f32 0.01, %v1525_v11  ;;  %v6890_v14 = vpop.f32.mrb[10].mxu0  ;;  %7151 = vmatprep.subr.bf16.mxu1 %v10602_v38  ;;  %v7152_v32 = vpack.c.bf16 %v2258_v20, %v2257_v28 }
 0x15f   :  { %v1540_v25 = vadd.f32 %v6890_v14, %v8923_v37  ;;  %v1534_v29 = vpop.f32.mrb[11].mxu0  ;;  %7048 = vmatmul.mubr.msk.f32.gmra.mrb[116].mxu0 %vm1029_vm1, %v250_v12  ;;  %v9333_v8 = vpop.permute.xlu1 %666  ;;  %v2260_v26 = vmax.f32 %v1530_v19, %v2132_v41  ;;  %v382_v37 = vld [vmem:[%s10588_s2 + $0x3c8] sm:$0xff]  ;;  %v381_v41 = vld [vmem:[%s10588_s2 + $0x3c0] sm:$0xff] }
 0x160   :  { %v1535_v10 = vadd.f32 %v1534_v29, %v8925_v39  ;;  %v9336_v46 = vpop.permute.xlu0 %661  ;;  %7153 = vmatpush1.bf16.msra.mxu1 %v7152_v32  ;;  %986 = vperm.xlu1 %8051, %v380_v31   ;;  %v2259_v20 = vmax.f32 %v1525_v11, %v2131_v13  ;;  %v253_v11 = vld [vmem:[%s10587_s1 + $0x3c0] sm:$0xff]  ;;  %v254_v29 = vld [vmem:[%s10587_s1 + $0x3c8] sm:$0xff] }
 0x161   :  { %v2134_v28 = vmul.f32 0.01, %v1540_v25  ;;  %981 = vperm.xlu0 %8050, %v379_v56   ;;  %7050 = vmatprep.mubr.msk.f32.mxu0 %vm1029_vm1, %v251_v7 }
 0x162   :  { %v2133_v19 = vmul.f32 0.01, %v1535_v10  ;;  %v6893_v12 = vpop.f32.mrb[12].mxu0  ;;  %7154 = vmatprep.subr.bf16.mxu1 %v10602_v38  ;;  %v7155_v39 = vpack.c.bf16 %v2260_v26, %v2259_v20 }
 0x163   :  { %v1550_v31 = vadd.f32 %v6893_v12, %v8941_v44  ;;  %v1544_v13 = vpop.f32.mrb[13].mxu0  ;;  %7051 = vmatmul.mubr.msk.f32.gmra.mrb[118].mxu0 %vm1029_vm1, %v252_v54  ;;  %v9354_v14 = vpop.permute.xlu1 %676  ;;  %v2262_v32 = vmax.f32 %v1540_v25, %v2134_v28  ;;  %v384_v44 = vld [vmem:[%s10588_s2 + $0x3d8] sm:$0xff]  ;;  %v383_v28 = vld [vmem:[%s10588_s2 + $0x3d0] sm:$0xff] }
 0x164   :  { %v1545_v56 = vadd.f32 %v1544_v13, %v8943_v45  ;;  %v9357_v7 = vpop.permute.xlu0 %671  ;;  %7156 = vmatpush1.bf16.msra.mxu1 %v7155_v39  ;;  %996 = vperm.xlu1 %8051, %v382_v37   ;;  %v2261_v26 = vmax.f32 %v1535_v10, %v2133_v19  ;;  %v255_v10 = vld [vmem:[%s10587_s1 + $0x3d0] sm:$0xff]  ;;  %v256_v13 = vld [vmem:[%s10587_s1 + $0x3d8] sm:$0xff] }
 0x165   :  { %v2136_v20 = vmul.f32 0.01, %v1550_v31  ;;  %991 = vperm.xlu0 %8050, %v381_v41   ;;  %7053 = vmatprep.mubr.msk.f32.mxu0 %vm1029_vm1, %v253_v11 }
 0x166   :  { %v2135_v25 = vmul.f32 0.01, %v1545_v56  ;;  %v6896_v54 = vpop.f32.mrb[14].mxu0  ;;  %7157 = vmatprep.subr.bf16.mxu1 %v10602_v38  ;;  %v7158_v45 = vpack.c.bf16 %v2262_v32, %v2261_v26 }
 0x167   :  { %v1560_v37 = vadd.f32 %v6896_v54, %v8959_v50  ;;  %v1554_v19 = vpop.f32.mrb[15].mxu0  ;;  %7054 = vmatmul.mubr.msk.f32.gmra.mrb[120].mxu0 %vm1029_vm1, %v254_v29  ;;  %v9375_v12 = vpop.permute.xlu1 %686  ;;  %v2264_v39 = vmax.f32 %v1550_v31, %v2136_v20  ;;  %v386_v50 = vld [vmem:[%s10588_s2 + $0x3e8] sm:$0xff]  ;;  %v385_v20 = vld [vmem:[%s10588_s2 + $0x3e0] sm:$0xff] }
 0x168   :  { %v1555_v41 = vadd.f32 %v1554_v19, %v8961_v51  ;;  %v9378_v11 = vpop.permute.xlu0 %681  ;;  %7159 = vmatpush1.bf16.msra.mxu1 %v7158_v45  ;;  %1006 = vperm.xlu1 %8051, %v384_v44   ;;  %v2263_v32 = vmax.f32 %v1545_v56, %v2135_v25  ;;  %v257_v56 = vld [vmem:[%s10587_s1 + $0x3e0] sm:$0xff]  ;;  %v258_v19 = vld [vmem:[%s10587_s1 + $0x3e8] sm:$0xff] }
 0x169   :  { %v2138_v26 = vmul.f32 0.01, %v1560_v37  ;;  %1001 = vperm.xlu0 %8050, %v383_v28   ;;  %7056 = vmatprep.mubr.msk.f32.mxu0 %vm1029_vm1, %v255_v10 }
 0x16a   :  { %v2137_v31 = vmul.f32 0.01, %v1555_v41  ;;  %v6899_v29 = vpop.f32.mrb[16].mxu0  ;;  %7160 = vmatprep.subr.bf16.mxu1 %v10602_v38  ;;  %v7161_v51 = vpack.c.bf16 %v2264_v39, %v2263_v32 }
 0x16b   :  { %v1570_v44 = vadd.f32 %v6899_v29, %v8977_v57  ;;  %v1564_v25 = vpop.f32.mrb[17].mxu0  ;;  %7057 = vmatmul.mubr.msk.f32.gmra.mrb[122].mxu0 %vm1029_vm1, %v256_v13  ;;  %v9396_v54 = vpop.permute.xlu1 %696  ;;  %v2266_v45 = vmax.f32 %v1560_v37, %v2138_v26  ;;  %v388_v57 = vld [vmem:[%s10588_s2 + $0x3f8] sm:$0xff]  ;;  %v387_v26 = vld [vmem:[%s10588_s2 + $0x3f0] sm:$0xff] }
 0x16c   :  { %v1565_v28 = vadd.f32 %v1564_v25, %v8979_v58  ;;  %v9399_v10 = vpop.permute.xlu0 %691  ;;  %7162 = vmatpush1.bf16.msra.mxu1 %v7161_v51  ;;  %1016 = vperm.xlu1 %8051, %v386_v50   ;;  %v2265_v39 = vmax.f32 %v1555_v41, %v2137_v31  ;;  %v259_v41 = vld [vmem:[%s10587_s1 + $0x3f0] sm:$0xff]  ;;  %v260_v25 = vld [vmem:[%s10587_s1 + $0x3f8] sm:$0xff] }
 0x16d   :  { %v2140_v32 = vmul.f32 0.01, %v1570_v44  ;;  %1011 = vperm.xlu0 %8050, %v385_v20   ;;  %7059 = vmatprep.mubr.msk.f32.mxu0 %vm1029_vm1, %v257_v56 }
 0x16e   :  { %v2139_v37 = vmul.f32 0.01, %v1565_v28  ;;  %v6902_v13 = vpop.f32.mrb[18].mxu0  ;;  %7163 = vmatprep.subr.bf16.mxu1 %v10602_v38  ;;  %v7164_v58 = vpack.c.bf16 %v2266_v45, %v2265_v39 }
 0x16f   :  { %v1580_v50 = vadd.f32 %v6902_v13, %v8995_v63  ;;  %v1574_v31 = vpop.f32.mrb[19].mxu0  ;;  %7060 = vmatmul.mubr.msk.f32.gmra.mrb[124].mxu0 %vm1029_vm1, %v258_v19  ;;  %v9417_v29 = vpop.permute.xlu1 %706  ;;  %v2268_v51 = vmax.f32 %v1570_v44, %v2140_v32  ;;  %v2892_v63 = vld [vmem:[%s10590_s4 + $0x8] sm:$0xff]  ;;  %v2891_v32 = vld [vmem:[%s10590_s4] sm:$0xff] }
 0x170   :  { %v1575_v20 = vadd.f32 %v1574_v31, %v8997_v0  ;;  %v9420_v56 = vpop.permute.xlu0 %701  ;;  %7165 = vmatpush1.bf16.msra.mxu1 %v7164_v58  ;;  %1026 = vperm.xlu1 %8051, %v388_v57   ;;  %v2267_v45 = vmax.f32 %v1565_v28, %v2139_v37 }
 0x171   :  { %v2142_v39 = vmul.f32 0.01, %v1580_v50  ;;  %1021 = vperm.xlu0 %8050, %v387_v26   ;;  %7062 = vmatprep.mubr.msk.f32.mxu0 %vm1029_vm1, %v259_v41 }
 0x172   :  { %v2141_v44 = vmul.f32 0.01, %v1575_v20  ;;  %v6905_v19 = vpop.f32.mrb[20].mxu0  ;;  %7166 = vmatprep.subr.bf16.mxu1 %v10602_v38  ;;  %v7167_v0 = vpack.c.bf16 %v2268_v51, %v2267_v45 }
 0x173   :  { %v1590_v57 = vadd.f32 %v6905_v19, %v9013_v5  ;;  %v1584_v28 = vpop.f32.mrb[21].mxu0  ;;  %7063 = vmatmul.mubr.msk.f32.gmra.mrb[126].mxu0 %vm1029_vm1, %v260_v25  ;;  %v9435_v37 = vpop.permute.xlu1 %716  ;;  %v2270_v13 = vmax.f32 %v1580_v50, %v2142_v39  ;;  %v2894_v5 = vld [vmem:[%s10590_s4 + $0x18] sm:$0xff] }
 0x174   :  { %v1585_v58 = vadd.f32 %v1584_v28, %v9015_v6  ;;  %v9438_v26 = vpop.permute.xlu0 %711  ;;  %7168 = vmatpush1.bf16.msra.mxu1 %v7167_v0  ;;  %2962 = vperm.xlu1 %8051, %v2892_v63   ;;  %v2269_v41 = vmax.f32 %v1575_v20, %v2141_v44  ;;  %v2893_v6 = vld [vmem:[%s10590_s4 + $0x10] sm:$0xff]  ;;  %v2896_v28 = vld [vmem:[%s10590_s4 + $0x28] sm:$0xff] }
 0x175   :  { %v2144_v31 = vmul.f32 0.01, %v1590_v57  ;;  %2957 = vperm.xlu0 %8050, %v2891_v32   ;;  %7169 = vmatprep.subr.bf16.mxu1 %v10602_v38 }
 0x176   :  { %v2143_v51 = vmul.f32 0.01, %v1585_v58  ;;  %v6908_v25 = vpop.f32.mrb[22].mxu0  ;;  %v7170_v45 = vpack.c.bf16 %v2270_v13, %v2269_v41 }
 0x177   :  { %v1600_v50 = vadd.f32 %v6908_v25, %v9031_v15  ;;  %v1594_v39 = vpop.f32.mrb[23].mxu0  ;;  %v9448_v63 = vpop.permute.xlu1 %726  ;;  %v2272_v20 = vmax.f32 %v1590_v57, %v2144_v31 }
 0x178   :  { %v1595_v44 = vadd.f32 %v1594_v39, %v9033_v16  ;;  %v9451_v19 = vpop.permute.xlu0 %721  ;;  %7171 = vmatpush1.bf16.msra.mxu1 %v7170_v45  ;;  %2972 = vperm.xlu1 %8051, %v2894_v5   ;;  %v2271_v0 = vmax.f32 %v1585_v58, %v2143_v51  ;;  %v2895_v16 = vld [vmem:[%s10590_s4 + $0x20] sm:$0xff]  ;;  %v2898_v39 = vld [vmem:[%s10590_s4 + $0x38] sm:$0xff] }
 0x179   :  { %v2146_v32 = vmul.f32 0.01, %v1600_v50  ;;  %2967 = vperm.xlu0 %8050, %v2893_v6   ;;  %7172 = vmatprep.subr.bf16.mxu1 %v10602_v38 }
 0x17a   :  { %v2145_v15 = vmul.f32 0.01, %v1595_v44  ;;  %v6911_v13 = vpop.f32.mrb[24].mxu0  ;;  %v7173_v41 = vpack.c.bf16 %v2272_v20, %v2271_v0 }
 0x17b   :  { %v1610_v57 = vadd.f32 %v6911_v13, %v9049_v23  ;;  %v1604_v31 = vpop.f32.mrb[25].mxu0  ;;  %v9461_v5 = vpop.permute.xlu1 %736  ;;  %v2274_v58 = vmax.f32 %v1600_v50, %v2146_v32 }
 0x17c   :  { %v1605_v51 = vadd.f32 %v1604_v31, %v9051_v24  ;;  %v9464_v25 = vpop.permute.xlu0 %731  ;;  %7174 = vmatpush1.bf16.msra.mxu1 %v7173_v41  ;;  %2982 = vperm.xlu1 %8051, %v2896_v28   ;;  %v2273_v45 = vmax.f32 %v1595_v44, %v2145_v15  ;;  %v2897_v24 = vld [vmem:[%s10590_s4 + $0x30] sm:$0xff]  ;;  %v2900_v31 = vld [vmem:[%s10590_s4 + $0x48] sm:$0xff] }
 0x17d   :  { %v2148_v6 = vmul.f32 0.01, %v1610_v57  ;;  %2977 = vperm.xlu0 %8050, %v2895_v16   ;;  %7175 = vmatprep.subr.bf16.mxu1 %v10602_v38 }
 0x17e   :  { %v2147_v23 = vmul.f32 0.01, %v1605_v51  ;;  %v6914_v20 = vpop.f32.mrb[26].mxu0  ;;  %v7176_v0 = vpack.c.bf16 %v2274_v58, %v2273_v45 }
 0x17f   :  { %v1620_v50 = vadd.f32 %v6914_v20, %v9067_v33  ;;  %v1614_v32 = vpop.f32.mrb[27].mxu0  ;;  %v9474_v28 = vpop.permute.xlu1 %746  ;;  %v2276_v44 = vmax.f32 %v1610_v57, %v2148_v6 }
 0x180   :  { %v1615_v15 = vadd.f32 %v1614_v32, %v9069_v34  ;;  %v9477_v13 = vpop.permute.xlu0 %741  ;;  %7177 = vmatpush1.bf16.msra.mxu1 %v7176_v0  ;;  %2992 = vperm.xlu1 %8051, %v2898_v39   ;;  %v2275_v41 = vmax.f32 %v1605_v51, %v2147_v23  ;;  %v2899_v34 = vld [vmem:[%s10590_s4 + $0x40] sm:$0xff]  ;;  %v2902_v32 = vld [vmem:[%s10590_s4 + $0x58] sm:$0xff] }
 0x181   :  { %v2150_v16 = vmul.f32 0.01, %v1620_v50  ;;  %2987 = vperm.xlu0 %8050, %v2897_v24   ;;  %7178 = vmatprep.subr.bf16.mxu1 %v10602_v38 }
 0x182   :  { %v2149_v33 = vmul.f32 0.01, %v1615_v15  ;;  %v6917_v58 = vpop.f32.mrb[28].mxu0  ;;  %v7179_v45 = vpack.c.bf16 %v2276_v44, %v2275_v41 }
 0x183   :  { %v1630_v57 = vadd.f32 %v6917_v58, %v9085_v42  ;;  %v1624_v6 = vpop.f32.mrb[29].mxu0  ;;  %v9487_v39 = vpop.permute.xlu1 %756  ;;  %v2278_v51 = vmax.f32 %v1620_v50, %v2150_v16 }
 0x184   :  { %v1625_v23 = vadd.f32 %v1624_v6, %v9087_v43  ;;  %v9490_v20 = vpop.permute.xlu0 %751  ;;  %7180 = vmatpush1.bf16.msra.mxu1 %v7179_v45  ;;  %3002 = vperm.xlu1 %8051, %v2900_v31   ;;  %v2277_v0 = vmax.f32 %v1615_v15, %v2149_v33  ;;  %v2901_v43 = vld [vmem:[%s10590_s4 + $0x50] sm:$0xff]  ;;  %v2904_v6 = vld [vmem:[%s10590_s4 + $0x68] sm:$0xff] }
 0x185   :  { %v2152_v24 = vmul.f32 0.01, %v1630_v57  ;;  %2997 = vperm.xlu0 %8050, %v2899_v34   ;;  %7181 = vmatprep.subr.bf16.mxu1 %v10602_v38 }
 0x186   :  { %v2151_v42 = vmul.f32 0.01, %v1625_v23  ;;  %v6920_v44 = vpop.f32.mrb[30].mxu0  ;;  %v7182_v41 = vpack.c.bf16 %v2278_v51, %v2277_v0 }
 0x187   :  { %v1640_v50 = vadd.f32 %v6920_v44, %v9103_v52  ;;  %v1634_v16 = vpop.f32.mrb[31].mxu0  ;;  %v9500_v31 = vpop.permute.xlu1 %876  ;;  %v2280_v15 = vmax.f32 %v1630_v57, %v2152_v24 }
 0x188   :  { %v1635_v33 = vadd.f32 %v1634_v16, %v9105_v53  ;;  %v9503_v58 = vpop.permute.xlu0 %871  ;;  %7183 = vmatpush1.bf16.msra.mxu1 %v7182_v41  ;;  %3012 = vperm.xlu1 %8051, %v2902_v32   ;;  %v2279_v45 = vmax.f32 %v1625_v23, %v2151_v42  ;;  %v2903_v53 = vld [vmem:[%s10590_s4 + $0x60] sm:$0xff]  ;;  %v2906_v16 = vld [vmem:[%s10590_s4 + $0x78] sm:$0xff] }
 0x189   :  { %v2154_v34 = vmul.f32 0.01, %v1640_v50  ;;  %3007 = vperm.xlu0 %8050, %v2901_v43   ;;  %7184 = vmatprep.subr.bf16.mxu1 %v10602_v38 }
 0x18a   :  { %v2153_v52 = vmul.f32 0.01, %v1635_v33  ;;  %v6923_v51 = vpop.f32.mrb[32].mxu0  ;;  %v7185_v0 = vpack.c.bf16 %v2280_v15, %v2279_v45 }
 0x18b   :  { %v1650_v57 = vadd.f32 %v6923_v51, %v9121_v60  ;;  %v1644_v24 = vpop.f32.mrb[33].mxu0  ;;  %v9513_v32 = vpop.permute.xlu1 %766  ;;  %v2282_v23 = vmax.f32 %v1640_v50, %v2154_v34 }
 0x18c   :  { %v1645_v42 = vadd.f32 %v1644_v24, %v9123_v61  ;;  %v9516_v44 = vpop.permute.xlu0 %761  ;;  %7186 = vmatpush1.bf16.msra.mxu1 %v7185_v0  ;;  %3022 = vperm.xlu1 %8051, %v2904_v6   ;;  %v2281_v41 = vmax.f32 %v1635_v33, %v2153_v52  ;;  %v2905_v61 = vld [vmem:[%s10590_s4 + $0x70] sm:$0xff] }
 0x18d   :  { %v2156_v43 = vmul.f32 0.01, %v1650_v57  ;;  %3017 = vperm.xlu0 %8050, %v2903_v53   ;;  %7187 = vmatprep.subr.bf16.mxu1 %v10602_v38  ;;  %v2379_v53 = vld [vmem:[#allocation3] sm:$0xff] }
 0x18e   :  { %v2155_v60 = vmul.f32 0.01, %v1645_v42  ;;  %v6926_v15 = vpop.f32.mrb[34].mxu0  ;;  %v7188_v45 = vpack.c.bf16 %v2282_v23, %v2281_v41 }
 0x18f   :  { %v2284_v50 = vmax.f32 %v1650_v57, %v2156_v43  ;;  %v1660_v34 = vadd.f32 %v6926_v15, %v9139_v4  ;;  %v1654_v6 = vpop.f32.mrb[35].mxu0  ;;  %v9526_v33 = vpop.permute.xlu1 %886  ;;  %v2908_v57 = vld [vmem:[%s10590_s4 + $0x88] sm:$0xff] }
 0x190   :  { %v2283_v52 = vmax.f32 %v1645_v42, %v2155_v60  ;;  %v1655_v51 = vadd.f32 %v1654_v6, %v9141_v9  ;;  %v9529_v0 = vpop.permute.xlu0 %881  ;;  %7189 = vmatpush1.bf16.msra.mxu1 %v7188_v45  ;;  %3032 = vperm.xlu1 %8051, %v2906_v16   ;;  %v2907_v9 = vld [vmem:[%s10590_s4 + $0x80] sm:$0xff]  ;;  %v2388_v42 = vld [vmem:[#allocation3 + $0x48] sm:$0xff] }
 0x191   :  { %v2158_v24 = vmul.f32 0.01, %v1660_v34  ;;  %3027 = vperm.xlu0 %8050, %v2905_v61   ;;  %7190 = vmatprep.subr.bf16.mxu1 %v10602_v38 }
 0x192   :  { %v2157_v4 = vmul.f32 0.01, %v1655_v51  ;;  %v6929_v23 = vpop.f32.mrb[36].mxu0  ;;  %v7191_v41 = vpack.c.bf16 %v2284_v50, %v2283_v52  ;;  %v2387_v50 = vld [vmem:[#allocation3 + $0x40] sm:$0xff] }
 0x193   :  { %v2286_v43 = vmax.f32 %v1660_v34, %v2158_v24  ;;  %v1670_v16 = vadd.f32 %v6929_v23, %v9157_v18  ;;  %v1664_v60 = vpop.f32.mrb[37].mxu0  ;;  %3340 = vmatmul.mubr.f32.vlgmr.msra.gmra.mrb[0].mxu1 %v2379_v53  ;;  %v9539_v15 = vpop.permute.xlu1 %776  ;;  %v2910_v34 = vld [vmem:[%s10590_s4 + $0x98] sm:$0xff] }
 0x194   :  { %v2285_v45 = vmax.f32 %v1655_v51, %v2157_v4  ;;  %v1665_v61 = vadd.f32 %v1664_v60, %v9159_v21  ;;  %v9542_v6 = vpop.permute.xlu0 %771  ;;  %7192 = vmatpush1.bf16.msra.mxu1 %v7191_v41  ;;  %3042 = vperm.xlu1 %8051, %v2908_v57   ;;  %v2909_v21 = vld [vmem:[%s10590_s4 + $0x90] sm:$0xff] }
 0x195   :  { %v2160_v52 = vmul.f32 0.01, %v1670_v16  ;;  %3037 = vperm.xlu0 %8050, %v2907_v9   ;;  %3344 = vmatprep.mubr.f32.mxu1 %v2388_v42  ;;  %v2396_v51 = vld [vmem:[#allocation3 + $0x88] sm:$0xff] }
 0x196   :  { %v2159_v18 = vmul.f32 0.01, %v1665_v61  ;;  %v6932_v24 = vpop.f32.mrb[38].mxu0  ;;  %7193 = vmatprep.subr.bf16.mxu1 %v10602_v38  ;;  %v7194_v53 = vpack.c.bf16 %v2286_v43, %v2285_v45  ;;  %v2395_v43 = vld [vmem:[#allocation3 + $0x80] sm:$0xff] }
 0x197   :  { %v2288_v4 = vmax.f32 %v1670_v16, %v2160_v52  ;;  %v1680_v57 = vadd.f32 %v6932_v24, %v9175_v30  ;;  %v1674_v23 = vpop.f32.mrb[39].mxu0  ;;  %3345 = vmatmul.mubr.f32.gmra.mrb[2].mxu1 %v2387_v50  ;;  %v9552_v41 = vpop.permute.xlu1 %896  ;;  %v2912_v16 = vld [vmem:[%s10590_s4 + $0xa8] sm:$0xff] }
 0x198   :  { %v2287_v9 = vmax.f32 %v1665_v61, %v2159_v18  ;;  %v1675_v42 = vadd.f32 %v1674_v23, %v9177_v35  ;;  %v9555_v60 = vpop.permute.xlu0 %891  ;;  %7195 = vmatpush1.bf16.msra.mxu1 %v7194_v53  ;;  %3052 = vperm.xlu1 %8051, %v2910_v34   ;;  %v2911_v35 = vld [vmem:[%s10590_s4 + $0xa0] sm:$0xff]  ;;  %v2404_v61 = vld [vmem:[#allocation3 + $0xc8] sm:$0xff] }
 0x199   :  { %10604 = vst [vmem:[#allocation17_spill] sm:$0xff] %v9555_v60  ;;  %v2162_v45 = vmul.f32 0.01, %v1680_v57  ;;  %3047 = vperm.xlu0 %8050, %v2909_v21   ;;  %3349 = vmatprep.mubr.f32.mxu1 %v2396_v51 }
 0x19a   :  { %v2161_v30 = vmul.f32 0.01, %v1675_v42  ;;  %v6935_v52 = vpop.f32.mrb[40].mxu0  ;;  %7196 = vmatprep.subr.bf16.mxu1 %v10602_v38  ;;  %v7197_v50 = vpack.c.bf16 %v2288_v4, %v2287_v9  ;;  %v2403_v4 = vld [vmem:[#allocation3 + $0xc0] sm:$0xff] }
 0x19b   :  { %v2290_v18 = vmax.f32 %v1680_v57, %v2162_v45  ;;  %v1690_v34 = vadd.f32 %v6935_v52, %v9193_v47  ;;  %v1684_v24 = vpop.f32.mrb[41].mxu0  ;;  %3350 = vmatmul.mubr.f32.gmra.mrb[4].mxu1 %v2395_v43  ;;  %v9566_v51 = vpop.permute.xlu1 %786  ;;  %v2914_v57 = vld [vmem:[%s10590_s4 + $0xb8] sm:$0xff]  ;;  %v2412_v43 = vld [vmem:[#allocation3 + $0x108] sm:$0xff] }
 0x19c   :  { %v2289_v53 = vmax.f32 %v1675_v42, %v2161_v30  ;;  %v1685_v21 = vadd.f32 %v1684_v24, %v9195_v48  ;;  %v9568_v23 = vpop.permute.xlu0 %781  ;;  %7198 = vmatpush1.bf16.msra.mxu1 %v7197_v50  ;;  %3062 = vperm.xlu1 %8051, %v2912_v16   ;;  %v2913_v48 = vld [vmem:[%s10590_s4 + $0xb0] sm:$0xff] }
 0x19d   :  { %v2164_v9 = vmul.f32 0.01, %v1690_v34  ;;  %3057 = vperm.xlu0 %8050, %v2911_v35   ;;  %3354 = vmatprep.mubr.f32.mxu1 %v2404_v61  ;;  %v2411_v61 = vld [vmem:[#allocation3 + $0x100] sm:$0xff] }
 0x19e   :  { %v2163_v47 = vmul.f32 0.01, %v1685_v21  ;;  %v6938_v45 = vpop.f32.mrb[42].mxu0  ;;  %7199 = vmatprep.subr.bf16.mxu1 %v10602_v38  ;;  %v7200_v42 = vpack.c.bf16 %v2290_v18, %v2289_v53  ;;  %v2916_v18 = vld [vmem:[%s10590_s4 + $0xc8] sm:$0xff] }
 0x19f   :  { %v2292_v30 = vmax.f32 %v1690_v34, %v2164_v9  ;;  %v1700_v16 = vadd.f32 %v6938_v45, %v9211_v59  ;;  %v1694_v52 = vpop.f32.mrb[43].mxu0  ;;  %3355 = vmatmul.mubr.f32.gmra.mrb[6].mxu1 %v2403_v4  ;;  %v9584_v53 = vpop.permute.xlu1 %906  ;;  %v2420_v4 = vld [vmem:[#allocation3 + $0x148] sm:$0xff] }
 0x1a0   :  { %v2291_v50 = vmax.f32 %v1685_v21, %v2163_v47  ;;  %v1695_v35 = vadd.f32 %v1694_v52, %v9213_v62  ;;  %7201 = vmatpush1.bf16.msra.mxu1 %v7200_v42  ;;  %3072 = vperm.xlu1 %8051, %v2914_v57   ;;  %v9579_v60 = vpop.permute.xlu0 %901  ;;  %v2915_v62 = vld [vmem:[%s10590_s4 + $0xc0] sm:$0xff] }
 0x1a1   :  { %v2166_v24 = vmul.f32 0.01, %v1700_v16  ;;  %3067 = vperm.xlu0 %8050, %v2913_v48   ;;  %3359 = vmatprep.mubr.f32.mxu1 %v2412_v43  ;;  %v2419_v48 = vld [vmem:[#allocation3 + $0x140] sm:$0xff] }
 0x1a2   :  { %v2165_v34 = vmul.f32 0.01, %v1695_v35  ;;  %v6941_v59 = vpop.f32.mrb[44].mxu0  ;;  %7202 = vmatprep.subr.bf16.mxu1 %v10602_v38  ;;  %v7203_v21 = vpack.c.bf16 %v2292_v30, %v2291_v50  ;;  %v2918_v30 = vld [vmem:[%s10590_s4 + $0xd8] sm:$0xff] }
 0x1a3   :  { %v2294_v9 = vmax.f32 %v1700_v16, %v2166_v24  ;;  %v1710_v57 = vadd.f32 %v6941_v59, %v9229_v17  ;;  %v1704_v47 = vpop.f32.mrb[45].mxu0  ;;  %3360 = vmatmul.mubr.f32.gmra.mrb[8].mxu1 %v2411_v61  ;;  %v2917_v16 = vld [vmem:[%s10590_s4 + $0xd0] sm:$0xff]  ;;  %v9602_v59 = vpop.permute.xlu1 %796 }
 0x1a4   :  { %v2293_v45 = vmax.f32 %v1695_v35, %v2165_v34  ;;  %v1705_v42 = vadd.f32 %v1704_v47, %v9232_v27  ;;  %7204 = vmatpush1.bf16.msra.mxu1 %v7203_v21  ;;  %3082 = vperm.xlu1 %8051, %v2916_v18   ;;  %v2428_v27 = vld [vmem:[#allocation3 + $0x188] sm:$0xff]  ;;  %v9599_v61 = vpop.permute.xlu0 %791 }
 0x1a5   :  { %v2168_v43 = vmul.f32 0.01, %v1710_v57  ;;  %3077 = vperm.xlu0 %8050, %v2915_v62   ;;  %3364 = vmatprep.mubr.f32.mxu1 %v2420_v4  ;;  %v2427_v62 = vld [vmem:[#allocation3 + $0x180] sm:$0xff] }
 0x1a6   :  { %v2167_v52 = vmul.f32 0.01, %v1705_v42  ;;  %v6944_v50 = vpop.f32.mrb[46].mxu0  ;;  %7205 = vmatprep.subr.bf16.mxu1 %v10602_v38  ;;  %v7206_v17 = vpack.c.bf16 %v2294_v9, %v2293_v45  ;;  %v2920_v9 = vld [vmem:[%s10590_s4 + $0xe8] sm:$0xff]  ;;  %v2919_v45 = vld [vmem:[%s10590_s4 + $0xe0] sm:$0xff] }
 0x1a7   :  { %v2296_v35 = vmax.f32 %v1710_v57, %v2168_v43  ;;  %v1720_v24 = vadd.f32 %v6944_v50, %v9250_v55  ;;  %v1714_v18 = vpop.f32.mrb[47].mxu0  ;;  %3365 = vmatmul.mubr.f32.gmra.mrb[10].mxu1 %v2419_v48  ;;  %v2435_v50 = vld [vmem:[#allocation3 + $0x1c0] sm:$0xff] }
 0x1a8   :  { %v2295_v34 = vmax.f32 %v1705_v42, %v2167_v52  ;;  %v1715_v21 = vadd.f32 %v1714_v18, %v9253_v2  ;;  %7207 = vmatpush1.bf16.msra.mxu1 %v7206_v17  ;;  %3092 = vperm.xlu1 %8051, %v2918_v30   ;;  %v2436_v2 = vld [vmem:[#allocation3 + $0x1c8] sm:$0xff]  ;;  %v9614_v17 = vpop.permute.xlu0 %911 }
 0x1a9   :  { %v2170_v4 = vmul.f32 0.01, %v1720_v24  ;;  %3087 = vperm.xlu0 %8050, %v2917_v16   ;;  %3369 = vmatprep.mubr.f32.mxu1 %v2428_v27  ;;  %v2922_v27 = vld [vmem:[%s10590_s4 + $0xf8] sm:$0xff] }
 0x1aa   :  { %v2169_v57 = vmul.f32 0.01, %v1715_v21  ;;  %v6947_v47 = vpop.f32.mrb[48].mxu0  ;;  %7208 = vmatprep.subr.bf16.mxu1 %v10602_v38  ;;  %v7209_v55 = vpack.c.bf16 %v2296_v35, %v2295_v34  ;;  %v9619_v35 = vpop.permute.xlu1 %916  ;;  %v2444_v34 = vld [vmem:[#allocation3 + $0x208] sm:$0xff] }
 0x1ab   :  { %v2298_v42 = vmax.f32 %v1720_v24, %v2170_v4  ;;  %v1730_v48 = vadd.f32 %v6947_v47, %v9270_v40  ;;  %v1724_v43 = vpop.f32.mrb[49].mxu0  ;;  %3370 = vmatmul.mubr.f32.gmra.mrb[12].mxu1 %v2427_v62  ;;  %v2443_v47 = vld [vmem:[#allocation3 + $0x200] sm:$0xff] }
 0x1ac   :  { %v2297_v30 = vmax.f32 %v1715_v21, %v2169_v57  ;;  %v1725_v52 = vadd.f32 %v1724_v43, %v9273_v49  ;;  %7210 = vmatpush1.bf16.msra.mxu1 %v7209_v55  ;;  %3102 = vperm.xlu1 %8051, %v2920_v9   ;;  %v2921_v49 = vld [vmem:[%s10590_s4 + $0xf0] sm:$0xff]  ;;  %v9634_v43 = vpop.permute.xlu0 %801 }
 0x1ad   :  { %v2172_v16 = vmul.f32 0.01, %v1730_v48  ;;  %3097 = vperm.xlu0 %8050, %v2919_v45   ;;  %3374 = vmatprep.mubr.f32.mxu1 %v2436_v2  ;;  %v2924_v45 = vld [vmem:[%s10590_s4 + $0x108] sm:$0xff] }
 0x1ae   :  { %v2171_v40 = vmul.f32 0.01, %v1725_v52  ;;  %v6950_v24 = vpop.f32.mrb[50].mxu0  ;;  %7211 = vmatprep.subr.bf16.mxu1 %v10602_v38  ;;  %v7212_v18 = vpack.c.bf16 %v2298_v42, %v2297_v30 }
 0x1af   :  { %v2300_v21 = vmax.f32 %v1730_v48, %v2172_v16  ;;  %v1740_v62 = vadd.f32 %v6950_v24, %v9291_v22  ;;  %v1734_v4 = vpop.f32.mrb[51].mxu0  ;;  %3375 = vmatmul.mubr.f32.gmra.mrb[14].mxu1 %v2435_v50  ;;  %v2923_v48 = vld [vmem:[%s10590_s4 + $0x100] sm:$0xff]  ;;  %v9637_v16 = vpop.permute.xlu1 %806 }
 0x1b0   :  { %v2299_v9 = vmax.f32 %v1725_v52, %v2171_v40  ;;  %v1735_v57 = vadd.f32 %v1734_v4, %v9294_v36  ;;  %7213 = vmatpush1.bf16.msra.mxu1 %v7212_v18  ;;  %3112 = vperm.xlu1 %8051, %v2922_v27   ;;  %v2452_v36 = vld [vmem:[#allocation3 + $0x248] sm:$0xff]  ;;  %v2451_v24 = vld [vmem:[#allocation3 + $0x240] sm:$0xff] }
 0x1b1   :  { %v2174_v55 = vmul.f32 0.01, %v1740_v62  ;;  %3107 = vperm.xlu0 %8050, %v2921_v49   ;;  %3379 = vmatprep.mubr.f32.mxu1 %v2444_v34  ;;  %v2926_v49 = vld [vmem:[%s10590_s4 + $0x118] sm:$0xff] }
 0x1b2   :  { %v2173_v2 = vmul.f32 0.01, %v1735_v57  ;;  %v6953_v42 = vpop.f32.mrb[52].mxu0  ;;  %7214 = vmatprep.subr.bf16.mxu1 %v10602_v38  ;;  %v7215_v22 = vpack.c.bf16 %v2300_v21, %v2299_v9 }
 0x1b3   :  { %v2302_v30 = vmax.f32 %v1740_v62, %v2174_v55  ;;  %v1750_v52 = vadd.f32 %v6953_v42, %v9312_v3  ;;  %v1744_v50 = vpop.f32.mrb[53].mxu0  ;;  %3380 = vmatmul.mubr.f32.gmra.mrb[16].mxu1 %v2443_v47  ;;  %v2925_v62 = vld [vmem:[%s10590_s4 + $0x110] sm:$0xff] }
 0x1b4   :  { %v2301_v27 = vmax.f32 %v1735_v57, %v2173_v2  ;;  %v1745_v40 = vadd.f32 %v1744_v50, %v9315_v1  ;;  %7216 = vmatpush1.bf16.msra.mxu1 %v7215_v22  ;;  %3122 = vperm.xlu1 %8051, %v2924_v45   ;;  %v2460_v1 = vld [vmem:[#allocation3 + $0x288] sm:$0xff]  ;;  %v2459_v45 = vld [vmem:[#allocation3 + $0x280] sm:$0xff]  ;;  %v9649_v2 = vpop.permute.xlu0 %921 }
 0x1b5   :  { %v2176_v18 = vmul.f32 0.01, %v1750_v52  ;;  %3117 = vperm.xlu0 %8050, %v2923_v48   ;;  %3384 = vmatprep.mubr.f32.mxu1 %v2452_v36  ;;  %v2928_v22 = vld [vmem:[%s10590_s4 + $0x128] sm:$0xff]  ;;  %v9654_v48 = vpop.permute.xlu1 %926 }
 0x1b6   :  { %v2175_v34 = vmul.f32 0.01, %v1745_v40  ;;  %v6956_v21 = vpop.f32.mrb[54].mxu0  ;;  %7217 = vmatprep.subr.bf16.mxu1 %v10602_v38  ;;  %v7218_v3 = vpack.c.bf16 %v2302_v30, %v2301_v27 }
 0x1b7   :  { %v2304_v4 = vmax.f32 %v1750_v52, %v2176_v18  ;;  %v1760_v9 = vadd.f32 %v6956_v21, %v9333_v8  ;;  %v1754_v57 = vpop.f32.mrb[55].mxu0  ;;  %3385 = vmatmul.mubr.f32.gmra.mrb[18].mxu1 %v2451_v24  ;;  %v2468_v52 = vld [vmem:[#allocation3 + $0x2c8] sm:$0xff]  ;;  %v2930_v21 = vld [vmem:[%s10590_s4 + $0x138] sm:$0xff] }
 0x1b8   :  { %v2303_v47 = vmax.f32 %v1745_v40, %v2175_v34  ;;  %v1755_v55 = vadd.f32 %v1754_v57, %v9336_v46  ;;  %7219 = vmatpush1.bf16.msra.mxu1 %v7218_v3  ;;  %3132 = vperm.xlu1 %8051, %v2926_v49   ;;  %v2927_v46 = vld [vmem:[%s10590_s4 + $0x120] sm:$0xff] }
 0x1b9   :  { %v2178_v42 = vmul.f32 0.01, %v1760_v9  ;;  %3127 = vperm.xlu0 %8050, %v2925_v62   ;;  %3389 = vmatprep.mubr.f32.mxu1 %v2460_v1  ;;  %v2467_v49 = vld [vmem:[#allocation3 + $0x2c0] sm:$0xff]  ;;  %v2929_v1 = vld [vmem:[%s10590_s4 + $0x130] sm:$0xff] }
 0x1ba   :  { %v2177_v8 = vmul.f32 0.01, %v1755_v55  ;;  %v6959_v36 = vpop.f32.mrb[56].mxu0  ;;  %7220 = vmatprep.subr.bf16.mxu1 %v10602_v38  ;;  %v7221_v30 = vpack.c.bf16 %v2304_v4, %v2303_v47  ;;  %v9669_v4 = vpop.permute.xlu0 %811 }
 0x1bb   :  { %v2306_v50 = vmax.f32 %v1760_v9, %v2178_v42  ;;  %v1770_v27 = vadd.f32 %v6959_v36, %v9354_v14  ;;  %v1764_v40 = vpop.f32.mrb[57].mxu0  ;;  %3390 = vmatmul.mubr.f32.gmra.mrb[20].mxu1 %v2459_v45  ;;  %v2932_v36 = vld [vmem:[%s10590_s4 + $0x148] sm:$0xff] }
 0x1bc   :  { %v2305_v24 = vmax.f32 %v1755_v55, %v2177_v8  ;;  %v1765_v18 = vadd.f32 %v1764_v40, %v9357_v7  ;;  %7222 = vmatpush1.bf16.msra.mxu1 %v7221_v30  ;;  %3142 = vperm.xlu1 %8051, %v2928_v22   ;;  %v2476_v7 = vld [vmem:[#allocation3 + $0x308] sm:$0xff]  ;;  %v9672_v55 = vpop.permute.xlu1 %816  ;;  %v2475_v22 = vld [vmem:[#allocation3 + $0x300] sm:$0xff] }
 0x1bd   :  { %v2180_v34 = vmul.f32 0.01, %v1770_v27  ;;  %3137 = vperm.xlu0 %8050, %v2927_v46   ;;  %3394 = vmatprep.mubr.f32.mxu1 %v2468_v52  ;;  %v2931_v52 = vld [vmem:[%s10590_s4 + $0x140] sm:$0xff] }
 0x1be   :  { %v2179_v3 = vmul.f32 0.01, %v1765_v18  ;;  %v6962_v62 = vpop.f32.mrb[58].mxu0  ;;  %7223 = vmatprep.subr.bf16.mxu1 %v10602_v38  ;;  %v7224_v14 = vpack.c.bf16 %v2306_v50, %v2305_v24 }
 0x1bf   :  { %v2308_v9 = vmax.f32 %v1770_v27, %v2180_v34  ;;  %v1780_v57 = vadd.f32 %v6962_v62, %v9375_v12  ;;  %v1774_v47 = vpop.f32.mrb[59].mxu0  ;;  %3395 = vmatmul.mubr.f32.gmra.mrb[22].mxu1 %v2467_v49  ;;  %v2483_v49 = vld [vmem:[#allocation3 + $0x340] sm:$0xff]  ;;  %v9684_v34 = vpop.permute.xlu0 %931 }
 0x1c0   :  { %v2307_v45 = vmax.f32 %v1765_v18, %v2179_v3  ;;  %v1775_v42 = vadd.f32 %v1774_v47, %v9378_v11  ;;  %7225 = vmatpush1.bf16.msra.mxu1 %v7224_v14  ;;  %3152 = vperm.xlu1 %8051, %v2930_v21   ;;  %v2484_v11 = vld [vmem:[#allocation3 + $0x348] sm:$0xff]  ;;  %v2934_v3 = vld [vmem:[%s10590_s4 + $0x158] sm:$0xff]  ;;  %v9689_v62 = vpop.permute.xlu1 %936 }
 0x1c1   :  { %v2182_v8 = vmul.f32 0.01, %v1780_v57  ;;  %3147 = vperm.xlu0 %8050, %v2929_v1   ;;  %3399 = vmatprep.mubr.f32.mxu1 %v2476_v7  ;;  %v2492_v7 = vld [vmem:[#allocation3 + $0x388] sm:$0xff] }
 0x1c2   :  { %v2181_v30 = vmul.f32 0.01, %v1775_v42  ;;  %v6965_v46 = vpop.f32.mrb[60].mxu0  ;;  %7226 = vmatprep.subr.bf16.mxu1 %v10602_v38  ;;  %v7227_v12 = vpack.c.bf16 %v2308_v9, %v2307_v45 }
 0x1c3   :  { %v2310_v50 = vmax.f32 %v1780_v57, %v2182_v8  ;;  %v1790_v27 = vadd.f32 %v6965_v46, %v9396_v54  ;;  %v1784_v40 = vpop.f32.mrb[61].mxu0  ;;  %3400 = vmatmul.mubr.f32.gmra.mrb[24].mxu1 %v2475_v22  ;;  %v2491_v22 = vld [vmem:[#allocation3 + $0x380] sm:$0xff] }
 0x1c4   :  { %v2309_v24 = vmax.f32 %v1775_v42, %v2181_v30  ;;  %v1785_v18 = vadd.f32 %v1784_v40, %v9399_v10  ;;  %7228 = vmatpush1.bf16.msra.mxu1 %v7227_v12  ;;  %3162 = vperm.xlu1 %8051, %v2932_v36   ;;  %v2933_v10 = vld [vmem:[%s10590_s4 + $0x150] sm:$0xff]  ;;  %v2936_v36 = vld [vmem:[%s10590_s4 + $0x168] sm:$0xff]  ;;  %v2935_v12 = vld [vmem:[%s10590_s4 + $0x160] sm:$0xff]  ;;  %v9707_v40 = vpop.permute.xlu1 %826 }
 0x1c5   :  { %v2184_v21 = vmul.f32 0.01, %v1790_v27  ;;  %3157 = vperm.xlu0 %8050, %v2931_v52   ;;  %3404 = vmatprep.mubr.f32.mxu1 %v2484_v11  ;;  %v9704_v52 = vpop.permute.xlu0 %821 }
 0x1c6   :  { %v2183_v54 = vmul.f32 0.01, %v1785_v18  ;;  %v6968_v14 = vpop.f32.mrb[62].mxu0  ;;  %7229 = vmatprep.subr.bf16.mxu1 %v10602_v38  ;;  %v7230_v1 = vpack.c.bf16 %v2310_v50, %v2309_v24 }
 0x1c7   :  { %v2312_v9 = vmax.f32 %v1790_v27, %v2184_v21  ;;  %v1800_v57 = vadd.f32 %v6968_v14, %v9417_v29  ;;  %v1794_v47 = vpop.f32.mrb[63].mxu0  ;;  %3405 = vmatmul.mubr.f32.gmra.mrb[26].mxu1 %v2483_v49  ;;  %v2499_v49 = vld [vmem:[#allocation3 + $0x3c0] sm:$0xff] }
 0x1c8   :  { %v2311_v45 = vmax.f32 %v1785_v18, %v2183_v54  ;;  %v1795_v42 = vadd.f32 %v1794_v47, %v9420_v56  ;;  %7231 = vmatpush1.bf16.msra.mxu1 %v7230_v1  ;;  %3172 = vperm.xlu1 %8051, %v2934_v3   ;;  %v2500_v56 = vld [vmem:[#allocation3 + $0x3c8] sm:$0xff]  ;;  %v2938_v3 = vld [vmem:[%s10590_s4 + $0x178] sm:$0xff] }
 0x1c9   :  { %v2186_v8 = vmul.f32 0.01, %v1800_v57  ;;  %3167 = vperm.xlu0 %8050, %v2933_v10   ;;  %3409 = vmatprep.mubr.f32.mxu1 %v2492_v7  ;;  %v2937_v1 = vld [vmem:[%s10590_s4 + $0x170] sm:$0xff] }
 0x1ca   :  { %v2185_v30 = vmul.f32 0.01, %v1795_v42  ;;  %v6971_v46 = vpop.f32.mrb[64].mxu0  ;;  %7232 = vmatprep.subr.bf16.mxu1 %v10602_v38  ;;  %v7233_v29 = vpack.c.bf16 %v2312_v9, %v2311_v45  ;;  %v2507_v45 = vld [vmem:[#allocation3 + $0x400] sm:$0xff] }
 0x1cb   :  { %v2314_v11 = vmax.f32 %v1800_v57, %v2186_v8  ;;  %v1810_v50 = vadd.f32 %v6971_v46, %v9435_v37  ;;  %v1804_v27 = vpop.f32.mrb[65].mxu0  ;;  %3410 = vmatmul.mubr.f32.gmra.mrb[28].mxu1 %v2491_v22  ;;  %v2940_v8 = vld [vmem:[%s10590_s4 + $0x188] sm:$0xff] }
 0x1cc   :  { %v2313_v24 = vmax.f32 %v1795_v42, %v2185_v30  ;;  %v1805_v18 = vadd.f32 %v1804_v27, %v9438_v26  ;;  %7234 = vmatpush1.bf16.msra.mxu1 %v7233_v29  ;;  %3182 = vperm.xlu1 %8051, %v2936_v36   ;;  %v2508_v26 = vld [vmem:[#allocation3 + $0x408] sm:$0xff]  ;;  %v9719_v42 = vpop.permute.xlu0 %941  ;;  %v9724_v30 = vpop.permute.xlu1 %946 }
 0x1cd   :  { %v2188_v21 = vmul.f32 0.01, %v1810_v50  ;;  %3177 = vperm.xlu0 %8050, %v2935_v12   ;;  %3414 = vmatprep.mubr.f32.mxu1 %v2500_v56  ;;  %v2516_v36 = vld [vmem:[#allocation3 + $0x448] sm:$0xff] }
 0x1ce   :  { %v2187_v54 = vmul.f32 0.01, %v1805_v18  ;;  %v6974_v14 = vpop.f32.mrb[66].mxu0  ;;  %7235 = vmatprep.subr.bf16.mxu1 %v10602_v38  ;;  %v7236_v37 = vpack.c.bf16 %v2314_v11, %v2313_v24  ;;  %v2515_v24 = vld [vmem:[#allocation3 + $0x440] sm:$0xff] }
 0x1cf   :  { %v2316_v10 = vmax.f32 %v1810_v50, %v2188_v21  ;;  %v1820_v7 = vadd.f32 %v6974_v14, %v9448_v63  ;;  %v1814_v9 = vpop.f32.mrb[67].mxu0  ;;  %3415 = vmatmul.mubr.f32.gmra.mrb[30].mxu1 %v2499_v49  ;;  %v2942_v49 = vld [vmem:[%s10590_s4 + $0x198] sm:$0xff]  ;;  %v2524_v21 = vld [vmem:[#allocation3 + $0x488] sm:$0xff] }
 0x1d0   :  { %v2315_v57 = vmax.f32 %v1805_v18, %v2187_v54  ;;  %v1815_v47 = vadd.f32 %v1814_v9, %v9451_v19  ;;  %7237 = vmatpush1.bf16.msra.mxu1 %v7236_v37  ;;  %3192 = vperm.xlu1 %8051, %v2938_v3   ;;  %v2939_v19 = vld [vmem:[%s10590_s4 + $0x180] sm:$0xff]  ;;  %v9742_v37 = vpop.permute.xlu0 %831 }
 0x1d1   :  { %v2190_v22 = vmul.f32 0.01, %v1820_v7  ;;  %3187 = vperm.xlu0 %8050, %v2937_v1   ;;  %3419 = vmatprep.mubr.f32.mxu1 %v2508_v26 }
 0x1d2   :  { %v2189_v63 = vmul.f32 0.01, %v1815_v47  ;;  %v6977_v46 = vpop.f32.mrb[68].mxu0  ;;  %7238 = vmatprep.subr.bf16.mxu1 %v10602_v38  ;;  %v9730_v29 = vpack.c.bf16 %v2316_v10, %v2315_v57  ;;  %v9745_v10 = vpop.permute.xlu1 %836  ;;  %v2523_v57 = vld [vmem:[#allocation3 + $0x480] sm:$0xff] }
 0x1d3   :  { %v2318_v12 = vmax.f32 %v1820_v7, %v2190_v22  ;;  %v1830_v56 = vadd.f32 %v6977_v46, %v9461_v5  ;;  %v1824_v11 = vpop.f32.mrb[69].mxu0  ;;  %3420 = vmatmul.mubr.f32.gmra.mrb[32].mxu1 %v2507_v45  ;;  %v2941_v5 = vld [vmem:[%s10590_s4 + $0x190] sm:$0xff]  ;;  %v2944_v45 = vld [vmem:[%s10590_s4 + $0x1a8] sm:$0xff] }
 0x1d4   :  { %v2317_v50 = vmax.f32 %v1815_v47, %v2189_v63  ;;  %v1825_v27 = vadd.f32 %v1824_v11, %v9464_v25  ;;  %3202 = vperm.xlu1 %8051, %v2940_v8   ;;  %3424 = vmatprep.mubr.f32.mxu1 %v2516_v36  ;;  %v2532_v22 = vld [vmem:[#allocation3 + $0x4c8] sm:$0xff]  ;;  %v2531_v11 = vld [vmem:[#allocation3 + $0x4c0] sm:$0xff] }
 0x1d5   :  { %v2192_v18 = vmul.f32 0.01, %v1830_v56  ;;  %3197 = vperm.xlu0 %8050, %v2939_v19  }
 0x1d6   :  { %v2191_v3 = vmul.f32 0.01, %v1825_v27  ;;  %v6980_v54 = vpop.f32.mrb[70].mxu0  ;;  %v9740_v14 = vpack.c.bf16 %v2318_v12, %v2317_v50  ;;  %v9758_v50 = vpop.permute.xlu0 %951 }
 0x1d7   :  { %v2320_v25 = vmax.f32 %v1830_v56, %v2192_v18  ;;  %v1840_v1 = vadd.f32 %v6980_v54, %v9474_v28  ;;  %v1834_v26 = vpop.f32.mrb[71].mxu0  ;;  %3425 = vmatmul.mubr.f32.gmra.mrb[34].mxu1 %v2515_v24  ;;  %v2943_v28 = vld [vmem:[%s10590_s4 + $0x1a0] sm:$0xff]  ;;  %v2946_v24 = vld [vmem:[%s10590_s4 + $0x1b8] sm:$0xff]  ;;  %v2540_v18 = vld [vmem:[#allocation3 + $0x508] sm:$0xff] }
 0x1d8   :  { %v2319_v7 = vmax.f32 %v1825_v27, %v2191_v3  ;;  %v1835_v9 = vadd.f32 %v1834_v26, %v9477_v13  ;;  %3212 = vperm.xlu1 %8051, %v2942_v49   ;;  %3429 = vmatprep.mubr.f32.mxu1 %v2524_v21  ;;  %v9763_v49 = vpop.permute.xlu1 %956 }
 0x1d9   :  { %v2194_v47 = vmul.f32 0.01, %v1840_v1  ;;  %3207 = vperm.xlu0 %8050, %v2941_v5  }
 0x1da   :  { %v2193_v8 = vmul.f32 0.01, %v1835_v9  ;;  %v6983_v36 = vpop.f32.mrb[72].mxu0  ;;  %v9754_v63 = vpack.c.bf16 %v2320_v25, %v2319_v7  ;;  %v2539_v7 = vld [vmem:[#allocation3 + $0x500] sm:$0xff] }
 0x1db   :  { %v2322_v46 = vmax.f32 %v1840_v1, %v2194_v47  ;;  %v1850_v13 = vadd.f32 %v6983_v36, %v9487_v39  ;;  %v1844_v19 = vpop.f32.mrb[73].mxu0  ;;  %3430 = vmatmul.mubr.f32.gmra.mrb[36].mxu1 %v2523_v57  ;;  %v2948_v57 = vld [vmem:[%s10590_s4 + $0x1c8] sm:$0xff]  ;;  %v9780_v36 = vpop.permute.xlu0 %841 }
 0x1dc   :  { %v2321_v12 = vmax.f32 %v1835_v9, %v2193_v8  ;;  %v1845_v56 = vadd.f32 %v1844_v19, %v9490_v20  ;;  %3222 = vperm.xlu1 %8051, %v2944_v45   ;;  %3434 = vmatprep.mubr.f32.mxu1 %v2532_v22  ;;  %v2945_v20 = vld [vmem:[%s10590_s4 + $0x1b0] sm:$0xff] }
 0x1dd   :  { %v2196_v27 = vmul.f32 0.01, %v1850_v13  ;;  %3217 = vperm.xlu0 %8050, %v2943_v28   ;;  %v2548_v47 = vld [vmem:[#allocation3 + $0x548] sm:$0xff] }
 0x1de   :  { %v2195_v39 = vmul.f32 0.01, %v1845_v56  ;;  %v6986_v21 = vpop.f32.mrb[74].mxu0  ;;  %v9768_v3 = vpack.c.bf16 %v2322_v46, %v2321_v12 }
 0x1df   :  { %v2324_v54 = vmax.f32 %v1850_v13, %v2196_v27  ;;  %v1860_v5 = vadd.f32 %v6986_v21, %v9513_v32  ;;  %v1854_v25 = vpop.f32.mrb[75].mxu0  ;;  %3435 = vmatmul.mubr.f32.gmra.mrb[38].mxu1 %v2531_v11  ;;  %v2947_v32 = vld [vmem:[%s10590_s4 + $0x1c0] sm:$0xff]  ;;  %v9783_v13 = vpop.permute.xlu1 %846  ;;  %v2950_v27 = vld [vmem:[%s10590_s4 + $0x1d8] sm:$0xff] }
 0x1e0   :  { %v2323_v1 = vmax.f32 %v1845_v56, %v2195_v39  ;;  %v1855_v26 = vadd.f32 %v1854_v25, %v9516_v44  ;;  %3232 = vperm.xlu1 %8051, %v2946_v24   ;;  %3439 = vmatprep.mubr.f32.mxu1 %v2540_v18  ;;  %v2547_v56 = vld [vmem:[#allocation3 + $0x540] sm:$0xff]  ;;  %v2556_v24 = vld [vmem:[#allocation3 + $0x588] sm:$0xff] }
 0x1e1   :  { %v2198_v9 = vmul.f32 0.01, %v1860_v5  ;;  %3227 = vperm.xlu0 %8050, %v2945_v20  }
 0x1e2   :  { %v2197_v45 = vmul.f32 0.01, %v1855_v26  ;;  %v6989_v22 = vpop.f32.mrb[76].mxu0  ;;  %v9778_v8 = vpack.c.bf16 %v2324_v54, %v2323_v1  ;;  %v2555_v1 = vld [vmem:[#allocation3 + $0x580] sm:$0xff] }
 0x1e3   :  { %v2326_v44 = vmax.f32 %v1860_v5, %v2198_v9  ;;  %v1870_v28 = vadd.f32 %v6989_v22, %v9539_v15  ;;  %v1864_v46 = vpop.f32.mrb[77].mxu0  ;;  %3440 = vmatmul.mubr.f32.gmra.mrb[40].mxu1 %v2539_v7  ;;  %v2949_v15 = vld [vmem:[%s10590_s4 + $0x1d0] sm:$0xff]  ;;  %v2952_v9 = vld [vmem:[%s10590_s4 + $0x1e8] sm:$0xff] }
 0x1e4   :  { %v2325_v19 = vmax.f32 %v1855_v26, %v2197_v45  ;;  %v1865_v12 = vadd.f32 %v1864_v46, %v9542_v6  ;;  %3242 = vperm.xlu1 %8051, %v2948_v57   ;;  %3444 = vmatprep.mubr.f32.mxu1 %v2548_v47  ;;  %v9796_v26 = vpop.permute.xlu0 %961  ;;  %v2564_v57 = vld [vmem:[#allocation3 + $0x5c8] sm:$0xff]  ;;  %v9801_v47 = vpop.permute.xlu1 %966 }
 0x1e5   :  { %v2200_v11 = vmul.f32 0.01, %v1870_v28  ;;  %3237 = vperm.xlu0 %8050, %v2947_v32  }
 0x1e6   :  { %v2199_v18 = vmul.f32 0.01, %v1865_v12  ;;  %v6992_v39 = vpop.f32.mrb[78].mxu0  ;;  %v9792_v21 = vpack.c.bf16 %v2326_v44, %v2325_v19 }
 0x1e7   :  { %v2328_v20 = vmax.f32 %v1870_v28, %v2200_v11  ;;  %v1880_v6 = vadd.f32 %v6992_v39, %v9566_v51  ;;  %v1874_v54 = vpop.f32.mrb[79].mxu0  ;;  %3445 = vmatmul.mubr.f32.gmra.mrb[42].mxu1 %v2547_v56  ;;  %v2954_v11 = vld [vmem:[%s10590_s4 + $0x1f8] sm:$0xff] }
 0x1e8   :  { %v2327_v5 = vmax.f32 %v1865_v12, %v2199_v18  ;;  %v1875_v25 = vadd.f32 %v1874_v54, %v9568_v23  ;;  %3252 = vperm.xlu1 %8051, %v2950_v27   ;;  %3449 = vmatprep.mubr.f32.mxu1 %v2556_v24  ;;  %v2951_v23 = vld [vmem:[%s10590_s4 + $0x1e0] sm:$0xff]  ;;  %v2572_v27 = vld [vmem:[#allocation3 + $0x608] sm:$0xff]  ;;  %v9821_v54 = vpop.permute.xlu1 %856 }
 0x1e9   :  { %v2202_v7 = vmul.f32 0.01, %v1880_v6  ;;  %3247 = vperm.xlu0 %8050, %v2949_v15   ;;  %v2563_v12 = vld [vmem:[#allocation3 + $0x5c0] sm:$0xff]  ;;  %v9818_v15 = vpop.permute.xlu0 %851 }
 0x1ea   :  { %v2201_v51 = vmul.f32 0.01, %v1875_v25  ;;  %v6995_v45 = vpop.f32.mrb[80].mxu0  ;;  %v9806_v22 = vpack.c.bf16 %v2328_v20, %v2327_v5 }
 0x1eb   :  { %v2330_v32 = vmax.f32 %v1880_v6, %v2202_v7  ;;  %v1890_v44 = vadd.f32 %v6995_v45, %v9602_v59  ;;  %v1884_v28 = vpop.f32.mrb[81].mxu0  ;;  %3450 = vmatmul.mubr.f32.gmra.mrb[44].mxu1 %v2555_v1  ;;  %v2953_v59 = vld [vmem:[%s10590_s4 + $0x1f0] sm:$0xff]  ;;  %v2571_v1 = vld [vmem:[#allocation3 + $0x600] sm:$0xff] }
 0x1ec   :  { %v2329_v46 = vmax.f32 %v1875_v25, %v2201_v51  ;;  %v1885_v19 = vadd.f32 %v1884_v28, %v9599_v61  ;;  %3262 = vperm.xlu1 %8051, %v2952_v9   ;;  %3454 = vmatprep.mubr.f32.mxu1 %v2564_v57  ;;  %v5088_v9 = vld [vmem:[%s10592_s6 + $0x88] sm:$0xff] }
 0x1ed   :  { %v2204_v56 = vmul.f32 0.01, %v1890_v44  ;;  %3257 = vperm.xlu0 %8050, %v2951_v23   ;;  %v2580_v57 = vld [vmem:[#allocation3 + $0x648] sm:$0xff] }
 0x1ee   :  { %v2203_v24 = vmul.f32 0.01, %v1885_v19  ;;  %v6998_v18 = vpop.f32.mrb[82].mxu0  ;;  %v9816_v39 = vpack.c.bf16 %v2330_v32, %v2329_v46 }
 0x1ef   :  { %v2332_v61 = vmax.f32 %v1890_v44, %v2204_v56  ;;  %v1900_v20 = vadd.f32 %v6998_v18, %v9637_v16  ;;  %v1894_v6 = vpop.f32.mrb[83].mxu0  ;;  %3455 = vmatmul.mubr.f32.gmra.mrb[46].mxu1 %v2563_v12  ;;  %v5087_v16 = vld [vmem:[%s10592_s6 + $0x80] sm:$0xff]  ;;  %v9834_v12 = vpop.permute.xlu0 %971 }
 0x1f0   :  { %v2331_v5 = vmax.f32 %v1885_v19, %v2203_v24  ;;  %v1895_v25 = vadd.f32 %v1894_v6, %v9634_v43  ;;  %3272 = vperm.xlu1 %8051, %v2954_v11   ;;  %3459 = vmatprep.mubr.f32.mxu1 %v2572_v27  ;;  %v2579_v19 = vld [vmem:[#allocation3 + $0x640] sm:$0xff]  ;;  %v2588_v27 = vld [vmem:[#allocation3 + $0x688] sm:$0xff]  ;;  %v9839_v24 = vpop.permute.xlu1 %976 }
 0x1f1   :  { %v2206_v7 = vmul.f32 0.01, %v1900_v20  ;;  %3267 = vperm.xlu0 %8050, %v2953_v59   ;;  %v5072_v11 = vld [vmem:[%s10592_s6 + $0x8] sm:$0xff] }
 0x1f2   :  { %v2205_v51 = vmul.f32 0.01, %v1895_v25  ;;  %v7001_v45 = vpop.f32.mrb[84].mxu0  ;;  %v9830_v23 = vpack.c.bf16 %v2332_v61, %v2331_v5 }
 0x1f3   :  { %v2334_v32 = vmax.f32 %v1900_v20, %v2206_v7  ;;  %v1910_v43 = vadd.f32 %v7001_v45, %v9672_v55  ;;  %v1904_v44 = vpop.f32.mrb[85].mxu0  ;;  %3460 = vmatmul.mubr.f32.gmra.mrb[48].mxu1 %v2571_v1  ;;  %v2587_v1 = vld [vmem:[#allocation3 + $0x680] sm:$0xff] }
 0x1f4   :  { %v2333_v28 = vmax.f32 %v1895_v25, %v2205_v51  ;;  %v1905_v46 = vadd.f32 %v1904_v44, %v9669_v4  ;;  %5190 = vperm.xlu1 %8051, %v5088_v9   ;;  %3464 = vmatprep.mubr.f32.mxu1 %v2580_v57  ;;  %v5071_v4 = vld [vmem:[%s10592_s6] sm:$0xff]  ;;  %v5090_v9 = vld [vmem:[%s10592_s6 + $0x98] sm:$0xff]  ;;  %v2596_v57 = vld [vmem:[#allocation3 + $0x6c8] sm:$0xff] }
 0x1f5   :  { %v2208_v56 = vmul.f32 0.01, %v1910_v43  ;;  %5185 = vperm.xlu0 %8050, %v5087_v16  }
 0x1f6   :  { %v2207_v55 = vmul.f32 0.01, %v1905_v46  ;;  %v7004_v18 = vpop.f32.mrb[86].mxu0  ;;  %v9844_v59 = vpack.c.bf16 %v2334_v32, %v2333_v28  ;;  %v862_v32 = vpop.permute.xlu0 %861 }
 0x1f7   :  { %v2336_v61 = vmax.f32 %v1910_v43, %v2208_v56  ;;  %v1920_v20 = vadd.f32 %v7004_v18, %v9707_v40  ;;  %v1914_v6 = vpop.f32.mrb[87].mxu0  ;;  %3465 = vmatmul.mubr.f32.gmra.mrb[50].mxu1 %v2579_v19  ;;  %v5089_v40 = vld [vmem:[%s10592_s6 + $0x90] sm:$0xff]  ;;  %v867_v28 = vpop.permute.xlu1 %866  ;;  %v2595_v56 = vld [vmem:[#allocation3 + $0x6c0] sm:$0xff] }
 0x1f8   :  { %v2335_v5 = vmax.f32 %v1905_v46, %v2207_v55  ;;  %v1915_v25 = vadd.f32 %v1914_v6, %v9704_v52  ;;  %5110 = vperm.xlu1 %8051, %v5072_v11   ;;  %3469 = vmatprep.mubr.f32.mxu1 %v2588_v27  ;;  %v5074_v27 = vld [vmem:[%s10592_s6 + $0x18] sm:$0xff]  ;;  %v2604_v55 = vld [vmem:[#allocation3 + $0x708] sm:$0xff] }
 0x1f9   :  { %v2210_v7 = vmul.f32 0.01, %v1920_v20  ;;  %5105 = vperm.xlu0 %8050, %v5071_v4  }
 0x1fa   :  { %v2209_v51 = vmul.f32 0.01, %v1915_v25  ;;  %v7007_v45 = vpop.f32.mrb[88].mxu0  ;;  %v9854_v16 = vpack.c.bf16 %v2336_v61, %v2335_v5 }
 0x1fb   :  { %v2338_v52 = vmax.f32 %v1920_v20, %v2210_v7  ;;  %v1930_v43 = vadd.f32 %v7007_v45, %v9745_v10  ;;  %v1924_v44 = vpop.f32.mrb[89].mxu0  ;;  %3470 = vmatmul.mubr.f32.gmra.mrb[52].mxu1 %v2587_v1  ;;  %v5073_v10 = vld [vmem:[%s10592_s6 + $0x10] sm:$0xff]  ;;  %v2603_v1 = vld [vmem:[#allocation3 + $0x700] sm:$0xff]  ;;  %v9868_v7 = vpop.permute.xlu0 %981 }
 0x1fc   :  { %v2337_v46 = vmax.f32 %v1915_v25, %v2209_v51  ;;  %v1925_v19 = vadd.f32 %v1924_v44, %v9742_v37  ;;  %5200 = vperm.xlu1 %8051, %v5090_v9   ;;  %3474 = vmatprep.mubr.f32.mxu1 %v2596_v57  ;;  %v5092_v57 = vld [vmem:[%s10592_s6 + $0xa8] sm:$0xff]  ;;  %v9873_v45 = vpop.permute.xlu1 %986 }
 0x1fd   :  { %v2212_v11 = vmul.f32 0.01, %v1930_v43  ;;  %5195 = vperm.xlu0 %8050, %v5089_v40   ;;  %v2612_v51 = vld [vmem:[#allocation3 + $0x748] sm:$0xff] }
 0x1fe   :  { %v2211_v18 = vmul.f32 0.01, %v1925_v19  ;;  %v7010_v4 = vpop.f32.mrb[90].mxu0  ;;  %v9864_v61 = vpack.c.bf16 %v2338_v52, %v2337_v46 }
 0x1ff   :  { %v2340_v20 = vmax.f32 %v1930_v43, %v2212_v11  ;;  %v1940_v37 = vadd.f32 %v7010_v4, %v9783_v13  ;;  %v1934_v6 = vpop.f32.mrb[91].mxu0  ;;  %3475 = vmatmul.mubr.f32.gmra.mrb[54].mxu1 %v2595_v56  ;;  %v2611_v11 = vld [vmem:[#allocation3 + $0x740] sm:$0xff] }
 0x200   :  { %v2339_v5 = vmax.f32 %v1925_v19, %v2211_v18  ;;  %v1935_v25 = vadd.f32 %v1934_v6, %v9780_v36  ;;  %5120 = vperm.xlu1 %8051, %v5074_v27   ;;  %3479 = vmatprep.mubr.f32.mxu1 %v2604_v55  ;;  %v5091_v36 = vld [vmem:[%s10592_s6 + $0xa0] sm:$0xff]  ;;  %v5076_v55 = vld [vmem:[%s10592_s6 + $0x28] sm:$0xff] }
 0x201   :  { %v2214_v9 = vmul.f32 0.01, %v1940_v37  ;;  %5115 = vperm.xlu0 %8050, %v5073_v10   ;;  %v2620_v18 = vld [vmem:[#allocation3 + $0x788] sm:$0xff] }
 0x202   :  { %v2213_v13 = vmul.f32 0.01, %v1935_v25  ;;  %v7013_v40 = vpop.f32.mrb[92].mxu0  ;;  %v9878_v52 = vpack.c.bf16 %v2340_v20, %v2339_v5 }
 0x203   :  { %v2342_v43 = vmax.f32 %v1940_v37, %v2214_v9  ;;  %v1950_v44 = vadd.f32 %v7013_v40, %v9821_v54  ;;  %v1944_v46 = vpop.f32.mrb[93].mxu0  ;;  %3480 = vmatmul.mubr.f32.gmra.mrb[56].mxu1 %v2603_v1  ;;  %v5075_v54 = vld [vmem:[%s10592_s6 + $0x20] sm:$0xff]  ;;  %v9890_v37 = vpop.permute.xlu0 %991  ;;  %v2628_v40 = vld [vmem:[#allocation3 + $0x7c8] sm:$0xff] }
 0x204   :  { %v2341_v19 = vmax.f32 %v1935_v25, %v2213_v13  ;;  %v1945_v56 = vadd.f32 %v1944_v46, %v9818_v15  ;;  %5210 = vperm.xlu1 %8051, %v5092_v57   ;;  %3484 = vmatprep.mubr.f32.mxu1 %v2612_v51  ;;  %v9892_v25 = vpop.permute.xlu1 %996  ;;  %v2619_v57 = vld [vmem:[#allocation3 + $0x780] sm:$0xff]  ;;  %v5094_v13 = vld [vmem:[%s10592_s6 + $0xb8] sm:$0xff] }
 0x205   :  { %v2216_v27 = vmul.f32 0.01, %v1950_v44  ;;  %5205 = vperm.xlu0 %8050, %v5091_v36  }
 0x206   :  { %v2215_v4 = vmul.f32 0.01, %v1945_v56  ;;  %v7016_v10 = vpop.f32.mrb[94].mxu0  ;;  %v9888_v20 = vpack.c.bf16 %v2342_v43, %v2341_v19 }
 0x207   :  { %v2344_v15 = vmax.f32 %v1950_v44, %v2216_v27  ;;  %v1960_v6 = vadd.f32 %v7016_v10, %v867_v28  ;;  %v1954_v5 = vpop.f32.mrb[95].mxu0  ;;  %3485 = vmatmul.mubr.f32.gmra.mrb[58].mxu1 %v2611_v11  ;;  %v5093_v28 = vld [vmem:[%s10592_s6 + $0xb0] sm:$0xff]  ;;  %v2627_v27 = vld [vmem:[#allocation3 + $0x7c0] sm:$0xff] }
 0x208   :  { %v2343_v1 = vmax.f32 %v1945_v56, %v2215_v4  ;;  %v1955_v9 = vadd.f32 %v1954_v5, %v862_v32  ;;  %5130 = vperm.xlu1 %8051, %v5076_v55   ;;  %3489 = vmatprep.mubr.f32.mxu1 %v2620_v18  ;;  %v9904_v55 = vpop.permute.xlu0 %1001  ;;  %v5078_v4 = vld [vmem:[%s10592_s6 + $0x38] sm:$0xff]  ;;  %v2636_v10 = vld [vmem:[#allocation3 + $0x808] sm:$0xff] }
 0x209   :  { %v2218_v51 = vmul.f32 0.01, %v1960_v6  ;;  %5125 = vperm.xlu0 %8050, %v5075_v54   ;;  %v9909_v54 = vpop.permute.xlu1 %1006 }
 0x20a   :  { %v2217_v36 = vmul.f32 0.01, %v1955_v9  ;;  %v7019_v43 = vpop.f32.mrb[96].mxu0  ;;  %v9900_v44 = vpack.c.bf16 %v2344_v15, %v2343_v1 }
 0x20b   :  { %v2346_v46 = vmax.f32 %v1960_v6, %v2218_v51  ;;  %v1970_v32 = vadd.f32 %v7019_v43, %v9500_v31  ;;  %v1964_v19 = vpop.f32.mrb[97].mxu0  ;;  %3490 = vmatmul.mubr.f32.gmra.mrb[60].mxu1 %v2619_v57 }
 0x20c   :  { %v2345_v56 = vmax.f32 %v1955_v9, %v2217_v36  ;;  %v1965_v11 = vadd.f32 %v1964_v19, %v9503_v58  ;;  %5220 = vperm.xlu1 %8051, %v5094_v13   ;;  %3494 = vmatprep.mubr.f32.mxu1 %v2628_v40  ;;  %v5077_v58 = vld [vmem:[%s10592_s6 + $0x30] sm:$0xff]  ;;  %v2635_v13 = vld [vmem:[#allocation3 + $0x800] sm:$0xff]  ;;  %v9926_v19 = vpop.permute.xlu0 %1011 }
 0x20d   :  { %v2220_v18 = vmul.f32 0.01, %v1970_v32  ;;  %5215 = vperm.xlu0 %8050, %v5093_v28   ;;  %v5096_v36 = vld [vmem:[%s10592_s6 + $0xc8] sm:$0xff] }
 0x20e   :  { %v2219_v31 = vmul.f32 0.01, %v1965_v11  ;;  %v7022_v15 = vpop.f32.mrb[98].mxu0  ;;  %v9914_v6 = vpack.c.bf16 %v2346_v46, %v2345_v56 }
 0x20f   :  { %v2348_v5 = vmax.f32 %v1970_v32, %v2220_v18  ;;  %v1980_v1 = vadd.f32 %v7022_v15, %v9526_v33  ;;  %v1974_v9 = vpop.f32.mrb[99].mxu0  ;;  %3495 = vmatmul.mubr.f32.gmra.mrb[62].mxu1 %v2627_v27  ;;  %v5095_v33 = vld [vmem:[%s10592_s6 + $0xc0] sm:$0xff]  ;;  %v2644_v32 = vld [vmem:[#allocation3 + $0x848] sm:$0xff]  ;;  %v9929_v27 = vpop.permute.xlu1 %1016 }
 0x210   :  { %v2347_v57 = vmax.f32 %v1965_v11, %v2219_v31  ;;  %v1975_v51 = vadd.f32 %v1974_v9, %v9529_v0  ;;  %5140 = vperm.xlu1 %8051, %v5078_v4   ;;  %3499 = vmatprep.mubr.f32.mxu1 %v2636_v10  ;;  %v10605_v4 = vld [vmem:[#allocation17_spill] sm:$0xff] }
 0x211   :  { %v2222_v40 = vmul.f32 0.01, %v1980_v1  ;;  %5135 = vperm.xlu0 %8050, %v5077_v58   ;;  %v2643_v31 = vld [vmem:[#allocation3 + $0x840] sm:$0xff] }
 0x212   :  { %v2221_v43 = vmul.f32 0.01, %v1975_v51  ;;  %v7025_v28 = vpop.f32.mrb[100].mxu0  ;;  %v9921_v46 = vpack.c.bf16 %v2348_v5, %v2347_v57  ;;  %v5080_v58 = vld [vmem:[%s10592_s6 + $0x48] sm:$0xff]  ;;  %v5079_v9 = vld [vmem:[%s10592_s6 + $0x40] sm:$0xff] }
 0x213   :  { %v2350_v0 = vmax.f32 %v1980_v1, %v2222_v40  ;;  %v1990_v56 = vadd.f32 %v7025_v28, %v9552_v41  ;;  %v1984_v11 = vpop.f32.mrb[101].mxu0  ;;  %3500 = vmatmul.mubr.f32.gmra.mrb[64].mxu1 %v2635_v13  ;;  %v2652_v57 = vld [vmem:[#allocation3 + $0x888] sm:$0xff]  ;;  %v2651_v28 = vld [vmem:[#allocation3 + $0x880] sm:$0xff] }
 0x214   :  { %v2349_v18 = vmax.f32 %v1975_v51, %v2221_v43  ;;  %v1985_v10 = vadd.f32 %v1984_v11, %v10605_v4  ;;  %7288 = vmatpush1.bf16.msra.mxu0 %v9921_v46  ;;  %5230 = vperm.xlu1 %8051, %v5096_v36   ;;  %v2660_v4 = vld [vmem:[#allocation3 + $0x8c8] sm:$0xff] }
 0x215   :  { %v2224_v15 = vmul.f32 0.01, %v1990_v56  ;;  %5225 = vperm.xlu0 %8050, %v5095_v33   ;;  %3504 = vmatprep.mubr.f32.mxu1 %v2644_v32  ;;  %v9945_v33 = vpop.permute.xlu0 %1021 }
 0x216   :  { %v2223_v5 = vmul.f32 0.01, %v1985_v10  ;;  %v7028_v41 = vpop.f32.mrb[102].mxu0  ;;  %7289 = vmatprep.subr.bf16.mxu0 %v10602_v38  ;;  %v9937_v1 = vpack.c.bf16 %v2350_v0, %v2349_v18  ;;  %v5098_v0 = vld [vmem:[%s10592_s6 + $0xd8] sm:$0xff]  ;;  %v5097_v18 = vld [vmem:[%s10592_s6 + $0xd0] sm:$0xff] }
 0x217   :  { %v2352_v51 = vmax.f32 %v1990_v56, %v2224_v15  ;;  %v2000_v13 = vadd.f32 %v7028_v41, %v9584_v53  ;;  %v1994_v40 = vpop.f32.mrb[103].mxu0  ;;  %3505 = vmatmul.mubr.f32.gmra.mrb[66].mxu1 %v2643_v31  ;;  %v9950_v56 = vpop.permute.xlu1 %1026  ;;  %v2659_v41 = vld [vmem:[#allocation3 + $0x8c0] sm:$0xff] }
 0x218   :  { %v2351_v36 = vmax.f32 %v1985_v10, %v2223_v5  ;;  %v1995_v43 = vadd.f32 %v1994_v40, %v9579_v60  ;;  %7291 = vmatpush1.bf16.msra.mxu0 %v9937_v1  ;;  %5150 = vperm.xlu1 %8051, %v5080_v58   ;;  %v2668_v40 = vld [vmem:[#allocation3 + $0x908] sm:$0xff] }
 0x219   :  { %v2226_v32 = vmul.f32 0.01, %v2000_v13  ;;  %5145 = vperm.xlu0 %8050, %v5079_v9   ;;  %3509 = vmatprep.mubr.f32.mxu1 %v2652_v57  ;;  %v5082_v57 = vld [vmem:[%s10592_s6 + $0x58] sm:$0xff] }
 0x21a   :  { %v2225_v53 = vmul.f32 0.01, %v1995_v43  ;;  %v7031_v11 = vpop.f32.mrb[104].mxu0  ;;  %7292 = vmatprep.subr.bf16.mxu0 %v10602_v38  ;;  %v9953_v60 = vpack.c.bf16 %v2352_v51, %v2351_v36  ;;  %v9970_v36 = vpop.permute.xlu0 %2957 }
 0x21b   :  { %v2354_v10 = vmax.f32 %v2000_v13, %v2226_v32  ;;  %v2010_v31 = vadd.f32 %v7031_v11, %v9619_v35  ;;  %v2004_v15 = vpop.f32.mrb[105].mxu0  ;;  %3510 = vmatmul.mubr.f32.gmra.mrb[68].mxu1 %v2651_v28 }
 0x21c   :  { %v2353_v58 = vmax.f32 %v1995_v43, %v2225_v53  ;;  %v2005_v5 = vadd.f32 %v2004_v15, %v9614_v17  ;;  %7294 = vmatpush1.bf16.msra.mxu0 %v9953_v60  ;;  %5240 = vperm.xlu1 %8051, %v5098_v0   ;;  %v5081_v17 = vld [vmem:[%s10592_s6 + $0x50] sm:$0xff]  ;;  %v9973_v0 = vpop.permute.xlu1 %2962 }
 0x21d   :  { %v2228_v9 = vmul.f32 0.01, %v2010_v31  ;;  %5235 = vperm.xlu0 %8050, %v5097_v18   ;;  %3514 = vmatprep.mubr.f32.mxu1 %v2660_v4  ;;  %v2667_v18 = vld [vmem:[#allocation3 + $0x900] sm:$0xff] }
 0x21e   :  { %v9964_v51 = vpack.c.bf16 %v2354_v10, %v2353_v58  ;;  %v2227_v13 = vmul.f32 0.01, %v2005_v5  ;;  %v7034_v35 = vpop.f32.mrb[106].mxu0  ;;  %7295 = vmatprep.subr.bf16.mxu0 %v10602_v38  ;;  %v5100_v10 = vld [vmem:[%s10592_s6 + $0xe8] sm:$0xff] }
 0x21f   :  { %v2356_v43 = vmax.f32 %v2010_v31, %v2228_v9  ;;  %v2020_v28 = vadd.f32 %v7034_v35, %v9654_v48  ;;  %v2014_v32 = vpop.f32.mrb[107].mxu0  ;;  %3515 = vmatmul.mubr.f32.gmra.mrb[70].mxu1 %v2659_v41  ;;  %v2676_v58 = vld [vmem:[#allocation3 + $0x948] sm:$0xff]  ;;  %v2675_v35 = vld [vmem:[#allocation3 + $0x940] sm:$0xff] }
 0x220   :  { %v2355_v53 = vmax.f32 %v2005_v5, %v2227_v13  ;;  %v2015_v11 = vadd.f32 %v2014_v32, %v9649_v2  ;;  %7297 = vmatpush1.bf16.msra.mxu0 %v9964_v51  ;;  %5160 = vperm.xlu1 %8051, %v5082_v57   ;;  %v5099_v2 = vld [vmem:[%s10592_s6 + $0xe0] sm:$0xff] }
 0x221   :  { %v2230_v4 = vmul.f32 0.01, %v2020_v28  ;;  %5155 = vperm.xlu0 %8050, %v5081_v17   ;;  %3519 = vmatprep.mubr.f32.mxu1 %v2668_v40  ;;  %v9989_v17 = vpop.permute.xlu0 %2967 }
 0x222   :  { %v9980_v31 = vpack.c.bf16 %v2356_v43, %v2355_v53  ;;  %v2229_v48 = vmul.f32 0.01, %v2015_v11  ;;  %v7037_v15 = vpop.f32.mrb[108].mxu0  ;;  %7298 = vmatprep.subr.bf16.mxu0 %v10602_v38  ;;  %v5084_v43 = vld [vmem:[%s10592_s6 + $0x68] sm:$0xff] }
 0x223   :  { %v2358_v5 = vmax.f32 %v2020_v28, %v2230_v4  ;;  %v2030_v41 = vadd.f32 %v7037_v15, %v9689_v62  ;;  %v2024_v9 = vpop.f32.mrb[109].mxu0  ;;  %3520 = vmatmul.mubr.f32.gmra.mrb[72].mxu1 %v2667_v18  ;;  %v9994_v28 = vpop.permute.xlu1 %2972 }
 0x224   :  { %v2357_v57 = vmax.f32 %v2015_v11, %v2229_v48  ;;  %v2025_v13 = vadd.f32 %v2024_v9, %v9684_v34  ;;  %7300 = vmatpush1.bf16.msra.mxu0 %v9980_v31  ;;  %5250 = vperm.xlu1 %8051, %v5100_v10   ;;  %v5083_v34 = vld [vmem:[%s10592_s6 + $0x60] sm:$0xff]  ;;  %v2684_v11 = vld [vmem:[#allocation3 + $0x988] sm:$0xff] }
 0x225   :  { %v2232_v40 = vmul.f32 0.01, %v2030_v41  ;;  %5245 = vperm.xlu0 %8050, %v5099_v2   ;;  %3524 = vmatprep.mubr.f32.mxu1 %v2676_v58  ;;  %v2683_v2 = vld [vmem:[#allocation3 + $0x980] sm:$0xff] }
 0x226   :  { %v9996_v62 = vpack.c.bf16 %v2358_v5, %v2357_v57  ;;  %v2231_v32 = vmul.f32 0.01, %v2025_v13  ;;  %v7040_v53 = vpop.f32.mrb[110].mxu0  ;;  %7301 = vmatprep.subr.bf16.mxu0 %v10602_v38  ;;  %v5102_v5 = vld [vmem:[%s10592_s6 + $0xf8] sm:$0xff]  ;;  %v2692_v57 = vld [vmem:[#allocation3 + $0x9c8] sm:$0xff] }
 0x227   :  { %v2360_v18 = vmax.f32 %v2030_v41, %v2232_v40  ;;  %v2040_v4 = vadd.f32 %v7040_v53, %v9724_v30  ;;  %v2034_v10 = vpop.f32.mrb[111].mxu0  ;;  %3525 = vmatmul.mubr.f32.gmra.mrb[74].mxu1 %v2675_v35 }
 0x228   :  { %v2359_v48 = vmax.f32 %v2025_v13, %v2231_v32  ;;  %v2035_v15 = vadd.f32 %v2034_v10, %v9719_v42  ;;  %7303 = vmatpush1.bf16.msra.mxu0 %v9996_v62  ;;  %5170 = vperm.xlu1 %8051, %v5084_v43   ;;  %v5101_v42 = vld [vmem:[%s10592_s6 + $0xf0] sm:$0xff]  ;;  %v10014_v13 = vpop.permute.xlu0 %2977  ;;  %v10017_v32 = vpop.permute.xlu1 %2982 }
 0x229   :  { %v2234_v58 = vmul.f32 0.01, %v2040_v4  ;;  %5165 = vperm.xlu0 %8050, %v5083_v34   ;;  %3529 = vmatprep.mubr.f32.mxu1 %v2684_v11  ;;  %v2691_v11 = vld [vmem:[#allocation3 + $0x9c0] sm:$0xff] }
 0x22a   :  { %v10008_v9 = vpack.c.bf16 %v2360_v18, %v2359_v48  ;;  %v2233_v41 = vmul.f32 0.01, %v2035_v15  ;;  %v7043_v30 = vpop.f32.mrb[112].mxu0  ;;  %7304 = vmatprep.subr.bf16.mxu0 %v10602_v38 }
 0x22b   :  { %v2362_v35 = vmax.f32 %v2040_v4, %v2234_v58  ;;  %v2050_v40 = vadd.f32 %v7043_v30, %v9763_v49  ;;  %v2044_v43 = vpop.f32.mrb[113].mxu0  ;;  %3530 = vmatmul.mubr.f32.gmra.mrb[76].mxu1 %v2683_v2  ;;  %v5086_v4 = vld [vmem:[%s10592_s6 + $0x78] sm:$0xff] }
 0x22c   :  { %v2361_v53 = vmax.f32 %v2035_v15, %v2233_v41  ;;  %v2045_v34 = vadd.f32 %v2044_v43, %v9758_v50  ;;  %7306 = vmatpush1.bf16.msra.mxu0 %v10008_v9  ;;  %5260 = vperm.xlu1 %8051, %v5102_v5   ;;  %v5085_v50 = vld [vmem:[%s10592_s6 + $0x70] sm:$0xff]  ;;  %v10038_v43 = vpop.permute.xlu1 %2992 }
 0x22d   :  { %v2236_v18 = vmul.f32 0.01, %v2050_v40  ;;  %5255 = vperm.xlu0 %8050, %v5101_v42   ;;  %3534 = vmatprep.mubr.f32.mxu1 %v2692_v57  ;;  %v2700_v15 = vld [vmem:[#allocation3 + $0xa08] sm:$0xff]  ;;  %v2699_v42 = vld [vmem:[#allocation3 + $0xa00] sm:$0xff]  ;;  %v10033_v57 = vpop.permute.xlu0 %2987 }
 0x22e   :  { %v10024_v10 = vpack.c.bf16 %v2362_v35, %v2361_v53  ;;  %v2235_v49 = vmul.f32 0.01, %v2045_v34  ;;  %v7046_v48 = vpop.f32.mrb[114].mxu0  ;;  %7307 = vmatprep.subr.bf16.mxu0 %v10602_v38 }
 0x22f   :  { %v2364_v2 = vmax.f32 %v2050_v40, %v2236_v18  ;;  %v2060_v58 = vadd.f32 %v7046_v48, %v9801_v47  ;;  %v2054_v5 = vpop.f32.mrb[115].mxu0  ;;  %3535 = vmatmul.mubr.f32.gmra.mrb[78].mxu1 %v2691_v11  ;;  %v5810_v40 = vld [vmem:[%s10594_s8 + $0x8] sm:$0xff] }
 0x230   :  { %v2363_v41 = vmax.f32 %v2045_v34, %v2235_v49  ;;  %v2055_v30 = vadd.f32 %v2054_v5, %v9796_v26  ;;  %7309 = vmatpush1.bf16.msra.mxu0 %v10024_v10  ;;  %5180 = vperm.xlu1 %8051, %v5086_v4   ;;  %v5809_v26 = vld [vmem:[%s10594_s8] sm:$0xff]  ;;  %v2708_v11 = vld [vmem:[#allocation3 + $0xa48] sm:$0xff]  ;;  %v5812_v5 = vld [vmem:[%s10594_s8 + $0x18] sm:$0xff] }
 0x231   :  { %v2238_v35 = vmul.f32 0.01, %v2060_v58  ;;  %5175 = vperm.xlu0 %8050, %v5085_v50   ;;  %3539 = vmatprep.mubr.f32.mxu1 %v2700_v15  ;;  %v2707_v15 = vld [vmem:[#allocation3 + $0xa40] sm:$0xff] }
 0x232   :  { %v10040_v47 = vpack.c.bf16 %v2364_v2, %v2363_v41  ;;  %v2237_v53 = vmul.f32 0.01, %v2055_v30  ;;  %v7049_v34 = vpop.f32.mrb[116].mxu0  ;;  %7310 = vmatprep.subr.bf16.mxu0 %v10602_v38 }
 0x233   :  { %v2366_v18 = vmax.f32 %v2060_v58, %v2238_v35  ;;  %v2070_v4 = vadd.f32 %v7049_v34, %v9839_v24  ;;  %v2064_v49 = vpop.f32.mrb[117].mxu0  ;;  %3540 = vmatmul.mubr.f32.gmra.mrb[80].mxu1 %v2699_v42  ;;  %v10058_v42 = vpop.permute.xlu0 %2997 }
 0x234   :  { %v2365_v48 = vmax.f32 %v2055_v30, %v2237_v53  ;;  %v2065_v50 = vadd.f32 %v2064_v49, %v9834_v12  ;;  %7312 = vmatpush1.bf16.msra.mxu0 %v10040_v47  ;;  %5832 = vperm.xlu1 %8051, %v5810_v40   ;;  %v5811_v12 = vld [vmem:[%s10594_s8 + $0x10] sm:$0xff]  ;;  %v10061_v34 = vpop.permute.xlu1 %3002 }
 0x235   :  { %v2240_v2 = vmul.f32 0.01, %v2070_v4  ;;  %5827 = vperm.xlu0 %8050, %v5809_v26   ;;  %3544 = vmatprep.mubr.f32.mxu1 %v2708_v11  ;;  %v2716_v30 = vld [vmem:[#allocation3 + $0xa88] sm:$0xff] }
 0x236   :  { %v10052_v41 = vpack.c.bf16 %v2366_v18, %v2365_v48  ;;  %v2239_v58 = vmul.f32 0.01, %v2065_v50  ;;  %v7052_v24 = vpop.f32.mrb[118].mxu0  ;;  %7313 = vmatprep.subr.bf16.mxu0 %v10602_v38  ;;  %v2715_v18 = vld [vmem:[#allocation3 + $0xa80] sm:$0xff] }
 0x237   :  { %v2368_v35 = vmax.f32 %v2070_v4, %v2240_v2  ;;  %v2080_v40 = vadd.f32 %v7052_v24, %v9873_v45  ;;  %v2074_v53 = vpop.f32.mrb[119].mxu0  ;;  %3545 = vmatmul.mubr.f32.gmra.mrb[82].mxu1 %v2707_v15  ;;  %v5814_v4 = vld [vmem:[%s10594_s8 + $0x28] sm:$0xff] }
 0x238   :  { %v2367_v26 = vmax.f32 %v2065_v50, %v2239_v58  ;;  %v2075_v11 = vadd.f32 %v2074_v53, %v9868_v7  ;;  %7315 = vmatpush1.bf16.msra.mxu0 %v10052_v41  ;;  %5842 = vperm.xlu1 %8051, %v5812_v5   ;;  %v5813_v7 = vld [vmem:[%s10594_s8 + $0x20] sm:$0xff]  ;;  %v2724_v50 = vld [vmem:[#allocation3 + $0xac8] sm:$0xff] }
 0x239   :  { %v2242_v49 = vmul.f32 0.01, %v2080_v40  ;;  %5837 = vperm.xlu0 %8050, %v5811_v12   ;;  %3549 = vmatprep.mubr.f32.mxu1 %v2716_v30  ;;  %v2723_v30 = vld [vmem:[#allocation3 + $0xac0] sm:$0xff] }
 0x23a   :  { %v10068_v48 = vpack.c.bf16 %v2368_v35, %v2367_v26  ;;  %v2241_v45 = vmul.f32 0.01, %v2075_v11  ;;  %v7055_v15 = vpop.f32.mrb[120].mxu0  ;;  %7316 = vmatprep.subr.bf16.mxu0 %v10602_v38  ;;  %v10077_v35 = vpop.permute.xlu0 %3007 }
 0x23b   :  { %v2370_v2 = vmax.f32 %v2080_v40, %v2242_v49  ;;  %v2090_v5 = vadd.f32 %v7055_v15, %v9892_v25  ;;  %v2084_v58 = vpop.f32.mrb[121].mxu0  ;;  %3550 = vmatmul.mubr.f32.gmra.mrb[84].mxu1 %v2715_v18  ;;  %v5816_v40 = vld [vmem:[%s10594_s8 + $0x38] sm:$0xff]  ;;  %v10082_v26 = vpop.permute.xlu1 %3012  ;;  %v2732_v49 = vld [vmem:[#allocation3 + $0xb08] sm:$0xff] }
 0x23c   :  { %v2369_v24 = vmax.f32 %v2075_v11, %v2241_v45  ;;  %v2085_v12 = vadd.f32 %v2084_v58, %v9890_v37  ;;  %7318 = vmatpush1.bf16.msra.mxu0 %v10068_v48  ;;  %5852 = vperm.xlu1 %8051, %v5814_v4   ;;  %v5815_v37 = vld [vmem:[%s10594_s8 + $0x30] sm:$0xff] }
 0x23d   :  { %v2244_v53 = vmul.f32 0.01, %v2090_v5  ;;  %5847 = vperm.xlu0 %8050, %v5813_v7   ;;  %3554 = vmatprep.mubr.f32.mxu1 %v2724_v50 }
 0x23e   :  { %v10084_v25 = vpack.c.bf16 %v2370_v2, %v2369_v24  ;;  %v2243_v11 = vmul.f32 0.01, %v2085_v12  ;;  %v7058_v18 = vpop.f32.mrb[122].mxu0  ;;  %7319 = vmatprep.subr.bf16.mxu0 %v10602_v38  ;;  %v2731_v2 = vld [vmem:[#allocation3 + $0xb00] sm:$0xff] }
 0x23f   :  { %v2372_v4 = vmax.f32 %v2090_v5, %v2244_v53  ;;  %v2100_v45 = vadd.f32 %v7058_v18, %v9909_v54  ;;  %v2094_v15 = vpop.f32.mrb[123].mxu0  ;;  %3555 = vmatmul.mubr.f32.gmra.mrb[86].mxu1 %v2723_v30  ;;  %v5818_v24 = vld [vmem:[%s10594_s8 + $0x48] sm:$0xff]  ;;  %v10606_v53 = vmov 0.0|0.0   ;;  %v10102_v30 = vpop.permute.xlu0 %3017 }
 0x240   :  { %v2371_v7 = vmax.f32 %v2085_v12, %v2243_v11  ;;  %v2095_v50 = vadd.f32 %v2094_v15, %v9904_v55  ;;  %7321 = vmatpush1.bf16.msra.mxu0 %v10084_v25  ;;  %5862 = vperm.xlu1 %8051, %v5816_v40   ;;  %v5817_v55 = vld [vmem:[%s10594_s8 + $0x40] sm:$0xff]  ;;  %v2740_v12 = vld [vmem:[#allocation3 + $0xb48] sm:$0xff] }
 0x241   :  { %v2246_v58 = vmul.f32 0.01, %v2100_v45  ;;  %5857 = vperm.xlu0 %8050, %v5815_v37   ;;  %3559 = vmatprep.mubr.f32.mxu1 %v2732_v49  ;;  %v10105_v37 = vpop.permute.xlu1 %3022  ;;  %v2739_v15 = vld [vmem:[#allocation3 + $0xb40] sm:$0xff] }
 0x242   :  { %v10096_v38 = vpack.c.bf16 %v2372_v4, %v2371_v7  ;;  %v2245_v5 = vmul.f32 0.01, %v2095_v50  ;;  %v7061_v54 = vpop.f32.mrb[124].mxu0  ;;  %7322 = vmatprep.subr.bf16.mxu0 %v10606_v53 }
 0x243   :  { %v2374_v40 = vmax.f32 %v2100_v45, %v2246_v58  ;;  %v2110_v11 = vadd.f32 %v7061_v54, %v9929_v27  ;;  %v2104_v18 = vpop.f32.mrb[125].mxu0  ;;  %3560 = vmatmul.mubr.f32.gmra.mrb[88].mxu1 %v2731_v2  ;;  %v5820_v45 = vld [vmem:[%s10594_s8 + $0x58] sm:$0xff] }
 0x244   :  { %v2373_v49 = vmax.f32 %v2095_v50, %v2245_v5  ;;  %v2105_v4 = vadd.f32 %v2104_v18, %v9926_v19  ;;  %7324 = vmatpush1.bf16.msra.mxu0 %v10096_v38  ;;  %5872 = vperm.xlu1 %8051, %v5818_v24   ;;  %v5819_v19 = vld [vmem:[%s10594_s8 + $0x50] sm:$0xff]  ;;  %v10121_v18 = vpop.permute.xlu0 %3027 }
 0x245   :  { %v2248_v7 = vmul.f32 0.01, %v2110_v11  ;;  %5867 = vperm.xlu0 %8050, %v5817_v55   ;;  %3564 = vmatprep.mubr.f32.mxu1 %v2740_v12  ;;  %v2748_v50 = vld [vmem:[#allocation3 + $0xb88] sm:$0xff] }
 0x246   :  { %v10112_v58 = vpack.c.bf16 %v2374_v40, %v2373_v49  ;;  %v2247_v27 = vmul.f32 0.01, %v2105_v4  ;;  %v7064_v2 = vpop.f32.mrb[126].mxu0  ;;  %7325 = vmatprep.subr.bf16.mxu0 %v10606_v53  ;;  %v2747_v40 = vld [vmem:[#allocation3 + $0xb80] sm:$0xff] }
 0x247   :  { %v2376_v24 = vmax.f32 %v2110_v11, %v2248_v7  ;;  %v2120_v5 = vadd.f32 %v7064_v2, %v9950_v56  ;;  %v2114_v54 = vpop.f32.mrb[127].mxu0  ;;  %3565 = vmatmul.mubr.f32.gmra.mrb[90].mxu1 %v2739_v15  ;;  %v5822_v11 = vld [vmem:[%s10594_s8 + $0x68] sm:$0xff]  ;;  %v10126_v7 = vpop.permute.xlu1 %3032 }
 0x248   :  { %v2375_v55 = vmax.f32 %v2105_v4, %v2247_v27  ;;  %v2115_v12 = vadd.f32 %v2114_v54, %v9945_v33  ;;  %7327 = vmatpush1.bf16.msra.mxu0 %v10112_v58  ;;  %5882 = vperm.xlu1 %8051, %v5820_v45   ;;  %v5821_v33 = vld [vmem:[%s10594_s8 + $0x60] sm:$0xff]  ;;  %v2756_v15 = vld [vmem:[#allocation3 + $0xbc8] sm:$0xff]  ;;  %v10144_v54 = vpop.permute.xlu0 %3037 }
 0x249   :  { %v2250_v49 = vmul.f32 0.01, %v2120_v5  ;;  %5877 = vperm.xlu0 %8050, %v5819_v19   ;;  %3569 = vmatprep.mubr.f32.mxu1 %v2748_v50  ;;  %v2755_v2 = vld [vmem:[#allocation3 + $0xbc0] sm:$0xff]  ;;  %v5824_v19 = vld [vmem:[%s10594_s8 + $0x78] sm:$0xff] }
 0x24a   :  { %v10128_v56 = vpack.c.bf16 %v2376_v24, %v2375_v55  ;;  %v2249_v4 = vmul.f32 0.01, %v2115_v12  ;;  %7328 = vmatprep.subr.bf16.mxu0 %v10606_v53  ;;  %v5823_v24 = vld [vmem:[%s10594_s8 + $0x70] sm:$0xff] }
 0x24b   :  { %v2378_v45 = vmax.f32 %v2120_v5, %v2250_v49  ;;  %3570 = vmatmul.mubr.f32.gmra.mrb[92].mxu1 %v2747_v40  ;;  %v2764_v5 = vld [vmem:[#allocation3 + $0xc08] sm:$0xff]  ;;  %v10146_v55 = vpop.permute.xlu1 %3042 }
 0x24c   :  { %v2377_v27 = vmax.f32 %v2115_v12, %v2249_v4  ;;  %7330 = vmatpush1.bf16.msra.mxu0 %v10128_v56  ;;  %5892 = vperm.xlu1 %8051, %v5822_v11   ;;  %v2763_v12 = vld [vmem:[#allocation3 + $0xc00] sm:$0xff]  ;;  %v2772_v49 = vld [vmem:[#allocation3 + $0xc48] sm:$0xff] }
 0x24d   :  { %5887 = vperm.xlu0 %8050, %v5821_v33   ;;  %3574 = vmatprep.mubr.f32.mxu1 %v2756_v15  ;;  %v6091_v40 = vld [vmem:[%s10596_s10 + $0x8] sm:$0xff]  ;;  %v6090_v11 = vld [vmem:[%s10596_s10] sm:$0xff]  ;;  %v10156_v33 = vpop.permute.xlu0 %3047  ;;  %v6093_v15 = vld [vmem:[%s10596_s10 + $0x18] sm:$0xff] }
 0x24e   :  { %v10138_v50 = vpack.c.bf16 %v2378_v45, %v2377_v27  ;;  %7331 = vmatprep.subr.bf16.mxu0 %v10606_v53  ;;  %v2771_v4 = vld [vmem:[#allocation3 + $0xc40] sm:$0xff]  ;;  %10607 = vst [vmem:[#allocation17_spill] sm:$0xff] %v10156_v33  ;;  %v2780_v45 = vld [vmem:[#allocation3 + $0xc88] sm:$0xff] }
 0x24f   :  { %3575 = vmatmul.mubr.f32.gmra.mrb[94].mxu1 %v2755_v2  ;;  %v10161_v27 = vpop.permute.xlu1 %3052  ;;  %v6092_v2 = vld [vmem:[%s10596_s10 + $0x10] sm:$0xff]  ;;  %v2827_v33 = vld [vmem:[#allocation3 + $0xe00] sm:$0xff] }
 0x250   :  { %7333 = vmatpush1.bf16.msra.mxu0 %v10138_v50  ;;  %5902 = vperm.xlu1 %8051, %v5824_v19   ;;  %10608 = vst [vmem:[#allocation18_spill] sm:$0xff] %v10161_v27  ;;  %v2779_v19 = vld [vmem:[#allocation3 + $0xc80] sm:$0xff]  ;;  %v2828_v27 = vld [vmem:[#allocation3 + $0xe08] sm:$0xff] }
 0x251   :  { %5897 = vperm.xlu0 %8050, %v5823_v24   ;;  %3579 = vmatprep.mubr.f32.mxu1 %v2764_v5  ;;  %v6095_v24 = vld [vmem:[%s10596_s10 + $0x28] sm:$0xff] }
 0x252   :  { %7334 = vmatprep.subr.bf16.mxu0 %v10606_v53  ;;  %v2788_v5 = vld [vmem:[#allocation3 + $0xcc8] sm:$0xff] }
 0x253   :  { %3580 = vmatmul.mubr.f32.gmra.mrb[96].mxu1 %v2763_v12  ;;  %v6094_v12 = vld [vmem:[%s10596_s10 + $0x20] sm:$0xff] }
 0x254   :  { %6105 = vperm.xlu1 %8051, %v6091_v40   ;;  %3584 = vmatprep.mubr.f32.mxu1 %v2772_v49  ;;  %v10172_v40 = vpop.permute.xlu0 %3057  ;;  %v10174_v49 = vpop.permute.xlu1 %3062 }
 0x255   :  { %6100 = vperm.xlu0 %8050, %v6090_v11   ;;  %10609 = vst [vmem:[#allocation19_spill] sm:$0xff] %v10172_v40  ;;  %10610 = vst [vmem:[#allocation20_spill] sm:$0xff] %v10174_v49  ;;  %v2787_v11 = vld [vmem:[#allocation3 + $0xcc0] sm:$0xff] }
 0x256   :  { %v6263_v49 = vld [vmem:[%s10598_s12] sm:$0xff] }
 0x257   :  { %3585 = vmatmul.mubr.f32.gmra.mrb[98].mxu1 %v2771_v4  ;;  %v6097_v4 = vld [vmem:[%s10596_s10 + $0x38] sm:$0xff] }
 0x258   :  { %6115 = vperm.xlu1 %8051, %v6093_v15   ;;  %3589 = vmatprep.mubr.f32.mxu1 %v2780_v45  ;;  %v2796_v15 = vld [vmem:[#allocation3 + $0xd08] sm:$0xff] }
 0x259   :  { %6110 = vperm.xlu0 %8050, %v6092_v2   ;;  %v6096_v45 = vld [vmem:[%s10596_s10 + $0x30] sm:$0xff]  ;;  %v2795_v2 = vld [vmem:[#allocation3 + $0xd00] sm:$0xff] }
 0x25b   :  { %3590 = vmatmul.mubr.f32.gmra.mrb[100].mxu1 %v2779_v19  ;;  %v10182_v19 = vpop.permute.xlu0 %3067 }
 0x25c   :  { %6125 = vperm.xlu1 %8051, %v6095_v24   ;;  %3594 = vmatprep.mubr.f32.mxu1 %v2788_v5  ;;  %10611 = vst [vmem:[#allocation21_spill] sm:$0xff] %v10182_v19  ;;  %v6264_v24 = vld [vmem:[%s10598_s12 + $0x8] sm:$0xff] }
 0x25d   :  { %6120 = vperm.xlu0 %8050, %v6094_v12   ;;  %v2804_v5 = vld [vmem:[#allocation3 + $0xd48] sm:$0xff]  ;;  %v10187_v12 = vpop.permute.xlu1 %3072 }
 0x25e   :  { %10612 = vst [vmem:[#allocation22_spill] sm:$0xff] %v10187_v12 }
 0x25f   :  { %3595 = vmatmul.mubr.f32.gmra.mrb[102].mxu1 %v2787_v11  ;;  %v2803_v11 = vld [vmem:[#allocation3 + $0xd40] sm:$0xff]  ;;  %v10198_v19 = vpop.permute.xlu0 %3077 }
 0x260   :  { %6135 = vperm.xlu1 %8051, %v6097_v4   ;;  %3599 = vmatprep.mubr.f32.mxu1 %v2796_v15  ;;  %v6266_v4 = vld [vmem:[%s10598_s12 + $0x18] sm:$0xff]  ;;  %v2812_v15 = vld [vmem:[#allocation3 + $0xd88] sm:$0xff]  ;;  %10613 = vst [vmem:[#allocation23_spill] sm:$0xff] %v10198_v19 }
 0x261   :  { %6130 = vperm.xlu0 %8050, %v6096_v45   ;;  %v6265_v45 = vld [vmem:[%s10598_s12 + $0x10] sm:$0xff]  ;;  %v10200_v12 = vpop.permute.xlu1 %3082 }
 0x262   :  { %v2836_v19 = vld [vmem:[#allocation3 + $0xe48] sm:$0xff] }
 0x263   :  { %3600 = vmatmul.mubr.f32.gmra.mrb[104].mxu1 %v2795_v2  ;;  %v2811_v2 = vld [vmem:[#allocation3 + $0xd80] sm:$0xff]  ;;  %v10202_v40 = vpop.permute.xlu0 %3087 }
 0x264   :  { %6274 = vperm.xlu1 %8051, %v6264_v24   ;;  %3604 = vmatprep.mubr.f32.mxu1 %v2804_v5  ;;  %v2820_v24 = vld [vmem:[#allocation3 + $0xdc8] sm:$0xff]  ;;  %v2819_v5 = vld [vmem:[#allocation3 + $0xdc0] sm:$0xff]  ;;  %10614 = vst [vmem:[#allocation24_spill] sm:$0xff] %v10202_v40 }
 0x265   :  { %6269 = vperm.xlu0 %8050, %v6263_v49   ;;  %v6394_v49 = vld [vmem:[#allocation2] sm:$0x1]  ;;  %v2868_v40 = vld [vmem:[#allocation3 + $0xf48] sm:$0xff] }
 0x267   :  { %3605 = vmatmul.mubr.f32.gmra.mrb[106].mxu1 %v2803_v11  ;;  %v2835_v11 = vld [vmem:[#allocation3 + $0xe40] sm:$0xff] }
 0x268   :  { %6284 = vperm.xlu1 %8051, %v6266_v4   ;;  %3609 = vmatprep.mubr.f32.mxu1 %v2812_v15  ;;  %v2844_v4 = vld [vmem:[#allocation3 + $0xe88] sm:$0xff]  ;;  %v2843_v15 = vld [vmem:[#allocation3 + $0xe80] sm:$0xff] }
 0x269   :  { %6279 = vperm.xlu0 %8050, %v6265_v45   ;;  %v2852_v45 = vld [vmem:[#allocation3 + $0xec8] sm:$0xff] }
 0x26b   :  { %3610 = vmatmul.mubr.f32.gmra.mrb[108].mxu1 %v2811_v2  ;;  %v2851_v2 = vld [vmem:[#allocation3 + $0xec0] sm:$0xff] }
 0x26c   :  { %3614 = vmatprep.mubr.f32.mxu1 %v2820_v24  ;;  %v2860_v24 = vld [vmem:[#allocation3 + $0xf08] sm:$0xff] }
 0x26d   :  { %6397 = vperm.xlu0 %8050, %v6394_v49   ;;  %v2859_v49 = vld [vmem:[#allocation3 + $0xf00] sm:$0xff] }
 0x26f   :  { %3615 = vmatmul.mubr.f32.gmra.mrb[110].mxu1 %v2819_v5  ;;  %v2876_v5 = vld [vmem:[#allocation3 + $0xf88] sm:$0xff] }
 0x270   :  { %3619 = vmatprep.mubr.f32.mxu1 %v2828_v27  ;;  %v2867_v27 = vld [vmem:[#allocation3 + $0xf40] sm:$0xff] }
 0x273   :  { %3620 = vmatmul.mubr.f32.gmra.mrb[112].mxu1 %v2827_v33  ;;  %v2875_v33 = vld [vmem:[#allocation3 + $0xf80] sm:$0xff] }
 0x274   :  { %3624 = vmatprep.mubr.f32.mxu1 %v2836_v19  ;;  %v2884_v19 = vld [vmem:[#allocation3 + $0xfc8] sm:$0xff] }
 0x277   :  { %3625 = vmatmul.mubr.f32.gmra.mrb[114].mxu1 %v2835_v11  ;;  %v2883_v11 = vld [vmem:[#allocation3 + $0xfc0] sm:$0xff] }
 0x278   :  { %3629 = vmatprep.mubr.f32.mxu1 %v2844_v4  ;;  %v2382_v4 = vld [vmem:[#allocation3 + $0x18] sm:$0xff] }
 0x27b   :  { %3630 = vmatmul.mubr.f32.gmra.mrb[116].mxu1 %v2843_v15  ;;  %v2381_v15 = vld [vmem:[#allocation3 + $0x10] sm:$0xff] }
 0x27c   :  { %3634 = vmatprep.mubr.f32.mxu1 %v2852_v45  ;;  %v2390_v45 = vld [vmem:[#allocation3 + $0x58] sm:$0xff] }
 0x27f   :  { %3635 = vmatmul.mubr.f32.gmra.mrb[118].mxu1 %v2851_v2  ;;  %v2389_v2 = vld [vmem:[#allocation3 + $0x50] sm:$0xff] }
 0x280   :  { %3639 = vmatprep.mubr.f32.mxu1 %v2860_v24  ;;  %v2397_v24 = vld [vmem:[#allocation3 + $0x90] sm:$0xff] }
 0x283   :  { %3640 = vmatmul.mubr.f32.gmra.mrb[120].mxu1 %v2859_v49  ;;  %v2406_v49 = vld [vmem:[#allocation3 + $0xd8] sm:$0xff] }
 0x284   :  { %3644 = vmatprep.mubr.f32.mxu1 %v2868_v40  ;;  %v2398_v40 = vld [vmem:[#allocation3 + $0x98] sm:$0xff] }
 0x287   :  { %3645 = vmatmul.mubr.f32.gmra.mrb[122].mxu1 %v2867_v27  ;;  %v2405_v27 = vld [vmem:[#allocation3 + $0xd0] sm:$0xff] }
 0x288   :  { %3649 = vmatprep.mubr.f32.mxu1 %v2876_v5  ;;  %v2413_v5 = vld [vmem:[#allocation3 + $0x110] sm:$0xff] }
 0x28b   :  { %3650 = vmatmul.mubr.f32.gmra.mrb[124].mxu1 %v2875_v33  ;;  %v2421_v33 = vld [vmem:[#allocation3 + $0x150] sm:$0xff] }
 0x28c   :  { %3654 = vmatprep.mubr.f32.mxu1 %v2884_v19  ;;  %v2429_v19 = vld [vmem:[#allocation3 + $0x190] sm:$0xff] }
 0x28f   :  { %3655 = vmatmul.mubr.f32.gmra.mrb[126].mxu1 %v2883_v11  ;;  %v2437_v11 = vld [vmem:[#allocation3 + $0x1d0] sm:$0xff] }
 0x290   :  { %3724 = vmatprep.mubr.f32.mxu1 %v2382_v4  ;;  %v2445_v4 = vld [vmem:[#allocation3 + $0x210] sm:$0xff] }
 0x293   :  { %3725 = vmatmul.mubr.f32.vlgmr.msra.gmra.mrb[0].mxu1 %v2381_v15  ;;  %v2453_v15 = vld [vmem:[#allocation3 + $0x250] sm:$0xff] }
 0x294   :  { %7240 = vmatpush1.bf16.msra.mxu1 %v9730_v29  ;;  %3729 = vmatprep.mubr.f32.mxu1 %v2390_v45  ;;  %v2414_v29 = vld [vmem:[#allocation3 + $0x118] sm:$0xff]  ;;  %v2461_v45 = vld [vmem:[#allocation3 + $0x290] sm:$0xff] }
 0x295   :  { %7241 = vmatprep.subr.bf16.mxu1 %v10606_v53 }
 0x297   :  { %3730 = vmatmul.mubr.f32.gmra.mrb[2].mxu1 %v2389_v2  ;;  %v2469_v2 = vld [vmem:[#allocation3 + $0x2d0] sm:$0xff] }
 0x298   :  { %7243 = vmatpush1.bf16.msra.mxu1 %v9740_v14  ;;  %3734 = vmatprep.mubr.f32.mxu1 %v2398_v40  ;;  %v2422_v14 = vld [vmem:[#allocation3 + $0x158] sm:$0xff]  ;;  %v2477_v40 = vld [vmem:[#allocation3 + $0x310] sm:$0xff] }
 0x299   :  { %7244 = vmatprep.subr.bf16.mxu1 %v10606_v53 }
 0x29b   :  { %3735 = vmatmul.mubr.f32.gmra.mrb[4].mxu1 %v2397_v24  ;;  %v2485_v24 = vld [vmem:[#allocation3 + $0x350] sm:$0xff] }
 0x29c   :  { %7246 = vmatpush1.bf16.msra.mxu1 %v9754_v63  ;;  %3739 = vmatprep.mubr.f32.mxu1 %v2406_v49  ;;  %v2430_v63 = vld [vmem:[#allocation3 + $0x198] sm:$0xff]  ;;  %v2493_v49 = vld [vmem:[#allocation3 + $0x390] sm:$0xff] }
 0x29d   :  { %7247 = vmatprep.subr.bf16.mxu1 %v10606_v53 }
 0x29f   :  { %3740 = vmatmul.mubr.f32.gmra.mrb[6].mxu1 %v2405_v27  ;;  %v2501_v27 = vld [vmem:[#allocation3 + $0x3d0] sm:$0xff] }
 0x2a0   :  { %7249 = vmatpush1.bf16.msra.mxu1 %v9768_v3  ;;  %3744 = vmatprep.mubr.f32.mxu1 %v2414_v29  ;;  %v2438_v3 = vld [vmem:[#allocation3 + $0x1d8] sm:$0xff]  ;;  %v2509_v29 = vld [vmem:[#allocation3 + $0x410] sm:$0xff] }
 0x2a1   :  { %7250 = vmatprep.subr.bf16.mxu1 %v10606_v53 }
 0x2a3   :  { %3745 = vmatmul.mubr.f32.gmra.mrb[8].mxu1 %v2413_v5  ;;  %v2518_v5 = vld [vmem:[#allocation3 + $0x458] sm:$0xff] }
 0x2a4   :  { %7252 = vmatpush1.bf16.msra.mxu1 %v9778_v8  ;;  %3749 = vmatprep.mubr.f32.mxu1 %v2422_v14  ;;  %v2446_v8 = vld [vmem:[#allocation3 + $0x218] sm:$0xff] }
 0x2a5   :  { %7253 = vmatprep.subr.bf16.mxu1 %v10606_v53  ;;  %v2526_v14 = vld [vmem:[#allocation3 + $0x498] sm:$0xff] }
 0x2a7   :  { %3750 = vmatmul.mubr.f32.gmra.mrb[10].mxu1 %v2421_v33  ;;  %v2534_v33 = vld [vmem:[#allocation3 + $0x4d8] sm:$0xff] }
 0x2a8   :  { %7255 = vmatpush1.bf16.msra.mxu1 %v9792_v21  ;;  %3754 = vmatprep.mubr.f32.mxu1 %v2430_v63  ;;  %v2454_v21 = vld [vmem:[#allocation3 + $0x258] sm:$0xff]  ;;  %v2533_v63 = vld [vmem:[#allocation3 + $0x4d0] sm:$0xff] }
 0x2a9   :  { %7256 = vmatprep.subr.bf16.mxu1 %v10606_v53 }
 0x2ab   :  { %3755 = vmatmul.mubr.f32.gmra.mrb[12].mxu1 %v2429_v19  ;;  %v2542_v19 = vld [vmem:[#allocation3 + $0x518] sm:$0xff] }
 0x2ac   :  { %7258 = vmatpush1.bf16.msra.mxu1 %v9806_v22  ;;  %3759 = vmatprep.mubr.f32.mxu1 %v2438_v3  ;;  %v2462_v22 = vld [vmem:[#allocation3 + $0x298] sm:$0xff] }
 0x2ad   :  { %7259 = vmatprep.subr.bf16.mxu1 %v10606_v53  ;;  %v2550_v3 = vld [vmem:[#allocation3 + $0x558] sm:$0xff] }
 0x2af   :  { %3760 = vmatmul.mubr.f32.gmra.mrb[14].mxu1 %v2437_v11  ;;  %v2549_v11 = vld [vmem:[#allocation3 + $0x550] sm:$0xff] }
 0x2b0   :  { %7261 = vmatpush1.bf16.msra.mxu1 %v9816_v39  ;;  %3764 = vmatprep.mubr.f32.mxu1 %v2446_v8  ;;  %v2470_v39 = vld [vmem:[#allocation3 + $0x2d8] sm:$0xff] }
 0x2b1   :  { %7262 = vmatprep.subr.bf16.mxu1 %v10606_v53  ;;  %v2558_v8 = vld [vmem:[#allocation3 + $0x598] sm:$0xff] }
 0x2b3   :  { %3765 = vmatmul.mubr.f32.gmra.mrb[16].mxu1 %v2445_v4  ;;  %v2557_v4 = vld [vmem:[#allocation3 + $0x590] sm:$0xff] }
 0x2b4   :  { %7264 = vmatpush1.bf16.msra.mxu1 %v9830_v23  ;;  %3769 = vmatprep.mubr.f32.mxu1 %v2454_v21  ;;  %v2478_v23 = vld [vmem:[#allocation3 + $0x318] sm:$0xff] }
 0x2b5   :  { %7265 = vmatprep.subr.bf16.mxu1 %v10606_v53  ;;  %v2566_v21 = vld [vmem:[#allocation3 + $0x5d8] sm:$0xff] }
 0x2b7   :  { %3770 = vmatmul.mubr.f32.gmra.mrb[18].mxu1 %v2453_v15  ;;  %v2565_v15 = vld [vmem:[#allocation3 + $0x5d0] sm:$0xff] }
 0x2b8   :  { %7267 = vmatpush1.bf16.msra.mxu1 %v9844_v59  ;;  %3774 = vmatprep.mubr.f32.mxu1 %v2462_v22  ;;  %v2486_v59 = vld [vmem:[#allocation3 + $0x358] sm:$0xff] }
 0x2b9   :  { %7268 = vmatprep.subr.bf16.mxu1 %v10606_v53  ;;  %v2574_v22 = vld [vmem:[#allocation3 + $0x618] sm:$0xff] }
 0x2bb   :  { %3775 = vmatmul.mubr.f32.gmra.mrb[20].mxu1 %v2461_v45  ;;  %v2573_v45 = vld [vmem:[#allocation3 + $0x610] sm:$0xff] }
 0x2bc   :  { %7270 = vmatpush1.bf16.msra.mxu1 %v9854_v16  ;;  %3779 = vmatprep.mubr.f32.mxu1 %v2470_v39  ;;  %v2494_v16 = vld [vmem:[#allocation3 + $0x398] sm:$0xff] }
 0x2bd   :  { %7271 = vmatprep.subr.bf16.mxu1 %v10606_v53  ;;  %v2582_v39 = vld [vmem:[#allocation3 + $0x658] sm:$0xff] }
 0x2bf   :  { %3780 = vmatmul.mubr.f32.gmra.mrb[22].mxu1 %v2469_v2  ;;  %v2581_v2 = vld [vmem:[#allocation3 + $0x650] sm:$0xff] }
 0x2c0   :  { %7273 = vmatpush1.bf16.msra.mxu1 %v9864_v61  ;;  %3784 = vmatprep.mubr.f32.mxu1 %v2478_v23  ;;  %v2502_v61 = vld [vmem:[#allocation3 + $0x3d8] sm:$0xff] }
 0x2c1   :  { %7274 = vmatprep.subr.bf16.mxu1 %v10606_v53  ;;  %v2590_v23 = vld [vmem:[#allocation3 + $0x698] sm:$0xff] }
 0x2c3   :  { %3785 = vmatmul.mubr.f32.gmra.mrb[24].mxu1 %v2477_v40  ;;  %v2589_v40 = vld [vmem:[#allocation3 + $0x690] sm:$0xff] }
 0x2c4   :  { %7276 = vmatpush1.bf16.msra.mxu1 %v9878_v52  ;;  %3789 = vmatprep.mubr.f32.mxu1 %v2486_v59  ;;  %v2510_v52 = vld [vmem:[#allocation3 + $0x418] sm:$0xff] }
 0x2c5   :  { %7277 = vmatprep.subr.bf16.mxu1 %v10606_v53  ;;  %v2598_v59 = vld [vmem:[#allocation3 + $0x6d8] sm:$0xff] }
 0x2c7   :  { %3790 = vmatmul.mubr.f32.gmra.mrb[26].mxu1 %v2485_v24  ;;  %v2597_v24 = vld [vmem:[#allocation3 + $0x6d0] sm:$0xff] }
 0x2c8   :  { %7279 = vmatpush1.bf16.msra.mxu1 %v9888_v20  ;;  %3794 = vmatprep.mubr.f32.mxu1 %v2494_v16  ;;  %v2517_v20 = vld [vmem:[#allocation3 + $0x450] sm:$0xff]  ;;  %v2606_v16 = vld [vmem:[#allocation3 + $0x718] sm:$0xff] }
 0x2c9   :  { %7280 = vmatprep.subr.bf16.mxu1 %v10606_v53 }
 0x2cb   :  { %3795 = vmatmul.mubr.f32.gmra.mrb[28].mxu1 %v2493_v49  ;;  %v2605_v49 = vld [vmem:[#allocation3 + $0x710] sm:$0xff] }
 0x2cc   :  { %7282 = vmatpush1.bf16.msra.mxu1 %v9900_v44  ;;  %3799 = vmatprep.mubr.f32.mxu1 %v2502_v61  ;;  %v2525_v44 = vld [vmem:[#allocation3 + $0x490] sm:$0xff]  ;;  %v2614_v61 = vld [vmem:[#allocation3 + $0x758] sm:$0xff] }
 0x2cd   :  { %7283 = vmatprep.subr.bf16.mxu1 %v10606_v53 }
 0x2cf   :  { %3800 = vmatmul.mubr.f32.gmra.mrb[30].mxu1 %v2501_v27  ;;  %v2613_v27 = vld [vmem:[#allocation3 + $0x750] sm:$0xff] }
 0x2d0   :  { %7285 = vmatpush1.bf16.msra.mxu1 %v9914_v6  ;;  %3804 = vmatprep.mubr.f32.mxu1 %v2510_v52  ;;  %v2541_v6 = vld [vmem:[#allocation3 + $0x510] sm:$0xff]  ;;  %v2622_v52 = vld [vmem:[#allocation3 + $0x798] sm:$0xff] }
 0x2d1   :  { %7516 = vmatprep.subr.bf16.mxu1 %v10606_v53 }
 0x2d3   :  { %3805 = vmatmul.mubr.f32.gmra.mrb[32].mxu1 %v2509_v29  ;;  %v2621_v29 = vld [vmem:[#allocation3 + $0x790] sm:$0xff] }
 0x2d4   :  { %3809 = vmatprep.mubr.f32.mxu1 %v2518_v5  ;;  %v2630_v5 = vld [vmem:[#allocation3 + $0x7d8] sm:$0xff] }
 0x2d7   :  { %3810 = vmatmul.mubr.f32.gmra.mrb[34].mxu1 %v2517_v20  ;;  %v2629_v20 = vld [vmem:[#allocation3 + $0x7d0] sm:$0xff] }
 0x2d8   :  { %3814 = vmatprep.mubr.f32.mxu1 %v2526_v14  ;;  %v2638_v14 = vld [vmem:[#allocation3 + $0x818] sm:$0xff] }
 0x2db   :  { %3815 = vmatmul.mubr.f32.gmra.mrb[36].mxu1 %v2525_v44  ;;  %v2637_v44 = vld [vmem:[#allocation3 + $0x810] sm:$0xff] }
 0x2dc   :  { %3819 = vmatprep.mubr.f32.mxu1 %v2534_v33  ;;  %v2646_v33 = vld [vmem:[#allocation3 + $0x858] sm:$0xff] }
 0x2df   :  { %3820 = vmatmul.mubr.f32.gmra.mrb[38].mxu1 %v2533_v63  ;;  %v2645_v63 = vld [vmem:[#allocation3 + $0x850] sm:$0xff] }
 0x2e0   :  { %3824 = vmatprep.mubr.f32.mxu1 %v2542_v19  ;;  %v2386_v19 = vld [vmem:[#allocation3 + $0x38] sm:$0xff] }
 0x2e1   :  { %4494 = vmatprep.mubr.f32.mxu0 %v2386_v19  ;;  %v2442_v19 = vld [vmem:[#allocation3 + $0x1f8] sm:$0xff] }
 0x2e3   :  { %3825 = vmatmul.mubr.f32.gmra.mrb[40].mxu1 %v2541_v6  ;;  %v2385_v6 = vld [vmem:[#allocation3 + $0x30] sm:$0xff] }
 0x2e4   :  { %3829 = vmatprep.mubr.f32.mxu1 %v2550_v3  ;;  %v2654_v3 = vld [vmem:[#allocation3 + $0x898] sm:$0xff]  ;;  %4495 = vmatmul.mubr.f32.vlgmr.msra.gmra.mrb[128].mxu0 %v2385_v6  ;;  %v2441_v6 = vld [vmem:[#allocation3 + $0x1f0] sm:$0xff] }
 0x2e7   :  { %3830 = vmatmul.mubr.f32.gmra.mrb[42].mxu1 %v2549_v11  ;;  %v2653_v11 = vld [vmem:[#allocation3 + $0x890] sm:$0xff] }
 0x2e8   :  { %3834 = vmatprep.mubr.f32.mxu1 %v2558_v8  ;;  %v2394_v8 = vld [vmem:[#allocation3 + $0x78] sm:$0xff] }
 0x2e9   :  { %4499 = vmatprep.mubr.f32.mxu0 %v2394_v8  ;;  %v2450_v8 = vld [vmem:[#allocation3 + $0x238] sm:$0xff] }
 0x2eb   :  { %3835 = vmatmul.mubr.f32.gmra.mrb[44].mxu1 %v2557_v4  ;;  %v2393_v4 = vld [vmem:[#allocation3 + $0x70] sm:$0xff] }
 0x2ec   :  { %3839 = vmatprep.mubr.f32.mxu1 %v2566_v21  ;;  %v2662_v21 = vld [vmem:[#allocation3 + $0x8d8] sm:$0xff]  ;;  %4500 = vmatmul.mubr.f32.gmra.mrb[130].mxu0 %v2393_v4  ;;  %v2449_v4 = vld [vmem:[#allocation3 + $0x230] sm:$0xff] }
 0x2ef   :  { %3840 = vmatmul.mubr.f32.gmra.mrb[46].mxu1 %v2565_v15  ;;  %v2661_v15 = vld [vmem:[#allocation3 + $0x8d0] sm:$0xff] }
 0x2f0   :  { %3844 = vmatprep.mubr.f32.mxu1 %v2574_v22  ;;  %v2402_v22 = vld [vmem:[#allocation3 + $0xb8] sm:$0xff] }
 0x2f1   :  { %4504 = vmatprep.mubr.f32.mxu0 %v2402_v22  ;;  %v2458_v22 = vld [vmem:[#allocation3 + $0x278] sm:$0xff] }
 0x2f3   :  { %3845 = vmatmul.mubr.f32.gmra.mrb[48].mxu1 %v2573_v45  ;;  %v2401_v45 = vld [vmem:[#allocation3 + $0xb0] sm:$0xff] }
 0x2f4   :  { %3849 = vmatprep.mubr.f32.mxu1 %v2582_v39  ;;  %v2670_v39 = vld [vmem:[#allocation3 + $0x918] sm:$0xff]  ;;  %4505 = vmatmul.mubr.f32.gmra.mrb[132].mxu0 %v2401_v45  ;;  %v2457_v45 = vld [vmem:[#allocation3 + $0x270] sm:$0xff] }
 0x2f7   :  { %3850 = vmatmul.mubr.f32.gmra.mrb[50].mxu1 %v2581_v2  ;;  %v2669_v2 = vld [vmem:[#allocation3 + $0x910] sm:$0xff] }
 0x2f8   :  { %3854 = vmatprep.mubr.f32.mxu1 %v2590_v23  ;;  %v2410_v23 = vld [vmem:[#allocation3 + $0xf8] sm:$0xff] }
 0x2f9   :  { %4509 = vmatprep.mubr.f32.mxu0 %v2410_v23  ;;  %v2466_v23 = vld [vmem:[#allocation3 + $0x2b8] sm:$0xff] }
 0x2fb   :  { %3855 = vmatmul.mubr.f32.gmra.mrb[52].mxu1 %v2589_v40  ;;  %v2409_v40 = vld [vmem:[#allocation3 + $0xf0] sm:$0xff] }
 0x2fc   :  { %3859 = vmatprep.mubr.f32.mxu1 %v2598_v59  ;;  %v2678_v59 = vld [vmem:[#allocation3 + $0x958] sm:$0xff]  ;;  %4510 = vmatmul.mubr.f32.gmra.mrb[134].mxu0 %v2409_v40  ;;  %v2465_v40 = vld [vmem:[#allocation3 + $0x2b0] sm:$0xff] }
 0x2ff   :  { %3860 = vmatmul.mubr.f32.gmra.mrb[54].mxu1 %v2597_v24  ;;  %v2677_v24 = vld [vmem:[#allocation3 + $0x950] sm:$0xff] }
 0x300   :  { %3864 = vmatprep.mubr.f32.mxu1 %v2606_v16  ;;  %v2418_v16 = vld [vmem:[#allocation3 + $0x138] sm:$0xff] }
 0x301   :  { %4514 = vmatprep.mubr.f32.mxu0 %v2418_v16  ;;  %v2474_v16 = vld [vmem:[#allocation3 + $0x2f8] sm:$0xff] }
 0x303   :  { %3865 = vmatmul.mubr.f32.gmra.mrb[56].mxu1 %v2605_v49  ;;  %v2417_v49 = vld [vmem:[#allocation3 + $0x130] sm:$0xff] }
 0x304   :  { %3869 = vmatprep.mubr.f32.mxu1 %v2614_v61  ;;  %v2686_v61 = vld [vmem:[#allocation3 + $0x998] sm:$0xff]  ;;  %4515 = vmatmul.mubr.f32.gmra.mrb[136].mxu0 %v2417_v49  ;;  %v2473_v49 = vld [vmem:[#allocation3 + $0x2f0] sm:$0xff] }
 0x307   :  { %3870 = vmatmul.mubr.f32.gmra.mrb[58].mxu1 %v2613_v27  ;;  %v2685_v27 = vld [vmem:[#allocation3 + $0x990] sm:$0xff] }
 0x308   :  { %3874 = vmatprep.mubr.f32.mxu1 %v2622_v52  ;;  %v2426_v52 = vld [vmem:[#allocation3 + $0x178] sm:$0xff] }
 0x309   :  { %4519 = vmatprep.mubr.f32.mxu0 %v2426_v52  ;;  %v2482_v52 = vld [vmem:[#allocation3 + $0x338] sm:$0xff] }
 0x30b   :  { %3875 = vmatmul.mubr.f32.gmra.mrb[60].mxu1 %v2621_v29  ;;  %v2425_v29 = vld [vmem:[#allocation3 + $0x170] sm:$0xff] }
 0x30c   :  { %3879 = vmatprep.mubr.f32.mxu1 %v2630_v5  ;;  %v2694_v5 = vld [vmem:[#allocation3 + $0x9d8] sm:$0xff]  ;;  %4520 = vmatmul.mubr.f32.gmra.mrb[138].mxu0 %v2425_v29  ;;  %v2481_v29 = vld [vmem:[#allocation3 + $0x330] sm:$0xff] }
 0x30f   :  { %3880 = vmatmul.mubr.f32.gmra.mrb[62].mxu1 %v2629_v20  ;;  %v2693_v20 = vld [vmem:[#allocation3 + $0x9d0] sm:$0xff] }
 0x310   :  { %3884 = vmatprep.mubr.f32.mxu1 %v2638_v14  ;;  %v2434_v14 = vld [vmem:[#allocation3 + $0x1b8] sm:$0xff] }
 0x311   :  { %4524 = vmatprep.mubr.f32.mxu0 %v2434_v14  ;;  %v2490_v14 = vld [vmem:[#allocation3 + $0x378] sm:$0xff] }
 0x313   :  { %3885 = vmatmul.mubr.f32.gmra.mrb[64].mxu1 %v2637_v44  ;;  %v2433_v44 = vld [vmem:[#allocation3 + $0x1b0] sm:$0xff] }
 0x314   :  { %3889 = vmatprep.mubr.f32.mxu1 %v2646_v33  ;;  %v2702_v33 = vld [vmem:[#allocation3 + $0xa18] sm:$0xff]  ;;  %4525 = vmatmul.mubr.f32.gmra.mrb[140].mxu0 %v2433_v44  ;;  %v2489_v44 = vld [vmem:[#allocation3 + $0x370] sm:$0xff] }
 0x315   :  { %4529 = vmatprep.mubr.f32.mxu0 %v2442_v19  ;;  %v2498_v19 = vld [vmem:[#allocation3 + $0x3b8] sm:$0xff] }
 0x317   :  { %3890 = vmatmul.mubr.f32.gmra.mrb[66].mxu1 %v2645_v63  ;;  %v2701_v63 = vld [vmem:[#allocation3 + $0xa10] sm:$0xff] }
 0x318   :  { %3894 = vmatprep.mubr.f32.mxu1 %v2654_v3  ;;  %v2710_v3 = vld [vmem:[#allocation3 + $0xa58] sm:$0xff]  ;;  %4530 = vmatmul.mubr.f32.gmra.mrb[142].mxu0 %v2441_v6  ;;  %v2497_v6 = vld [vmem:[#allocation3 + $0x3b0] sm:$0xff] }
 0x319   :  { %4534 = vmatprep.mubr.f32.mxu0 %v2450_v8  ;;  %v2506_v8 = vld [vmem:[#allocation3 + $0x3f8] sm:$0xff] }
 0x31b   :  { %3895 = vmatmul.mubr.f32.gmra.mrb[68].mxu1 %v2653_v11  ;;  %v2709_v11 = vld [vmem:[#allocation3 + $0xa50] sm:$0xff] }
 0x31c   :  { %3899 = vmatprep.mubr.f32.mxu1 %v2662_v21  ;;  %v2718_v21 = vld [vmem:[#allocation3 + $0xa98] sm:$0xff]  ;;  %4535 = vmatmul.mubr.f32.gmra.mrb[144].mxu0 %v2449_v4  ;;  %v2505_v4 = vld [vmem:[#allocation3 + $0x3f0] sm:$0xff] }
 0x31d   :  { %4539 = vmatprep.mubr.f32.mxu0 %v2458_v22  ;;  %v2513_v22 = vld [vmem:[#allocation3 + $0x430] sm:$0xff] }
 0x31f   :  { %3900 = vmatmul.mubr.f32.gmra.mrb[70].mxu1 %v2661_v15  ;;  %v2717_v15 = vld [vmem:[#allocation3 + $0xa90] sm:$0xff] }
 0x320   :  { %3904 = vmatprep.mubr.f32.mxu1 %v2670_v39  ;;  %v2726_v39 = vld [vmem:[#allocation3 + $0xad8] sm:$0xff]  ;;  %4540 = vmatmul.mubr.f32.gmra.mrb[146].mxu0 %v2457_v45  ;;  %v2773_v45 = vld [vmem:[#allocation3 + $0xc50] sm:$0xff] }
 0x321   :  { %4544 = vmatprep.mubr.f32.mxu0 %v2466_v23  ;;  %v2521_v23 = vld [vmem:[#allocation3 + $0x470] sm:$0xff] }
 0x323   :  { %3905 = vmatmul.mubr.f32.gmra.mrb[72].mxu1 %v2669_v2  ;;  %v2725_v2 = vld [vmem:[#allocation3 + $0xad0] sm:$0xff] }
 0x324   :  { %3909 = vmatprep.mubr.f32.mxu1 %v2678_v59  ;;  %v2734_v59 = vld [vmem:[#allocation3 + $0xb18] sm:$0xff]  ;;  %4545 = vmatmul.mubr.f32.gmra.mrb[148].mxu0 %v2465_v40  ;;  %v2781_v40 = vld [vmem:[#allocation3 + $0xc90] sm:$0xff] }
 0x325   :  { %4549 = vmatprep.mubr.f32.mxu0 %v2474_v16  ;;  %v2529_v16 = vld [vmem:[#allocation3 + $0x4b0] sm:$0xff] }
 0x327   :  { %3910 = vmatmul.mubr.f32.gmra.mrb[74].mxu1 %v2677_v24  ;;  %v2733_v24 = vld [vmem:[#allocation3 + $0xb10] sm:$0xff] }
 0x328   :  { %3914 = vmatprep.mubr.f32.mxu1 %v2686_v61  ;;  %v2742_v61 = vld [vmem:[#allocation3 + $0xb58] sm:$0xff]  ;;  %4550 = vmatmul.mubr.f32.gmra.mrb[150].mxu0 %v2473_v49  ;;  %v2789_v49 = vld [vmem:[#allocation3 + $0xcd0] sm:$0xff] }
 0x329   :  { %4554 = vmatprep.mubr.f32.mxu0 %v2482_v52  ;;  %v2537_v52 = vld [vmem:[#allocation3 + $0x4f0] sm:$0xff] }
 0x32b   :  { %3915 = vmatmul.mubr.f32.gmra.mrb[76].mxu1 %v2685_v27  ;;  %v2741_v27 = vld [vmem:[#allocation3 + $0xb50] sm:$0xff] }
 0x32c   :  { %3919 = vmatprep.mubr.f32.mxu1 %v2694_v5  ;;  %v2750_v5 = vld [vmem:[#allocation3 + $0xb98] sm:$0xff]  ;;  %4555 = vmatmul.mubr.f32.gmra.mrb[152].mxu0 %v2481_v29  ;;  %v2797_v29 = vld [vmem:[#allocation3 + $0xd10] sm:$0xff] }
 0x32d   :  { %4559 = vmatprep.mubr.f32.mxu0 %v2490_v14  ;;  %v2545_v14 = vld [vmem:[#allocation3 + $0x530] sm:$0xff] }
 0x32f   :  { %3920 = vmatmul.mubr.f32.gmra.mrb[78].mxu1 %v2693_v20  ;;  %v2749_v20 = vld [vmem:[#allocation3 + $0xb90] sm:$0xff] }
 0x330   :  { %3924 = vmatprep.mubr.f32.mxu1 %v2702_v33  ;;  %v2758_v33 = vld [vmem:[#allocation3 + $0xbd8] sm:$0xff]  ;;  %4560 = vmatmul.mubr.f32.gmra.mrb[154].mxu0 %v2489_v44  ;;  %v2805_v44 = vld [vmem:[#allocation3 + $0xd50] sm:$0xff] }
 0x331   :  { %4564 = vmatprep.mubr.f32.mxu0 %v2498_v19  ;;  %v2553_v19 = vld [vmem:[#allocation3 + $0x570] sm:$0xff] }
 0x333   :  { %3925 = vmatmul.mubr.f32.gmra.mrb[80].mxu1 %v2701_v63  ;;  %v2757_v63 = vld [vmem:[#allocation3 + $0xbd0] sm:$0xff] }
 0x334   :  { %3929 = vmatprep.mubr.f32.mxu1 %v2710_v3  ;;  %v2766_v3 = vld [vmem:[#allocation3 + $0xc18] sm:$0xff]  ;;  %4565 = vmatmul.mubr.f32.gmra.mrb[156].mxu0 %v2497_v6  ;;  %v2813_v6 = vld [vmem:[#allocation3 + $0xd90] sm:$0xff] }
 0x335   :  { %4569 = vmatprep.mubr.f32.mxu0 %v2506_v8  ;;  %v2561_v8 = vld [vmem:[#allocation3 + $0x5b0] sm:$0xff] }
 0x337   :  { %3930 = vmatmul.mubr.f32.gmra.mrb[82].mxu1 %v2709_v11  ;;  %v2765_v11 = vld [vmem:[#allocation3 + $0xc10] sm:$0xff] }
 0x338   :  { %3934 = vmatprep.mubr.f32.mxu1 %v2718_v21  ;;  %v2774_v21 = vld [vmem:[#allocation3 + $0xc58] sm:$0xff]  ;;  %4570 = vmatmul.mubr.f32.gmra.mrb[158].mxu0 %v2505_v4  ;;  %v2821_v4 = vld [vmem:[#allocation3 + $0xdd0] sm:$0xff] }
 0x33b   :  { %3935 = vmatmul.mubr.f32.gmra.mrb[84].mxu1 %v2717_v15  ;;  %v2514_v15 = vld [vmem:[#allocation3 + $0x438] sm:$0xff] }
 0x33c   :  { %3939 = vmatprep.mubr.f32.mxu1 %v2726_v39  ;;  %4574 = vmatprep.mubr.f32.mxu0 %v2514_v15  ;;  %v2782_v39 = vld [vmem:[#allocation3 + $0xc98] sm:$0xff] }
 0x33d   :  { %4575 = vmatmul.mubr.f32.gmra.mrb[160].mxu0 %v2513_v22  ;;  %v2570_v15 = vld [vmem:[#allocation3 + $0x5f8] sm:$0xff]  ;;  %v2569_v22 = vld [vmem:[#allocation3 + $0x5f0] sm:$0xff] }
 0x33f   :  { %3940 = vmatmul.mubr.f32.gmra.mrb[86].mxu1 %v2725_v2  ;;  %v2522_v2 = vld [vmem:[#allocation3 + $0x478] sm:$0xff] }
 0x340   :  { %3944 = vmatprep.mubr.f32.mxu1 %v2734_v59  ;;  %4579 = vmatprep.mubr.f32.mxu0 %v2522_v2  ;;  %v2790_v59 = vld [vmem:[#allocation3 + $0xcd8] sm:$0xff] }
 0x341   :  { %4580 = vmatmul.mubr.f32.gmra.mrb[162].mxu0 %v2521_v23  ;;  %v2578_v2 = vld [vmem:[#allocation3 + $0x638] sm:$0xff]  ;;  %v2577_v23 = vld [vmem:[#allocation3 + $0x630] sm:$0xff] }
 0x343   :  { %3945 = vmatmul.mubr.f32.gmra.mrb[88].mxu1 %v2733_v24  ;;  %v2530_v24 = vld [vmem:[#allocation3 + $0x4b8] sm:$0xff] }
 0x344   :  { %3949 = vmatprep.mubr.f32.mxu1 %v2742_v61  ;;  %4584 = vmatprep.mubr.f32.mxu0 %v2530_v24  ;;  %v2798_v61 = vld [vmem:[#allocation3 + $0xd18] sm:$0xff] }
 0x345   :  { %4585 = vmatmul.mubr.f32.gmra.mrb[164].mxu0 %v2529_v16  ;;  %v2586_v24 = vld [vmem:[#allocation3 + $0x678] sm:$0xff]  ;;  %v2585_v16 = vld [vmem:[#allocation3 + $0x670] sm:$0xff] }
 0x347   :  { %3950 = vmatmul.mubr.f32.gmra.mrb[90].mxu1 %v2741_v27  ;;  %v2538_v27 = vld [vmem:[#allocation3 + $0x4f8] sm:$0xff] }
 0x348   :  { %3954 = vmatprep.mubr.f32.mxu1 %v2750_v5  ;;  %4589 = vmatprep.mubr.f32.mxu0 %v2538_v27  ;;  %v2806_v5 = vld [vmem:[#allocation3 + $0xd58] sm:$0xff] }
 0x349   :  { %4590 = vmatmul.mubr.f32.gmra.mrb[166].mxu0 %v2537_v52  ;;  %v2594_v27 = vld [vmem:[#allocation3 + $0x6b8] sm:$0xff]  ;;  %v2593_v52 = vld [vmem:[#allocation3 + $0x6b0] sm:$0xff] }
 0x34b   :  { %3955 = vmatmul.mubr.f32.gmra.mrb[92].mxu1 %v2749_v20  ;;  %v2546_v20 = vld [vmem:[#allocation3 + $0x538] sm:$0xff] }
 0x34c   :  { %3959 = vmatprep.mubr.f32.mxu1 %v2758_v33  ;;  %4594 = vmatprep.mubr.f32.mxu0 %v2546_v20  ;;  %v2814_v33 = vld [vmem:[#allocation3 + $0xd98] sm:$0xff] }
 0x34d   :  { %4595 = vmatmul.mubr.f32.gmra.mrb[168].mxu0 %v2545_v14  ;;  %v2602_v20 = vld [vmem:[#allocation3 + $0x6f8] sm:$0xff]  ;;  %v2601_v14 = vld [vmem:[#allocation3 + $0x6f0] sm:$0xff] }
 0x34f   :  { %3960 = vmatmul.mubr.f32.gmra.mrb[94].mxu1 %v2757_v63  ;;  %v2554_v63 = vld [vmem:[#allocation3 + $0x578] sm:$0xff] }
 0x350   :  { %3964 = vmatprep.mubr.f32.mxu1 %v2766_v3  ;;  %4599 = vmatprep.mubr.f32.mxu0 %v2554_v63  ;;  %v2822_v3 = vld [vmem:[#allocation3 + $0xdd8] sm:$0xff] }
 0x351   :  { %4600 = vmatmul.mubr.f32.gmra.mrb[170].mxu0 %v2553_v19  ;;  %v2610_v63 = vld [vmem:[#allocation3 + $0x738] sm:$0xff]  ;;  %v2609_v19 = vld [vmem:[#allocation3 + $0x730] sm:$0xff] }
 0x353   :  { %3965 = vmatmul.mubr.f32.gmra.mrb[96].mxu1 %v2765_v11  ;;  %v2562_v11 = vld [vmem:[#allocation3 + $0x5b8] sm:$0xff] }
 0x354   :  { %3969 = vmatprep.mubr.f32.mxu1 %v2774_v21  ;;  %4604 = vmatprep.mubr.f32.mxu0 %v2562_v11  ;;  %v2830_v21 = vld [vmem:[#allocation3 + $0xe18] sm:$0xff] }
 0x355   :  { %4605 = vmatmul.mubr.f32.gmra.mrb[172].mxu0 %v2561_v8  ;;  %v2618_v11 = vld [vmem:[#allocation3 + $0x778] sm:$0xff]  ;;  %v2617_v8 = vld [vmem:[#allocation3 + $0x770] sm:$0xff] }
 0x356   :  { %4609 = vmatprep.mubr.f32.mxu0 %v2570_v15  ;;  %v2626_v15 = vld [vmem:[#allocation3 + $0x7b8] sm:$0xff] }
 0x357   :  { %3970 = vmatmul.mubr.f32.gmra.mrb[98].mxu1 %v2773_v45  ;;  %v2829_v45 = vld [vmem:[#allocation3 + $0xe10] sm:$0xff] }
 0x358   :  { %3974 = vmatprep.mubr.f32.mxu1 %v2782_v39  ;;  %v2838_v39 = vld [vmem:[#allocation3 + $0xe58] sm:$0xff] }
 0x359   :  { %4610 = vmatmul.mubr.f32.gmra.mrb[174].mxu0 %v2569_v22  ;;  %v2625_v22 = vld [vmem:[#allocation3 + $0x7b0] sm:$0xff] }
 0x35a   :  { %4614 = vmatprep.mubr.f32.mxu0 %v2578_v2  ;;  %v2634_v2 = vld [vmem:[#allocation3 + $0x7f8] sm:$0xff] }
 0x35b   :  { %3975 = vmatmul.mubr.f32.gmra.mrb[100].mxu1 %v2781_v40  ;;  %v2837_v40 = vld [vmem:[#allocation3 + $0xe50] sm:$0xff] }
 0x35c   :  { %3979 = vmatprep.mubr.f32.mxu1 %v2790_v59  ;;  %v2846_v59 = vld [vmem:[#allocation3 + $0xe98] sm:$0xff] }
 0x35d   :  { %4615 = vmatmul.mubr.f32.gmra.mrb[176].mxu0 %v2577_v23  ;;  %v2633_v23 = vld [vmem:[#allocation3 + $0x7f0] sm:$0xff] }
 0x35e   :  { %4619 = vmatprep.mubr.f32.mxu0 %v2586_v24  ;;  %v2642_v24 = vld [vmem:[#allocation3 + $0x838] sm:$0xff] }
 0x35f   :  { %3980 = vmatmul.mubr.f32.gmra.mrb[102].mxu1 %v2789_v49  ;;  %v2845_v49 = vld [vmem:[#allocation3 + $0xe90] sm:$0xff] }
 0x360   :  { %3984 = vmatprep.mubr.f32.mxu1 %v2798_v61  ;;  %v2854_v61 = vld [vmem:[#allocation3 + $0xed8] sm:$0xff] }
 0x361   :  { %4620 = vmatmul.mubr.f32.gmra.mrb[178].mxu0 %v2585_v16  ;;  %v2641_v16 = vld [vmem:[#allocation3 + $0x830] sm:$0xff] }
 0x362   :  { %4624 = vmatprep.mubr.f32.mxu0 %v2594_v27  ;;  %v2650_v27 = vld [vmem:[#allocation3 + $0x878] sm:$0xff] }
 0x363   :  { %3985 = vmatmul.mubr.f32.gmra.mrb[104].mxu1 %v2797_v29  ;;  %v2853_v29 = vld [vmem:[#allocation3 + $0xed0] sm:$0xff] }
 0x364   :  { %3989 = vmatprep.mubr.f32.mxu1 %v2806_v5  ;;  %v2862_v5 = vld [vmem:[#allocation3 + $0xf18] sm:$0xff] }
 0x365   :  { %4625 = vmatmul.mubr.f32.gmra.mrb[180].mxu0 %v2593_v52  ;;  %v2649_v52 = vld [vmem:[#allocation3 + $0x870] sm:$0xff] }
 0x366   :  { %4629 = vmatprep.mubr.f32.mxu0 %v2602_v20  ;;  %v2657_v20 = vld [vmem:[#allocation3 + $0x8b0] sm:$0xff] }
 0x367   :  { %3990 = vmatmul.mubr.f32.gmra.mrb[106].mxu1 %v2805_v44  ;;  %v2861_v44 = vld [vmem:[#allocation3 + $0xf10] sm:$0xff] }
 0x368   :  { %3994 = vmatprep.mubr.f32.mxu1 %v2814_v33  ;;  %v2870_v33 = vld [vmem:[#allocation3 + $0xf58] sm:$0xff] }
 0x369   :  { %4630 = vmatmul.mubr.f32.gmra.mrb[182].mxu0 %v2601_v14  ;;  %v2407_v14 = vld [vmem:[#allocation3 + $0xe0] sm:$0xff] }
 0x36a   :  { %4634 = vmatprep.mubr.f32.mxu0 %v2610_v63  ;;  %v2415_v63 = vld [vmem:[#allocation3 + $0x120] sm:$0xff] }
 0x36b   :  { %3995 = vmatmul.mubr.f32.gmra.mrb[108].mxu1 %v2813_v6  ;;  %v2869_v6 = vld [vmem:[#allocation3 + $0xf50] sm:$0xff] }
 0x36c   :  { %3999 = vmatprep.mubr.f32.mxu1 %v2822_v3  ;;  %v2878_v3 = vld [vmem:[#allocation3 + $0xf98] sm:$0xff] }
 0x36d   :  { %4635 = vmatmul.mubr.f32.gmra.mrb[184].mxu0 %v2609_v19  ;;  %v2424_v19 = vld [vmem:[#allocation3 + $0x168] sm:$0xff] }
 0x36e   :  { %4639 = vmatprep.mubr.f32.mxu0 %v2618_v11  ;;  %v2432_v11 = vld [vmem:[#allocation3 + $0x1a8] sm:$0xff] }
 0x36f   :  { %4000 = vmatmul.mubr.f32.gmra.mrb[110].mxu1 %v2821_v4  ;;  %v2877_v4 = vld [vmem:[#allocation3 + $0xf90] sm:$0xff] }
 0x370   :  { %4004 = vmatprep.mubr.f32.mxu1 %v2830_v21  ;;  %v2886_v21 = vld [vmem:[#allocation3 + $0xfd8] sm:$0xff] }
 0x371   :  { %4640 = vmatmul.mubr.f32.gmra.mrb[186].mxu0 %v2617_v8  ;;  %v2681_v8 = vld [vmem:[#allocation3 + $0x970] sm:$0xff] }
 0x372   :  { %4644 = vmatprep.mubr.f32.mxu0 %v2626_v15  ;;  %v2689_v15 = vld [vmem:[#allocation3 + $0x9b0] sm:$0xff] }
 0x373   :  { %4005 = vmatmul.mubr.f32.gmra.mrb[112].mxu1 %v2829_v45  ;;  %v2885_v45 = vld [vmem:[#allocation3 + $0xfd0] sm:$0xff] }
 0x374   :  { %4009 = vmatprep.mubr.f32.mxu1 %v2838_v39  ;;  %v2384_v39 = vld [vmem:[#allocation3 + $0x28] sm:$0xff] }
 0x375   :  { %4645 = vmatmul.mubr.f32.gmra.mrb[188].mxu0 %v2625_v22  ;;  %v2439_v22 = vld [vmem:[#allocation3 + $0x1e0] sm:$0xff] }
 0x376   :  { %4649 = vmatprep.mubr.f32.mxu0 %v2634_v2  ;;  %v2447_v2 = vld [vmem:[#allocation3 + $0x220] sm:$0xff] }
 0x377   :  { %4010 = vmatmul.mubr.f32.gmra.mrb[114].mxu1 %v2837_v40  ;;  %v2383_v40 = vld [vmem:[#allocation3 + $0x20] sm:$0xff] }
 0x378   :  { %4014 = vmatprep.mubr.f32.mxu1 %v2846_v59  ;;  %v2392_v59 = vld [vmem:[#allocation3 + $0x68] sm:$0xff] }
 0x379   :  { %4650 = vmatmul.mubr.f32.gmra.mrb[190].mxu0 %v2633_v23  ;;  %v2456_v23 = vld [vmem:[#allocation3 + $0x268] sm:$0xff] }
 0x37a   :  { %4654 = vmatprep.mubr.f32.mxu0 %v2642_v24  ;;  %v2464_v24 = vld [vmem:[#allocation3 + $0x2a8] sm:$0xff] }
 0x37b   :  { %4015 = vmatmul.mubr.f32.gmra.mrb[116].mxu1 %v2845_v49  ;;  %v2391_v49 = vld [vmem:[#allocation3 + $0x60] sm:$0xff] }
 0x37c   :  { %4019 = vmatprep.mubr.f32.mxu1 %v2854_v61  ;;  %v2400_v61 = vld [vmem:[#allocation3 + $0xa8] sm:$0xff] }
 0x37d   :  { %4655 = vmatmul.mubr.f32.gmra.mrb[192].mxu0 %v2641_v16  ;;  %v2713_v16 = vld [vmem:[#allocation3 + $0xa70] sm:$0xff] }
 0x37e   :  { %4659 = vmatprep.mubr.f32.mxu0 %v2650_v27  ;;  %v2721_v27 = vld [vmem:[#allocation3 + $0xab0] sm:$0xff] }
 0x37f   :  { %4020 = vmatmul.mubr.f32.gmra.mrb[118].mxu1 %v2853_v29  ;;  %v2399_v29 = vld [vmem:[#allocation3 + $0xa0] sm:$0xff] }
 0x380   :  { %4024 = vmatprep.mubr.f32.mxu1 %v2862_v5  ;;  %v2408_v5 = vld [vmem:[#allocation3 + $0xe8] sm:$0xff] }
 0x381   :  { %4660 = vmatmul.mubr.f32.gmra.mrb[194].mxu0 %v2649_v52  ;;  %v2471_v52 = vld [vmem:[#allocation3 + $0x2e0] sm:$0xff] }
 0x383   :  { %4025 = vmatmul.mubr.f32.gmra.mrb[120].mxu1 %v2861_v44  ;;  %v2416_v44 = vld [vmem:[#allocation3 + $0x128] sm:$0xff] }
 0x384   :  { %4029 = vmatprep.mubr.f32.mxu1 %v2870_v33  ;;  %v2665_v33 = vld [vmem:[#allocation3 + $0x8f0] sm:$0xff] }
 0x387   :  { %4030 = vmatmul.mubr.f32.gmra.mrb[122].mxu1 %v2869_v6  ;;  %v2673_v6 = vld [vmem:[#allocation3 + $0x930] sm:$0xff] }
 0x388   :  { %4034 = vmatprep.mubr.f32.mxu1 %v2878_v3  ;;  %v2423_v3 = vld [vmem:[#allocation3 + $0x160] sm:$0xff] }
 0x38b   :  { %4035 = vmatmul.mubr.f32.gmra.mrb[124].mxu1 %v2877_v4  ;;  %v2431_v4 = vld [vmem:[#allocation3 + $0x1a0] sm:$0xff] }
 0x38c   :  { %4039 = vmatprep.mubr.f32.mxu1 %v2886_v21  ;;  %v2440_v21 = vld [vmem:[#allocation3 + $0x1e8] sm:$0xff] }
 0x38f   :  { %4040 = vmatmul.mubr.f32.gmra.mrb[126].mxu1 %v2885_v45  ;;  %v2448_v45 = vld [vmem:[#allocation3 + $0x228] sm:$0xff] }
 0x390   :  { %4109 = vmatprep.mubr.f32.mxu1 %v2384_v39  ;;  %v2697_v39 = vld [vmem:[#allocation3 + $0x9f0] sm:$0xff] }
 0x393   :  { %4110 = vmatmul.mubr.f32.vlgmr.msra.gmra.mrb[0].mxu1 %v2383_v40  ;;  %v2705_v40 = vld [vmem:[#allocation3 + $0xa30] sm:$0xff] }
 0x394   :  { %7532 = vmatpush1.bf16.msra.mxu1 %v9921_v46  ;;  %4114 = vmatprep.mubr.f32.mxu1 %v2392_v59  ;;  %v2658_v46 = vld [vmem:[#allocation3 + $0x8b8] sm:$0xff]  ;;  %v2455_v59 = vld [vmem:[#allocation3 + $0x260] sm:$0xff] }
 0x395   :  { %7517 = vmatprep.subr.bf16.mxu1 %v10606_v53  ;;  %4664 = vmatprep.mubr.f32.mxu0 %v2658_v46  ;;  %v2479_v46 = vld [vmem:[#allocation3 + $0x320] sm:$0xff] }
 0x396   :  { %4665 = vmatmul.mubr.f32.gmra.mrb[196].mxu0 %v2657_v20  ;;  %v2488_v20 = vld [vmem:[#allocation3 + $0x368] sm:$0xff] }
 0x397   :  { %4115 = vmatmul.mubr.f32.gmra.mrb[2].mxu1 %v2391_v49  ;;  %v2463_v49 = vld [vmem:[#allocation3 + $0x2a0] sm:$0xff] }
 0x398   :  { %7533 = vmatpush1.bf16.msra.mxu1 %v9937_v1  ;;  %4119 = vmatprep.mubr.f32.mxu1 %v2400_v61  ;;  %v2666_v1 = vld [vmem:[#allocation3 + $0x8f8] sm:$0xff]  ;;  %v2472_v61 = vld [vmem:[#allocation3 + $0x2e8] sm:$0xff] }
 0x399   :  { %7518 = vmatprep.subr.bf16.mxu1 %v10606_v53  ;;  %4669 = vmatprep.mubr.f32.mxu0 %v2666_v1  ;;  %v2496_v1 = vld [vmem:[#allocation3 + $0x3a8] sm:$0xff] }
 0x39a   :  { %4670 = vmatmul.mubr.f32.gmra.mrb[198].mxu0 %v2665_v33  ;;  %v2745_v33 = vld [vmem:[#allocation3 + $0xb70] sm:$0xff] }
 0x39b   :  { %4120 = vmatmul.mubr.f32.gmra.mrb[4].mxu1 %v2399_v29  ;;  %v2480_v29 = vld [vmem:[#allocation3 + $0x328] sm:$0xff] }
 0x39c   :  { %7534 = vmatpush1.bf16.msra.mxu1 %v9953_v60  ;;  %4124 = vmatprep.mubr.f32.mxu1 %v2408_v5  ;;  %v2674_v60 = vld [vmem:[#allocation3 + $0x938] sm:$0xff]  ;;  %v2729_v5 = vld [vmem:[#allocation3 + $0xaf0] sm:$0xff] }
 0x39d   :  { %7519 = vmatprep.subr.bf16.mxu1 %v10606_v53  ;;  %4674 = vmatprep.mubr.f32.mxu0 %v2674_v60  ;;  %v2753_v60 = vld [vmem:[#allocation3 + $0xbb0] sm:$0xff] }
 0x39e   :  { %4675 = vmatmul.mubr.f32.gmra.mrb[200].mxu0 %v2673_v6  ;;  %v2503_v6 = vld [vmem:[#allocation3 + $0x3e0] sm:$0xff] }
 0x39f   :  { %4125 = vmatmul.mubr.f32.gmra.mrb[6].mxu1 %v2407_v14  ;;  %v2737_v14 = vld [vmem:[#allocation3 + $0xb30] sm:$0xff] }
 0x3a0   :  { %7535 = vmatpush1.bf16.msra.mxu1 %v9964_v51  ;;  %4129 = vmatprep.mubr.f32.mxu1 %v2416_v44  ;;  %v2682_v51 = vld [vmem:[#allocation3 + $0x978] sm:$0xff]  ;;  %v2487_v44 = vld [vmem:[#allocation3 + $0x360] sm:$0xff] }
 0x3a1   :  { %7520 = vmatprep.subr.bf16.mxu1 %v10606_v53  ;;  %4679 = vmatprep.mubr.f32.mxu0 %v2682_v51  ;;  %v2511_v51 = vld [vmem:[#allocation3 + $0x420] sm:$0xff] }
 0x3a2   :  { %4680 = vmatmul.mubr.f32.gmra.mrb[202].mxu0 %v2681_v8  ;;  %v2520_v8 = vld [vmem:[#allocation3 + $0x468] sm:$0xff] }
 0x3a3   :  { %4130 = vmatmul.mubr.f32.gmra.mrb[8].mxu1 %v2415_v63  ;;  %v2495_v63 = vld [vmem:[#allocation3 + $0x3a0] sm:$0xff] }
 0x3a4   :  { %7536 = vmatpush1.bf16.msra.mxu1 %v9980_v31  ;;  %4134 = vmatprep.mubr.f32.mxu1 %v2424_v19  ;;  %v2690_v31 = vld [vmem:[#allocation3 + $0x9b8] sm:$0xff]  ;;  %v2504_v19 = vld [vmem:[#allocation3 + $0x3e8] sm:$0xff] }
 0x3a5   :  { %7521 = vmatprep.subr.bf16.mxu1 %v10606_v53  ;;  %4684 = vmatprep.mubr.f32.mxu0 %v2690_v31  ;;  %v2528_v31 = vld [vmem:[#allocation3 + $0x4a8] sm:$0xff] }
 0x3a6   :  { %4685 = vmatmul.mubr.f32.gmra.mrb[204].mxu0 %v2689_v15  ;;  %v2778_v15 = vld [vmem:[#allocation3 + $0xc78] sm:$0xff] }
 0x3a7   :  { %4135 = vmatmul.mubr.f32.gmra.mrb[10].mxu1 %v2423_v3  ;;  %v2512_v3 = vld [vmem:[#allocation3 + $0x428] sm:$0xff] }
 0x3a8   :  { %7537 = vmatpush1.bf16.msra.mxu1 %v9996_v62  ;;  %4139 = vmatprep.mubr.f32.mxu1 %v2432_v11  ;;  %v2698_v62 = vld [vmem:[#allocation3 + $0x9f8] sm:$0xff]  ;;  %v2761_v11 = vld [vmem:[#allocation3 + $0xbf0] sm:$0xff] }
 0x3a9   :  { %7522 = vmatprep.subr.bf16.mxu1 %v10606_v53  ;;  %4689 = vmatprep.mubr.f32.mxu0 %v2698_v62  ;;  %v2786_v62 = vld [vmem:[#allocation3 + $0xcb8] sm:$0xff] }
 0x3aa   :  { %4690 = vmatmul.mubr.f32.gmra.mrb[206].mxu0 %v2697_v39  ;;  %v2785_v39 = vld [vmem:[#allocation3 + $0xcb0] sm:$0xff] }
 0x3ab   :  { %4140 = vmatmul.mubr.f32.gmra.mrb[12].mxu1 %v2431_v4  ;;  %v2770_v4 = vld [vmem:[#allocation3 + $0xc38] sm:$0xff] }
 0x3ac   :  { %7538 = vmatpush1.bf16.msra.mxu1 %v10008_v9  ;;  %4144 = vmatprep.mubr.f32.mxu1 %v2440_v21  ;;  %v2706_v9 = vld [vmem:[#allocation3 + $0xa38] sm:$0xff]  ;;  %v2519_v21 = vld [vmem:[#allocation3 + $0x460] sm:$0xff] }
 0x3ad   :  { %7523 = vmatprep.subr.bf16.mxu1 %v10606_v53  ;;  %4694 = vmatprep.mubr.f32.mxu0 %v2706_v9  ;;  %v2794_v9 = vld [vmem:[#allocation3 + $0xcf8] sm:$0xff] }
 0x3ae   :  { %4695 = vmatmul.mubr.f32.gmra.mrb[208].mxu0 %v2705_v40  ;;  %v2793_v40 = vld [vmem:[#allocation3 + $0xcf0] sm:$0xff] }
 0x3af   :  { %4145 = vmatmul.mubr.f32.gmra.mrb[14].mxu1 %v2439_v22  ;;  %v2777_v22 = vld [vmem:[#allocation3 + $0xc70] sm:$0xff] }
 0x3b0   :  { %7539 = vmatpush1.bf16.msra.mxu1 %v10024_v10  ;;  %4149 = vmatprep.mubr.f32.mxu1 %v2448_v45  ;;  %v2714_v10 = vld [vmem:[#allocation3 + $0xa78] sm:$0xff]  ;;  %v2527_v45 = vld [vmem:[#allocation3 + $0x4a0] sm:$0xff] }
 0x3b1   :  { %7524 = vmatprep.subr.bf16.mxu1 %v10606_v53  ;;  %4699 = vmatprep.mubr.f32.mxu0 %v2714_v10  ;;  %v2802_v10 = vld [vmem:[#allocation3 + $0xd38] sm:$0xff] }
 0x3b2   :  { %4700 = vmatmul.mubr.f32.gmra.mrb[210].mxu0 %v2713_v16  ;;  %v2801_v16 = vld [vmem:[#allocation3 + $0xd30] sm:$0xff] }
 0x3b3   :  { %4150 = vmatmul.mubr.f32.gmra.mrb[16].mxu1 %v2447_v2  ;;  %v2535_v2 = vld [vmem:[#allocation3 + $0x4e0] sm:$0xff] }
 0x3b4   :  { %7540 = vmatpush1.bf16.msra.mxu1 %v10040_v47  ;;  %4154 = vmatprep.mubr.f32.mxu1 %v2456_v23  ;;  %v2722_v47 = vld [vmem:[#allocation3 + $0xab8] sm:$0xff]  ;;  %v2544_v23 = vld [vmem:[#allocation3 + $0x528] sm:$0xff] }
 0x3b5   :  { %7525 = vmatprep.subr.bf16.mxu1 %v10606_v53  ;;  %4704 = vmatprep.mubr.f32.mxu0 %v2722_v47  ;;  %v2559_v47 = vld [vmem:[#allocation3 + $0x5a0] sm:$0xff] }
 0x3b6   :  { %4705 = vmatmul.mubr.f32.gmra.mrb[212].mxu0 %v2721_v27  ;;  %v2810_v27 = vld [vmem:[#allocation3 + $0xd78] sm:$0xff] }
 0x3b7   :  { %4155 = vmatmul.mubr.f32.gmra.mrb[18].mxu1 %v2455_v59  ;;  %v2543_v59 = vld [vmem:[#allocation3 + $0x520] sm:$0xff] }
 0x3b8   :  { %7541 = vmatpush1.bf16.msra.mxu1 %v10052_v41  ;;  %4159 = vmatprep.mubr.f32.mxu1 %v2464_v24  ;;  %v2730_v41 = vld [vmem:[#allocation3 + $0xaf8] sm:$0xff]  ;;  %v2552_v24 = vld [vmem:[#allocation3 + $0x568] sm:$0xff] }
 0x3b9   :  { %7526 = vmatprep.subr.bf16.mxu1 %v10606_v53  ;;  %4709 = vmatprep.mubr.f32.mxu0 %v2730_v41  ;;  %v2809_v41 = vld [vmem:[#allocation3 + $0xd70] sm:$0xff] }
 0x3ba   :  { %4710 = vmatmul.mubr.f32.gmra.mrb[214].mxu0 %v2729_v5 }
 0x3bb   :  { %4160 = vmatmul.mubr.f32.gmra.mrb[20].mxu1 %v2463_v49  ;;  %v2551_v49 = vld [vmem:[#allocation3 + $0x560] sm:$0xff] }
 0x3bc   :  { %7542 = vmatpush1.bf16.msra.mxu1 %v10068_v48  ;;  %4164 = vmatprep.mubr.f32.mxu1 %v2472_v61  ;;  %v2738_v48 = vld [vmem:[#allocation3 + $0xb38] sm:$0xff]  ;;  %v2560_v61 = vld [vmem:[#allocation3 + $0x5a8] sm:$0xff] }
 0x3bd   :  { %7527 = vmatprep.subr.bf16.mxu1 %v10606_v53  ;;  %4714 = vmatprep.mubr.f32.mxu0 %v2738_v48  ;;  %v2576_v48 = vld [vmem:[#allocation3 + $0x628] sm:$0xff] }
 0x3be   :  { %4715 = vmatmul.mubr.f32.gmra.mrb[216].mxu0 %v2737_v14 }
 0x3bf   :  { %4165 = vmatmul.mubr.f32.gmra.mrb[22].mxu1 %v2471_v52  ;;  %v2568_v52 = vld [vmem:[#allocation3 + $0x5e8] sm:$0xff] }
 0x3c0   :  { %7543 = vmatpush1.bf16.msra.mxu1 %v10084_v25  ;;  %4169 = vmatprep.mubr.f32.mxu1 %v2480_v29  ;;  %v2746_v25 = vld [vmem:[#allocation3 + $0xb78] sm:$0xff]  ;;  %v10267_v29 = vpop.f32.mrb[128].mxu0 }
 0x3c1   :  { %7528 = vmatprep.subr.bf16.mxu1 %v10606_v53  ;;  %4719 = vmatprep.mubr.f32.mxu0 %v2746_v25  ;;  %v4498_v5 = vpop.f32.mrb[129].mxu0  ;;  %v2575_v25 = vld [vmem:[#allocation3 + $0x620] sm:$0xff] }
 0x3c2   :  { %4720 = vmatmul.mubr.f32.gmra.mrb[218].mxu0 %v2745_v33  ;;  %v10269_v14 = vpop.f32.mrb[130].mxu0  ;;  %v2826_v33 = vld [vmem:[#allocation3 + $0xdf8] sm:$0xff] }
 0x3c3   :  { %4170 = vmatmul.mubr.f32.gmra.mrb[24].mxu1 %v2479_v46  ;;  %v2567_v46 = vld [vmem:[#allocation3 + $0x5e0] sm:$0xff] }
 0x3c4   :  { %7544 = vmatpush1.bf16.msra.mxu1 %v10096_v38  ;;  %4174 = vmatprep.mubr.f32.mxu1 %v2488_v20  ;;  %v2754_v38 = vld [vmem:[#allocation3 + $0xbb8] sm:$0xff] }
 0x3c5   :  { %7529 = vmatprep.subr.bf16.mxu1 %v10606_v53  ;;  %4724 = vmatprep.mubr.f32.mxu0 %v2754_v38  ;;  %v2818_v20 = vld [vmem:[#allocation3 + $0xdb8] sm:$0xff]  ;;  %v2825_v38 = vld [vmem:[#allocation3 + $0xdf0] sm:$0xff] }
 0x3c6   :  { %4725 = vmatmul.mubr.f32.gmra.mrb[220].mxu0 %v2753_v60 }
 0x3c7   :  { %4175 = vmatmul.mubr.f32.gmra.mrb[26].mxu1 %v2487_v44  ;;  %v2817_v44 = vld [vmem:[#allocation3 + $0xdb0] sm:$0xff] }
 0x3c8   :  { %7545 = vmatpush1.bf16.msra.mxu1 %v10112_v58  ;;  %4179 = vmatprep.mubr.f32.mxu1 %v2496_v1  ;;  %v2762_v58 = vld [vmem:[#allocation3 + $0xbf8] sm:$0xff]  ;;  %v4503_v1 = vpop.f32.mrb[131].mxu0 }
 0x3c9   :  { %7530 = vmatprep.subr.bf16.mxu1 %v10606_v53  ;;  %4729 = vmatprep.mubr.f32.mxu0 %v2762_v58  ;;  %v2592_v58 = vld [vmem:[#allocation3 + $0x6a8] sm:$0xff] }
 0x3ca   :  { %4730 = vmatmul.mubr.f32.gmra.mrb[222].mxu0 %v2761_v11 }
 0x3cb   :  { %4180 = vmatmul.mubr.f32.gmra.mrb[28].mxu1 %v2495_v63  ;;  %4734 = vmatprep.mubr.f32.mxu0 %v2770_v4  ;;  %v2584_v63 = vld [vmem:[#allocation3 + $0x668] sm:$0xff]  ;;  %v2591_v4 = vld [vmem:[#allocation3 + $0x6a0] sm:$0xff] }
 0x3cc   :  { %7546 = vmatpush1.bf16.msra.mxu1 %v10128_v56  ;;  %4184 = vmatprep.mubr.f32.mxu1 %v2504_v19  ;;  %v2769_v56 = vld [vmem:[#allocation3 + $0xc30] sm:$0xff]  ;;  %v10271_v19 = vpop.f32.mrb[132].mxu0 }
 0x3cd   :  { %7531 = vmatprep.subr.bf16.mxu1 %v10606_v53  ;;  %v4508_v60 = vpop.f32.mrb[133].mxu0 }
 0x3ce   :  { %4735 = vmatmul.mubr.f32.gmra.mrb[224].mxu0 %v2769_v56  ;;  %v2842_v56 = vld [vmem:[#allocation3 + $0xe78] sm:$0xff]  ;;  %v2647_v60 = vld [vmem:[#allocation3 + $0x860] sm:$0xff] }
 0x3cf   :  { %4185 = vmatmul.mubr.f32.gmra.mrb[30].mxu1 %v2503_v6  ;;  %4739 = vmatprep.mubr.f32.mxu0 %v2778_v15  ;;  %v2583_v6 = vld [vmem:[#allocation3 + $0x660] sm:$0xff]  ;;  %v10273_v11 = vpop.f32.mrb[134].mxu0  ;;  %v2841_v15 = vld [vmem:[#allocation3 + $0xe70] sm:$0xff] }
 0x3d0   :  { %7547 = vmatpush1.bf16.msra.mxu1 %v10138_v50  ;;  %4189 = vmatprep.mubr.f32.mxu1 %v2512_v3  ;;  %v2536_v50 = vld [vmem:[#allocation3 + $0x4e8] sm:$0xff]  ;;  %v2834_v3 = vld [vmem:[#allocation3 + $0xe38] sm:$0xff] }
 0x3d2   :  { %4740 = vmatmul.mubr.f32.gmra.mrb[226].mxu0 %v2777_v22 }
 0x3d3   :  { %4190 = vmatmul.mubr.f32.gmra.mrb[32].mxu1 %v2511_v51  ;;  %4744 = vmatprep.mubr.f32.mxu0 %v2786_v62  ;;  %v2833_v51 = vld [vmem:[#allocation3 + $0xe30] sm:$0xff]  ;;  %v2608_v62 = vld [vmem:[#allocation3 + $0x728] sm:$0xff] }
 0x3d4   :  { %4194 = vmatprep.mubr.f32.mxu1 %v2520_v8  ;;  %v4513_v8 = vpop.f32.mrb[135].mxu0 }
 0x3d5   :  { %v2664_v8 = vld [vmem:[#allocation3 + $0x8e8] sm:$0xff] }
 0x3d6   :  { %4745 = vmatmul.mubr.f32.gmra.mrb[228].mxu0 %v2785_v39 }
 0x3d7   :  { %4195 = vmatmul.mubr.f32.gmra.mrb[34].mxu1 %v2519_v21  ;;  %4749 = vmatprep.mubr.f32.mxu0 %v2794_v9  ;;  %v2600_v21 = vld [vmem:[#allocation3 + $0x6e8] sm:$0xff]  ;;  %v2607_v9 = vld [vmem:[#allocation3 + $0x720] sm:$0xff] }
 0x3d8   :  { %4199 = vmatprep.mubr.f32.mxu1 %v2528_v31  ;;  %v10275_v31 = vpop.f32.mrb[136].mxu0 }
 0x3d9   :  { %v4518_v22 = vpop.f32.mrb[137].mxu0 }
 0x3da   :  { %4750 = vmatmul.mubr.f32.gmra.mrb[230].mxu0 %v2793_v40  ;;  %v2858_v40 = vld [vmem:[#allocation3 + $0xef8] sm:$0xff] }
 0x3db   :  { %4200 = vmatmul.mubr.f32.gmra.mrb[36].mxu1 %v2527_v45  ;;  %4754 = vmatprep.mubr.f32.mxu0 %v2802_v10  ;;  %v2599_v45 = vld [vmem:[#allocation3 + $0x6e0] sm:$0xff]  ;;  %v2857_v10 = vld [vmem:[#allocation3 + $0xef0] sm:$0xff] }
 0x3dc   :  { %4204 = vmatprep.mubr.f32.mxu1 %v2536_v50  ;;  %v2850_v50 = vld [vmem:[#allocation3 + $0xeb8] sm:$0xff] }
 0x3de   :  { %4755 = vmatmul.mubr.f32.gmra.mrb[232].mxu0 %v2801_v16 }
 0x3df   :  { %4205 = vmatmul.mubr.f32.gmra.mrb[38].mxu1 %v2535_v2  ;;  %4759 = vmatprep.mubr.f32.mxu0 %v2810_v27  ;;  %v10277_v39 = vpop.f32.mrb[138].mxu0  ;;  %v2849_v2 = vld [vmem:[#allocation3 + $0xeb0] sm:$0xff] }
 0x3e0   :  { %4209 = vmatprep.mubr.f32.mxu1 %v2544_v23  ;;  %v4523_v23 = vpop.f32.mrb[139].mxu0 }
 0x3e2   :  { %4760 = vmatmul.mubr.f32.gmra.mrb[234].mxu0 %v2809_v41  ;;  %v2632_v41 = vld [vmem:[#allocation3 + $0x7e8] sm:$0xff] }
 0x3e3   :  { %4210 = vmatmul.mubr.f32.gmra.mrb[40].mxu1 %v2543_v59  ;;  %4764 = vmatprep.mubr.f32.mxu0 %v2818_v20  ;;  %v2616_v59 = vld [vmem:[#allocation3 + $0x768] sm:$0xff]  ;;  %v2631_v20 = vld [vmem:[#allocation3 + $0x7e0] sm:$0xff] }
 0x3e4   :  { %4214 = vmatprep.mubr.f32.mxu1 %v2552_v24 }
 0x3e6   :  { %4765 = vmatmul.mubr.f32.gmra.mrb[236].mxu0 %v2817_v44 }
 0x3e7   :  { %4215 = vmatmul.mubr.f32.gmra.mrb[42].mxu1 %v2551_v49  ;;  %4769 = vmatprep.mubr.f32.mxu0 %v2826_v33  ;;  %v10279_v24 = vpop.f32.mrb[140].mxu0  ;;  %v2615_v49 = vld [vmem:[#allocation3 + $0x760] sm:$0xff]  ;;  %v2648_v33 = vld [vmem:[#allocation3 + $0x868] sm:$0xff] }
 0x3e8   :  { %4219 = vmatprep.mubr.f32.mxu1 %v2560_v61  ;;  %v4528_v16 = vpop.f32.mrb[141].mxu0  ;;  %v2624_v61 = vld [vmem:[#allocation3 + $0x7a8] sm:$0xff] }
 0x3e9   :  { %v2687_v16 = vld [vmem:[#allocation3 + $0x9a0] sm:$0xff] }
 0x3ea   :  { %4770 = vmatmul.mubr.f32.gmra.mrb[238].mxu0 %v2825_v38 }
 0x3eb   :  { %4220 = vmatmul.mubr.f32.gmra.mrb[44].mxu1 %v2559_v47  ;;  %4774 = vmatprep.mubr.f32.mxu0 %v2834_v3  ;;  %v10281_v47 = vpop.f32.mrb[142].mxu0 }
 0x3ec   :  { %4224 = vmatprep.mubr.f32.mxu1 %v2568_v52  ;;  %v4533_v27 = vpop.f32.mrb[143].mxu0  ;;  %v2623_v52 = vld [vmem:[#allocation3 + $0x7a0] sm:$0xff] }
 0x3ee   :  { %4775 = vmatmul.mubr.f32.gmra.mrb[240].mxu0 %v2833_v51  ;;  %v2655_v51 = vld [vmem:[#allocation3 + $0x8a0] sm:$0xff] }
 0x3ef   :  { %4225 = vmatmul.mubr.f32.gmra.mrb[46].mxu1 %v2567_v46  ;;  %4779 = vmatprep.mubr.f32.mxu0 %v2842_v56  ;;  %v10283_v5 = vpop.f32.mrb[144].mxu0 }
 0x3f0   :  { %4229 = vmatprep.mubr.f32.mxu1 %v2576_v48  ;;  %v4538_v46 = vpop.f32.mrb[145].mxu0  ;;  %v2640_v48 = vld [vmem:[#allocation3 + $0x828] sm:$0xff] }
 0x3f2   :  { %4780 = vmatmul.mubr.f32.gmra.mrb[242].mxu0 %v2841_v15  ;;  %v2672_v15 = vld [vmem:[#allocation3 + $0x928] sm:$0xff] }
 0x3f3   :  { %4230 = vmatmul.mubr.f32.gmra.mrb[48].mxu1 %v2575_v25  ;;  %4784 = vmatprep.mubr.f32.mxu0 %v2850_v50  ;;  %v10285_v44 = vpop.f32.mrb[146].mxu0  ;;  %v2639_v25 = vld [vmem:[#allocation3 + $0x820] sm:$0xff] }
 0x3f4   :  { %4234 = vmatprep.mubr.f32.mxu1 %v2584_v63  ;;  %v4543_v1 = vpop.f32.mrb[147].mxu0  ;;  %v2671_v50 = vld [vmem:[#allocation3 + $0x920] sm:$0xff] }
 0x3f5   :  { %v2712_v1 = vld [vmem:[#allocation3 + $0xa68] sm:$0xff] }
 0x3f6   :  { %4785 = vmatmul.mubr.f32.gmra.mrb[244].mxu0 %v2849_v2 }
 0x3f7   :  { %4235 = vmatmul.mubr.f32.gmra.mrb[50].mxu1 %v2583_v6  ;;  %4789 = vmatprep.mubr.f32.mxu0 %v2858_v40  ;;  %v10287_v63 = vpop.f32.mrb[148].mxu0  ;;  %v2656_v6 = vld [vmem:[#allocation3 + $0x8a8] sm:$0xff] }
 0x3f8   :  { %4239 = vmatprep.mubr.f32.mxu1 %v2592_v58  ;;  %v4548_v38 = vpop.f32.mrb[149].mxu0  ;;  %v2688_v40 = vld [vmem:[#allocation3 + $0x9a8] sm:$0xff] }
 0x3f9   :  { %v2711_v38 = vld [vmem:[#allocation3 + $0xa60] sm:$0xff] }
 0x3fa   :  { %4790 = vmatmul.mubr.f32.gmra.mrb[246].mxu0 %v2857_v10 }
 0x3fb   :  { %4240 = vmatmul.mubr.f32.gmra.mrb[52].mxu1 %v2591_v4  ;;  %v10289_v3 = vpop.f32.mrb[150].mxu0 }
 0x3fc   :  { %4244 = vmatprep.mubr.f32.mxu1 %v2600_v21  ;;  %v4553_v58 = vpop.f32.mrb[151].mxu0  ;;  %v2663_v21 = vld [vmem:[#allocation3 + $0x8e0] sm:$0xff] }
 0x3ff   :  { %4245 = vmatmul.mubr.f32.gmra.mrb[54].mxu1 %v2599_v45  ;;  %v10291_v4 = vpop.f32.mrb[152].mxu0 }
 0x400   :  { %4249 = vmatprep.mubr.f32.mxu1 %v2608_v62  ;;  %v4558_v56 = vpop.f32.mrb[153].mxu0  ;;  %v2680_v62 = vld [vmem:[#allocation3 + $0x968] sm:$0xff] }
 0x403   :  { %4250 = vmatmul.mubr.f32.gmra.mrb[56].mxu1 %v2607_v9  ;;  %v10293_v22 = vpop.f32.mrb[154].mxu0  ;;  %v2679_v9 = vld [vmem:[#allocation3 + $0x960] sm:$0xff] }
 0x404   :  { %4254 = vmatprep.mubr.f32.mxu1 %v2616_v59  ;;  %v4563_v45 = vpop.f32.mrb[155].mxu0 }
 0x405   :  { %v2736_v45 = vld [vmem:[#allocation3 + $0xb28] sm:$0xff] }
 0x407   :  { %4255 = vmatmul.mubr.f32.gmra.mrb[58].mxu1 %v2615_v49  ;;  %v10295_v2 = vpop.f32.mrb[156].mxu0  ;;  %v2696_v49 = vld [vmem:[#allocation3 + $0x9e8] sm:$0xff] }
 0x408   :  { %4259 = vmatprep.mubr.f32.mxu1 %v2624_v61  ;;  %v4568_v23 = vpop.f32.mrb[157].mxu0 }
 0x409   :  { %v2735_v23 = vld [vmem:[#allocation3 + $0xb20] sm:$0xff] }
 0x40b   :  { %4260 = vmatmul.mubr.f32.gmra.mrb[60].mxu1 %v2623_v52  ;;  %v10297_v59 = vpop.f32.mrb[158].mxu0  ;;  %v2695_v52 = vld [vmem:[#allocation3 + $0x9e0] sm:$0xff] }
 0x40c   :  { %4264 = vmatprep.mubr.f32.mxu1 %v2632_v41  ;;  %v4573_v10 = vpop.f32.mrb[159].mxu0  ;;  %v2704_v41 = vld [vmem:[#allocation3 + $0xa28] sm:$0xff] }
 0x40f   :  { %4265 = vmatmul.mubr.f32.gmra.mrb[62].mxu1 %v2631_v20 }
 0x410   :  { %4269 = vmatprep.mubr.f32.mxu1 %v2640_v48  ;;  %v10299_v61 = vpop.f32.mrb[160].mxu0  ;;  %v2703_v48 = vld [vmem:[#allocation3 + $0xa20] sm:$0xff] }
 0x411   :  { %v4578_v27 = vpop.f32.mrb[161].mxu0 }
 0x413   :  { %4270 = vmatmul.mubr.f32.gmra.mrb[64].mxu1 %v2639_v25 }
 0x414   :  { %4274 = vmatprep.mubr.f32.mxu1 %v2648_v33  ;;  %v10301_v46 = vpop.f32.mrb[162].mxu0 }
 0x415   :  { %v4583_v20 = vpop.f32.mrb[163].mxu0 }
 0x416   :  { %v2760_v20 = vld [vmem:[#allocation3 + $0xbe8] sm:$0xff] }
 0x417   :  { %4275 = vmatmul.mubr.f32.gmra.mrb[66].mxu1 %v2647_v60  ;;  %v2720_v60 = vld [vmem:[#allocation3 + $0xaa8] sm:$0xff] }
 0x418   :  { %4279 = vmatprep.mubr.f32.mxu1 %v2656_v6  ;;  %v10303_v25 = vpop.f32.mrb[164].mxu0 }
 0x419   :  { %v4588_v33 = vpop.f32.mrb[165].mxu0 }
 0x41a   :  { %v2759_v33 = vld [vmem:[#allocation3 + $0xbe0] sm:$0xff] }
 0x41b   :  { %4280 = vmatmul.mubr.f32.gmra.mrb[68].mxu1 %v2655_v51  ;;  %v2719_v51 = vld [vmem:[#allocation3 + $0xaa0] sm:$0xff] }
 0x41c   :  { %4284 = vmatprep.mubr.f32.mxu1 %v2664_v8  ;;  %v10305_v6 = vpop.f32.mrb[166].mxu0  ;;  %v2728_v8 = vld [vmem:[#allocation3 + $0xae8] sm:$0xff] }
 0x41d   :  { %v4593_v58 = vpop.f32.mrb[167].mxu0 }
 0x41f   :  { %4285 = vmatmul.mubr.f32.gmra.mrb[70].mxu1 %v2663_v21 }
 0x420   :  { %4289 = vmatprep.mubr.f32.mxu1 %v2672_v15  ;;  %v10307_v56 = vpop.f32.mrb[168].mxu0  ;;  %v2727_v15 = vld [vmem:[#allocation3 + $0xae0] sm:$0xff] }
 0x421   :  { %v4598_v21 = vpop.f32.mrb[169].mxu0 }
 0x423   :  { %4290 = vmatmul.mubr.f32.gmra.mrb[72].mxu1 %v2671_v50 }
 0x424   :  { %4294 = vmatprep.mubr.f32.mxu1 %v2680_v62  ;;  %v10309_v50 = vpop.f32.mrb[170].mxu0 }
 0x425   :  { %v4603_v62 = vpop.f32.mrb[171].mxu0 }
 0x426   :  { %v2784_v62 = vld [vmem:[#allocation3 + $0xca8] sm:$0xff] }
 0x427   :  { %4295 = vmatmul.mubr.f32.gmra.mrb[74].mxu1 %v2679_v9  ;;  %v2744_v9 = vld [vmem:[#allocation3 + $0xb68] sm:$0xff] }
 0x428   :  { %4299 = vmatprep.mubr.f32.mxu1 %v2688_v40  ;;  %v10311_v40 = vpop.f32.mrb[172].mxu0 }
 0x429   :  { %v4608_v10 = vpop.f32.mrb[173].mxu0 }
 0x42a   :  { %v2783_v10 = vld [vmem:[#allocation3 + $0xca0] sm:$0xff] }
 0x42b   :  { %4300 = vmatmul.mubr.f32.gmra.mrb[76].mxu1 %v2687_v16  ;;  %v2743_v16 = vld [vmem:[#allocation3 + $0xb60] sm:$0xff] }
 0x42c   :  { %4304 = vmatprep.mubr.f32.mxu1 %v2696_v49  ;;  %v2752_v49 = vld [vmem:[#allocation3 + $0xba8] sm:$0xff]  ;;  %v10313_v27 = vpop.f32.mrb[174].mxu0 }
 0x42f   :  { %4305 = vmatmul.mubr.f32.gmra.mrb[78].mxu1 %v2695_v52  ;;  %v4613_v52 = vpop.f32.mrb[175].mxu0 }
 0x430   :  { %4309 = vmatprep.mubr.f32.mxu1 %v2704_v41  ;;  %v2751_v41 = vld [vmem:[#allocation3 + $0xba0] sm:$0xff] }
 0x433   :  { %4310 = vmatmul.mubr.f32.gmra.mrb[80].mxu1 %v2703_v48  ;;  %v10315_v48 = vpop.f32.mrb[176].mxu0 }
 0x434   :  { %4314 = vmatprep.mubr.f32.mxu1 %v2712_v1  ;;  %v4618_v1 = vpop.f32.mrb[177].mxu0 }
 0x437   :  { %4315 = vmatmul.mubr.f32.gmra.mrb[82].mxu1 %v2711_v38  ;;  %v2768_v38 = vld [vmem:[#allocation3 + $0xc28] sm:$0xff] }
 0x438   :  { %4319 = vmatprep.mubr.f32.mxu1 %v2720_v60  ;;  %v10317_v60 = vpop.f32.mrb[178].mxu0 }
 0x439   :  { %v4623_v58 = vpop.f32.mrb[179].mxu0 }
 0x43a   :  { %v10319_v21 = vpop.f32.mrb[180].mxu0  ;;  %v2808_v58 = vld [vmem:[#allocation3 + $0xd68] sm:$0xff] }
 0x43b   :  { %4320 = vmatmul.mubr.f32.gmra.mrb[84].mxu1 %v2719_v51  ;;  %v2767_v51 = vld [vmem:[#allocation3 + $0xc20] sm:$0xff] }
 0x43c   :  { %4324 = vmatprep.mubr.f32.mxu1 %v2728_v8  ;;  %v2776_v8 = vld [vmem:[#allocation3 + $0xc68] sm:$0xff] }
 0x43f   :  { %4325 = vmatmul.mubr.f32.gmra.mrb[86].mxu1 %v2727_v15  ;;  %v4628_v15 = vpop.f32.mrb[181].mxu0 }
 0x440   :  { %4329 = vmatprep.mubr.f32.mxu1 %v2736_v45  ;;  %v2775_v45 = vld [vmem:[#allocation3 + $0xc60] sm:$0xff] }
 0x441   :  { %v2807_v15 = vld [vmem:[#allocation3 + $0xd60] sm:$0xff] }
 0x443   :  { %4330 = vmatmul.mubr.f32.gmra.mrb[88].mxu1 %v2735_v23  ;;  %v10321_v23 = vpop.f32.mrb[182].mxu0 }
 0x444   :  { %4334 = vmatprep.mubr.f32.mxu1 %v2744_v9  ;;  %v4633_v9 = vpop.f32.mrb[183].mxu0 }
 0x447   :  { %4335 = vmatmul.mubr.f32.gmra.mrb[90].mxu1 %v2743_v16  ;;  %v2792_v16 = vld [vmem:[#allocation3 + $0xce8] sm:$0xff] }
 0x448   :  { %4339 = vmatprep.mubr.f32.mxu1 %v2752_v49  ;;  %v10323_v49 = vpop.f32.mrb[184].mxu0 }
 0x449   :  { %10615 = vst [vmem:[#allocation25_spill] sm:$0xff] %v10323_v49  ;;  %v4638_v52 = vpop.f32.mrb[185].mxu0 }
 0x44a   :  { %v10325_v1 = vpop.f32.mrb[186].mxu0 }
 0x44b   :  { %4340 = vmatmul.mubr.f32.gmra.mrb[92].mxu1 %v2751_v41  ;;  %v2791_v41 = vld [vmem:[#allocation3 + $0xce0] sm:$0xff]  ;;  %10616 = vst [vmem:[#allocation26_spill] sm:$0xff] %v10325_v1 }
 0x44c   :  { %4344 = vmatprep.mubr.f32.mxu1 %v2760_v20  ;;  %v2800_v20 = vld [vmem:[#allocation3 + $0xd28] sm:$0xff] }
 0x44f   :  { %4345 = vmatmul.mubr.f32.gmra.mrb[94].mxu1 %v2759_v33  ;;  %v4643_v33 = vpop.f32.mrb[187].mxu0 }
 0x450   :  { %4349 = vmatprep.mubr.f32.mxu1 %v2768_v38  ;;  %v2799_v38 = vld [vmem:[#allocation3 + $0xd20] sm:$0xff]  ;;  %v2824_v33 = vld [vmem:[#allocation3 + $0xde8] sm:$0xff] }
 0x453   :  { %4350 = vmatmul.mubr.f32.gmra.mrb[96].mxu1 %v2767_v51  ;;  %v10327_v51 = vpop.f32.mrb[188].mxu0 }
 0x454   :  { %4354 = vmatprep.mubr.f32.mxu1 %v2776_v8  ;;  %10617 = vst [vmem:[#allocation27_spill] sm:$0xff] %v10327_v51  ;;  %v4648_v8 = vpop.f32.mrb[189].mxu0 }
 0x457   :  { %4355 = vmatmul.mubr.f32.gmra.mrb[98].mxu1 %v2775_v45  ;;  %v2816_v45 = vld [vmem:[#allocation3 + $0xda8] sm:$0xff] }
 0x458   :  { %4359 = vmatprep.mubr.f32.mxu1 %v2784_v62  ;;  %v10329_v62 = vpop.f32.mrb[190].mxu0 }
 0x459   :  { %10618 = vst [vmem:[#allocation28_spill] sm:$0xff] %v10329_v62  ;;  %v2823_v62 = vld [vmem:[#allocation3 + $0xde0] sm:$0xff] }
 0x45b   :  { %4360 = vmatmul.mubr.f32.gmra.mrb[100].mxu1 %v2783_v10  ;;  %v4653_v10 = vpop.f32.mrb[191].mxu0 }
 0x45c   :  { %4364 = vmatprep.mubr.f32.mxu1 %v2792_v16  ;;  %v10333_v1 = vpop.f32.mrb[192].mxu0 }
 0x45d   :  { %10619 = vst [vmem:[#allocation29_spill] sm:$0xff] %v10333_v1 }
 0x45f   :  { %4365 = vmatmul.mubr.f32.gmra.mrb[102].mxu1 %v2791_v41  ;;  %v2815_v41 = vld [vmem:[#allocation3 + $0xda0] sm:$0xff] }
 0x460   :  { %4369 = vmatprep.mubr.f32.mxu1 %v2800_v20 }
 0x463   :  { %4370 = vmatmul.mubr.f32.gmra.mrb[104].mxu1 %v2799_v38  ;;  %v4658_v38 = vpop.f32.mrb[193].mxu0 }
 0x464   :  { %4374 = vmatprep.mubr.f32.mxu1 %v2808_v58  ;;  %v2831_v38 = vld [vmem:[#allocation3 + $0xe20] sm:$0xff] }
 0x466   :  { %v4111_v9 = vpop.f32.mrb[0].mxu1 }
 0x467   :  { %v7548_v16 = vadd.f32 %v4111_v9, %v9970_v36  ;;  %v4113_v52 = vpop.f32.mrb[1].mxu1  ;;  %4375 = vmatmul.mubr.f32.gmra.mrb[106].mxu1 %v2807_v15  ;;  %v2832_v9 = vld [vmem:[#allocation3 + $0xe28] sm:$0xff]  ;;  %v10337_v15 = vpop.f32.mrb[194].mxu0 }
 0x468   :  { %4379 = vmatprep.mubr.f32.mxu1 %v2816_v45  ;;  %10620 = vst [vmem:[#allocation30_spill] sm:$0xff] %v10337_v15  ;;  %v4663_v52 = vpop.f32.mrb[195].mxu0 }
 0x469   :  { %v7549_v20 = vadd.f32 %v7548_v16, %v10267_v29 }
 0x46a   :  { %v4116_v8 = vpop.f32.mrb[2].mxu1 }
 0x46b   :  { %v7550_v58 = vadd.f32 %v4116_v8, %v9973_v0  ;;  %v4118_v51 = vpop.f32.mrb[3].mxu1  ;;  %4380 = vmatmul.mubr.f32.gmra.mrb[108].mxu1 %v2815_v41  ;;  %v4815_v10 = vmul.f32 0.01, %v7549_v20  ;;  %v10341_v8 = vpop.f32.mrb[196].mxu0 }
 0x46c   :  { %4384 = vmatprep.mubr.f32.mxu1 %v2824_v33  ;;  %v2840_v33 = vld [vmem:[#allocation3 + $0xe68] sm:$0xff] }
 0x46d   :  { %v7551_v36 = vadd.f32 %v7550_v58, %v10269_v14  ;;  %v4879_v0 = vmax.f32 %v7549_v20, %v4815_v10  ;;  %v4668_v58 = vpop.f32.mrb[197].mxu0  ;;  %v2848_v20 = vld [vmem:[#allocation3 + $0xea8] sm:$0xff] }
 0x46e   :  { %v4121_v45 = vpop.f32.mrb[4].mxu1  ;;  %v10345_v10 = vpop.f32.mrb[198].mxu0 }
 0x46f   :  { %v4816_v29 = vmul.f32 0.01, %v7551_v36  ;;  %v7552_v16 = vadd.f32 %v4121_v45, %v9989_v17  ;;  %v4123_v1 = vpop.f32.mrb[5].mxu1  ;;  %4385 = vmatmul.mubr.f32.gmra.mrb[110].mxu1 %v2823_v62  ;;  %v2839_v17 = vld [vmem:[#allocation3 + $0xe60] sm:$0xff] }
 0x470   :  { %4389 = vmatprep.mubr.f32.mxu1 %v2832_v9  ;;  %v4944_v1 = vld [vmem:[#allocation5 + $0x8] sm:$0xff] }
 0x471   :  { %v4880_v51 = vmax.f32 %v7551_v36, %v4816_v29  ;;  %v7553_v41 = vadd.f32 %v7552_v16, %v10271_v19  ;;  %5327 = vmatprep.mubr.f32.mxu0 %v4944_v1  ;;  %v4673_v36 = vpop.f32.mrb[199].mxu0  ;;  %v2847_v16 = vld [vmem:[#allocation3 + $0xea0] sm:$0xff] }
 0x472   :  { %v4126_v14 = vpop.f32.mrb[6].mxu1 }
 0x473   :  { %v7335_v49 = vpack.c.bf16 %v4880_v51, %v4879_v0  ;;  %v7554_v15 = vadd.f32 %v4126_v14, %v9994_v28  ;;  %v4128_v52 = vpop.f32.mrb[7].mxu1  ;;  %4390 = vmatmul.mubr.f32.gmra.mrb[112].mxu1 %v2831_v38  ;;  %v4817_v62 = vmul.f32 0.01, %v7553_v41 }
 0x474   :  { %4394 = vmatprep.mubr.f32.mxu1 %v2840_v33 }
 0x475   :  { %v7555_v9 = vadd.f32 %v7554_v15, %v10273_v11  ;;  %7336 = vmatpush1.bf16.msra.mxu0 %v7335_v49  ;;  %v4881_v38 = vmax.f32 %v7553_v41, %v4817_v62  ;;  %v2856_v49 = vld [vmem:[#allocation3 + $0xee8] sm:$0xff]  ;;  %v10350_v15 = vpop.f32.mrb[200].mxu0 }
 0x476   :  { %v4131_v19 = vpop.f32.mrb[8].mxu1  ;;  %7337 = vmatprep.subr.bf16.mxu0 %v10606_v53  ;;  %v4678_v33 = vpop.f32.mrb[201].mxu0  ;;  %v2864_v41 = vld [vmem:[#allocation3 + $0xf28] sm:$0xff] }
 0x477   :  { %v4818_v45 = vmul.f32 0.01, %v7555_v9  ;;  %v7556_v28 = vadd.f32 %v4131_v19, %v10014_v13  ;;  %v4133_v29 = vpop.f32.mrb[9].mxu1  ;;  %4395 = vmatmul.mubr.f32.gmra.mrb[114].mxu1 %v2839_v17  ;;  %v2855_v13 = vld [vmem:[#allocation3 + $0xee0] sm:$0xff]  ;;  %v10354_v62 = vpop.f32.mrb[202].mxu0 }
 0x478   :  { %4399 = vmatprep.mubr.f32.mxu1 %v2848_v20 }
 0x479   :  { %v4882_v0 = vmax.f32 %v7555_v9, %v4818_v45  ;;  %v7557_v11 = vadd.f32 %v7556_v28, %v10275_v31  ;;  %v4683_v9 = vpop.f32.mrb[203].mxu0 }
 0x47a   :  { %v4136_v51 = vpop.f32.mrb[10].mxu1 }
 0x47b   :  { %v7338_v14 = vpack.c.bf16 %v4882_v0, %v4881_v38  ;;  %v7558_v58 = vadd.f32 %v4136_v51, %v10017_v32  ;;  %v4138_v52 = vpop.f32.mrb[11].mxu1  ;;  %4400 = vmatmul.mubr.f32.gmra.mrb[116].mxu1 %v2847_v16  ;;  %v4819_v1 = vmul.f32 0.01, %v7557_v11  ;;  %v2863_v32 = vld [vmem:[#allocation3 + $0xf20] sm:$0xff]  ;;  %v10359_v16 = vpop.f32.mrb[204].mxu0 }
 0x47c   :  { %4404 = vmatprep.mubr.f32.mxu1 %v2856_v49  ;;  %v4688_v0 = vpop.f32.mrb[205].mxu0 }
 0x47d   :  { %v7559_v17 = vadd.f32 %v7558_v58, %v10277_v39  ;;  %7339 = vmatpush1.bf16.msra.mxu0 %v7338_v14  ;;  %v4883_v45 = vmax.f32 %v7557_v11, %v4819_v1  ;;  %v2872_v39 = vld [vmem:[#allocation3 + $0xf68] sm:$0xff]  ;;  %v10363_v52 = vpop.f32.mrb[206].mxu0 }
 0x47e   :  { %v4141_v31 = vpop.f32.mrb[12].mxu1  ;;  %7340 = vmatprep.subr.bf16.mxu0 %v10606_v53  ;;  %v2880_v11 = vld [vmem:[#allocation3 + $0xfa8] sm:$0xff] }
 0x47f   :  { %v4820_v20 = vmul.f32 0.01, %v7559_v17  ;;  %v7560_v19 = vadd.f32 %v4141_v31, %v10033_v57  ;;  %v4143_v36 = vpop.f32.mrb[13].mxu1  ;;  %4405 = vmatmul.mubr.f32.gmra.mrb[118].mxu1 %v2855_v13  ;;  %v2871_v57 = vld [vmem:[#allocation3 + $0xf60] sm:$0xff]  ;;  %v4693_v13 = vpop.f32.mrb[207].mxu0 }
 0x480   :  { %4409 = vmatprep.mubr.f32.mxu1 %v2864_v41 }
 0x481   :  { %v4884_v28 = vmax.f32 %v7559_v17, %v4820_v20  ;;  %v7561_v29 = vadd.f32 %v7560_v19, %v10279_v24  ;;  %v10368_v19 = vpop.f32.mrb[208].mxu0 }
 0x482   :  { %v4146_v38 = vpop.f32.mrb[14].mxu1 }
 0x483   :  { %v7341_v49 = vpack.c.bf16 %v4884_v28, %v4883_v45  ;;  %v7562_v51 = vadd.f32 %v4146_v38, %v10038_v43  ;;  %v4148_v33 = vpop.f32.mrb[15].mxu1  ;;  %4410 = vmatmul.mubr.f32.gmra.mrb[120].mxu1 %v2863_v32  ;;  %v4821_v14 = vmul.f32 0.01, %v7561_v29  ;;  %v2879_v43 = vld [vmem:[#allocation3 + $0xfa0] sm:$0xff]  ;;  %v4698_v32 = vpop.f32.mrb[209].mxu0 }
 0x484   :  { %4414 = vmatprep.mubr.f32.mxu1 %v2872_v39 }
 0x485   :  { %v7563_v58 = vadd.f32 %v7562_v51, %v10281_v47  ;;  %7342 = vmatpush1.bf16.msra.mxu0 %v7341_v49  ;;  %v4885_v31 = vmax.f32 %v7561_v29, %v4821_v14  ;;  %v2888_v47 = vld [vmem:[#allocation3 + $0xfe8] sm:$0xff]  ;;  %v2866_v29 = vld [vmem:[#allocation3 + $0xf38] sm:$0xff]  ;;  %v10372_v49 = vpop.f32.mrb[210].mxu0 }
 0x486   :  { %v4151_v24 = vpop.f32.mrb[16].mxu1  ;;  %7343 = vmatprep.subr.bf16.mxu0 %v10606_v53  ;;  %v4703_v51 = vpop.f32.mrb[211].mxu0 }
 0x487   :  { %v4822_v1 = vmul.f32 0.01, %v7563_v58  ;;  %v7564_v17 = vadd.f32 %v4151_v24, %v10058_v42  ;;  %v4153_v41 = vpop.f32.mrb[17].mxu1  ;;  %4415 = vmatmul.mubr.f32.gmra.mrb[122].mxu1 %v2871_v57  ;;  %v2887_v42 = vld [vmem:[#allocation3 + $0xfe0] sm:$0xff] }
 0x488   :  { %4419 = vmatprep.mubr.f32.mxu1 %v2880_v11 }
 0x489   :  { %v4886_v9 = vmax.f32 %v7563_v58, %v4822_v1  ;;  %v7565_v20 = vadd.f32 %v7564_v17, %v10283_v5  ;;  %v10377_v13 = vpop.f32.mrb[212].mxu0 }
 0x48a   :  { %v4156_v36 = vpop.f32.mrb[18].mxu1  ;;  %v4708_v17 = vpop.f32.mrb[213].mxu0 }
 0x48b   :  { %v7344_v45 = vpack.c.bf16 %v4886_v9, %v4885_v31  ;;  %v7566_v28 = vadd.f32 %v4156_v36, %v10061_v34  ;;  %v4158_v39 = vpop.f32.mrb[19].mxu1  ;;  %4420 = vmatmul.mubr.f32.gmra.mrb[124].mxu1 %v2879_v43  ;;  %v4823_v38 = vmul.f32 0.01, %v7565_v20  ;;  %v2865_v34 = vld [vmem:[#allocation3 + $0xf30] sm:$0xff] }
 0x48c   :  { %4424 = vmatprep.mubr.f32.mxu1 %v2888_v47 }
 0x48d   :  { %v7567_v0 = vadd.f32 %v7566_v28, %v10285_v44  ;;  %7345 = vmatpush1.bf16.msra.mxu0 %v7344_v45  ;;  %v4887_v58 = vmax.f32 %v7565_v20, %v4823_v38  ;;  %v2874_v44 = vld [vmem:[#allocation3 + $0xf78] sm:$0xff]  ;;  %v10381_v36 = vpop.f32.mrb[214].mxu0 }
 0x48e   :  { %v4161_v5 = vpop.f32.mrb[20].mxu1  ;;  %7346 = vmatprep.subr.bf16.mxu0 %v10606_v53  ;;  %v2882_v20 = vld [vmem:[#allocation3 + $0xfb8] sm:$0xff]  ;;  %v4713_v32 = vpop.f32.mrb[215].mxu0 }
 0x48f   :  { %v4824_v33 = vmul.f32 0.01, %v7567_v0  ;;  %v7568_v57 = vadd.f32 %v4161_v5, %v10077_v35  ;;  %v4163_v14 = vpop.f32.mrb[21].mxu1  ;;  %4425 = vmatmul.mubr.f32.gmra.mrb[126].mxu1 %v2887_v42  ;;  %v2873_v35 = vld [vmem:[#allocation3 + $0xf70] sm:$0xff] }
 0x490   :  { %4794 = vmatprep.mubr.f32.mxu1 %v2866_v29 }
 0x491   :  { %v4888_v11 = vmax.f32 %v7567_v0, %v4824_v33  ;;  %v7569_v24 = vadd.f32 %v7568_v57, %v10287_v63  ;;  %v10386_v29 = vpop.f32.mrb[216].mxu0 }
 0x492   :  { %v4166_v1 = vpop.f32.mrb[22].mxu1  ;;  %v4718_v51 = vpop.f32.mrb[217].mxu0 }
 0x493   :  { %v7347_v41 = vpack.c.bf16 %v4888_v11, %v4887_v58  ;;  %v7570_v43 = vadd.f32 %v4166_v1, %v10082_v26  ;;  %v4168_v31 = vpop.f32.mrb[23].mxu1  ;;  %4795 = vmatmul.mubr.f32.vlgmr.msra.gmra.mrb[120].mxu1 %v2865_v34  ;;  %v4825_v9 = vmul.f32 0.01, %v7569_v24  ;;  %v2881_v26 = vld [vmem:[#allocation3 + $0xfb0] sm:$0xff] }
 0x494   :  { %4799 = vmatprep.mubr.f32.mxu1 %v2874_v44 }
 0x495   :  { %v7571_v47 = vadd.f32 %v7570_v43, %v10289_v3  ;;  %7348 = vmatpush1.bf16.msra.mxu0 %v7347_v41  ;;  %v4889_v42 = vmax.f32 %v7569_v24, %v4825_v9  ;;  %v2890_v3 = vld [vmem:[#allocation3 + $0xff8] sm:$0xff]  ;;  %v10390_v11 = vpop.f32.mrb[218].mxu0 }
 0x496   :  { %v4171_v63 = vpop.f32.mrb[24].mxu1  ;;  %7349 = vmatprep.subr.bf16.mxu0 %v10606_v53 }
 0x497   :  { %v4826_v45 = vmul.f32 0.01, %v7571_v47  ;;  %v7572_v28 = vadd.f32 %v4171_v63, %v10102_v30  ;;  %v4173_v39 = vpop.f32.mrb[25].mxu1  ;;  %4800 = vmatmul.mubr.f32.gmra.mrb[122].mxu1 %v2873_v35  ;;  %v2889_v30 = vld [vmem:[#allocation3 + $0xff0] sm:$0xff] }
 0x498   :  { %4804 = vmatprep.mubr.f32.mxu1 %v2882_v20 }
 0x499   :  { %v4890_v38 = vmax.f32 %v7571_v47, %v4826_v45  ;;  %v7573_v0 = vadd.f32 %v7572_v28, %v10291_v4  ;;  %v4723_v4 = vpop.f32.mrb[219].mxu0 }
 0x49a   :  { %v4176_v5 = vpop.f32.mrb[26].mxu1  ;;  %v10395_v31 = vpop.f32.mrb[220].mxu0 }
 0x49b   :  { %v7350_v33 = vpack.c.bf16 %v4890_v38, %v4889_v42  ;;  %v7574_v57 = vadd.f32 %v4176_v5, %v10105_v37  ;;  %v4178_v14 = vpop.f32.mrb[27].mxu1  ;;  %4805 = vmatmul.mubr.f32.gmra.mrb[124].mxu1 %v2881_v26  ;;  %v4827_v34 = vmul.f32 0.01, %v7573_v0 }
 0x49c   :  { %4809 = vmatprep.mubr.f32.mxu1 %v2890_v3 }
 0x49d   :  { %v7575_v58 = vadd.f32 %v7574_v57, %v10293_v22  ;;  %7351 = vmatpush1.bf16.msra.mxu0 %v7350_v33  ;;  %v4891_v37 = vmax.f32 %v7573_v0, %v4827_v34  ;;  %v4728_v22 = vpop.f32.mrb[221].mxu0 }
 0x49e   :  { %v4181_v24 = vpop.f32.mrb[28].mxu1  ;;  %7352 = vmatprep.subr.bf16.mxu0 %v10606_v53  ;;  %v10399_v45 = vpop.f32.mrb[222].mxu0 }
 0x49f   :  { %v4828_v44 = vmul.f32 0.01, %v7575_v58  ;;  %v7576_v1 = vadd.f32 %v4181_v24, %v10121_v18  ;;  %v4183_v17 = vpop.f32.mrb[29].mxu1  ;;  %4810 = vmatmul.mubr.f32.gmra.mrb[126].mxu1 %v2889_v30  ;;  %v4733_v28 = vpop.f32.mrb[223].mxu0 }
 0x4a1   :  { %v4892_v41 = vmax.f32 %v7575_v58, %v4828_v44  ;;  %v7577_v43 = vadd.f32 %v7576_v1, %v10295_v2 }
 0x4a2   :  { %v4186_v35 = vpop.f32.mrb[30].mxu1 }
 0x4a3   :  { %v7353_v9 = vpack.c.bf16 %v4892_v41, %v4891_v37  ;;  %v7578_v47 = vadd.f32 %v4186_v35, %v10126_v7  ;;  %v4188_v20 = vpop.f32.mrb[31].mxu1  ;;  %v4829_v63 = vmul.f32 0.01, %v7577_v43  ;;  %v10404_v7 = vpop.f32.mrb[224].mxu0 }
 0x4a4   :  { %v4738_v5 = vpop.f32.mrb[225].mxu0 }
 0x4a5   :  { %v7579_v32 = vadd.f32 %v7578_v47, %v10297_v59  ;;  %7354 = vmatpush1.bf16.msra.mxu0 %v7353_v9  ;;  %v4893_v42 = vmax.f32 %v7577_v43, %v4829_v63  ;;  %v10408_v30 = vpop.f32.mrb[226].mxu0  ;;  %v10622_v43 = vld [vmem:[#allocation18_spill] sm:$0xff]  ;;  %v10624_v5 = vld [vmem:[#allocation20_spill] sm:$0xff] }
 0x4a6   :  { %v4191_v18 = vpop.f32.mrb[32].mxu1  ;;  %7355 = vmatprep.subr.bf16.mxu0 %v10606_v53  ;;  %v4743_v34 = vpop.f32.mrb[227].mxu0 }
 0x4a7   :  { %v4830_v39 = vmul.f32 0.01, %v7579_v32  ;;  %v7580_v2 = vadd.f32 %v4191_v18, %v10144_v54  ;;  %v4193_v26 = vpop.f32.mrb[33].mxu1 }
 0x4a9   :  { %v4894_v38 = vmax.f32 %v7579_v32, %v4830_v39  ;;  %v7581_v0 = vadd.f32 %v7580_v2, %v10299_v61  ;;  %v10621_v61 = vld [vmem:[#allocation17_spill] sm:$0xff] }
 0x4aa   :  { %v4196_v3 = vpop.f32.mrb[34].mxu1 }
 0x4ab   :  { %v7356_v59 = vpack.c.bf16 %v4894_v38, %v4893_v42  ;;  %v7582_v51 = vadd.f32 %v4196_v3, %v10146_v55  ;;  %v4198_v33 = vpop.f32.mrb[35].mxu1  ;;  %v4831_v57 = vmul.f32 0.01, %v7581_v0  ;;  %v10413_v55 = vpop.f32.mrb[228].mxu0 }
 0x4ac   :  { %v4748_v41 = vpop.f32.mrb[229].mxu0 }
 0x4ad   :  { %v7583_v14 = vadd.f32 %v7582_v51, %v10301_v46  ;;  %7357 = vmatpush1.bf16.msra.mxu0 %v7356_v59  ;;  %v4895_v44 = vmax.f32 %v7581_v0, %v4831_v57  ;;  %v10417_v20 = vpop.f32.mrb[230].mxu0 }
 0x4ae   :  { %v4201_v54 = vpop.f32.mrb[36].mxu1  ;;  %7358 = vmatprep.subr.bf16.mxu0 %v10606_v53  ;;  %v4753_v32 = vpop.f32.mrb[231].mxu0 }
 0x4af   :  { %v4832_v58 = vmul.f32 0.01, %v7583_v14  ;;  %v7584_v24 = vadd.f32 %v4201_v54, %v10621_v61  ;;  %v4203_v4 = vpop.f32.mrb[37].mxu1 }
 0x4b1   :  { %v4896_v1 = vmax.f32 %v7583_v14, %v4832_v58  ;;  %v7585_v17 = vadd.f32 %v7584_v24, %v10303_v25  ;;  %v10623_v25 = vld [vmem:[#allocation19_spill] sm:$0xff]  ;;  %v10422_v38 = vpop.f32.mrb[232].mxu0 }
 0x4b2   :  { %v4206_v37 = vpop.f32.mrb[38].mxu1  ;;  %v4758_v3 = vpop.f32.mrb[233].mxu0 }
 0x4b3   :  { %v7359_v46 = vpack.c.bf16 %v4896_v1, %v4895_v44  ;;  %v7586_v35 = vadd.f32 %v4206_v37, %v10622_v43  ;;  %v4208_v22 = vpop.f32.mrb[39].mxu1  ;;  %v4833_v9 = vmul.f32 0.01, %v7585_v17 }
 0x4b5   :  { %v7587_v47 = vadd.f32 %v7586_v35, %v10305_v6  ;;  %7360 = vmatpush1.bf16.msra.mxu0 %v7359_v46  ;;  %v4897_v2 = vmax.f32 %v7585_v17, %v4833_v9  ;;  %v10426_v14 = vpop.f32.mrb[234].mxu0  ;;  %v10626_v46 = vld [vmem:[#allocation22_spill] sm:$0xff] }
 0x4b6   :  { %v4211_v63 = vpop.f32.mrb[40].mxu1  ;;  %7361 = vmatprep.subr.bf16.mxu0 %v10606_v53  ;;  %v4763_v34 = vpop.f32.mrb[235].mxu0 }
 0x4b7   :  { %v4834_v18 = vmul.f32 0.01, %v7587_v47  ;;  %v7588_v28 = vadd.f32 %v4211_v63, %v10623_v25  ;;  %v4213_v39 = vpop.f32.mrb[41].mxu1 }
 0x4b9   :  { %v4898_v26 = vmax.f32 %v7587_v47, %v4834_v18  ;;  %v7589_v42 = vadd.f32 %v7588_v28, %v10307_v56  ;;  %v10625_v56 = vld [vmem:[#allocation21_spill] sm:$0xff]  ;;  %v10431_v17 = vpop.f32.mrb[236].mxu0 }
 0x4ba   :  { %v4216_v0 = vpop.f32.mrb[42].mxu1  ;;  %v4768_v41 = vpop.f32.mrb[237].mxu0 }
 0x4bb   :  { %v7362_v6 = vpack.c.bf16 %v4898_v26, %v4897_v2  ;;  %v7590_v59 = vadd.f32 %v4216_v0, %v10624_v5  ;;  %v4218_v51 = vpop.f32.mrb[43].mxu1  ;;  %v4835_v33 = vmul.f32 0.01, %v7589_v42 }
 0x4bd   :  { %v7591_v57 = vadd.f32 %v7590_v59, %v10309_v50  ;;  %7363 = vmatpush1.bf16.msra.mxu0 %v7362_v6  ;;  %v4899_v4 = vmax.f32 %v7589_v42, %v4835_v33  ;;  %v10435_v47 = vpop.f32.mrb[238].mxu0 }
 0x4be   :  { %v4221_v54 = vpop.f32.mrb[44].mxu1  ;;  %7364 = vmatprep.subr.bf16.mxu0 %v10606_v53  ;;  %v4773_v32 = vpop.f32.mrb[239].mxu0 }
 0x4bf   :  { %v4836_v58 = vmul.f32 0.01, %v7591_v57  ;;  %v7592_v61 = vadd.f32 %v4221_v54, %v10625_v56  ;;  %v4223_v24 = vpop.f32.mrb[45].mxu1 }
 0x4c1   :  { %v4900_v44 = vmax.f32 %v7591_v57, %v4836_v58  ;;  %v7593_v1 = vadd.f32 %v7592_v61, %v10311_v40  ;;  %v10627_v40 = vld [vmem:[#allocation23_spill] sm:$0xff]  ;;  %v10440_v42 = vpop.f32.mrb[240].mxu0  ;;  %v3093_v61 = vpop.permute.xlu1 %3092 }
 0x4c2   :  { %v4226_v37 = vpop.f32.mrb[46].mxu1  ;;  %v4778_v3 = vpop.f32.mrb[241].mxu0 }
 0x4c3   :  { %v7365_v50 = vpack.c.bf16 %v4900_v44, %v4899_v4  ;;  %v7594_v43 = vadd.f32 %v4226_v37, %v10626_v46  ;;  %v4228_v35 = vpop.f32.mrb[47].mxu1  ;;  %v4837_v22 = vmul.f32 0.01, %v7593_v1  ;;  %v3098_v46 = vpop.permute.xlu0 %3097 }
 0x4c5   :  { %v7595_v9 = vadd.f32 %v7594_v43, %v10313_v27  ;;  %7366 = vmatpush1.bf16.msra.mxu0 %v7365_v50  ;;  %v4901_v39 = vmax.f32 %v7593_v1, %v4837_v22  ;;  %v10444_v33 = vpop.f32.mrb[242].mxu0 }
 0x4c6   :  { %v4231_v63 = vpop.f32.mrb[48].mxu1  ;;  %7367 = vmatprep.subr.bf16.mxu0 %v10606_v53  ;;  %v4783_v54 = vpop.f32.mrb[243].mxu0 }
 0x4c7   :  { %v4838_v18 = vmul.f32 0.01, %v7595_v9  ;;  %v7596_v25 = vadd.f32 %v4231_v63, %v10627_v40  ;;  %v4233_v28 = vpop.f32.mrb[49].mxu1 }
 0x4c8   :  { %v10629_v28 = vld [vmem:[#allocation25_spill] sm:$0xff] }
 0x4c9   :  { %v4902_v2 = vmax.f32 %v7595_v9, %v4838_v18  ;;  %v7597_v26 = vadd.f32 %v7596_v25, %v10315_v48  ;;  %v10628_v48 = vld [vmem:[#allocation24_spill] sm:$0xff]  ;;  %v10449_v44 = vpop.f32.mrb[244].mxu0 }
 0x4ca   :  { %v4236_v0 = vpop.f32.mrb[50].mxu1 }
 0x4cb   :  { %v7368_v27 = vpack.c.bf16 %v4902_v2, %v4901_v39  ;;  %v7598_v6 = vadd.f32 %v4236_v0, %v10200_v12  ;;  %v4238_v5 = vpop.f32.mrb[51].mxu1  ;;  %v4839_v59 = vmul.f32 0.01, %v7597_v26  ;;  %v3103_v2 = vpop.permute.xlu1 %3102 }
 0x4cd   :  { %v7599_v51 = vadd.f32 %v7598_v6, %v10317_v60  ;;  %7369 = vmatpush1.bf16.msra.mxu0 %v7368_v27  ;;  %v4903_v24 = vmax.f32 %v7597_v26, %v4839_v59  ;;  %v4788_v60 = vpop.f32.mrb[245].mxu0  ;;  %v10630_v6 = vld [vmem:[#allocation26_spill] sm:$0xff]  ;;  %v3108_v59 = vpop.permute.xlu0 %3107 }
 0x4ce   :  { %v4241_v57 = vpop.f32.mrb[52].mxu1  ;;  %7370 = vmatprep.subr.bf16.mxu0 %v10606_v53  ;;  %v10452_v22 = vpop.f32.mrb[246].mxu0 }
 0x4cf   :  { %v4840_v34 = vmul.f32 0.01, %v7599_v51  ;;  %v7600_v58 = vadd.f32 %v4241_v57, %v10628_v48  ;;  %v4243_v56 = vpop.f32.mrb[53].mxu1  ;;  %v4793_v63 = vpop.f32.mrb[247].mxu0 }
 0x4d0   :  { %v10631_v56 = vld [vmem:[#allocation27_spill] sm:$0xff] }
 0x4d1   :  { %v4904_v4 = vmax.f32 %v7599_v51, %v4840_v34  ;;  %v7601_v12 = vadd.f32 %v7600_v58, %v10319_v21 }
 0x4d2   :  { %v4246_v1 = vpop.f32.mrb[54].mxu1 }
 0x4d3   :  { %v7371_v37 = vpack.c.bf16 %v4904_v4, %v4903_v24  ;;  %v7602_v41 = vadd.f32 %v4246_v1, %v3093_v61  ;;  %v4248_v50 = vpop.f32.mrb[55].mxu1  ;;  %v4841_v43 = vmul.f32 0.01, %v7601_v12  ;;  %v3113_v24 = vpop.permute.xlu1 %3112 }
 0x4d5   :  { %v7603_v35 = vadd.f32 %v7602_v41, %v10321_v23  ;;  %7372 = vmatpush1.bf16.msra.mxu0 %v7371_v37  ;;  %v4905_v40 = vmax.f32 %v7601_v12, %v4841_v43  ;;  %v10632_v41 = vld [vmem:[#allocation28_spill] sm:$0xff] }
 0x4d6   :  { %v4251_v9 = vpop.f32.mrb[56].mxu1  ;;  %7373 = vmatprep.subr.bf16.mxu0 %v10606_v53 }
 0x4d7   :  { %v4842_v32 = vmul.f32 0.01, %v7603_v35  ;;  %v7604_v21 = vadd.f32 %v4251_v9, %v3098_v46  ;;  %v4253_v18 = vpop.f32.mrb[57].mxu1  ;;  %v3118_v46 = vpop.permute.xlu0 %3117 }
 0x4d8   :  { %v10633_v18 = vld [vmem:[#allocation29_spill] sm:$0xff] }
 0x4d9   :  { %v4906_v25 = vmax.f32 %v7603_v35, %v4842_v32  ;;  %v7605_v39 = vadd.f32 %v7604_v21, %v10629_v28 }
 0x4da   :  { %v4256_v26 = vpop.f32.mrb[58].mxu1 }
 0x4db   :  { %v7374_v0 = vpack.c.bf16 %v4906_v25, %v4905_v40  ;;  %v7606_v3 = vadd.f32 %v4256_v26, %v3103_v2  ;;  %v4258_v27 = vpop.f32.mrb[59].mxu1  ;;  %v4843_v23 = vmul.f32 0.01, %v7605_v39  ;;  %v3123_v25 = vpop.permute.xlu1 %3122 }
 0x4dd   :  { %v7607_v5 = vadd.f32 %v7606_v3, %v10630_v6  ;;  %7375 = vmatpush1.bf16.msra.mxu0 %v7374_v0  ;;  %v4907_v48 = vmax.f32 %v7605_v39, %v4843_v23  ;;  %v10634_v3 = vld [vmem:[#allocation30_spill] sm:$0xff]  ;;  %v4943_v23 = vld [vmem:[#allocation5] sm:$0xff]  ;;  %v3128_v6 = vpop.permute.xlu0 %3127 }
 0x4de   :  { %v4261_v51 = vpop.f32.mrb[60].mxu1  ;;  %7376 = vmatprep.subr.bf16.mxu0 %v10606_v53 }
 0x4df   :  { %v4844_v57 = vmul.f32 0.01, %v7607_v5  ;;  %v7608_v54 = vadd.f32 %v4261_v51, %v3108_v59  ;;  %v4263_v34 = vpop.f32.mrb[61].mxu1  ;;  %v4948_v59 = vld [vmem:[#allocation5 + $0x28] sm:$0xff] }
 0x4e1   :  { %v4908_v58 = vmax.f32 %v7607_v5, %v4844_v57  ;;  %v7609_v61 = vadd.f32 %v7608_v54, %v10631_v56  ;;  %v4947_v56 = vld [vmem:[#allocation5 + $0x20] sm:$0xff] }
 0x4e2   :  { %v4266_v4 = vpop.f32.mrb[62].mxu1 }
 0x4e3   :  { %v7377_v12 = vpack.c.bf16 %v4908_v58, %v4907_v48  ;;  %v7610_v1 = vadd.f32 %v4266_v4, %v3113_v24  ;;  %v4268_v60 = vpop.f32.mrb[63].mxu1  ;;  %v4845_v37 = vmul.f32 0.01, %v7609_v61  ;;  %v4952_v4 = vld [vmem:[#allocation5 + $0x48] sm:$0xff] }
 0x4e5   :  { %v7611_v50 = vadd.f32 %v7610_v1, %v10632_v41  ;;  %7378 = vmatpush1.bf16.msra.mxu0 %v7377_v12  ;;  %v4909_v32 = vmax.f32 %v7609_v61, %v4845_v37  ;;  %v3133_v61 = vpop.permute.xlu1 %3132 }
 0x4e6   :  { %v4271_v43 = vpop.f32.mrb[64].mxu1  ;;  %7379 = vmatprep.subr.bf16.mxu0 %v10606_v53 }
 0x4e7   :  { %v4846_v35 = vmul.f32 0.01, %v7611_v50  ;;  %v7612_v9 = vadd.f32 %v4271_v43, %v3118_v46  ;;  %v4273_v63 = vpop.f32.mrb[65].mxu1  ;;  %v3138_v46 = vpop.permute.xlu0 %3137 }
 0x4e9   :  { %v4910_v21 = vmax.f32 %v7611_v50, %v4846_v35  ;;  %v7613_v40 = vadd.f32 %v7612_v9, %v10633_v18  ;;  %v4951_v50 = vld [vmem:[#allocation5 + $0x40] sm:$0xff] }
 0x4ea   :  { %v4276_v28 = vpop.f32.mrb[66].mxu1 }
 0x4eb   :  { %v7380_v39 = vpack.c.bf16 %v4910_v21, %v4909_v32  ;;  %v7614_v2 = vadd.f32 %v4276_v28, %v3123_v25  ;;  %v4278_v26 = vpop.f32.mrb[67].mxu1  ;;  %v4847_v0 = vmul.f32 0.01, %v7613_v40  ;;  %v3143_v25 = vpop.permute.xlu1 %3142  ;;  %v4960_v28 = vld [vmem:[#allocation5 + $0x88] sm:$0xff] }
 0x4ed   :  { %v7615_v27 = vadd.f32 %v7614_v2, %v10634_v3  ;;  %7381 = vmatpush1.bf16.msra.mxu0 %v7380_v39  ;;  %v4911_v34 = vmax.f32 %v7613_v40, %v4847_v0  ;;  %v4955_v40 = vld [vmem:[#allocation5 + $0x60] sm:$0xff] }
 0x4ee   :  { %v4281_v5 = vpop.f32.mrb[68].mxu1  ;;  %7382 = vmatprep.subr.bf16.mxu0 %v10606_v53 }
 0x4ef   :  { %v4848_v51 = vmul.f32 0.01, %v7615_v27  ;;  %v7616_v57 = vadd.f32 %v4281_v5, %v3128_v6  ;;  %v4283_v54 = vpop.f32.mrb[69].mxu1 }
 0x4f0   :  { %5328 = vmatmul.mubr.f32.vlgmr.msra.gmra.mrb[248].mxu0 %v4943_v23  ;;  %v3148_v23 = vpop.permute.xlu0 %3147 }
 0x4f1   :  { %v4912_v48 = vmax.f32 %v7615_v27, %v4848_v51  ;;  %v7617_v58 = vadd.f32 %v7616_v57, %v10341_v8  ;;  %5332 = vmatprep.mubr.f32.mxu0 %v4948_v59  ;;  %v4956_v8 = vld [vmem:[#allocation5 + $0x68] sm:$0xff]  ;;  %v4959_v27 = vld [vmem:[#allocation5 + $0x80] sm:$0xff] }
 0x4f2   :  { %v4286_v24 = vpop.f32.mrb[70].mxu1 }
 0x4f3   :  { %v7383_v12 = vpack.c.bf16 %v4912_v48, %v4911_v34  ;;  %v7618_v1 = vadd.f32 %v4286_v24, %v3133_v61  ;;  %v4288_v60 = vpop.f32.mrb[71].mxu1  ;;  %v4849_v37 = vmul.f32 0.01, %v7617_v58  ;;  %v4963_v48 = vld [vmem:[#allocation5 + $0xa0] sm:$0xff] }
 0x4f4   :  { %5333 = vmatmul.mubr.f32.gmra.mrb[250].mxu0 %v4947_v56  ;;  %v4968_v56 = vld [vmem:[#allocation5 + $0xc8] sm:$0xff]  ;;  %v4967_v60 = vld [vmem:[#allocation5 + $0xc0] sm:$0xff] }
 0x4f5   :  { %v7619_v41 = vadd.f32 %v7618_v1, %v10345_v10  ;;  %7384 = vmatpush1.bf16.msra.mxu0 %v7383_v12  ;;  %5337 = vmatprep.mubr.f32.mxu0 %v4952_v4  ;;  %v4913_v32 = vmax.f32 %v7617_v58, %v4849_v37  ;;  %v3153_v58 = vpop.permute.xlu1 %3152  ;;  %v3158_v37 = vpop.permute.xlu0 %3157 }
 0x4f6   :  { %v4291_v43 = vpop.f32.mrb[72].mxu1  ;;  %7385 = vmatprep.subr.bf16.mxu0 %v10606_v53 }
 0x4f7   :  { %v4850_v35 = vmul.f32 0.01, %v7619_v41  ;;  %v7620_v9 = vadd.f32 %v4291_v43, %v3138_v46  ;;  %v4293_v63 = vpop.f32.mrb[73].mxu1 }
 0x4f8   :  { %5338 = vmatmul.mubr.f32.gmra.mrb[252].mxu0 %v4951_v50  ;;  %v4971_v63 = vld [vmem:[#allocation5 + $0xe0] sm:$0xff] }
 0x4f9   :  { %v4914_v21 = vmax.f32 %v7619_v41, %v4850_v35  ;;  %v7621_v18 = vadd.f32 %v7620_v9, %v10350_v15  ;;  %5342 = vmatprep.mubr.f32.mxu0 %v4956_v8  ;;  %v4964_v15 = vld [vmem:[#allocation5 + $0xa8] sm:$0xff] }
 0x4fa   :  { %v4296_v10 = vpop.f32.mrb[74].mxu1 }
 0x4fb   :  { %v7386_v39 = vpack.c.bf16 %v4914_v21, %v4913_v32  ;;  %v7622_v2 = vadd.f32 %v4296_v10, %v3143_v25  ;;  %v4298_v26 = vpop.f32.mrb[75].mxu1  ;;  %v4851_v0 = vmul.f32 0.01, %v7621_v18  ;;  %v3163_v32 = vpop.permute.xlu1 %3162  ;;  %v4976_v21 = vld [vmem:[#allocation5 + $0x108] sm:$0xff] }
 0x4fc   :  { %5343 = vmatmul.mubr.f32.gmra.mrb[254].mxu0 %v4955_v40 }
 0x4fd   :  { %v7623_v3 = vadd.f32 %v7622_v2, %v10354_v62  ;;  %7387 = vmatpush1.bf16.msra.mxu0 %v7386_v39  ;;  %5347 = vmatprep.mubr.f32.mxu0 %v4960_v28  ;;  %v4915_v57 = vmax.f32 %v7621_v18, %v4851_v0  ;;  %v4975_v39 = vld [vmem:[#allocation5 + $0x100] sm:$0xff]  ;;  %v3168_v2 = vpop.permute.xlu0 %3167 }
 0x4fe   :  { %v4301_v6 = vpop.f32.mrb[76].mxu1  ;;  %7388 = vmatprep.subr.bf16.mxu0 %v10606_v53 }
 0x4ff   :  { %v4852_v5 = vmul.f32 0.01, %v7623_v3  ;;  %v7624_v59 = vadd.f32 %v4301_v6, %v3148_v23  ;;  %v4303_v51 = vpop.f32.mrb[77].mxu1 }
 0x500   :  { %5348 = vmatmul.mubr.f32.gmra.mrb[0].mxu0 %v4959_v27  ;;  %v4984_v51 = vld [vmem:[#allocation5 + $0x148] sm:$0xff] }
 0x501   :  { %v4916_v54 = vmax.f32 %v7623_v3, %v4852_v5  ;;  %v7625_v34 = vadd.f32 %v7624_v59, %v10359_v16  ;;  %5352 = vmatprep.mubr.f32.mxu0 %v4964_v15  ;;  %v4972_v16 = vld [vmem:[#allocation5 + $0xe8] sm:$0xff]  ;;  %v4979_v5 = vld [vmem:[#allocation5 + $0x120] sm:$0xff]  ;;  %v3173_v59 = vpop.permute.xlu1 %3172 }
 0x502   :  { %v4306_v62 = vpop.f32.mrb[78].mxu1 }
 0x503   :  { %v7389_v61 = vpack.c.bf16 %v4916_v54, %v4915_v57  ;;  %v7626_v24 = vadd.f32 %v4306_v62, %v3153_v58  ;;  %v4308_v4 = vpop.f32.mrb[79].mxu1  ;;  %v4853_v12 = vmul.f32 0.01, %v7625_v34  ;;  %v4983_v62 = vld [vmem:[#allocation5 + $0x140] sm:$0xff] }
 0x504   :  { %5353 = vmatmul.mubr.f32.gmra.mrb[2].mxu0 %v4963_v48 }
 0x505   :  { %v7627_v1 = vadd.f32 %v7626_v24, %v10363_v52  ;;  %7390 = vmatpush1.bf16.msra.mxu0 %v7389_v61  ;;  %5357 = vmatprep.mubr.f32.mxu0 %v4968_v56  ;;  %v4917_v8 = vmax.f32 %v7625_v34, %v4853_v12  ;;  %v3178_v56 = vpop.permute.xlu0 %3177 }
 0x506   :  { %v4311_v41 = vpop.f32.mrb[80].mxu1  ;;  %7391 = vmatprep.subr.bf16.mxu0 %v10606_v53 }
 0x507   :  { %v4854_v50 = vmul.f32 0.01, %v7627_v1  ;;  %v7628_v46 = vadd.f32 %v4311_v41, %v3158_v37  ;;  %v4313_v43 = vpop.f32.mrb[81].mxu1  ;;  %v4987_v41 = vld [vmem:[#allocation5 + $0x160] sm:$0xff] }
 0x508   :  { %5358 = vmatmul.mubr.f32.gmra.mrb[4].mxu0 %v4967_v60 }
 0x509   :  { %v4918_v35 = vmax.f32 %v7627_v1, %v4854_v50  ;;  %v7629_v9 = vadd.f32 %v7628_v46, %v10368_v19  ;;  %5362 = vmatprep.mubr.f32.mxu0 %v4972_v16  ;;  %v4980_v19 = vld [vmem:[#allocation5 + $0x128] sm:$0xff]  ;;  %v3183_v16 = vpop.permute.xlu1 %3182 }
 0x50a   :  { %v4316_v52 = vpop.f32.mrb[82].mxu1  ;;  %v4992_v50 = vld [vmem:[#allocation5 + $0x188] sm:$0xff] }
 0x50b   :  { %v7392_v18 = vpack.c.bf16 %v4918_v35, %v4917_v8  ;;  %v7630_v40 = vadd.f32 %v4316_v52, %v3163_v32  ;;  %v4318_v25 = vpop.f32.mrb[83].mxu1  ;;  %v4855_v10 = vmul.f32 0.01, %v7629_v9  ;;  %v3188_v32 = vpop.permute.xlu0 %3187 }
 0x50c   :  { %5363 = vmatmul.mubr.f32.gmra.mrb[6].mxu0 %v4971_v63  ;;  %v4991_v63 = vld [vmem:[#allocation5 + $0x180] sm:$0xff] }
 0x50d   :  { %v7631_v28 = vadd.f32 %v7630_v40, %v10372_v49  ;;  %7393 = vmatpush1.bf16.msra.mxu0 %v7392_v18  ;;  %5367 = vmatprep.mubr.f32.mxu0 %v4976_v21  ;;  %v4919_v23 = vmax.f32 %v7629_v9, %v4855_v10 }
 0x50e   :  { %v4321_v26 = vpop.f32.mrb[84].mxu1  ;;  %7394 = vmatprep.subr.bf16.mxu0 %v10606_v53 }
 0x50f   :  { %v4856_v0 = vmul.f32 0.01, %v7631_v28  ;;  %v7632_v3 = vadd.f32 %v4321_v26, %v3168_v2  ;;  %v4323_v27 = vpop.f32.mrb[85].mxu1  ;;  %v3193_v2 = vpop.permute.xlu1 %3192  ;;  %v5000_v26 = vld [vmem:[#allocation5 + $0x1c8] sm:$0xff] }
 0x510   :  { %5368 = vmatmul.mubr.f32.gmra.mrb[8].mxu0 %v4975_v39  ;;  %v4995_v39 = vld [vmem:[#allocation5 + $0x1a0] sm:$0xff] }
 0x511   :  { %v4920_v6 = vmax.f32 %v7631_v28, %v4856_v0  ;;  %v7633_v15 = vadd.f32 %v7632_v3, %v10377_v13  ;;  %5372 = vmatprep.mubr.f32.mxu0 %v4980_v19  ;;  %v4988_v13 = vld [vmem:[#allocation5 + $0x168] sm:$0xff] }
 0x512   :  { %v4326_v49 = vpop.f32.mrb[86].mxu1 }
 0x513   :  { %v7395_v57 = vpack.c.bf16 %v4920_v6, %v4919_v23  ;;  %v7634_v54 = vadd.f32 %v4326_v49, %v3173_v59  ;;  %v4328_v34 = vpop.f32.mrb[87].mxu1  ;;  %v4857_v48 = vmul.f32 0.01, %v7633_v15  ;;  %v4999_v6 = vld [vmem:[#allocation5 + $0x1c0] sm:$0xff] }
 0x514   :  { %5373 = vmatmul.mubr.f32.gmra.mrb[10].mxu0 %v4979_v5 }
 0x515   :  { %v7635_v58 = vadd.f32 %v7634_v54, %v10381_v36  ;;  %7396 = vmatpush1.bf16.msra.mxu0 %v7395_v57  ;;  %5377 = vmatprep.mubr.f32.mxu0 %v4984_v51  ;;  %v4921_v1 = vmax.f32 %v7633_v15, %v4857_v48  ;;  %v3198_v15 = vpop.permute.xlu0 %3197  ;;  %v5003_v48 = vld [vmem:[#allocation5 + $0x1e0] sm:$0xff] }
 0x516   :  { %v4331_v61 = vpop.f32.mrb[88].mxu1  ;;  %7397 = vmatprep.subr.bf16.mxu0 %v10606_v53 }
 0x517   :  { %v4858_v24 = vmul.f32 0.01, %v7635_v58  ;;  %v7636_v4 = vadd.f32 %v4331_v61, %v3178_v56  ;;  %v4333_v12 = vpop.f32.mrb[89].mxu1 }
 0x518   :  { %5378 = vmatmul.mubr.f32.gmra.mrb[12].mxu0 %v4983_v62  ;;  %v5008_v62 = vld [vmem:[#allocation5 + $0x208] sm:$0xff]  ;;  %v5007_v12 = vld [vmem:[#allocation5 + $0x200] sm:$0xff] }
 0x519   :  { %v4922_v60 = vmax.f32 %v7635_v58, %v4858_v24  ;;  %v7637_v37 = vadd.f32 %v7636_v4, %v10386_v29  ;;  %5382 = vmatprep.mubr.f32.mxu0 %v4988_v13  ;;  %v4996_v29 = vld [vmem:[#allocation5 + $0x1a8] sm:$0xff]  ;;  %v3203_v58 = vpop.permute.xlu1 %3202 }
 0x51a   :  { %v4336_v36 = vpop.f32.mrb[90].mxu1 }
 0x51b   :  { %v7398_v46 = vpack.c.bf16 %v4922_v60, %v4921_v1  ;;  %v7638_v43 = vadd.f32 %v4336_v36, %v3183_v16  ;;  %v4338_v8 = vpop.f32.mrb[91].mxu1  ;;  %v4859_v35 = vmul.f32 0.01, %v7637_v37  ;;  %v3208_v1 = vpop.permute.xlu0 %3207 }
 0x51c   :  { %5383 = vmatmul.mubr.f32.gmra.mrb[14].mxu0 %v4987_v41 }
 0x51d   :  { %v7639_v9 = vadd.f32 %v7638_v43, %v10390_v11  ;;  %7399 = vmatpush1.bf16.msra.mxu0 %v7398_v46  ;;  %5387 = vmatprep.mubr.f32.mxu0 %v4992_v50  ;;  %v4923_v25 = vmax.f32 %v7637_v37, %v4859_v35  ;;  %v5011_v43 = vld [vmem:[#allocation5 + $0x220] sm:$0xff]  ;;  %v3213_v8 = vpop.permute.xlu1 %3212  ;;  %v5016_v35 = vld [vmem:[#allocation5 + $0x248] sm:$0xff] }
 0x51e   :  { %v4341_v52 = vpop.f32.mrb[92].mxu1  ;;  %7400 = vmatprep.subr.bf16.mxu0 %v10606_v53 }
 0x51f   :  { %v4860_v21 = vmul.f32 0.01, %v7639_v9  ;;  %v7640_v18 = vadd.f32 %v4341_v52, %v3188_v32  ;;  %v4343_v40 = vpop.f32.mrb[93].mxu1 }
 0x520   :  { %5388 = vmatmul.mubr.f32.gmra.mrb[16].mxu0 %v4991_v63 }
 0x521   :  { %v4924_v10 = vmax.f32 %v7639_v9, %v4860_v21  ;;  %v7641_v28 = vadd.f32 %v7640_v18, %v10395_v31  ;;  %5392 = vmatprep.mubr.f32.mxu0 %v4996_v29  ;;  %v5004_v31 = vld [vmem:[#allocation5 + $0x1e8] sm:$0xff]  ;;  %v5015_v21 = vld [vmem:[#allocation5 + $0x240] sm:$0xff]  ;;  %v3218_v18 = vpop.permute.xlu0 %3217 }
 0x522   :  { %v4346_v11 = vpop.f32.mrb[94].mxu1 }
 0x523   :  { %v7401_v19 = vpack.c.bf16 %v4924_v10, %v4923_v25  ;;  %v7642_v0 = vadd.f32 %v4346_v11, %v3193_v2  ;;  %v4348_v3 = vpop.f32.mrb[95].mxu1  ;;  %v4861_v27 = vmul.f32 0.01, %v7641_v28 }
 0x524   :  { %5393 = vmatmul.mubr.f32.gmra.mrb[18].mxu0 %v4995_v39 }
 0x525   :  { %v7643_v23 = vadd.f32 %v7642_v0, %v10399_v45  ;;  %7402 = vmatpush1.bf16.msra.mxu0 %v7401_v19  ;;  %5397 = vmatprep.mubr.f32.mxu0 %v5000_v26  ;;  %v4925_v57 = vmax.f32 %v7641_v28, %v4861_v27  ;;  %v5019_v26 = vld [vmem:[#allocation5 + $0x260] sm:$0xff]  ;;  %v3223_v19 = vpop.permute.xlu1 %3222  ;;  %v5024_v0 = vld [vmem:[#allocation5 + $0x288] sm:$0xff] }
 0x526   :  { %v4351_v5 = vpop.f32.mrb[96].mxu1  ;;  %7403 = vmatprep.subr.bf16.mxu0 %v10606_v53 }
 0x527   :  { %v4862_v59 = vmul.f32 0.01, %v7643_v23  ;;  %v7644_v49 = vadd.f32 %v4351_v5, %v3198_v15  ;;  %v4353_v51 = vpop.f32.mrb[97].mxu1  ;;  %v5023_v5 = vld [vmem:[#allocation5 + $0x280] sm:$0xff] }
 0x528   :  { %5398 = vmatmul.mubr.f32.gmra.mrb[20].mxu0 %v4999_v6 }
 0x529   :  { %v4926_v54 = vmax.f32 %v7643_v23, %v4862_v59  ;;  %v7645_v34 = vadd.f32 %v7644_v49, %v10404_v7  ;;  %5402 = vmatprep.mubr.f32.mxu0 %v5004_v31  ;;  %v5012_v7 = vld [vmem:[#allocation5 + $0x228] sm:$0xff]  ;;  %v3228_v31 = vpop.permute.xlu0 %3227 }
 0x52a   :  { %v4356_v45 = vpop.f32.mrb[98].mxu1 }
 0x52b   :  { %v7404_v56 = vpack.c.bf16 %v4926_v54, %v4925_v57  ;;  %v7646_v61 = vadd.f32 %v4356_v45, %v3203_v58  ;;  %v4358_v13 = vpop.f32.mrb[99].mxu1  ;;  %v4863_v24 = vmul.f32 0.01, %v7645_v34  ;;  %v5027_v58 = vld [vmem:[#allocation5 + $0x2a0] sm:$0xff]  ;;  %v3233_v45 = vpop.permute.xlu1 %3232 }
 0x52c   :  { %5403 = vmatmul.mubr.f32.gmra.mrb[22].mxu0 %v5003_v48 }
 0x52d   :  { %v7647_v4 = vadd.f32 %v7646_v61, %v10408_v30  ;;  %7405 = vmatpush1.bf16.msra.mxu0 %v7404_v56  ;;  %5407 = vmatprep.mubr.f32.mxu0 %v5008_v62  ;;  %v4927_v36 = vmax.f32 %v7645_v34, %v4863_v24  ;;  %v5032_v62 = vld [vmem:[#allocation5 + $0x2c8] sm:$0xff] }
 0x52e   :  { %v4361_v60 = vpop.f32.mrb[100].mxu1  ;;  %7406 = vmatprep.subr.bf16.mxu0 %v10606_v53 }
 0x52f   :  { %v4864_v37 = vmul.f32 0.01, %v7647_v4  ;;  %v7648_v41 = vadd.f32 %v4361_v60, %v3208_v1  ;;  %v4363_v16 = vpop.f32.mrb[101].mxu1  ;;  %v3238_v1 = vpop.permute.xlu0 %3237 }
 0x530   :  { %5408 = vmatmul.mubr.f32.gmra.mrb[24].mxu0 %v5007_v12  ;;  %v5031_v12 = vld [vmem:[#allocation5 + $0x2c0] sm:$0xff] }
 0x531   :  { %v4928_v50 = vmax.f32 %v7647_v4, %v4864_v37  ;;  %v7649_v46 = vadd.f32 %v7648_v41, %v10413_v55  ;;  %5412 = vmatprep.mubr.f32.mxu0 %v5012_v7  ;;  %v5020_v55 = vld [vmem:[#allocation5 + $0x268] sm:$0xff] }
 0x532   :  { %v4366_v30 = vpop.f32.mrb[102].mxu1 }
 0x533   :  { %v7407_v9 = vpack.c.bf16 %v4928_v50, %v4927_v36  ;;  %v7650_v63 = vadd.f32 %v4366_v30, %v3213_v8  ;;  %v4368_v32 = vpop.f32.mrb[103].mxu1  ;;  %v4865_v52 = vmul.f32 0.01, %v7649_v46  ;;  %v5040_v8 = vld [vmem:[#allocation5 + $0x308] sm:$0xff] }
 0x534   :  { %5413 = vmatmul.mubr.f32.gmra.mrb[26].mxu0 %v5011_v43  ;;  %v3243_v43 = vpop.permute.xlu1 %3242 }
 0x535   :  { %v7651_v29 = vadd.f32 %v7650_v63, %v10417_v20  ;;  %7408 = vmatpush1.bf16.msra.mxu0 %v7407_v9  ;;  %5417 = vmatprep.mubr.f32.mxu0 %v5016_v35  ;;  %v4929_v39 = vmax.f32 %v7649_v46, %v4865_v52  ;;  %v5035_v46 = vld [vmem:[#allocation5 + $0x2e0] sm:$0xff] }
 0x536   :  { %v4371_v40 = vpop.f32.mrb[104].mxu1  ;;  %7409 = vmatprep.subr.bf16.mxu0 %v10606_v53  ;;  %v5039_v52 = vld [vmem:[#allocation5 + $0x300] sm:$0xff] }
 0x537   :  { %v4866_v25 = vmul.f32 0.01, %v7651_v29  ;;  %v7652_v10 = vadd.f32 %v4371_v40, %v3218_v18  ;;  %v4373_v28 = vpop.f32.mrb[105].mxu1 }
 0x538   :  { %5418 = vmatmul.mubr.f32.gmra.mrb[28].mxu0 %v5015_v21 }
 0x539   :  { %v4930_v2 = vmax.f32 %v7651_v29, %v4866_v25  ;;  %v7653_v11 = vadd.f32 %v7652_v10, %v10422_v38  ;;  %5422 = vmatprep.mubr.f32.mxu0 %v5020_v55  ;;  %v5028_v38 = vld [vmem:[#allocation5 + $0x2a8] sm:$0xff]  ;;  %v3248_v29 = vpop.permute.xlu0 %3247 }
 0x53a   :  { %v4376_v20 = vpop.f32.mrb[106].mxu1 }
 0x53b   :  { %v7410_v3 = vpack.c.bf16 %v4930_v2, %v4929_v39  ;;  %v7654_v27 = vadd.f32 %v4376_v20, %v3223_v19  ;;  %v4378_v23 = vpop.f32.mrb[107].mxu1  ;;  %v4867_v6 = vmul.f32 0.01, %v7653_v11  ;;  %v5043_v39 = vld [vmem:[#allocation5 + $0x320] sm:$0xff]  ;;  %v3253_v2 = vpop.permute.xlu1 %3252 }
 0x53c   :  { %5423 = vmatmul.mubr.f32.gmra.mrb[30].mxu0 %v5019_v26  ;;  %v5052_v23 = vld [vmem:[#allocation5 + $0x368] sm:$0xff] }
 0x53d   :  { %v7655_v15 = vadd.f32 %v7654_v27, %v10426_v14  ;;  %7411 = vmatpush1.bf16.msra.mxu0 %v7410_v3  ;;  %5427 = vmatprep.mubr.f32.mxu0 %v5024_v0  ;;  %v4931_v54 = vmax.f32 %v7653_v11, %v4867_v6  ;;  %v5048_v11 = vld [vmem:[#allocation5 + $0x348] sm:$0xff]  ;;  %v5047_v27 = vld [vmem:[#allocation5 + $0x340] sm:$0xff] }
 0x53e   :  { %v4381_v59 = vpop.f32.mrb[108].mxu1  ;;  %7412 = vmatprep.subr.bf16.mxu0 %v10606_v53 }
 0x53f   :  { %v4868_v49 = vmul.f32 0.01, %v7655_v15  ;;  %v7656_v51 = vadd.f32 %v4381_v59, %v3228_v31  ;;  %v4383_v57 = vpop.f32.mrb[109].mxu1  ;;  %v5056_v31 = vld [vmem:[#allocation5 + $0x388] sm:$0xff] }
 0x540   :  { %5428 = vmatmul.mubr.f32.gmra.mrb[32].mxu0 %v5023_v5  ;;  %v5051_v5 = vld [vmem:[#allocation5 + $0x360] sm:$0xff] }
 0x541   :  { %v4932_v34 = vmax.f32 %v7655_v15, %v4868_v49  ;;  %v7657_v48 = vadd.f32 %v7656_v51, %v10431_v17  ;;  %5432 = vmatprep.mubr.f32.mxu0 %v5028_v38  ;;  %v5036_v17 = vld [vmem:[#allocation5 + $0x2e8] sm:$0xff]  ;;  %v5055_v38 = vld [vmem:[#allocation5 + $0x380] sm:$0xff] }
 0x542   :  { %v4386_v14 = vpop.f32.mrb[110].mxu1  ;;  %v5060_v49 = vld [vmem:[#allocation5 + $0x3a8] sm:$0xff]  ;;  %v5063_v57 = vld [vmem:[#allocation5 + $0x3c0] sm:$0xff] }
 0x543   :  { %v7413_v56 = vpack.c.bf16 %v4932_v34, %v4931_v54  ;;  %v7658_v61 = vadd.f32 %v4386_v14, %v3233_v45  ;;  %v4388_v13 = vpop.f32.mrb[111].mxu1  ;;  %v4869_v24 = vmul.f32 0.01, %v7657_v48  ;;  %v5064_v51 = vld [vmem:[#allocation5 + $0x3c8] sm:$0xff]  ;;  %v3258_v54 = vpop.permute.xlu0 %3257  ;;  %v5067_v14 = vld [vmem:[#allocation5 + $0x3e0] sm:$0xff] }
 0x544   :  { %5433 = vmatmul.mubr.f32.gmra.mrb[34].mxu0 %v5027_v58 }
 0x545   :  { %v7659_v4 = vadd.f32 %v7658_v61, %v10435_v47  ;;  %7414 = vmatpush1.bf16.msra.mxu0 %v7413_v56  ;;  %5437 = vmatprep.mubr.f32.mxu0 %v5032_v62  ;;  %v4933_v16 = vmax.f32 %v7657_v48, %v4869_v24  ;;  %v5068_v48 = vld [vmem:[#allocation5 + $0x3e8] sm:$0xff]  ;;  %v3263_v62 = vpop.permute.xlu1 %3262  ;;  %v4946_v61 = vld [vmem:[#allocation5 + $0x18] sm:$0xff] }
 0x546   :  { %v4391_v60 = vpop.f32.mrb[112].mxu1  ;;  %7415 = vmatprep.subr.bf16.mxu0 %v10606_v53 }
 0x547   :  { %v4870_v7 = vmul.f32 0.01, %v7659_v4  ;;  %v7660_v37 = vadd.f32 %v4391_v60, %v3238_v1  ;;  %v4393_v41 = vpop.f32.mrb[113].mxu1  ;;  %v3268_v1 = vpop.permute.xlu0 %3267 }
 0x548   :  { %5438 = vmatmul.mubr.f32.gmra.mrb[36].mxu0 %v5031_v12 }
 0x549   :  { %v4934_v36 = vmax.f32 %v7659_v4, %v4870_v7  ;;  %v7661_v50 = vadd.f32 %v7660_v37, %v10440_v42  ;;  %5442 = vmatprep.mubr.f32.mxu0 %v5036_v17  ;;  %v5044_v42 = vld [vmem:[#allocation5 + $0x328] sm:$0xff] }
 0x54a   :  { %v4396_v47 = vpop.f32.mrb[114].mxu1 }
 0x54b   :  { %v7416_v30 = vpack.c.bf16 %v4934_v36, %v4933_v16  ;;  %v7662_v35 = vadd.f32 %v4396_v47, %v3243_v43  ;;  %v4398_v9 = vpop.f32.mrb[115].mxu1  ;;  %v4871_v63 = vmul.f32 0.01, %v7661_v50  ;;  %v3273_v36 = vpop.permute.xlu1 %3272 }
 0x54c   :  { %5443 = vmatmul.mubr.f32.gmra.mrb[38].mxu0 %v5035_v46 }
 0x54d   :  { %v7663_v32 = vadd.f32 %v7662_v35, %v10444_v33  ;;  %7417 = vmatpush1.bf16.msra.mxu0 %v7416_v30  ;;  %5447 = vmatprep.mubr.f32.mxu0 %v5040_v8  ;;  %v4935_v25 = vmax.f32 %v7661_v50, %v4871_v63  ;;  %v4945_v63 = vld [vmem:[#allocation5 + $0x10] sm:$0xff] }
 0x54e   :  { %v4401_v21 = vpop.f32.mrb[116].mxu1  ;;  %7418 = vmatprep.subr.bf16.mxu0 %v10606_v53 }
 0x54f   :  { %v4872_v18 = vmul.f32 0.01, %v7663_v32  ;;  %v7664_v40 = vadd.f32 %v4401_v21, %v3248_v29  ;;  %v4403_v55 = vpop.f32.mrb[117].mxu1  ;;  %v4954_v29 = vld [vmem:[#allocation5 + $0x58] sm:$0xff]  ;;  %v4953_v21 = vld [vmem:[#allocation5 + $0x50] sm:$0xff] }
 0x550   :  { %5448 = vmatmul.mubr.f32.gmra.mrb[40].mxu0 %v5039_v52  ;;  %v4949_v52 = vld [vmem:[#allocation5 + $0x30] sm:$0xff] }
 0x551   :  { %v4936_v10 = vmax.f32 %v7663_v32, %v4872_v18  ;;  %v7665_v28 = vadd.f32 %v7664_v40, %v10449_v44  ;;  %5452 = vmatprep.mubr.f32.mxu0 %v5044_v42  ;;  %v4950_v32 = vld [vmem:[#allocation5 + $0x38] sm:$0xff]  ;;  %v4957_v18 = vld [vmem:[#allocation5 + $0x70] sm:$0xff] }
 0x552   :  { %v4406_v33 = vpop.f32.mrb[118].mxu1  ;;  %v4958_v42 = vld [vmem:[#allocation5 + $0x78] sm:$0xff]  ;;  %v4961_v55 = vld [vmem:[#allocation5 + $0x90] sm:$0xff] }
 0x553   :  { %v7419_v26 = vpack.c.bf16 %v4936_v10, %v4935_v25  ;;  %v7666_v19 = vadd.f32 %v4406_v33, %v3253_v2  ;;  %v4408_v20 = vpop.f32.mrb[119].mxu1  ;;  %v4873_v0 = vmul.f32 0.01, %v7665_v28  ;;  %v4962_v40 = vld [vmem:[#allocation5 + $0x98] sm:$0xff]  ;;  %v4965_v10 = vld [vmem:[#allocation5 + $0xb0] sm:$0xff] }
 0x554   :  { %5453 = vmatmul.mubr.f32.gmra.mrb[42].mxu0 %v5043_v39  ;;  %v4966_v25 = vld [vmem:[#allocation5 + $0xb8] sm:$0xff]  ;;  %v4969_v39 = vld [vmem:[#allocation5 + $0xd0] sm:$0xff] }
 0x555   :  { %v7667_v3 = vadd.f32 %v7666_v19, %v10452_v22  ;;  %7420 = vmatpush1.bf16.msra.mxu0 %v7419_v26  ;;  %5457 = vmatprep.mubr.f32.mxu0 %v5048_v11  ;;  %v4937_v44 = vmax.f32 %v7665_v28, %v4873_v0  ;;  %v5059_v22 = vld [vmem:[#allocation5 + $0x3a0] sm:$0xff]  ;;  %v4970_v28 = vld [vmem:[#allocation5 + $0xd8] sm:$0xff]  ;;  %v4973_v33 = vld [vmem:[#allocation5 + $0xf0] sm:$0xff] }
 0x556   :  { %7421 = vmatprep.subr.bf16.mxu0 %v10606_v53  ;;  %v4974_v2 = vld [vmem:[#allocation5 + $0xf8] sm:$0xff]  ;;  %v4977_v26 = vld [vmem:[#allocation5 + $0x110] sm:$0xff] }
 0x557   :  { %v4874_v6 = vmul.f32 0.01, %v7667_v3  ;;  %v4978_v11 = vld [vmem:[#allocation5 + $0x118] sm:$0xff]  ;;  %v4981_v20 = vld [vmem:[#allocation5 + $0x130] sm:$0xff] }
 0x558   :  { %5458 = vmatmul.mubr.f32.gmra.mrb[44].mxu0 %v5047_v27  ;;  %v4982_v19 = vld [vmem:[#allocation5 + $0x138] sm:$0xff] }
 0x559   :  { %v4938_v15 = vmax.f32 %v7667_v3, %v4874_v6  ;;  %5462 = vmatprep.mubr.f32.mxu0 %v5052_v23  ;;  %v4986_v0 = vld [vmem:[#allocation5 + $0x158] sm:$0xff]  ;;  %v4985_v3 = vld [vmem:[#allocation5 + $0x150] sm:$0xff] }
 0x55a   :  { %v4990_v27 = vld [vmem:[#allocation5 + $0x178] sm:$0xff]  ;;  %v4989_v23 = vld [vmem:[#allocation5 + $0x170] sm:$0xff] }
 0x55b   :  { %v7422_v59 = vpack.c.bf16 %v4938_v15, %v4937_v44  ;;  %v4994_v6 = vld [vmem:[#allocation5 + $0x198] sm:$0xff]  ;;  %v4993_v44 = vld [vmem:[#allocation5 + $0x190] sm:$0xff] }
 0x55c   :  { %5463 = vmatmul.mubr.f32.gmra.mrb[46].mxu0 %v5051_v5  ;;  %v4998_v15 = vld [vmem:[#allocation5 + $0x1b8] sm:$0xff]  ;;  %v4997_v5 = vld [vmem:[#allocation5 + $0x1b0] sm:$0xff] }
 0x55d   :  { %7423 = vmatpush1.bf16.msra.mxu0 %v7422_v59  ;;  %5467 = vmatprep.mubr.f32.mxu0 %v5056_v31  ;;  %v5002_v31 = vld [vmem:[#allocation5 + $0x1d8] sm:$0xff]  ;;  %v5001_v59 = vld [vmem:[#allocation5 + $0x1d0] sm:$0xff] }
 0x55e   :  { %7424 = vmatprep.subr.bf16.mxu0 %v10606_v53 }
 0x560   :  { %5468 = vmatmul.mubr.f32.gmra.mrb[48].mxu0 %v5055_v38  ;;  %v5006_v38 = vld [vmem:[#allocation5 + $0x1f8] sm:$0xff] }
 0x561   :  { %5472 = vmatprep.mubr.f32.mxu0 %v5060_v49  ;;  %v5005_v49 = vld [vmem:[#allocation5 + $0x1f0] sm:$0xff] }
 0x564   :  { %5473 = vmatmul.mubr.f32.gmra.mrb[50].mxu0 %v5059_v22  ;;  %v5010_v22 = vld [vmem:[#allocation5 + $0x218] sm:$0xff] }
 0x565   :  { %5477 = vmatprep.mubr.f32.mxu0 %v5064_v51  ;;  %v5009_v51 = vld [vmem:[#allocation5 + $0x210] sm:$0xff] }
 0x566   :  { %v4796_v34 = vpop.f32.mrb[120].mxu1 }
 0x567   :  { %v7668_v58 = vadd.f32 %v4796_v34, %v3258_v54  ;;  %v4798_v45 = vpop.f32.mrb[121].mxu1  ;;  %v5013_v54 = vld [vmem:[#allocation5 + $0x230] sm:$0xff]  ;;  %v5018_v34 = vld [vmem:[#allocation5 + $0x258] sm:$0xff] }
 0x568   :  { %5478 = vmatmul.mubr.f32.gmra.mrb[52].mxu0 %v5063_v57  ;;  %v5014_v57 = vld [vmem:[#allocation5 + $0x238] sm:$0xff]  ;;  %v5021_v45 = vld [vmem:[#allocation5 + $0x270] sm:$0xff] }
 0x569   :  { %5482 = vmatprep.mubr.f32.mxu0 %v5068_v48  ;;  %v4875_v13 = vmul.f32 0.01, %v7668_v58  ;;  %v5017_v48 = vld [vmem:[#allocation5 + $0x250] sm:$0xff] }
 0x56a   :  { %v4801_v56 = vpop.f32.mrb[122].mxu1 }
 0x56b   :  { %v7669_v24 = vadd.f32 %v4801_v56, %v3263_v62  ;;  %v4803_v4 = vpop.f32.mrb[123].mxu1  ;;  %v4939_v17 = vmax.f32 %v7668_v58, %v4875_v13  ;;  %v5022_v58 = vld [vmem:[#allocation5 + $0x278] sm:$0xff]  ;;  %v5025_v62 = vld [vmem:[#allocation5 + $0x290] sm:$0xff] }
 0x56c   :  { %5483 = vmatmul.mubr.f32.gmra.mrb[54].mxu0 %v5067_v14  ;;  %v5026_v14 = vld [vmem:[#allocation5 + $0x298] sm:$0xff] }
 0x56d   :  { %v4876_v12 = vmul.f32 0.01, %v7669_v24  ;;  %5552 = vmatprep.mubr.f32.mxu0 %v4946_v61  ;;  %v5030_v56 = vld [vmem:[#allocation5 + $0x2b8] sm:$0xff]  ;;  %v5029_v61 = vld [vmem:[#allocation5 + $0x2b0] sm:$0xff] }
 0x56e   :  { %v4806_v60 = vpop.f32.mrb[124].mxu1  ;;  %v5034_v13 = vld [vmem:[#allocation5 + $0x2d8] sm:$0xff] }
 0x56f   :  { %v4940_v7 = vmax.f32 %v7669_v24, %v4876_v12  ;;  %v7670_v37 = vadd.f32 %v4806_v60, %v3268_v1  ;;  %v4808_v41 = vpop.f32.mrb[125].mxu1  ;;  %v5033_v24 = vld [vmem:[#allocation5 + $0x2d0] sm:$0xff]  ;;  %v5038_v4 = vld [vmem:[#allocation5 + $0x2f8] sm:$0xff] }
 0x570   :  { %v5037_v12 = vld [vmem:[#allocation5 + $0x2f0] sm:$0xff]  ;;  %v5042_v1 = vld [vmem:[#allocation5 + $0x318] sm:$0xff] }
 0x571   :  { %v7425_v16 = vpack.c.bf16 %v4940_v7, %v4939_v17  ;;  %v4877_v46 = vmul.f32 0.01, %v7670_v37  ;;  %v5041_v60 = vld [vmem:[#allocation5 + $0x310] sm:$0xff]  ;;  %v5046_v17 = vld [vmem:[#allocation5 + $0x338] sm:$0xff] }
 0x572   :  { %v4811_v50 = vpop.f32.mrb[126].mxu1  ;;  %v5045_v7 = vld [vmem:[#allocation5 + $0x330] sm:$0xff] }
 0x573   :  { %v7671_v43 = vadd.f32 %v4811_v50, %v3273_v36  ;;  %v4813_v47 = vpop.f32.mrb[127].mxu1  ;;  %7426 = vmatpush1.bf16.msra.mxu0 %v7425_v16  ;;  %v4941_v30 = vmax.f32 %v7670_v37, %v4877_v46  ;;  %v5050_v37 = vld [vmem:[#allocation5 + $0x358] sm:$0xff]  ;;  %v5049_v41 = vld [vmem:[#allocation5 + $0x350] sm:$0xff] }
 0x574   :  { %7427 = vmatprep.subr.bf16.mxu0 %v10606_v53  ;;  %v5054_v16 = vld [vmem:[#allocation5 + $0x378] sm:$0xff]  ;;  %v5053_v36 = vld [vmem:[#allocation5 + $0x370] sm:$0xff] }
 0x575   :  { %v4878_v8 = vmul.f32 0.01, %v7671_v43  ;;  %v5058_v50 = vld [vmem:[#allocation5 + $0x398] sm:$0xff]  ;;  %v5057_v46 = vld [vmem:[#allocation5 + $0x390] sm:$0xff] }
 0x576   :  { %v5061_v47 = vld [vmem:[#allocation5 + $0x3b0] sm:$0xff] }
 0x577   :  { %v4942_v35 = vmax.f32 %v7671_v43, %v4878_v8  ;;  %v5062_v43 = vld [vmem:[#allocation5 + $0x3b8] sm:$0xff] }
 0x578   :  { %v5066_v8 = vld [vmem:[#allocation5 + $0x3d8] sm:$0xff] }
 0x579   :  { %v7428_v9 = vpack.c.bf16 %v4942_v35, %v4941_v30  ;;  %v5065_v30 = vld [vmem:[#allocation5 + $0x3d0] sm:$0xff]  ;;  %v5070_v35 = vld [vmem:[#allocation5 + $0x3f8] sm:$0xff] }
 0x57b   :  { %7429 = vmatpush1.bf16.msra.mxu0 %v7428_v9  ;;  %v5069_v9 = vld [vmem:[#allocation5 + $0x3f0] sm:$0xff] }
 0x57e   :  { %5553 = vmatmul.mubr.f32.vlgmr.msra.gmra.mrb[248].mxu0 %v4945_v63  ;;  %v10505_v63 = vpop.permute.xlu0 %5185 }
 0x57f   :  { %5557 = vmatprep.mubr.f32.mxu0 %v4950_v32  ;;  %v10507_v32 = vpop.permute.xlu1 %5190 }
 0x582   :  { %5558 = vmatmul.mubr.f32.gmra.mrb[250].mxu0 %v4949_v52  ;;  %v5106_v52 = vpop.permute.xlu0 %5105 }
 0x583   :  { %5562 = vmatprep.mubr.f32.mxu0 %v4954_v29  ;;  %v5111_v29 = vpop.permute.xlu1 %5110 }
 0x586   :  { %5563 = vmatmul.mubr.f32.gmra.mrb[252].mxu0 %v4953_v21  ;;  %v10509_v21 = vpop.permute.xlu0 %5195 }
 0x587   :  { %5567 = vmatprep.mubr.f32.mxu0 %v4958_v42  ;;  %v10511_v42 = vpop.permute.xlu1 %5200 }
 0x58a   :  { %5568 = vmatmul.mubr.f32.gmra.mrb[254].mxu0 %v4957_v18  ;;  %v5116_v18 = vpop.permute.xlu0 %5115 }
 0x58b   :  { %5572 = vmatprep.mubr.f32.mxu0 %v4962_v40  ;;  %v5121_v40 = vpop.permute.xlu1 %5120 }
 0x58e   :  { %5573 = vmatmul.mubr.f32.gmra.mrb[0].mxu0 %v4961_v55  ;;  %v10513_v55 = vpop.permute.xlu0 %5205 }
 0x58f   :  { %5577 = vmatprep.mubr.f32.mxu0 %v4966_v25  ;;  %v10515_v25 = vpop.permute.xlu1 %5210 }
 0x592   :  { %5578 = vmatmul.mubr.f32.gmra.mrb[2].mxu0 %v4965_v10  ;;  %v5126_v10 = vpop.permute.xlu0 %5125 }
 0x593   :  { %5582 = vmatprep.mubr.f32.mxu0 %v4970_v28  ;;  %v5131_v28 = vpop.permute.xlu1 %5130 }
 0x596   :  { %5583 = vmatmul.mubr.f32.gmra.mrb[4].mxu0 %v4969_v39 }
 0x597   :  { %5587 = vmatprep.mubr.f32.mxu0 %v4974_v2 }
 0x59a   :  { %5588 = vmatmul.mubr.f32.gmra.mrb[6].mxu0 %v4973_v33 }
 0x59b   :  { %5592 = vmatprep.mubr.f32.mxu0 %v4978_v11  ;;  %v10517_v11 = vpop.permute.xlu0 %5215 }
 0x59e   :  { %5593 = vmatmul.mubr.f32.gmra.mrb[8].mxu0 %v4977_v26 }
 0x59f   :  { %5597 = vmatprep.mubr.f32.mxu0 %v4982_v19 }
 0x5a2   :  { %5598 = vmatmul.mubr.f32.gmra.mrb[10].mxu0 %v4981_v20 }
 0x5a3   :  { %5602 = vmatprep.mubr.f32.mxu0 %v4986_v0 }
 0x5a6   :  { %5603 = vmatmul.mubr.f32.gmra.mrb[12].mxu0 %v4985_v3  ;;  %v10519_v3 = vpop.permute.xlu1 %5220 }
 0x5a7   :  { %5607 = vmatprep.mubr.f32.mxu0 %v4990_v27  ;;  %v5778_v27 = vld [vmem:[#allocation7 + $0x8] sm:$0xff] }
 0x5aa   :  { %5608 = vmatmul.mubr.f32.gmra.mrb[14].mxu0 %v4989_v23 }
 0x5ab   :  { %5612 = vmatprep.mubr.f32.mxu0 %v4994_v6  ;;  %v5136_v6 = vpop.permute.xlu0 %5135 }
 0x5ae   :  { %5613 = vmatmul.mubr.f32.gmra.mrb[16].mxu0 %v4993_v44 }
 0x5af   :  { %5617 = vmatprep.mubr.f32.mxu0 %v4998_v15 }
 0x5b2   :  { %5618 = vmatmul.mubr.f32.gmra.mrb[18].mxu0 %v4997_v5 }
 0x5b3   :  { %5622 = vmatprep.mubr.f32.mxu0 %v5002_v31 }
 0x5b6   :  { %5623 = vmatmul.mubr.f32.gmra.mrb[20].mxu0 %v5001_v59 }
 0x5b7   :  { %5627 = vmatprep.mubr.f32.mxu0 %v5006_v38 }
 0x5ba   :  { %5628 = vmatmul.mubr.f32.gmra.mrb[22].mxu0 %v5005_v49  ;;  %v5141_v49 = vpop.permute.xlu1 %5140 }
 0x5bb   :  { %5632 = vmatprep.mubr.f32.mxu0 %v5010_v22 }
 0x5be   :  { %5633 = vmatmul.mubr.f32.gmra.mrb[24].mxu0 %v5009_v51 }
 0x5bf   :  { %5637 = vmatprep.mubr.f32.mxu0 %v5014_v57 }
 0x5c2   :  { %5638 = vmatmul.mubr.f32.gmra.mrb[26].mxu0 %v5013_v54 }
 0x5c3   :  { %5642 = vmatprep.mubr.f32.mxu0 %v5018_v34  ;;  %v10523_v34 = vpop.permute.xlu0 %5225 }
 0x5c6   :  { %5643 = vmatmul.mubr.f32.gmra.mrb[28].mxu0 %v5017_v48 }
 0x5c7   :  { %5647 = vmatprep.mubr.f32.mxu0 %v5022_v58 }
 0x5ca   :  { %5648 = vmatmul.mubr.f32.gmra.mrb[30].mxu0 %v5021_v45 }
 0x5cb   :  { %5652 = vmatprep.mubr.f32.mxu0 %v5026_v14 }
 0x5ce   :  { %5653 = vmatmul.mubr.f32.gmra.mrb[32].mxu0 %v5025_v62 }
 0x5cf   :  { %5657 = vmatprep.mubr.f32.mxu0 %v5030_v56 }
 0x5d2   :  { %5658 = vmatmul.mubr.f32.gmra.mrb[34].mxu0 %v5029_v61  ;;  %v10525_v61 = vpop.permute.xlu1 %5230 }
 0x5d3   :  { %5662 = vmatprep.mubr.f32.mxu0 %v5034_v13 }
 0x5d6   :  { %5663 = vmatmul.mubr.f32.gmra.mrb[36].mxu0 %v5033_v24  ;;  %v5146_v24 = vpop.permute.xlu0 %5145 }
 0x5d7   :  { %5667 = vmatprep.mubr.f32.mxu0 %v5038_v4 }
 0x5da   :  { %5668 = vmatmul.mubr.f32.gmra.mrb[38].mxu0 %v5037_v12 }
 0x5db   :  { %5672 = vmatprep.mubr.f32.mxu0 %v5042_v1 }
 0x5de   :  { %5673 = vmatmul.mubr.f32.gmra.mrb[40].mxu0 %v5041_v60 }
 0x5df   :  { %5677 = vmatprep.mubr.f32.mxu0 %v5046_v17 }
 0x5e2   :  { %5678 = vmatmul.mubr.f32.gmra.mrb[42].mxu0 %v5045_v7  ;;  %v5151_v7 = vpop.permute.xlu1 %5150 }
 0x5e3   :  { %5682 = vmatprep.mubr.f32.mxu0 %v5050_v37 }
 0x5e6   :  { %5683 = vmatmul.mubr.f32.gmra.mrb[44].mxu0 %v5049_v41 }
 0x5e7   :  { %5687 = vmatprep.mubr.f32.mxu0 %v5054_v16 }
 0x5ea   :  { %5688 = vmatmul.mubr.f32.gmra.mrb[46].mxu0 %v5053_v36 }
 0x5eb   :  { %5692 = vmatprep.mubr.f32.mxu0 %v5058_v50 }
 0x5ee   :  { %5693 = vmatmul.mubr.f32.gmra.mrb[48].mxu0 %v5057_v46  ;;  %v10529_v46 = vpop.permute.xlu0 %5235 }
 0x5ef   :  { %5697 = vmatprep.mubr.f32.mxu0 %v5062_v43 }
 0x5f2   :  { %5698 = vmatmul.mubr.f32.gmra.mrb[50].mxu0 %v5061_v47 }
 0x5f3   :  { %5702 = vmatprep.mubr.f32.mxu0 %v5066_v8 }
 0x5f6   :  { %5703 = vmatmul.mubr.f32.gmra.mrb[52].mxu0 %v5065_v30 }
 0x5f7   :  { %5707 = vmatprep.mubr.f32.mxu0 %v5070_v35 }
 0x5fa   :  { %5708 = vmatmul.mubr.f32.gmra.mrb[54].mxu0 %v5069_v9  ;;  %v10533_v9 = vpop.permute.xlu1 %5240 }
 0x5fb   :  { %5969 = vmatprep.mubr.f32.mxu0 %v5778_v27 }
 0x651   :  { %v5554_v39 = vpop.f32.mrb[248].mxu0 }
 0x652   :  { %v7672_v2 = vadd.f32 %v5554_v39, %v5106_v52  ;;  %v5556_v33 = vpop.f32.mrb[249].mxu0 }
 0x653   :  { %v5161_v33 = vpop.permute.xlu1 %5160 }
 0x654   :  { %v5713_v19 = vmul.f32 0.01, %v7672_v2 }
 0x655   :  { %v5559_v26 = vpop.f32.mrb[250].mxu0 }
 0x656   :  { %v7673_v20 = vadd.f32 %v5559_v26, %v5111_v29  ;;  %v5561_v0 = vpop.f32.mrb[251].mxu0  ;;  %v5745_v15 = vmax.f32 %v7672_v2, %v5713_v19  ;;  %v5156_v29 = vpop.permute.xlu0 %5155 }
 0x658   :  { %v5714_v23 = vmul.f32 0.01, %v7673_v20 }
 0x659   :  { %v5564_v44 = vpop.f32.mrb[252].mxu0 }
 0x65a   :  { %v5746_v5 = vmax.f32 %v7673_v20, %v5714_v23  ;;  %v7674_v31 = vadd.f32 %v5564_v44, %v5116_v18  ;;  %v5566_v59 = vpop.f32.mrb[253].mxu0  ;;  %v10537_v27 = vpop.permute.xlu0 %5245 }
 0x65b   :  { %v10539_v59 = vpop.permute.xlu1 %5250 }
 0x65c   :  { %v10521_v38 = vpack.c.bf16 %v5746_v5, %v5745_v15  ;;  %v5715_v51 = vmul.f32 0.01, %v7674_v31 }
 0x65d   :  { %v5569_v22 = vpop.f32.mrb[254].mxu0 }
 0x65e   :  { %v7675_v57 = vadd.f32 %v5569_v22, %v5121_v40  ;;  %v5571_v54 = vpop.f32.mrb[255].mxu0  ;;  %v5747_v45 = vmax.f32 %v7674_v31, %v5715_v51  ;;  %v5166_v22 = vpop.permute.xlu0 %5165 }
 0x660   :  { %v5716_v48 = vmul.f32 0.01, %v7675_v57 }
 0x661   :  { %v5574_v58 = vpop.f32.mrb[0].mxu0 }
 0x662   :  { %v5748_v14 = vmax.f32 %v7675_v57, %v5716_v48  ;;  %v7676_v62 = vadd.f32 %v5574_v58, %v5126_v10  ;;  %v5576_v56 = vpop.f32.mrb[1].mxu0 }
 0x664   :  { %v10527_v13 = vpack.c.bf16 %v5748_v14, %v5747_v45  ;;  %v5717_v12 = vmul.f32 0.01, %v7676_v62  ;;  %v5171_v45 = vpop.permute.xlu1 %5170 }
 0x665   :  { %v5579_v4 = vpop.f32.mrb[2].mxu0 }
 0x666   :  { %v7677_v1 = vadd.f32 %v5579_v4, %v5131_v28  ;;  %v5581_v60 = vpop.f32.mrb[3].mxu0  ;;  %v5749_v41 = vmax.f32 %v7676_v62, %v5717_v12  ;;  %v10543_v12 = vpop.permute.xlu0 %5255 }
 0x668   :  { %v5718_v17 = vmul.f32 0.01, %v7677_v1 }
 0x669   :  { %v5584_v37 = vpop.f32.mrb[4].mxu0 }
 0x66a   :  { %v5750_v16 = vmax.f32 %v7677_v1, %v5718_v17  ;;  %v7678_v36 = vadd.f32 %v5584_v37, %v5136_v6  ;;  %v5586_v50 = vpop.f32.mrb[5].mxu0 }
 0x66c   :  { %v10531_v43 = vpack.c.bf16 %v5750_v16, %v5749_v41  ;;  %v5719_v8 = vmul.f32 0.01, %v7678_v36  ;;  %v10547_v41 = vpop.permute.xlu1 %5260 }
 0x66d   :  { %v5589_v47 = vpop.f32.mrb[6].mxu0 }
 0x66e   :  { %v7679_v30 = vadd.f32 %v5589_v47, %v5141_v49  ;;  %v5591_v35 = vpop.f32.mrb[7].mxu0  ;;  %v5751_v40 = vmax.f32 %v7678_v36, %v5719_v8  ;;  %v5176_v36 = vpop.permute.xlu0 %5175 }
 0x670   :  { %v5720_v52 = vmul.f32 0.01, %v7679_v30 }
 0x671   :  { %v5594_v18 = vpop.f32.mrb[8].mxu0 }
 0x672   :  { %v5752_v10 = vmax.f32 %v7679_v30, %v5720_v52  ;;  %v7680_v28 = vadd.f32 %v5594_v18, %v5146_v24  ;;  %v5596_v39 = vpop.f32.mrb[9].mxu0 }
 0x674   :  { %v10535_v2 = vpack.c.bf16 %v5752_v10, %v5751_v40  ;;  %v5721_v19 = vmul.f32 0.01, %v7680_v28 }
 0x675   :  { %v5599_v26 = vpop.f32.mrb[10].mxu0 }
 0x676   :  { %v7681_v20 = vadd.f32 %v5599_v26, %v5151_v7  ;;  %v5601_v0 = vpop.f32.mrb[11].mxu0  ;;  %v5753_v44 = vmax.f32 %v7680_v28, %v5721_v19 }
 0x678   :  { %v5722_v23 = vmul.f32 0.01, %v7681_v20 }
 0x679   :  { %v5604_v6 = vpop.f32.mrb[12].mxu0 }
 0x67a   :  { %v5754_v15 = vmax.f32 %v7681_v20, %v5722_v23  ;;  %v7682_v5 = vadd.f32 %v5604_v6, %v5156_v29  ;;  %v5606_v31 = vpop.f32.mrb[13].mxu0  ;;  %v5181_v29 = vpop.permute.xlu1 %5180 }
 0x67c   :  { %v10541_v49 = vpack.c.bf16 %v5754_v15, %v5753_v44  ;;  %v5723_v57 = vmul.f32 0.01, %v7682_v5 }
 0x67d   :  { %v5609_v51 = vpop.f32.mrb[14].mxu0 }
 0x67e   :  { %v7683_v54 = vadd.f32 %v5609_v51, %v5161_v33  ;;  %v5611_v48 = vpop.f32.mrb[15].mxu0  ;;  %v5755_v62 = vmax.f32 %v7682_v5, %v5723_v57 }
 0x680   :  { %v5724_v58 = vmul.f32 0.01, %v7683_v54 }
 0x681   :  { %v5614_v14 = vpop.f32.mrb[16].mxu0 }
 0x682   :  { %v5756_v56 = vmax.f32 %v7683_v54, %v5724_v58  ;;  %v7684_v24 = vadd.f32 %v5614_v14, %v5166_v22  ;;  %v5616_v4 = vpop.f32.mrb[17].mxu0 }
 0x684   :  { %v10545_v1 = vpack.c.bf16 %v5756_v56, %v5755_v62  ;;  %v5725_v17 = vmul.f32 0.01, %v7684_v24 }
 0x685   :  { %v5619_v60 = vpop.f32.mrb[18].mxu0 }
 0x686   :  { %v7685_v7 = vadd.f32 %v5619_v60, %v5171_v45  ;;  %v5621_v37 = vpop.f32.mrb[19].mxu0  ;;  %v5757_v47 = vmax.f32 %v7684_v24, %v5725_v17 }
 0x688   :  { %v5726_v16 = vmul.f32 0.01, %v7685_v7 }
 0x689   :  { %v5624_v50 = vpop.f32.mrb[20].mxu0 }
 0x68a   :  { %v5758_v8 = vmax.f32 %v7685_v7, %v5726_v16  ;;  %v7686_v30 = vadd.f32 %v5624_v50, %v5176_v36  ;;  %v5626_v35 = vpop.f32.mrb[21].mxu0 }
 0x68c   :  { %v10549_v52 = vpack.c.bf16 %v5758_v8, %v5757_v47  ;;  %v5727_v40 = vmul.f32 0.01, %v7686_v30 }
 0x68d   :  { %v5629_v18 = vpop.f32.mrb[22].mxu0 }
 0x68e   :  { %v7687_v10 = vadd.f32 %v5629_v18, %v5181_v29  ;;  %v5631_v28 = vpop.f32.mrb[23].mxu0  ;;  %v5759_v26 = vmax.f32 %v7686_v30, %v5727_v40 }
 0x690   :  { %v5728_v39 = vmul.f32 0.01, %v7687_v10 }
 0x691   :  { %v5634_v33 = vpop.f32.mrb[24].mxu0 }
 0x692   :  { %v5760_v19 = vmax.f32 %v7687_v10, %v5728_v39  ;;  %v7688_v20 = vadd.f32 %v5634_v33, %v10505_v63  ;;  %v5636_v0 = vpop.f32.mrb[25].mxu0 }
 0x694   :  { %v10552_v23 = vpack.c.bf16 %v5760_v19, %v5759_v26  ;;  %v5729_v44 = vmul.f32 0.01, %v7688_v20 }
 0x695   :  { %v5639_v6 = vpop.f32.mrb[26].mxu0 }
 0x696   :  { %v7689_v15 = vadd.f32 %v5639_v6, %v10507_v32  ;;  %v5641_v5 = vpop.f32.mrb[27].mxu0  ;;  %v5761_v51 = vmax.f32 %v7688_v20, %v5729_v44 }
 0x698   :  { %v5730_v31 = vmul.f32 0.01, %v7689_v15 }
 0x699   :  { %v5644_v22 = vpop.f32.mrb[28].mxu0 }
 0x69a   :  { %v5762_v57 = vmax.f32 %v7689_v15, %v5730_v31  ;;  %v7690_v54 = vadd.f32 %v5644_v22, %v10509_v21  ;;  %v5646_v48 = vpop.f32.mrb[29].mxu0 }
 0x69c   :  { %v7430_v58 = vpack.c.bf16 %v5762_v57, %v5761_v51  ;;  %v5731_v14 = vmul.f32 0.01, %v7690_v54 }
 0x69d   :  { %v5649_v45 = vpop.f32.mrb[30].mxu0 }
 0x69e   :  { %v7691_v63 = vadd.f32 %v5649_v45, %v10511_v42  ;;  %v5651_v62 = vpop.f32.mrb[31].mxu0  ;;  %7431 = vmatprep.subr.bf16.mxu0 %v7430_v58  ;;  %v5763_v32 = vmax.f32 %v7690_v54, %v5731_v14 }
 0x69f   :  { %7433 = vmatpush3.bf16.msra.mxu0 %v10521_v38 }
 0x6a0   :  { %v5732_v56 = vmul.f32 0.01, %v7691_v63 }
 0x6a1   :  { %v5654_v24 = vpop.f32.mrb[32].mxu0 }
 0x6a2   :  { %v5764_v4 = vmax.f32 %v7691_v63, %v5732_v56  ;;  %v7692_v60 = vadd.f32 %v5654_v24, %v10513_v55  ;;  %v5656_v17 = vpop.f32.mrb[33].mxu0 }
 0x6a4   :  { %v7434_v7 = vpack.c.bf16 %v5764_v4, %v5763_v32  ;;  %v5733_v21 = vmul.f32 0.01, %v7692_v60 }
 0x6a5   :  { %v5659_v37 = vpop.f32.mrb[34].mxu0 }
 0x6a6   :  { %v7693_v16 = vadd.f32 %v5659_v37, %v10515_v25  ;;  %v5661_v36 = vpop.f32.mrb[35].mxu0  ;;  %7435 = vmatprep.subr.bf16.mxu0 %v7434_v7  ;;  %v5765_v47 = vmax.f32 %v7692_v60, %v5733_v21 }
 0x6a7   :  { %7437 = vmatpush3.bf16.msra.mxu0 %v10527_v13 }
 0x6a8   :  { %v5734_v42 = vmul.f32 0.01, %v7693_v16 }
 0x6a9   :  { %v5664_v50 = vpop.f32.mrb[36].mxu0 }
 0x6aa   :  { %v5766_v38 = vmax.f32 %v7693_v16, %v5734_v42  ;;  %v7694_v8 = vadd.f32 %v5664_v50, %v10517_v11  ;;  %v5666_v30 = vpop.f32.mrb[37].mxu0  ;;  %v5777_v42 = vld [vmem:[#allocation7] sm:$0xff]  ;;  %v5780_v50 = vld [vmem:[#allocation7 + $0x18] sm:$0xff] }
 0x6ab   :  { %v5785_v30 = vld [vmem:[#allocation7 + $0x40] sm:$0xff] }
 0x6ac   :  { %v7438_v35 = vpack.c.bf16 %v5766_v38, %v5765_v47  ;;  %v5735_v55 = vmul.f32 0.01, %v7694_v8  ;;  %v5782_v47 = vld [vmem:[#allocation7 + $0x28] sm:$0xff]  ;;  %v5784_v38 = vld [vmem:[#allocation7 + $0x38] sm:$0xff] }
 0x6ad   :  { %v5669_v29 = vpop.f32.mrb[38].mxu0 }
 0x6ae   :  { %v7695_v18 = vadd.f32 %v5669_v29, %v10519_v3  ;;  %v5671_v40 = vpop.f32.mrb[39].mxu0  ;;  %7439 = vmatprep.subr.bf16.mxu0 %v7438_v35  ;;  %v5767_v28 = vmax.f32 %v7694_v8, %v5735_v55  ;;  %v5786_v8 = vld [vmem:[#allocation7 + $0x48] sm:$0xff]  ;;  %v5788_v35 = vld [vmem:[#allocation7 + $0x58] sm:$0xff]  ;;  %v5789_v55 = vld [vmem:[#allocation7 + $0x60] sm:$0xff] }
 0x6af   :  { %7441 = vmatpush3.bf16.msra.mxu0 %v10531_v43  ;;  %v5790_v29 = vld [vmem:[#allocation7 + $0x68] sm:$0xff]  ;;  %v5791_v40 = vld [vmem:[#allocation7 + $0x70] sm:$0xff] }
 0x6b0   :  { %v5736_v25 = vmul.f32 0.01, %v7695_v18 }
 0x6b1   :  { %v5674_v10 = vpop.f32.mrb[40].mxu0 }
 0x6b2   :  { %v5768_v13 = vmax.f32 %v7695_v18, %v5736_v25  ;;  %v7696_v39 = vadd.f32 %v5674_v10, %v10523_v34  ;;  %v5676_v33 = vpop.f32.mrb[41].mxu0  ;;  %v5792_v18 = vld [vmem:[#allocation7 + $0x78] sm:$0xff]  ;;  %v5794_v25 = vld [vmem:[#allocation7 + $0x88] sm:$0xff]  ;;  %v5793_v10 = vld [vmem:[#allocation7 + $0x80] sm:$0xff] }
 0x6b3   :  { %v5797_v33 = vld [vmem:[#allocation7 + $0xa0] sm:$0xff] }
 0x6b4   :  { %v7442_v26 = vpack.c.bf16 %v5768_v13, %v5767_v28  ;;  %v5737_v11 = vmul.f32 0.01, %v7696_v39  ;;  %v5796_v28 = vld [vmem:[#allocation7 + $0x98] sm:$0xff]  ;;  %v5795_v13 = vld [vmem:[#allocation7 + $0x90] sm:$0xff] }
 0x6b5   :  { %v5679_v19 = vpop.f32.mrb[42].mxu0 }
 0x6b6   :  { %v7697_v20 = vadd.f32 %v5679_v19, %v10525_v61  ;;  %v5681_v0 = vpop.f32.mrb[43].mxu0  ;;  %7443 = vmatprep.subr.bf16.mxu0 %v7442_v26  ;;  %v5769_v44 = vmax.f32 %v7696_v39, %v5737_v11  ;;  %v5798_v39 = vld [vmem:[#allocation7 + $0xa8] sm:$0xff]  ;;  %v5800_v26 = vld [vmem:[#allocation7 + $0xb8] sm:$0xff]  ;;  %v5799_v19 = vld [vmem:[#allocation7 + $0xb0] sm:$0xff] }
 0x6b7   :  { %7445 = vmatpush3.bf16.msra.mxu0 %v10535_v2  ;;  %v5802_v11 = vld [vmem:[#allocation7 + $0xc8] sm:$0xff]  ;;  %v5804_v0 = vld [vmem:[#allocation7 + $0xd8] sm:$0xff] }
 0x6b8   :  { %v5738_v3 = vmul.f32 0.01, %v7697_v20 }
 0x6b9   :  { %v5684_v6 = vpop.f32.mrb[44].mxu0 }
 0x6ba   :  { %v5770_v43 = vmax.f32 %v7697_v20, %v5738_v3  ;;  %v7698_v15 = vadd.f32 %v5684_v6, %v10529_v46  ;;  %v5686_v5 = vpop.f32.mrb[45].mxu0  ;;  %v5801_v20 = vld [vmem:[#allocation7 + $0xc0] sm:$0xff]  ;;  %v5803_v3 = vld [vmem:[#allocation7 + $0xd0] sm:$0xff]  ;;  %v5806_v6 = vld [vmem:[#allocation7 + $0xe8] sm:$0xff] }
 0x6bb   :  { %v6082_v5 = vld [vmem:[#allocation8] sm:$0xff] }
 0x6bc   :  { %v7446_v31 = vpack.c.bf16 %v5770_v43, %v5769_v44  ;;  %v5739_v34 = vmul.f32 0.01, %v7698_v15  ;;  %v5805_v44 = vld [vmem:[#allocation7 + $0xe0] sm:$0xff]  ;;  %v5808_v43 = vld [vmem:[#allocation7 + $0xf8] sm:$0xff] }
 0x6bd   :  { %v5689_v22 = vpop.f32.mrb[46].mxu0 }
 0x6be   :  { %v7699_v51 = vadd.f32 %v5689_v22, %v10533_v9  ;;  %v5691_v57 = vpop.f32.mrb[47].mxu0  ;;  %7447 = vmatprep.subr.bf16.mxu0 %v7446_v31  ;;  %v5771_v48 = vmax.f32 %v7698_v15, %v5739_v34  ;;  %v5807_v15 = vld [vmem:[#allocation7 + $0xf0] sm:$0xff] }
 0x6bf   :  { %7449 = vmatpush3.bf16.msra.mxu0 %v10541_v49 }
 0x6c0   :  { %v5740_v61 = vmul.f32 0.01, %v7699_v51 }
 0x6c1   :  { %v5694_v54 = vpop.f32.mrb[48].mxu0 }
 0x6c2   :  { %v5772_v2 = vmax.f32 %v7699_v51, %v5740_v61  ;;  %v7700_v58 = vadd.f32 %v5694_v54, %v10537_v27  ;;  %v5696_v45 = vpop.f32.mrb[49].mxu0  ;;  %v5828_v51 = vpop.permute.xlu0 %5827 }
 0x6c4   :  { %v7450_v14 = vpack.c.bf16 %v5772_v2, %v5771_v48  ;;  %v5741_v46 = vmul.f32 0.01, %v7700_v58  ;;  %v5833_v2 = vpop.permute.xlu1 %5832 }
 0x6c5   :  { %v5699_v63 = vpop.f32.mrb[50].mxu0 }
 0x6c6   :  { %v7701_v62 = vadd.f32 %v5699_v63, %v10539_v59  ;;  %v5701_v56 = vpop.f32.mrb[51].mxu0  ;;  %7451 = vmatprep.subr.bf16.mxu0 %v7450_v14  ;;  %v5773_v32 = vmax.f32 %v7700_v58, %v5741_v46 }
 0x6c7   :  { %7453 = vmatpush3.bf16.msra.mxu0 %v10545_v1  ;;  %v5838_v56 = vpop.permute.xlu0 %5837 }
 0x6c8   :  { %v5742_v9 = vmul.f32 0.01, %v7701_v62 }
 0x6c9   :  { %v5704_v24 = vpop.f32.mrb[52].mxu0 }
 0x6ca   :  { %v5774_v49 = vmax.f32 %v7701_v62, %v5742_v9  ;;  %v7702_v4 = vadd.f32 %v5704_v24, %v10543_v12  ;;  %v5706_v60 = vpop.f32.mrb[53].mxu0  ;;  %v5779_v12 = vld [vmem:[#allocation7 + $0x10] sm:$0xff] }
 0x6cc   :  { %v7454_v17 = vpack.c.bf16 %v5774_v49, %v5773_v32  ;;  %v5743_v27 = vmul.f32 0.01, %v7702_v4 }
 0x6cd   :  { %v5709_v7 = vpop.f32.mrb[54].mxu0 }
 0x6ce   :  { %v7703_v37 = vadd.f32 %v5709_v7, %v10547_v41  ;;  %v5711_v21 = vpop.f32.mrb[55].mxu0  ;;  %7455 = vmatprep.subr.bf16.mxu0 %v7454_v17  ;;  %v5775_v16 = vmax.f32 %v7702_v4, %v5743_v27  ;;  %v5781_v41 = vld [vmem:[#allocation7 + $0x20] sm:$0xff]  ;;  %v5843_v7 = vpop.permute.xlu1 %5842 }
 0x6cf   :  { %7457 = vmatpush3.bf16.msra.mxu0 %v10549_v52  ;;  %v5783_v52 = vld [vmem:[#allocation7 + $0x30] sm:$0xff] }
 0x6d0   :  { %v5744_v59 = vmul.f32 0.01, %v7703_v37 }
 0x6d2   :  { %v5776_v36 = vmax.f32 %v7703_v37, %v5744_v59 }
 0x6d4   :  { %v7458_v1 = vpack.c.bf16 %v5776_v36, %v5775_v16 }
 0x6d6   :  { %7459 = vmatprep.subr.bf16.mxu0 %v7458_v1  ;;  %v5848_v1 = vpop.permute.xlu0 %5847 }
 0x6d7   :  { %7461 = vmatpush3.bf16.msra.mxu0 %v10552_v23  ;;  %v5787_v23 = vld [vmem:[#allocation7 + $0x50] sm:$0xff] }
 0x6da   :  { %5970 = vmatmul.mubr.f32.vlgmr.msra.gmra.mrb[56].mxu0 %v5777_v42 }
 0x6db   :  { %5974 = vmatprep.mubr.f32.mxu0 %v5780_v50 }
 0x6de   :  { %5975 = vmatmul.mubr.f32.gmra.mrb[58].mxu0 %v5779_v12 }
 0x6df   :  { %5979 = vmatprep.mubr.f32.mxu0 %v5782_v47 }
 0x6e2   :  { %5980 = vmatmul.mubr.f32.gmra.mrb[60].mxu0 %v5781_v41 }
 0x6e3   :  { %5984 = vmatprep.mubr.f32.mxu0 %v5784_v38 }
 0x6e6   :  { %5985 = vmatmul.mubr.f32.gmra.mrb[62].mxu0 %v5783_v52 }
 0x6e7   :  { %5989 = vmatprep.mubr.f32.mxu0 %v5786_v8  ;;  %v5853_v8 = vpop.permute.xlu1 %5852 }
 0x6ea   :  { %5990 = vmatmul.mubr.f32.gmra.mrb[64].mxu0 %v5785_v30 }
 0x6eb   :  { %5994 = vmatprep.mubr.f32.mxu0 %v5788_v35 }
 0x6ee   :  { %5995 = vmatmul.mubr.f32.gmra.mrb[66].mxu0 %v5787_v23 }
 0x6ef   :  { %5999 = vmatprep.mubr.f32.mxu0 %v5790_v29 }
 0x6f2   :  { %6000 = vmatmul.mubr.f32.gmra.mrb[68].mxu0 %v5789_v55 }
 0x6f3   :  { %6004 = vmatprep.mubr.f32.mxu0 %v5792_v18 }
 0x6f6   :  { %6005 = vmatmul.mubr.f32.gmra.mrb[70].mxu0 %v5791_v40  ;;  %v5858_v40 = vpop.permute.xlu0 %5857 }
 0x6f7   :  { %6009 = vmatprep.mubr.f32.mxu0 %v5794_v25 }
 0x6fa   :  { %6010 = vmatmul.mubr.f32.gmra.mrb[72].mxu0 %v5793_v10 }
 0x6fb   :  { %6014 = vmatprep.mubr.f32.mxu0 %v5796_v28 }
 0x6fe   :  { %6015 = vmatmul.mubr.f32.gmra.mrb[74].mxu0 %v5795_v13 }
 0x6ff   :  { %6019 = vmatprep.mubr.f32.mxu0 %v5798_v39 }
 0x702   :  { %6020 = vmatmul.mubr.f32.gmra.mrb[76].mxu0 %v5797_v33 }
 0x703   :  { %6024 = vmatprep.mubr.f32.mxu0 %v5800_v26 }
 0x706   :  { %6025 = vmatmul.mubr.f32.gmra.mrb[78].mxu0 %v5799_v19  ;;  %v5863_v19 = vpop.permute.xlu1 %5862 }
 0x707   :  { %6029 = vmatprep.mubr.f32.mxu0 %v5802_v11 }
 0x70a   :  { %6030 = vmatmul.mubr.f32.gmra.mrb[80].mxu0 %v5801_v20 }
 0x70b   :  { %6034 = vmatprep.mubr.f32.mxu0 %v5804_v0 }
 0x70e   :  { %6035 = vmatmul.mubr.f32.gmra.mrb[82].mxu0 %v5803_v3 }
 0x70f   :  { %6039 = vmatprep.mubr.f32.mxu0 %v5806_v6 }
 0x712   :  { %6040 = vmatmul.mubr.f32.gmra.mrb[84].mxu0 %v5805_v44 }
 0x713   :  { %6044 = vmatprep.mubr.f32.mxu0 %v5808_v43  ;;  %v5868_v43 = vpop.permute.xlu0 %5867 }
 0x716   :  { %6045 = vmatmul.mubr.f32.gmra.mrb[86].mxu0 %v5807_v15 }
 0x717   :  { %7097 = vmatprep.mubr.f32.mxu0 %v6082_v5 }
 0x7ad   :  { %v6782_v31 = vpop.f32.mrb[56].mxu0 }
 0x7ae   :  { %v6783_v22 = vpop.f32.mrb[57].mxu0 }
 0x7af   :  { %v6784_v34 = vadd.f32 %v6783_v22, %v6782_v31 }
 0x7b1   :  { %v5972_v57 = vadd.f32 %v6784_v34, %v5828_v51  ;;  %v6785_v61 = vpop.f32.mrb[58].mxu0 }
 0x7b2   :  { %v6786_v54 = vpop.f32.mrb[59].mxu0 }
 0x7b3   :  { %v6787_v48 = vadd.f32 %v6786_v54, %v6785_v61  ;;  %v6050_v58 = vmul.f32 0.01, %v5972_v57  ;;  %v5873_v61 = vpop.permute.xlu1 %5872 }
 0x7b5   :  { %v5977_v45 = vadd.f32 %v6787_v48, %v5833_v2  ;;  %v6788_v14 = vpop.f32.mrb[60].mxu0  ;;  %v6066_v9 = vmax.f32 %v5972_v57, %v6050_v58 }
 0x7b6   :  { %v6789_v63 = vpop.f32.mrb[61].mxu0 }
 0x7b7   :  { %v6051_v46 = vmul.f32 0.01, %v5977_v45  ;;  %v6790_v62 = vadd.f32 %v6789_v63, %v6788_v14  ;;  %v5878_v63 = vpop.permute.xlu0 %5877 }
 0x7b9   :  { %v6067_v24 = vmax.f32 %v5977_v45, %v6051_v46  ;;  %v5982_v32 = vadd.f32 %v6790_v62, %v5838_v56  ;;  %v6791_v49 = vpop.f32.mrb[62].mxu0 }
 0x7ba   :  { %v6792_v4 = vpop.f32.mrb[63].mxu0 }
 0x7bb   :  { %v6793_v60 = vadd.f32 %v6792_v4, %v6791_v49  ;;  %v7462_v17 = vpack.c.bf16 %v6067_v24, %v6066_v9  ;;  %v6052_v27 = vmul.f32 0.01, %v5982_v32  ;;  %v5883_v4 = vpop.permute.xlu1 %5882 }
 0x7bd   :  { %v5987_v37 = vadd.f32 %v6793_v60, %v5843_v7  ;;  %v6794_v21 = vpop.f32.mrb[64].mxu0  ;;  %7463 = vmatprep.subr.bf16.mxu0 %v7462_v17  ;;  %v6068_v42 = vmax.f32 %v5982_v32, %v6052_v27 }
 0x7be   :  { %v6795_v59 = vpop.f32.mrb[65].mxu0  ;;  %7465 = vmatpush3.bf16.msra.mxu0 %v7462_v17 }
 0x7bf   :  { %v6053_v16 = vmul.f32 0.01, %v5987_v37  ;;  %v6796_v36 = vadd.f32 %v6795_v59, %v6794_v21  ;;  %v5888_v59 = vpop.permute.xlu0 %5887 }
 0x7c1   :  { %v6069_v50 = vmax.f32 %v5987_v37, %v6053_v16  ;;  %v5992_v12 = vadd.f32 %v6796_v36, %v5848_v1  ;;  %v6797_v47 = vpop.f32.mrb[66].mxu0 }
 0x7c2   :  { %v6798_v41 = vpop.f32.mrb[67].mxu0 }
 0x7c3   :  { %v6799_v38 = vadd.f32 %v6798_v41, %v6797_v47  ;;  %v7466_v52 = vpack.c.bf16 %v6069_v50, %v6068_v42  ;;  %v6054_v30 = vmul.f32 0.01, %v5992_v12  ;;  %v5893_v41 = vpop.permute.xlu1 %5892 }
 0x7c5   :  { %v5997_v35 = vadd.f32 %v6799_v38, %v5853_v8  ;;  %v6800_v23 = vpop.f32.mrb[68].mxu0  ;;  %7467 = vmatprep.subr.bf16.mxu0 %v7466_v52  ;;  %v6070_v25 = vmax.f32 %v5992_v12, %v6054_v30 }
 0x7c6   :  { %v6801_v29 = vpop.f32.mrb[69].mxu0  ;;  %7469 = vmatpush3.bf16.msra.mxu0 %v7466_v52 }
 0x7c7   :  { %v6055_v55 = vmul.f32 0.01, %v5997_v35  ;;  %v6802_v18 = vadd.f32 %v6801_v29, %v6800_v23  ;;  %v5898_v29 = vpop.permute.xlu0 %5897 }
 0x7c9   :  { %v6071_v10 = vmax.f32 %v5997_v35, %v6055_v55  ;;  %v6002_v28 = vadd.f32 %v6802_v18, %v5858_v40  ;;  %v6803_v13 = vpop.f32.mrb[70].mxu0 }
 0x7ca   :  { %v6804_v39 = vpop.f32.mrb[71].mxu0 }
 0x7cb   :  { %v6805_v33 = vadd.f32 %v6804_v39, %v6803_v13  ;;  %v7470_v26 = vpack.c.bf16 %v6071_v10, %v6070_v25  ;;  %v6056_v11 = vmul.f32 0.01, %v6002_v28  ;;  %v5903_v39 = vpop.permute.xlu1 %5902 }
 0x7cd   :  { %v6007_v20 = vadd.f32 %v6805_v33, %v5863_v19  ;;  %v6806_v0 = vpop.f32.mrb[72].mxu0  ;;  %7471 = vmatprep.subr.bf16.mxu0 %v7470_v26  ;;  %v6072_v15 = vmax.f32 %v6002_v28, %v6056_v11 }
 0x7ce   :  { %v6807_v3 = vpop.f32.mrb[73].mxu0  ;;  %7473 = vmatpush3.bf16.msra.mxu0 %v7470_v26 }
 0x7cf   :  { %v6057_v6 = vmul.f32 0.01, %v6007_v20  ;;  %v6808_v44 = vadd.f32 %v6807_v3, %v6806_v0  ;;  %v6083_v3 = vld [vmem:[#allocation8 + $0x8] sm:$0xff] }
 0x7d1   :  { %v6073_v5 = vmax.f32 %v6007_v20, %v6057_v6  ;;  %v6012_v31 = vadd.f32 %v6808_v44, %v5868_v43  ;;  %v6809_v22 = vpop.f32.mrb[74].mxu0  ;;  %v6084_v6 = vld [vmem:[#allocation8 + $0x10] sm:$0xff]  ;;  %v6085_v44 = vld [vmem:[#allocation8 + $0x18] sm:$0xff]  ;;  %v6086_v43 = vld [vmem:[#allocation8 + $0x20] sm:$0xff] }
 0x7d2   :  { %v6810_v34 = vpop.f32.mrb[75].mxu0 }
 0x7d3   :  { %v6811_v51 = vadd.f32 %v6810_v34, %v6809_v22  ;;  %v7474_v57 = vpack.c.bf16 %v6073_v5, %v6072_v15  ;;  %v6058_v54 = vmul.f32 0.01, %v6012_v31  ;;  %v6087_v15 = vld [vmem:[#allocation8 + $0x28] sm:$0xff]  ;;  %v6088_v5 = vld [vmem:[#allocation8 + $0x30] sm:$0xff]  ;;  %v6259_v22 = vld [vmem:[#allocation10] sm:$0xff]  ;;  %v6106_v34 = vpop.permute.xlu1 %6105 }
 0x7d5   :  { %v6017_v48 = vadd.f32 %v6811_v51, %v5873_v61  ;;  %v6812_v2 = vpop.f32.mrb[76].mxu0  ;;  %7475 = vmatprep.subr.bf16.mxu0 %v7474_v57  ;;  %v6074_v46 = vmax.f32 %v6012_v31, %v6058_v54  ;;  %v6089_v31 = vld [vmem:[#allocation8 + $0x38] sm:$0xff]  ;;  %v6101_v51 = vpop.permute.xlu0 %6100 }
 0x7d6   :  { %v6813_v58 = vpop.f32.mrb[77].mxu0  ;;  %7477 = vmatpush3.bf16.msra.mxu0 %v7474_v57 }
 0x7d7   :  { %v6059_v45 = vmul.f32 0.01, %v6017_v48  ;;  %v6814_v14 = vadd.f32 %v6813_v58, %v6812_v2  ;;  %v6116_v57 = vpop.permute.xlu1 %6115 }
 0x7d9   :  { %v6075_v62 = vmax.f32 %v6017_v48, %v6059_v45  ;;  %v6022_v56 = vadd.f32 %v6814_v14, %v5878_v63  ;;  %v6815_v9 = vpop.f32.mrb[78].mxu0  ;;  %v6111_v54 = vpop.permute.xlu0 %6110 }
 0x7da   :  { %v6816_v24 = vpop.f32.mrb[79].mxu0 }
 0x7db   :  { %v6817_v32 = vadd.f32 %v6816_v24, %v6815_v9  ;;  %v7478_v49 = vpack.c.bf16 %v6075_v62, %v6074_v46  ;;  %v6060_v60 = vmul.f32 0.01, %v6022_v56  ;;  %v6126_v9 = vpop.permute.xlu1 %6125 }
 0x7dd   :  { %v6027_v17 = vadd.f32 %v6817_v32, %v5883_v4  ;;  %v6818_v7 = vpop.f32.mrb[80].mxu0  ;;  %7479 = vmatprep.subr.bf16.mxu0 %v7478_v49  ;;  %v6076_v16 = vmax.f32 %v6022_v56, %v6060_v60 }
 0x7de   :  { %v6819_v27 = vpop.f32.mrb[81].mxu0  ;;  %7481 = vmatpush3.bf16.msra.mxu0 %v7478_v49  ;;  %v6121_v49 = vpop.permute.xlu0 %6120 }
 0x7df   :  { %v6061_v37 = vmul.f32 0.01, %v6027_v17  ;;  %v6820_v21 = vadd.f32 %v6819_v27, %v6818_v7 }
 0x7e1   :  { %v6077_v36 = vmax.f32 %v6027_v17, %v6061_v37  ;;  %v6032_v1 = vadd.f32 %v6820_v21, %v5888_v59  ;;  %v6821_v42 = vpop.f32.mrb[82].mxu0 }
 0x7e2   :  { %v6822_v50 = vpop.f32.mrb[83].mxu0 }
 0x7e3   :  { %v6823_v12 = vadd.f32 %v6822_v50, %v6821_v42  ;;  %v7482_v47 = vpack.c.bf16 %v6077_v36, %v6076_v16  ;;  %v6062_v38 = vmul.f32 0.01, %v6032_v1 }
 0x7e5   :  { %v6037_v52 = vadd.f32 %v6823_v12, %v5893_v41  ;;  %v6824_v8 = vpop.f32.mrb[84].mxu0  ;;  %7483 = vmatprep.subr.bf16.mxu0 %v7482_v47  ;;  %v6078_v55 = vmax.f32 %v6032_v1, %v6062_v38  ;;  %v6136_v1 = vpop.permute.xlu1 %6135 }
 0x7e6   :  { %v6825_v30 = vpop.f32.mrb[85].mxu0  ;;  %7485 = vmatpush3.bf16.msra.mxu0 %v7482_v47  ;;  %v6131_v47 = vpop.permute.xlu0 %6130 }
 0x7e7   :  { %v6063_v35 = vmul.f32 0.01, %v6037_v52  ;;  %v6826_v23 = vadd.f32 %v6825_v30, %v6824_v8 }
 0x7e9   :  { %v6079_v18 = vmax.f32 %v6037_v52, %v6063_v35  ;;  %v6042_v40 = vadd.f32 %v6826_v23, %v5898_v29  ;;  %v6827_v25 = vpop.f32.mrb[86].mxu0 }
 0x7ea   :  { %v6828_v10 = vpop.f32.mrb[87].mxu0 }
 0x7eb   :  { %v6829_v28 = vadd.f32 %v6828_v10, %v6827_v25  ;;  %v7486_v13 = vpack.c.bf16 %v6079_v18, %v6078_v55  ;;  %v6064_v33 = vmul.f32 0.01, %v6042_v40  ;;  %v6260_v25 = vld [vmem:[#allocation10 + $0x8] sm:$0xff]  ;;  %v6261_v10 = vld [vmem:[#allocation10 + $0x10] sm:$0xff] }
 0x7ed   :  { %v6047_v26 = vadd.f32 %v6829_v28, %v5903_v39  ;;  %7487 = vmatprep.subr.bf16.mxu0 %v7486_v13  ;;  %v6080_v11 = vmax.f32 %v6042_v40, %v6064_v33  ;;  %v6262_v28 = vld [vmem:[#allocation10 + $0x18] sm:$0xff]  ;;  %v6275_v39 = vpop.permute.xlu1 %6274  ;;  %v6270_v33 = vpop.permute.xlu0 %6269 }
 0x7ee   :  { %7489 = vmatpush3.bf16.msra.mxu0 %v7486_v13  ;;  %v8209_v13 = vmov 0.0  }
 0x7ef   :  { %v6065_v19 = vmul.f32 0.01, %v6047_v26 }
 0x7f1   :  { %v6081_v20 = vmax.f32 %v6047_v26, %v6065_v19 }
 0x7f3   :  { %v7490_v0 = vpack.c.bf16 %v6081_v20, %v6080_v11 }
 0x7f5   :  { %7491 = vmatprep.subr.bf16.mxu0 %v7490_v0 }
 0x7f6   :  { %7493 = vmatpush3.bf16.msra.mxu0 %v7490_v0 }
 0x7f9   :  { %7098 = vmatmul.mubr.f32.vlgmr.msra.gmra.mrb[88].mxu0 %v6083_v3  ;;  %v6285_v3 = vpop.permute.xlu1 %6284 }
 0x7fa   :  { %7100 = vmatprep.mubr.f32.mxu0 %v6084_v6 }
 0x7fd   :  { %7101 = vmatmul.mubr.f32.gmra.mrb[90].mxu0 %v6085_v44 }
 0x7fe   :  { %7103 = vmatprep.mubr.f32.mxu0 %v6086_v43  ;;  %v6280_v43 = vpop.permute.xlu0 %6279 }
 0x801   :  { %7104 = vmatmul.mubr.f32.gmra.mrb[92].mxu0 %v6087_v15 }
 0x802   :  { %7106 = vmatprep.mubr.f32.mxu0 %v6088_v5 }
 0x805   :  { %7107 = vmatmul.mubr.f32.gmra.mrb[94].mxu0 %v6089_v31 }
 0x806   :  { %7125 = vmatprep.mubr.msk.f32.mxu0 %vm6287_vm2, %v6259_v22 }
 0x8cc   :  { %v7099_v61 = vpop.f32.mrb[88].mxu0 }
 0x8cd   :  { %v6210_v48 = vadd.f32 %v7099_v61, %v6106_v34  ;;  %v6204_v2 = vpop.f32.mrb[89].mxu0 }
 0x8ce   :  { %v6205_v58 = vadd.f32 %v6204_v2, %v6101_v51 }
 0x8cf   :  { %v6244_v45 = vmul.f32 0.01, %v6210_v48 }
 0x8d0   :  { %v6243_v14 = vmul.f32 0.01, %v6205_v58  ;;  %v7102_v63 = vpop.f32.mrb[90].mxu0 }
 0x8d1   :  { %v6252_v46 = vmax.f32 %v6210_v48, %v6244_v45  ;;  %v6220_v62 = vadd.f32 %v7102_v63, %v6116_v57  ;;  %v6214_v56 = vpop.f32.mrb[91].mxu0  ;;  %v6400_v45 = vlaneseq }
 0x8d2   :  { %v6251_v24 = vmax.f32 %v6205_v58, %v6243_v14  ;;  %v6215_v32 = vadd.f32 %v6214_v56, %v6111_v54  ;;  %v6393_v58 = vld [vmem:[#allocation11] sm:$0x1] }
 0x8d3   :  { %v6246_v4 = vmul.f32 0.01, %v6220_v62  ;;  %v6401_v14 = vshrl.u32 %v6400_v45, 7 }
 0x8d4   :  { %v6245_v60 = vmul.f32 0.01, %v6215_v32  ;;  %v7105_v17 = vpop.f32.mrb[92].mxu0  ;;  %v7494_v7 = vpack.c.bf16 %v6252_v46, %v6251_v24  ;;  %v6398_v46 = vpop.permute.xlu0 %6397 }
 0x8d5   :  { %v6254_v27 = vmax.f32 %v6220_v62, %v6246_v4  ;;  %v6230_v37 = vadd.f32 %v7105_v17, %v6126_v9  ;;  %v6224_v21 = vpop.f32.mrb[93].mxu0  ;;  %v6402_v63 = vsub.s32 0, %v6401_v14 }
 0x8d6   :  { %v6253_v59 = vmax.f32 %v6215_v32, %v6245_v60  ;;  %v6225_v16 = vadd.f32 %v6224_v21, %v6121_v49  ;;  %7495 = vmatprep.subr.bf16.mxu0 %v7494_v7 }
 0x8d7   :  { %v6248_v36 = vmul.f32 0.01, %v6230_v37  ;;  %7497 = vmatpush3.bf16.msra.mxu0 %v7494_v7  ;;  %v6403_v62 = vrot.slane %v6398_v46, %v6402_v63 }
 0x8d8   :  { %v6247_v42 = vmul.f32 0.01, %v6225_v16  ;;  %v7108_v50 = vpop.f32.mrb[94].mxu0  ;;  %v7498_v12 = vpack.c.bf16 %v6254_v27, %v6253_v59 }
 0x8d9   :  { %v6256_v41 = vmax.f32 %v6230_v37, %v6248_v36  ;;  %v6240_v38 = vadd.f32 %v7108_v50, %v6136_v1  ;;  %v6234_v52 = vpop.f32.mrb[95].mxu0 }
 0x8da   :  { %v6255_v8 = vmax.f32 %v6225_v16, %v6247_v42  ;;  %v6235_v30 = vadd.f32 %v6234_v52, %v6131_v47  ;;  %7499 = vmatprep.subr.bf16.mxu0 %v7498_v12 }
 0x8db   :  { %v6250_v35 = vmul.f32 0.01, %v6240_v38  ;;  %7501 = vmatpush3.bf16.msra.mxu0 %v7498_v12 }
 0x8dc   :  { %v6249_v23 = vmul.f32 0.01, %v6235_v30  ;;  %v7502_v29 = vpack.c.bf16 %v6256_v41, %v6255_v8 }
 0x8dd   :  { %v6258_v55 = vmax.f32 %v6240_v38, %v6250_v35 }
 0x8de   :  { %v6257_v18 = vmax.f32 %v6235_v30, %v6249_v23  ;;  %7503 = vmatprep.subr.bf16.mxu0 %v7502_v29 }
 0x8df   :  { %7505 = vmatpush3.bf16.msra.mxu0 %v7502_v29 }
 0x8e0   :  { %v7506_v40 = vpack.c.bf16 %v6258_v55, %v6257_v18 }
 0x8e2   :  { %7507 = vmatprep.subr.bf16.mxu0 %v7506_v40 }
 0x8e3   :  { %7509 = vmatpush3.bf16.msra.mxu0 %v7506_v40 }
 0x8e4   :  { %7510 = vmatprep.subr.bf16.mxu0 %v10606_v53 }
 0x8e6   :  { %7126 = vmatmul.mubr.msk.f32.vlgmr.msra.gmra.mrb[96].mxu0 %vm6287_vm2, %v6260_v25 }
 0x8e7   :  { %7128 = vmatprep.mubr.msk.f32.mxu0 %vm6287_vm2, %v6261_v10 }
 0x8ea   :  { %7129 = vmatmul.mubr.msk.f32.gmra.mrb[98].mxu0 %vm6287_vm2, %v6262_v28 }
 0x8eb   :  { %7139 = vmatprep.mubr.msk.f32.mxu0 %vm8208_vm3, %v8209_v13 }
 0x9b9   :  { %v7127_v26 = vpop.f32.mrb[96].mxu0 }
 0x9ba   :  { %v6372_v19 = vadd.f32 %v7127_v26, %v6275_v39  ;;  %v6366_v11 = vpop.f32.mrb[97].mxu0 }
 0x9bb   :  { %v6367_v20 = vadd.f32 %v6366_v11, %v6270_v33 }
 0x9bc   :  { %v6386_v0 = vmul.f32 0.01, %v6372_v19 }
 0x9bd   :  { %v6385_v6 = vmul.f32 0.01, %v6367_v20  ;;  %v7130_v44 = vpop.f32.mrb[98].mxu0 }
 0x9be   :  { %v6390_v15 = vmax.f32 %v6372_v19, %v6386_v0  ;;  %v6382_v5 = vadd.f32 %v7130_v44, %v6285_v3  ;;  %v6376_v31 = vpop.f32.mrb[99].mxu0 }
 0x9bf   :  { %v6389_v22 = vmax.f32 %v6367_v20, %v6385_v6  ;;  %v6377_v34 = vadd.f32 %v6376_v31, %v6280_v43 }
 0x9c0   :  { %v6388_v51 = vmul.f32 0.01, %v6382_v5 }
 0x9c1   :  { %v7511_v57 = vpack.c.bf16 %v6390_v15, %v6389_v22  ;;  %v6387_v61 = vmul.f32 0.01, %v6377_v34 }
 0x9c2   :  { %v6392_v54 = vmax.f32 %v6382_v5, %v6388_v51 }
 0x9c3   :  { %v6391_v48 = vmax.f32 %v6377_v34, %v6387_v61  ;;  %7512 = vmatpush3.bf16.msra.mxu0 %v7511_v57 }
 0x9c4   :  { %7513 = vmatprep.subr.bf16.mxu0 %v10606_v53 }
 0x9c5   :  { %v7514_v2 = vpack.c.bf16 %v6392_v54, %v6391_v48 }
 0x9c7   :  { %7515 = vmatpush3.bf16.msra.mxu0 %v7514_v2 }
 0x9ca   :  { %7140 = vmatmul.mubr.msk.f32.vlgmr.msra.gmra.mrb[100].mxu0 %vm6404_vm4, %v6393_v58 }
 0xa9d   :  { %v6474_v56 = vpop.f32.mrb[100].mxu0 }
 0xa9e   :  { %v6475_v9 = vadd.f32 %v6474_v56, %v6403_v62  ;;  %v7141_v24 = vpop.f32.mrb[101].mxu0 }
 0xaa0   :  { %6478 = vst [vmem:[%s10601_s15] sm:$0x1] %v6475_v9 }
 0xaa1   :  { %6483 = vsyncpa [#allocation4], 1 }
 0xaa2   :  { %6484 = vsyncpa [#allocation6], 1 }
 0xaa3   :  { %6485 = vsyncpa [#allocation9], 1 }
 0xaa4   :  { %6486 = vsyncpa [#allocation12], 1 }

</bundles_post_ra>
